<compile_context>
chip_gen: v5e
topology: v5e:2x2
jax: 0.10.0
libtpu: 0.0.40
codegen_flags: <defaults>
</compile_context>

<pallas_src>
import jax
import jax.numpy as jnp
from jax import lax
from jax.experimental import pallas as pl
from jax.experimental.pallas import tpu as pltpu

LANE = 128                      # batch tile width (lanes)
VMEM_LIMIT = 64 * 1024 * 1024   # raise scoped VMEM above 16/32 MiB defaults
UNROLL_T = 32                   # full static unroll below this, fori_loop above


def _compiler_params(sem):
    return pltpu.CompilerParams(dimension_semantics=sem,
                                vmem_limit_bytes=VMEM_LIMIT)


# ----------------------------------------------------------------------------
# Fused (input-projection + recurrence) kernel for one bidirectional layer.
# grid = (direction, batch-lane tile).  Layout: features on sublanes,
# batch on lanes -> gate slices are sublane blocks, stores are lane-dense.
# ----------------------------------------------------------------------------
def _make_layer_kernel(T, H, first):
    def kernel(len_ref, x_ref, *args):
        if first:
            w_ref, whh_ref, b_ref, out_ref = args
        else:
            wf_ref, wb_ref, whh_ref, b_ref, out_ref = args

        BB = out_ref.shape[-1]
        lengths = len_ref[...]                       # (1, BB) int32
        whh = whh_ref[0]                             # (4H, H)  compute dtype
        cd = whh.dtype                               # f32 or bf16 matmul dtype
        bias = b_ref[0].astype(jnp.float32)          # (4H, 1) broadcast on lanes
        if first:
            w_in = w_ref[0]                          # (4H, In)
        else:
            w_f = wf_ref[0]                          # (4H, H)
            w_b = wb_ref[0]                          # (4H, H)

        def step(t, h, c):
            # x-projection fused here: reads the VMEM-resident input block
            # directly (no xproj HBM round trip between kernels).
            if first:
                gx = jnp.dot(w_in, x_ref[t].astype(cd),
                             preferred_element_type=jnp.float32)
            else:
                gx = (jnp.dot(w_f, x_ref[0, t].astype(cd),
                              preferred_element_type=jnp.float32)
                      + jnp.dot(w_b, x_ref[1, t].astype(cd),
                                preferred_element_type=jnp.float32))
            g = gx + jnp.dot(whh, h.astype(cd),
                             preferred_element_type=jnp.float32) + bias
            # sublane-block gate slices (H % 8 == 0) -> no cross-lane shuffles
            i_g = jax.nn.sigmoid(g[0 * H:1 * H])
            f_g = jax.nn.sigmoid(g[1 * H:2 * H])
            g_g = jnp.tanh(g[2 * H:3 * H])
            o_g = jax.nn.sigmoid(g[3 * H:4 * H])
            c_new = f_g * c + i_g * g_g
            h_new = o_g * jnp.tanh(c_new)
            keep = t < lengths                        # packed-sequence mask
            out_ref[0, t] = jnp.where(keep, h_new, 0.0)   # lane-dense (H, BB)
            return jnp.where(keep, h_new, h), jnp.where(keep, c_new, c)

        h0 = jnp.zeros((H, BB), jnp.float32)
        c0 = jnp.zeros((H, BB), jnp.float32)

        if T <= UNROLL_T:
            # Static time indices; fwd / bwd split with pl.when so every
            # load/store address is static for the scheduler.
            @pl.when(pl.program_id(0) == 0)
            def _fwd():
                h, c = h0, c0
                for t in range(T):
                    h, c = step(t, h, c)

            @pl.when(pl.program_id(0) == 1)
            def _bwd():
                h, c = h0, c0
                for s in range(T):
                    h, c = step(T - 1 - s, h, c)
        else:
            # Large T: bound vreg live ranges / compile time.
            is_bwd = pl.program_id(0) == 1

            def body(s, hc):
                t = jnp.where(is_bwd, T - 1 - s, s)
                return step(t, *hc)

            lax.fori_loop(0, T, body, (h0, c0), unroll=4)

    return kernel


def _bilstm_layer(len_row, x, layer, *, T, H, first):
    Bl = x.shape[-1]
    nb = Bl // LANE
    G = 4 * H
    if first:
        In = x.shape[1]
        x_spec = pl.BlockSpec((T, In, LANE), lambda d, b: (0, 0, b))
        w_specs = [pl.BlockSpec((1, G, In), lambda d, b: (d, 0, 0))]
        w_args = [layer["w_in"]]
    else:
        x_spec = pl.BlockSpec((2, T, H, LANE), lambda d, b: (0, 0, 0, b))
        w_specs = [pl.BlockSpec((1, G, H), lambda d, b: (d, 0, 0)),
                   pl.BlockSpec((1, G, H), lambda d, b: (d, 0, 0))]
        w_args = [layer["w_in_f"], layer["w_in_b"]]

    in_specs = ([pl.BlockSpec((1, LANE), lambda d, b: (0, b)), x_spec]
                + w_specs
                + [pl.BlockSpec((1, G, H), lambda d, b: (d, 0, 0)),
                   pl.BlockSpec((1, G, 1), lambda d, b: (d, 0, 0))])

    return pl.pallas_call(
        _make_layer_kernel(T, H, first),
        out_shape=jax.ShapeDtypeStruct((2, T, H, Bl), jnp.float32),
        grid=(2, nb),
        in_specs=in_specs,
        out_specs=pl.BlockSpec((1, T, H, LANE), lambda d, b: (d, 0, 0, b)),
        compiler_params=_compiler_params(("parallel", "parallel")),
    )(len_row, x, *w_args, layer["whh"], layer["b"])


# ----------------------------------------------------------------------------
# Head: Linear -> ReLU -> Linear -> log_softmax, tiled over (T, batch lanes).
# Class axis on sublanes (padded to 8, pad rows get -1e30 bias), batch on
# lanes -> lane-dense stores.
# ----------------------------------------------------------------------------
def _head_kernel(x_ref, w1f_ref, w1b_ref, b1_ref, w2_ref, b2_ref, o_ref):
    w1f = w1f_ref[...]
    w1b = w1b_ref[...]
    w2 = w2_ref[...]
    cd = w1f.dtype
    hf = x_ref[0, 0].astype(cd)                       # (H, BB)
    hb = x_ref[1, 0].astype(cd)                       # (H, BB)
    h1 = (jnp.dot(w1f, hf, preferred_element_type=jnp.float32)
          + jnp.dot(w1b, hb, preferred_element_type=jnp.float32)
          + b1_ref[...])
    h1 = jnp.maximum(h1, 0.0)
    logits = (jnp.dot(w2, h1.astype(cd), preferred_element_type=jnp.float32)
              + b2_ref[...])                          # (Opad, BB), pad rows -1e30
    mx = jnp.max(logits, axis=0, keepdims=True)
    s = logits - mx
    lse = jnp.log(jnp.sum(jnp.exp(s), axis=0, keepdims=True))
    o_ref[0] = s - lse


def _head(lstm_out, params, *, T, H):
    Bl = lstm_out.shape[-1]
    nb = Bl // LANE
    G = 4 * H
    Opad = params["w2p"].shape[0]
    return pl.pallas_call(
        _head_kernel,
        out_shape=jax.ShapeDtypeStruct((T, Opad, Bl), jnp.float32),
        grid=(T, nb),
        in_specs=[pl.BlockSpec((2, 1, H, LANE), lambda t, b: (0, t, 0, b)),
                  pl.BlockSpec((G, H), lambda t, b: (0, 0)),
                  pl.BlockSpec((G, H), lambda t, b: (0, 0)),
                  pl.BlockSpec((G, 1), lambda t, b: (0, 0)),
                  pl.BlockSpec((Opad, G), lambda t, b: (0, 0)),
                  pl.BlockSpec((Opad, 1), lambda t, b: (0, 0))],
        out_specs=pl.BlockSpec((1, Opad, LANE), lambda t, b: (t, 0, b)),
        compiler_params=_compiler_params(("parallel", "parallel")),
    )(lstm_out, params["w1f"], params["w1b"], params["b1"],
      params["w2p"], params["b2p"])


# ----------------------------------------------------------------------------
# Model wrapper
# ----------------------------------------------------------------------------
def model_forward(params, X, lengths):
    T, B, _ = X.shape
    H = params["hidden_size"]
    O = params["output_size"]
    Bl = ((B + LANE - 1) // LANE) * LANE

    # Layout plumbing (outside kernels): batch on lanes, features on sublanes.
    x = jnp.transpose(X.astype(jnp.float32), (0, 2, 1))               # (T, In, B)
    x = jnp.pad(x, ((0, 0), (0, 0), (0, Bl - B)))
    len_row = jnp.pad(lengths.astype(jnp.int32)[None, :],
                      ((0, 0), (0, Bl - B)))                          # pads: len 0

    out = _bilstm_layer(len_row, x, params["lstm"][0], T=T, H=H, first=True)
    for layer in params["lstm"][1:]:
        out = _bilstm_layer(len_row, out, layer, T=T, H=H, first=False)

    logp = _head(out, params, T=T, H=H)                               # (T, Opad, Bl)
    logp = jnp.transpose(logp[:, :O, :B], (0, 2, 1))                  # (T, B, O)
    return logp, lengths                                              # (log-probs, out_lens)


# ----------------------------------------------------------------------------
# Parameters (PyTorch-compatible raw weights + kernel layouts)
# ----------------------------------------------------------------------------
def init_params(key, input_size, output_size, num_layers, hidden_size,
                compute_dtype=jnp.float32):
    H = hidden_size
    G = 4 * H

    def u(k, shape, scale):
        return jax.random.uniform(k, shape, jnp.float32, -scale, scale)

    k = key
    raw_layers = []
    layers = []
    for l in range(num_layers):
        in_l = input_size if l == 0 else 2 * H
        s = 1.0 / (H ** 0.5)
        raw = {}
        for d in ("fwd", "bwd"):
            k, k1, k2, k3, k4 = jax.random.split(k, 5)
            raw[d] = (u(k1, (G, in_l), s),   # W_ih
                      u(k2, (G, H), s),      # W_hh
                      u(k3, (G,), s),        # b_ih
                      u(k4, (G,), s))        # b_hh
        raw_layers.append(raw)
        wih_f, whh_f, bih_f, bhh_f = raw["fwd"]
        wih_b, whh_b, bih_b, bhh_b = raw["bwd"]
        layer = {
            "whh": jnp.stack([whh_f, whh_b]).astype(compute_dtype),     # (2,4H,H)
            "b": jnp.stack([(bih_f + bhh_f)[:, None],
                            (bih_b + bhh_b)[:, None]]),                 # (2,4H,1) f32
        }
        if l == 0:
            layer["w_in"] = jnp.stack([wih_f, wih_b]).astype(compute_dtype)       # (2,4H,In0)
        else:  # split columns so previous layer's fwd/bwd halves are used directly
            layer["w_in_f"] = jnp.stack([wih_f[:, :H], wih_b[:, :H]]).astype(compute_dtype)
            layer["w_in_b"] = jnp.stack([wih_f[:, H:], wih_b[:, H:]]).astype(compute_dtype)
        layers.append(layer)

    k, k1, k2, k3, k4 = jax.random.split(k, 5)
    s1 = 1.0 / ((2 * H) ** 0.5)
    s2 = 1.0 / ((4 * H) ** 0.5)
    W1 = u(k1, (G, 2 * H), s1)
    b1 = u(k2, (G,), s1)
    W2 = u(k3, (output_size, G), s2)
    b2 = u(k4, (output_size,), s2)

    Opad = ((output_size + 7) // 8) * 8                 # sublane-pad class axis
    w2p = jnp.zeros((Opad, G), jnp.float32).at[:output_size].set(W2)
    b2p = jnp.full((Opad, 1), -1e30, jnp.float32).at[:output_size, 0].set(b2)

    return {
        "hidden_size": H,
        "output_size": output_size,
        "lstm": layers,
        "w1f": W1[:, :H].astype(compute_dtype),
        "w1b": W1[:, H:].astype(compute_dtype),
        "b1": b1[:, None],                               # (4H,1) f32
        "w2p": w2p.astype(compute_dtype),                # (Opad,4H)
        "b2p": b2p,                                      # (Opad,1) f32
        "raw": {"lstm": raw_layers, "W1": W1, "b1": b1, "W2": W2, "b2": b2},
    }


# ----------------------------------------------------------------------------
# Pure-JAX reference (mirrors PyTorch packed-sequence semantics, f32)
# ----------------------------------------------------------------------------
def reference_forward(params, X, lengths):
    H = params["hidden_size"]
    T, B, _ = X.shape
    lengths = lengths.astype(jnp.int32)
    h_in = X.astype(jnp.float32)
    for raw in params["raw"]["lstm"]:
        outs = []
        for name, rev in (("fwd", False), ("bwd", True)):
            W_ih, W_hh, b_ih, b_hh = raw[name]
            h = jnp.zeros((B, H), jnp.float32)
            c = jnp.zeros((B, H), jnp.float32)
            out_seq = [None] * T
            order = range(T - 1, -1, -1) if rev else range(T)
            for t in order:
                gates = h_in[t] @ W_ih.T + h @ W_hh.T + b_ih + b_hh
                i = jax.nn.sigmoid(gates[:, 0 * H:1 * H])
                f = jax.nn.sigmoid(gates[:, 1 * H:2 * H])
                g = jnp.tanh(gates[:, 2 * H:3 * H])
                o = jax.nn.sigmoid(gates[:, 3 * H:4 * H])
                c_new = f * c + i * g
                h_new = o * jnp.tanh(c_new)
                keep = (t < lengths)[:, None]
                c = jnp.where(keep, c_new, c)
                h = jnp.where(keep, h_new, h)
                out_seq[t] = jnp.where(keep, h_new, 0.0)
            outs.append(jnp.stack(out_seq, axis=0))
        h_in = jnp.concatenate(outs, axis=-1)
    r = params["raw"]
    hid = jnp.maximum(h_in @ r["W1"].T + r["b1"], 0.0)
    logits = hid @ r["W2"].T + r["b2"]
    return jax.nn.log_softmax(logits, axis=-1)


if __name__ == "__main__":
    input_size, output_size, num_layers, hidden_size = 8, 10, 2, 16
    T, B = 8, 3

    key = jax.random.PRNGKey(0)
    kp, kx = jax.random.split(key)
    X = jax.random.normal(kx, (T, B, input_size), jnp.float32)
    lengths = jnp.array([8, 5, 3], dtype=jnp.int32)      # max length == T

    # ---- f32 path (tight correctness check against PyTorch-semantics ref) ---
    params = init_params(kp, input_size, output_size, num_layers, hidden_size)
    out, out_lens = model_forward(params, X, lengths)
    out = jax.block_until_ready(out)

    assert out.shape == (T, B, output_size)
    assert out_lens.shape == (B,)
    assert bool(jnp.all(jnp.isfinite(out)))
    assert bool(jnp.allclose(jnp.exp(out).sum(axis=2), 1.0, atol=1e-4))
    ref = reference_forward(params, X, lengths)
    err = float(jnp.max(jnp.abs(out - ref)))
    assert bool(jnp.allclose(out, ref, atol=2e-4, rtol=2e-4)), err

    # ---- bf16 MXU path (weights + matmul operands bf16, f32 accumulation) ---
    params_bf16 = init_params(kp, input_size, output_size, num_layers,
                              hidden_size, compute_dtype=jnp.bfloat16)
    out16, _ = model_forward(params_bf16, X, lengths)
    out16 = jax.block_until_ready(out16)
    assert bool(jnp.all(jnp.isfinite(out16)))
    assert bool(jnp.allclose(jnp.exp(out16).sum(axis=2), 1.0, atol=1e-3))
    assert bool(jnp.allclose(out16, ref, atol=1e-1, rtol=1e-1))

    print("KERNEL_OK")
</pallas_src>

<mosaic_0001>
module attributes {stable_mosaic.version = 11 : i64} {
  func.func @kernel(%arg0: i32, %arg1: i32, %arg2: memref<1x128xi32, #tpu.memory_space<vmem>>, %arg3: memref<8x8x128xf32, #tpu.memory_space<vmem>>, %arg4: memref<1x64x8xf32, #tpu.memory_space<vmem>>, %arg5: memref<1x64x16xf32, #tpu.memory_space<vmem>>, %arg6: memref<1x64x1xf32, #tpu.memory_space<vmem>>, %arg7: memref<1x8x16x128xf32, #tpu.memory_space<vmem>>) attributes {dimension_semantics = [#tpu.dimension_semantics<parallel>, #tpu.dimension_semantics<parallel>], iteration_bounds = array<i64: 2, 1>, scalar_prefetch = 0 : i64, scratch_operands = 0 : i64, tpu.core_type = #tpu.core_type<tc>, window_params = [{transform_indices = @transform_0, window_bounds = array<i64: 1, 128>}, {transform_indices = @transform_1, window_bounds = array<i64: 8, 8, 128>}, {transform_indices = @transform_2, window_bounds = array<i64: 1, 64, 8>}, {transform_indices = @transform_3, window_bounds = array<i64: 1, 64, 16>}, {transform_indices = @transform_4, window_bounds = array<i64: 1, 64, 1>}, {transform_indices = @transform_5, window_bounds = array<i64: 1, 8, 16, 128>}]} {
    %c0 = arith.constant 0 : index
    %c0_0 = arith.constant 0 : index
    %0 = vector.load %arg2[%c0, %c0_0] : memref<1x128xi32, #tpu.memory_space<vmem>>, vector<1x128xi32>
    %c0_1 = arith.constant 0 : index
    %c0_2 = arith.constant 0 : index
    %c0_3 = arith.constant 0 : index
    %1 = vector.load %arg5[%c0_1, %c0_2, %c0_3] : memref<1x64x16xf32, #tpu.memory_space<vmem>>, vector<1x64x16xf32>
    %2 = vector.shape_cast %1 : vector<1x64x16xf32> to vector<64x16xf32>
    %c0_4 = arith.constant 0 : index
    %c0_5 = arith.constant 0 : index
    %c0_6 = arith.constant 0 : index
    %3 = vector.load %arg6[%c0_4, %c0_5, %c0_6] : memref<1x64x1xf32, #tpu.memory_space<vmem>>, vector<1x64x1xf32>
    %4 = vector.shape_cast %3 : vector<1x64x1xf32> to vector<64x1xf32>
    %c0_7 = arith.constant 0 : index
    %c0_8 = arith.constant 0 : index
    %c0_9 = arith.constant 0 : index
    %5 = vector.load %arg4[%c0_7, %c0_8, %c0_9] : memref<1x64x8xf32, #tpu.memory_space<vmem>>, vector<1x64x8xf32>
    %6 = vector.shape_cast %5 : vector<1x64x8xf32> to vector<64x8xf32>
    %cst = arith.constant 0.000000e+00 : f32
    %7 = vector.broadcast %cst : f32 to vector<16x128xf32>
    %cst_10 = arith.constant 0.000000e+00 : f32
    %8 = vector.broadcast %cst_10 : f32 to vector<16x128xf32>
    %c0_i32 = arith.constant 0 : i32
    %9 = arith.cmpi eq, %arg0, %c0_i32 : i32
    %10 = arith.extui %9 : i1 to i32
    %c0_i32_11 = arith.constant 0 : i32
    %11 = arith.cmpi ne, %10, %c0_i32_11 : i32
    scf.if %11 {
      %c0_13 = arith.constant 0 : index
      %c0_14 = arith.constant 0 : index
      %c0_15 = arith.constant 0 : index
      %15 = vector.load %arg3[%c0_13, %c0_14, %c0_15] : memref<8x8x128xf32, #tpu.memory_space<vmem>>, vector<1x8x128xf32>
      %16 = vector.shape_cast %15 : vector<1x8x128xf32> to vector<8x128xf32>
      %cst_16 = arith.constant dense<0.000000e+00> : vector<64x128xf32>
      %17 = tpu.matmul %6, %16, %cst_16 {dimension_numbers = #tpu.dot_dimension_numbers<[1], [0], [0], [1], [0, 0, 1, 1], [], []>} : vector<64x8xf32>, vector<8x128xf32>, vector<64x128xf32> -> vector<64x128xf32>
      %cst_17 = arith.constant dense<0.000000e+00> : vector<64x128xf32>
      %18 = tpu.matmul %2, %7, %cst_17 {dimension_numbers = #tpu.dot_dimension_numbers<[1], [0], [0], [1], [0, 0, 1, 1], [], []>} : vector<64x16xf32>, vector<16x128xf32>, vector<64x128xf32> -> vector<64x128xf32>
      %19 = arith.addf %17, %18 : vector<64x128xf32>
      %20 = vector.broadcast %4 : vector<64x1xf32> to vector<64x128xf32>
      %21 = arith.addf %19, %20 : vector<64x128xf32>
      %22 = vector.extract_strided_slice %21 {offsets = [0, 0], sizes = [16, 128], strides = [1, 1]} : vector<64x128xf32> to vector<16x128xf32>
      %23 = arith.negf %22 : vector<16x128xf32>
      %24 = math.exp %23 : vector<16x128xf32>
      %cst_18 = arith.constant 1.000000e+00 : f32
      %25 = vector.broadcast %cst_18 : f32 to vector<16x128xf32>
      %26 = arith.addf %25, %24 : vector<16x128xf32>
      %27 = arith.divf %25, %26 : vector<16x128xf32>
      %28 = vector.extract_strided_slice %21 {offsets = [16, 0], sizes = [16, 128], strides = [1, 1]} : vector<64x128xf32> to vector<16x128xf32>
      %29 = arith.negf %28 : vector<16x128xf32>
      %30 = math.exp %29 : vector<16x128xf32>
      %cst_19 = arith.constant 1.000000e+00 : f32
      %31 = vector.broadcast %cst_19 : f32 to vector<16x128xf32>
      %32 = arith.addf %31, %30 : vector<16x128xf32>
      %33 = arith.divf %31, %32 : vector<16x128xf32>
      %34 = vector.extract_strided_slice %21 {offsets = [32, 0], sizes = [16, 128], strides = [1, 1]} : vector<64x128xf32> to vector<16x128xf32>
      %35 = math.tanh %34 : vector<16x128xf32>
      %36 = vector.extract_strided_slice %21 {offsets = [48, 0], sizes = [16, 128], strides = [1, 1]} : vector<64x128xf32> to vector<16x128xf32>
      %37 = arith.negf %36 : vector<16x128xf32>
      %38 = math.exp %37 : vector<16x128xf32>
      %cst_20 = arith.constant 1.000000e+00 : f32
      %39 = vector.broadcast %cst_20 : f32 to vector<16x128xf32>
      %40 = arith.addf %39, %38 : vector<16x128xf32>
      %41 = arith.divf %39, %40 : vector<16x128xf32>
      %42 = arith.mulf %33, %8 : vector<16x128xf32>
      %43 = arith.mulf %27, %35 : vector<16x128xf32>
      %44 = arith.addf %42, %43 : vector<16x128xf32>
      %45 = math.tanh %44 : vector<16x128xf32>
      %46 = arith.mulf %41, %45 : vector<16x128xf32>
      %c0_i32_21 = arith.constant 0 : i32
      %47 = vector.broadcast %c0_i32_21 : i32 to vector<1x128xi32>
      %48 = arith.cmpi sgt, %0, %47 : vector<1x128xi32>
      %cst_22 = arith.constant 0.000000e+00 : f32
      %49 = vector.shape_cast %48 : vector<1x128xi1> to vector<1x128xi1>
      %50 = vector.broadcast %49 : vector<1x128xi1> to vector<16x128xi1>
      %51 = vector.broadcast %cst_22 : f32 to vector<16x128xf32>
      %52 = arith.select %50, %46, %51 : vector<16x128xi1>, vector<16x128xf32>
      %c0_23 = arith.constant 0 : index
      %c0_24 = arith.constant 0 : index
      %c0_25 = arith.constant 0 : index
      %c0_26 = arith.constant 0 : index
      %53 = vector.load %arg7[%c0_23, %c0_24, %c0_25, %c0_26] : memref<1x8x16x128xf32, #tpu.memory_space<vmem>>, vector<1x1x16x128xf32>
      %54 = vector.shape_cast %53 : vector<1x1x16x128xf32> to vector<16x128xf32>
      %55 = vector.shape_cast %52 : vector<16x128xf32> to vector<1x1x16x128xf32>
      tpu.vector_store %arg7[%c0_23, %c0_24, %c0_25, %c0_26], %55 {strides = array<i32>} : memref<1x8x16x128xf32, #tpu.memory_space<vmem>>, vector<1x1x16x128xf32>,
      %56 = vector.shape_cast %48 : vector<1x128xi1> to vector<1x128xi1>
      %57 = vector.broadcast %56 : vector<1x128xi1> to vector<16x128xi1>
      %58 = arith.select %57, %46, %7 : vector<16x128xi1>, vector<16x128xf32>
      %59 = vector.shape_cast %48 : vector<1x128xi1> to vector<1x128xi1>
      %60 = vector.broadcast %59 : vector<1x128xi1> to vector<16x128xi1>
      %61 = arith.select %60, %44, %8 : vector<16x128xi1>, vector<16x128xf32>
      %c1 = arith.constant 1 : index
      %c0_27 = arith.constant 0 : index
      %c0_28 = arith.constant 0 : index
      %62 = vector.load %arg3[%c1, %c0_27, %c0_28] : memref<8x8x128xf32, #tpu.memory_space<vmem>>, vector<1x8x128xf32>
      %63 = vector.shape_cast %62 : vector<1x8x128xf32> to vector<8x128xf32>
      %cst_29 = arith.constant dense<0.000000e+00> : vector<64x128xf32>
      %64 = tpu.matmul %6, %63, %cst_29 {dimension_numbers = #tpu.dot_dimension_numbers<[1], [0], [0], [1], [0, 0, 1, 1], [], []>} : vector<64x8xf32>, vector<8x128xf32>, vector<64x128xf32> -> vector<64x128xf32>
      %cst_30 = arith.constant dense<0.000000e+00> : vector<64x128xf32>
      %65 = tpu.matmul %2, %58, %cst_30 {dimension_numbers = #tpu.dot_dimension_numbers<[1], [0], [0], [1], [0, 0, 1, 1], [], []>} : vector<64x16xf32>, vector<16x128xf32>, vector<64x128xf32> -> vector<64x128xf32>
      %66 = arith.addf %64, %65 : vector<64x128xf32>
      %67 = vector.broadcast %4 : vector<64x1xf32> to vector<64x128xf32>
      %68 = arith.addf %66, %67 : vector<64x128xf32>
      %69 = vector.extract_strided_slice %68 {offsets = [0, 0], sizes = [16, 128], strides = [1, 1]} : vector<64x128xf32> to vector<16x128xf32>
      %70 = arith.negf %69 : vector<16x128xf32>
      %71 = math.exp %70 : vector<16x128xf32>
      %cst_31 = arith.constant 1.000000e+00 : f32
      %72 = vector.broadcast %cst_31 : f32 to vector<16x128xf32>
      %73 = arith.addf %72, %71 : vector<16x128xf32>
      %74 = arith.divf %72, %73 : vector<16x128xf32>
      %75 = vector.extract_strided_slice %68 {offsets = [16, 0], sizes = [16, 128], strides = [1, 1]} : vector<64x128xf32> to vector<16x128xf32>
      %76 = arith.negf %75 : vector<16x128xf32>
      %77 = math.exp %76 : vector<16x128xf32>
      %cst_32 = arith.constant 1.000000e+00 : f32
      %78 = vector.broadcast %cst_32 : f32 to vector<16x128xf32>
      %79 = arith.addf %78, %77 : vector<16x128xf32>
      %80 = arith.divf %78, %79 : vector<16x128xf32>
      %81 = vector.extract_strided_slice %68 {offsets = [32, 0], sizes = [16, 128], strides = [1, 1]} : vector<64x128xf32> to vector<16x128xf32>
      %82 = math.tanh %81 : vector<16x128xf32>
      %83 = vector.extract_strided_slice %68 {offsets = [48, 0], sizes = [16, 128], strides = [1, 1]} : vector<64x128xf32> to vector<16x128xf32>
      %84 = arith.negf %83 : vector<16x128xf32>
      %85 = math.exp %84 : vector<16x128xf32>
      %cst_33 = arith.constant 1.000000e+00 : f32
      %86 = vector.broadcast %cst_33 : f32 to vector<16x128xf32>
      %87 = arith.addf %86, %85 : vector<16x128xf32>
      %88 = arith.divf %86, %87 : vector<16x128xf32>
      %89 = arith.mulf %80, %61 : vector<16x128xf32>
      %90 = arith.mulf %74, %82 : vector<16x128xf32>
      %91 = arith.addf %89, %90 : vector<16x128xf32>
      %92 = math.tanh %91 : vector<16x128xf32>
      %93 = arith.mulf %88, %92 : vector<16x128xf32>
      %c1_i32_34 = arith.constant 1 : i32
      %94 = vector.broadcast %c1_i32_34 : i32 to vector<1x128xi32>
      %95 = arith.cmpi sgt, %0, %94 : vector<1x128xi32>
      %cst_35 = arith.constant 0.000000e+00 : f32
      %96 = vector.shape_cast %95 : vector<1x128xi1> to vector<1x128xi1>
      %97 = vector.broadcast %96 : vector<1x128xi1> to vector<16x128xi1>
      %98 = vector.broadcast %cst_35 : f32 to vector<16x128xf32>
      %99 = arith.select %97, %93, %98 : vector<16x128xi1>, vector<16x128xf32>
      %c0_36 = arith.constant 0 : index
      %c1_37 = arith.constant 1 : index
      %c0_38 = arith.constant 0 : index
      %c0_39 = arith.constant 0 : index
      %100 = vector.load %arg7[%c0_36, %c1_37, %c0_38, %c0_39] : memref<1x8x16x128xf32, #tpu.memory_space<vmem>>, vector<1x1x16x128xf32>
      %101 = vector.shape_cast %100 : vector<1x1x16x128xf32> to vector<16x128xf32>
      %102 = vector.shape_cast %99 : vector<16x128xf32> to vector<1x1x16x128xf32>
      tpu.vector_store %arg7[%c0_36, %c1_37, %c0_38, %c0_39], %102 {strides = array<i32>} : memref<1x8x16x128xf32, #tpu.memory_space<vmem>>, vector<1x1x16x128xf32>,
      %103 = vector.shape_cast %95 : vector<1x128xi1> to vector<1x128xi1>
      %104 = vector.broadcast %103 : vector<1x128xi1> to vector<16x128xi1>
      %105 = arith.select %104, %93, %58 : vector<16x128xi1>, vector<16x128xf32>
      %106 = vector.shape_cast %95 : vector<1x128xi1> to vector<1x128xi1>
      %107 = vector.broadcast %106 : vector<1x128xi1> to vector<16x128xi1>
      %108 = arith.select %107, %91, %61 : vector<16x128xi1>, vector<16x128xf32>
      %c2 = arith.constant 2 : index
      %c0_40 = arith.constant 0 : index
      %c0_41 = arith.constant 0 : index
      %109 = vector.load %arg3[%c2, %c0_40, %c0_41] : memref<8x8x128xf32, #tpu.memory_space<vmem>>, vector<1x8x128xf32>
      %110 = vector.shape_cast %109 : vector<1x8x128xf32> to vector<8x128xf32>
      %cst_42 = arith.constant dense<0.000000e+00> : vector<64x128xf32>
      %111 = tpu.matmul %6, %110, %cst_42 {dimension_numbers = #tpu.dot_dimension_numbers<[1], [0], [0], [1], [0, 0, 1, 1], [], []>} : vector<64x8xf32>, vector<8x128xf32>, vector<64x128xf32> -> vector<64x128xf32>
      %cst_43 = arith.constant dense<0.000000e+00> : vector<64x128xf32>
      %112 = tpu.matmul %2, %105, %cst_43 {dimension_numbers = #tpu.dot_dimension_numbers<[1], [0], [0], [1], [0, 0, 1, 1], [], []>} : vector<64x16xf32>, vector<16x128xf32>, vector<64x128xf32> -> vector<64x128xf32>
      %113 = arith.addf %111, %112 : vector<64x128xf32>
      %114 = vector.broadcast %4 : vector<64x1xf32> to vector<64x128xf32>
      %115 = arith.addf %113, %114 : vector<64x128xf32>
      %116 = vector.extract_strided_slice %115 {offsets = [0, 0], sizes = [16, 128], strides = [1, 1]} : vector<64x128xf32> to vector<16x128xf32>
      %117 = arith.negf %116 : vector<16x128xf32>
      %118 = math.exp %117 : vector<16x128xf32>
      %cst_44 = arith.constant 1.000000e+00 : f32
      %119 = vector.broadcast %cst_44 : f32 to vector<16x128xf32>
      %120 = arith.addf %119, %118 : vector<16x128xf32>
      %121 = arith.divf %119, %120 : vector<16x128xf32>
      %122 = vector.extract_strided_slice %115 {offsets = [16, 0], sizes = [16, 128], strides = [1, 1]} : vector<64x128xf32> to vector<16x128xf32>
      %123 = arith.negf %122 : vector<16x128xf32>
      %124 = math.exp %123 : vector<16x128xf32>
      %cst_45 = arith.constant 1.000000e+00 : f32
      %125 = vector.broadcast %cst_45 : f32 to vector<16x128xf32>
      %126 = arith.addf %125, %124 : vector<16x128xf32>
      %127 = arith.divf %125, %126 : vector<16x128xf32>
      %128 = vector.extract_strided_slice %115 {offsets = [32, 0], sizes = [16, 128], strides = [1, 1]} : vector<64x128xf32> to vector<16x128xf32>
      %129 = math.tanh %128 : vector<16x128xf32>
      %130 = vector.extract_strided_slice %115 {offsets = [48, 0], sizes = [16, 128], strides = [1, 1]} : vector<64x128xf32> to vector<16x128xf32>
      %131 = arith.negf %130 : vector<16x128xf32>
      %132 = math.exp %131 : vector<16x128xf32>
      %cst_46 = arith.constant 1.000000e+00 : f32
      %133 = vector.broadcast %cst_46 : f32 to vector<16x128xf32>
      %134 = arith.addf %133, %132 : vector<16x128xf32>
      %135 = arith.divf %133, %134 : vector<16x128xf32>
      %136 = arith.mulf %127, %108 : vector<16x128xf32>
      %137 = arith.mulf %121, %129 : vector<16x128xf32>
      %138 = arith.addf %136, %137 : vector<16x128xf32>
      %139 = math.tanh %138 : vector<16x128xf32>
      %140 = arith.mulf %135, %139 : vector<16x128xf32>
      %c2_i32 = arith.constant 2 : i32
      %141 = vector.broadcast %c2_i32 : i32 to vector<1x128xi32>
      %142 = arith.cmpi sgt, %0, %141 : vector<1x128xi32>
      %cst_47 = arith.constant 0.000000e+00 : f32
      %143 = vector.shape_cast %142 : vector<1x128xi1> to vector<1x128xi1>
      %144 = vector.broadcast %143 : vector<1x128xi1> to vector<16x128xi1>
      %145 = vector.broadcast %cst_47 : f32 to vector<16x128xf32>
      %146 = arith.select %144, %140, %145 : vector<16x128xi1>, vector<16x128xf32>
      %c0_48 = arith.constant 0 : index
      %c2_49 = arith.constant 2 : index
      %c0_50 = arith.constant 0 : index
      %c0_51 = arith.constant 0 : index
      %147 = vector.load %arg7[%c0_48, %c2_49, %c0_50, %c0_51] : memref<1x8x16x128xf32, #tpu.memory_space<vmem>>, vector<1x1x16x128xf32>
      %148 = vector.shape_cast %147 : vector<1x1x16x128xf32> to vector<16x128xf32>
      %149 = vector.shape_cast %146 : vector<16x128xf32> to vector<1x1x16x128xf32>
      tpu.vector_store %arg7[%c0_48, %c2_49, %c0_50, %c0_51], %149 {strides = array<i32>} : memref<1x8x16x128xf32, #tpu.memory_space<vmem>>, vector<1x1x16x128xf32>,
      %150 = vector.shape_cast %142 : vector<1x128xi1> to vector<1x128xi1>
      %151 = vector.broadcast %150 : vector<1x128xi1> to vector<16x128xi1>
      %152 = arith.select %151, %140, %105 : vector<16x128xi1>, vector<16x128xf32>
      %153 = vector.shape_cast %142 : vector<1x128xi1> to vector<1x128xi1>
      %154 = vector.broadcast %153 : vector<1x128xi1> to vector<16x128xi1>
      %155 = arith.select %154, %138, %108 : vector<16x128xi1>, vector<16x128xf32>
      %c3 = arith.constant 3 : index
      %c0_52 = arith.constant 0 : index
      %c0_53 = arith.constant 0 : index
      %156 = vector.load %arg3[%c3, %c0_52, %c0_53] : memref<8x8x128xf32, #tpu.memory_space<vmem>>, vector<1x8x128xf32>
      %157 = vector.shape_cast %156 : vector<1x8x128xf32> to vector<8x128xf32>
      %cst_54 = arith.constant dense<0.000000e+00> : vector<64x128xf32>
      %158 = tpu.matmul %6, %157, %cst_54 {dimension_numbers = #tpu.dot_dimension_numbers<[1], [0], [0], [1], [0, 0, 1, 1], [], []>} : vector<64x8xf32>, vector<8x128xf32>, vector<64x128xf32> -> vector<64x128xf32>
      %cst_55 = arith.constant dense<0.000000e+00> : vector<64x128xf32>
      %159 = tpu.matmul %2, %152, %cst_55 {dimension_numbers = #tpu.dot_dimension_numbers<[1], [0], [0], [1], [0, 0, 1, 1], [], []>} : vector<64x16xf32>, vector<16x128xf32>, vector<64x128xf32> -> vector<64x128xf32>
      %160 = arith.addf %158, %159 : vector<64x128xf32>
      %161 = vector.broadcast %4 : vector<64x1xf32> to vector<64x128xf32>
      %162 = arith.addf %160, %161 : vector<64x128xf32>
      %163 = vector.extract_strided_slice %162 {offsets = [0, 0], sizes = [16, 128], strides = [1, 1]} : vector<64x128xf32> to vector<16x128xf32>
      %164 = arith.negf %163 : vector<16x128xf32>
      %165 = math.exp %164 : vector<16x128xf32>
      %cst_56 = arith.constant 1.000000e+00 : f32
      %166 = vector.broadcast %cst_56 : f32 to vector<16x128xf32>
      %167 = arith.addf %166, %165 : vector<16x128xf32>
      %168 = arith.divf %166, %167 : vector<16x128xf32>
      %169 = vector.extract_strided_slice %162 {offsets = [16, 0], sizes = [16, 128], strides = [1, 1]} : vector<64x128xf32> to vector<16x128xf32>
      %170 = arith.negf %169 : vector<16x128xf32>
      %171 = math.exp %170 : vector<16x128xf32>
      %cst_57 = arith.constant 1.000000e+00 : f32
      %172 = vector.broadcast %cst_57 : f32 to vector<16x128xf32>
      %173 = arith.addf %172, %171 : vector<16x128xf32>
      %174 = arith.divf %172, %173 : vector<16x128xf32>
      %175 = vector.extract_strided_slice %162 {offsets = [32, 0], sizes = [16, 128], strides = [1, 1]} : vector<64x128xf32> to vector<16x128xf32>
      %176 = math.tanh %175 : vector<16x128xf32>
      %177 = vector.extract_strided_slice %162 {offsets = [48, 0], sizes = [16, 128], strides = [1, 1]} : vector<64x128xf32> to vector<16x128xf32>
      %178 = arith.negf %177 : vector<16x128xf32>
      %179 = math.exp %178 : vector<16x128xf32>
      %cst_58 = arith.constant 1.000000e+00 : f32
      %180 = vector.broadcast %cst_58 : f32 to vector<16x128xf32>
      %181 = arith.addf %180, %179 : vector<16x128xf32>
      %182 = arith.divf %180, %181 : vector<16x128xf32>
      %183 = arith.mulf %174, %155 : vector<16x128xf32>
      %184 = arith.mulf %168, %176 : vector<16x128xf32>
      %185 = arith.addf %183, %184 : vector<16x128xf32>
      %186 = math.tanh %185 : vector<16x128xf32>
      %187 = arith.mulf %182, %186 : vector<16x128xf32>
      %c3_i32 = arith.constant 3 : i32
      %188 = vector.broadcast %c3_i32 : i32 to vector<1x128xi32>
      %189 = arith.cmpi sgt, %0, %188 : vector<1x128xi32>
      %cst_59 = arith.constant 0.000000e+00 : f32
      %190 = vector.shape_cast %189 : vector<1x128xi1> to vector<1x128xi1>
      %191 = vector.broadcast %190 : vector<1x128xi1> to vector<16x128xi1>
      %192 = vector.broadcast %cst_59 : f32 to vector<16x128xf32>
      %193 = arith.select %191, %187, %192 : vector<16x128xi1>, vector<16x128xf32>
      %c0_60 = arith.constant 0 : index
      %c3_61 = arith.constant 3 : index
      %c0_62 = arith.constant 0 : index
      %c0_63 = arith.constant 0 : index
      %194 = vector.load %arg7[%c0_60, %c3_61, %c0_62, %c0_63] : memref<1x8x16x128xf32, #tpu.memory_space<vmem>>, vector<1x1x16x128xf32>
      %195 = vector.shape_cast %194 : vector<1x1x16x128xf32> to vector<16x128xf32>
      %196 = vector.shape_cast %193 : vector<16x128xf32> to vector<1x1x16x128xf32>
      tpu.vector_store %arg7[%c0_60, %c3_61, %c0_62, %c0_63], %196 {strides = array<i32>} : memref<1x8x16x128xf32, #tpu.memory_space<vmem>>, vector<1x1x16x128xf32>,
      %197 = vector.shape_cast %189 : vector<1x128xi1> to vector<1x128xi1>
      %198 = vector.broadcast %197 : vector<1x128xi1> to vector<16x128xi1>
      %199 = arith.select %198, %187, %152 : vector<16x128xi1>, vector<16x128xf32>
      %200 = vector.shape_cast %189 : vector<1x128xi1> to vector<1x128xi1>
      %201 = vector.broadcast %200 : vector<1x128xi1> to vector<16x128xi1>
      %202 = arith.select %201, %185, %155 : vector<16x128xi1>, vector<16x128xf32>
      %c4 = arith.constant 4 : index
      %c0_64 = arith.constant 0 : index
      %c0_65 = arith.constant 0 : index
      %203 = vector.load %arg3[%c4, %c0_64, %c0_65] : memref<8x8x128xf32, #tpu.memory_space<vmem>>, vector<1x8x128xf32>
      %204 = vector.shape_cast %203 : vector<1x8x128xf32> to vector<8x128xf32>
      %cst_66 = arith.constant dense<0.000000e+00> : vector<64x128xf32>
      %205 = tpu.matmul %6, %204, %cst_66 {dimension_numbers = #tpu.dot_dimension_numbers<[1], [0], [0], [1], [0, 0, 1, 1], [], []>} : vector<64x8xf32>, vector<8x128xf32>, vector<64x128xf32> -> vector<64x128xf32>
      %cst_67 = arith.constant dense<0.000000e+00> : vector<64x128xf32>
      %206 = tpu.matmul %2, %199, %cst_67 {dimension_numbers = #tpu.dot_dimension_numbers<[1], [0], [0], [1], [0, 0, 1, 1], [], []>} : vector<64x16xf32>, vector<16x128xf32>, vector<64x128xf32> -> vector<64x128xf32>
      %207 = arith.addf %205, %206 : vector<64x128xf32>
      %208 = vector.broadcast %4 : vector<64x1xf32> to vector<64x128xf32>
      %209 = arith.addf %207, %208 : vector<64x128xf32>
      %210 = vector.extract_strided_slice %209 {offsets = [0, 0], sizes = [16, 128], strides = [1, 1]} : vector<64x128xf32> to vector<16x128xf32>
      %211 = arith.negf %210 : vector<16x128xf32>
      %212 = math.exp %211 : vector<16x128xf32>
      %cst_68 = arith.constant 1.000000e+00 : f32
      %213 = vector.broadcast %cst_68 : f32 to vector<16x128xf32>
      %214 = arith.addf %213, %212 : vector<16x128xf32>
      %215 = arith.divf %213, %214 : vector<16x128xf32>
      %216 = vector.extract_strided_slice %209 {offsets = [16, 0], sizes = [16, 128], strides = [1, 1]} : vector<64x128xf32> to vector<16x128xf32>
      %217 = arith.negf %216 : vector<16x128xf32>
      %218 = math.exp %217 : vector<16x128xf32>
      %cst_69 = arith.constant 1.000000e+00 : f32
      %219 = vector.broadcast %cst_69 : f32 to vector<16x128xf32>
      %220 = arith.addf %219, %218 : vector<16x128xf32>
      %221 = arith.divf %219, %220 : vector<16x128xf32>
      %222 = vector.extract_strided_slice %209 {offsets = [32, 0], sizes = [16, 128], strides = [1, 1]} : vector<64x128xf32> to vector<16x128xf32>
      %223 = math.tanh %222 : vector<16x128xf32>
      %224 = vector.extract_strided_slice %209 {offsets = [48, 0], sizes = [16, 128], strides = [1, 1]} : vector<64x128xf32> to vector<16x128xf32>
      %225 = arith.negf %224 : vector<16x128xf32>
      %226 = math.exp %225 : vector<16x128xf32>
      %cst_70 = arith.constant 1.000000e+00 : f32
      %227 = vector.broadcast %cst_70 : f32 to vector<16x128xf32>
      %228 = arith.addf %227, %226 : vector<16x128xf32>
      %229 = arith.divf %227, %228 : vector<16x128xf32>
      %230 = arith.mulf %221, %202 : vector<16x128xf32>
      %231 = arith.mulf %215, %223 : vector<16x128xf32>
      %232 = arith.addf %230, %231 : vector<16x128xf32>
      %233 = math.tanh %232 : vector<16x128xf32>
      %234 = arith.mulf %229, %233 : vector<16x128xf32>
      %c4_i32 = arith.constant 4 : i32
      %235 = vector.broadcast %c4_i32 : i32 to vector<1x128xi32>
      %236 = arith.cmpi sgt, %0, %235 : vector<1x128xi32>
      %cst_71 = arith.constant 0.000000e+00 : f32
      %237 = vector.shape_cast %236 : vector<1x128xi1> to vector<1x128xi1>
      %238 = vector.broadcast %237 : vector<1x128xi1> to vector<16x128xi1>
      %239 = vector.broadcast %cst_71 : f32 to vector<16x128xf32>
      %240 = arith.select %238, %234, %239 : vector<16x128xi1>, vector<16x128xf32>
      %c0_72 = arith.constant 0 : index
      %c4_73 = arith.constant 4 : index
      %c0_74 = arith.constant 0 : index
      %c0_75 = arith.constant 0 : index
      %241 = vector.load %arg7[%c0_72, %c4_73, %c0_74, %c0_75] : memref<1x8x16x128xf32, #tpu.memory_space<vmem>>, vector<1x1x16x128xf32>
      %242 = vector.shape_cast %241 : vector<1x1x16x128xf32> to vector<16x128xf32>
      %243 = vector.shape_cast %240 : vector<16x128xf32> to vector<1x1x16x128xf32>
      tpu.vector_store %arg7[%c0_72, %c4_73, %c0_74, %c0_75], %243 {strides = array<i32>} : memref<1x8x16x128xf32, #tpu.memory_space<vmem>>, vector<1x1x16x128xf32>,
      %244 = vector.shape_cast %236 : vector<1x128xi1> to vector<1x128xi1>
      %245 = vector.broadcast %244 : vector<1x128xi1> to vector<16x128xi1>
      %246 = arith.select %245, %234, %199 : vector<16x128xi1>, vector<16x128xf32>
      %247 = vector.shape_cast %236 : vector<1x128xi1> to vector<1x128xi1>
      %248 = vector.broadcast %247 : vector<1x128xi1> to vector<16x128xi1>
      %249 = arith.select %248, %232, %202 : vector<16x128xi1>, vector<16x128xf32>
      %c5 = arith.constant 5 : index
      %c0_76 = arith.constant 0 : index
      %c0_77 = arith.constant 0 : index
      %250 = vector.load %arg3[%c5, %c0_76, %c0_77] : memref<8x8x128xf32, #tpu.memory_space<vmem>>, vector<1x8x128xf32>
      %251 = vector.shape_cast %250 : vector<1x8x128xf32> to vector<8x128xf32>
      %cst_78 = arith.constant dense<0.000000e+00> : vector<64x128xf32>
      %252 = tpu.matmul %6, %251, %cst_78 {dimension_numbers = #tpu.dot_dimension_numbers<[1], [0], [0], [1], [0, 0, 1, 1], [], []>} : vector<64x8xf32>, vector<8x128xf32>, vector<64x128xf32> -> vector<64x128xf32>
      %cst_79 = arith.constant dense<0.000000e+00> : vector<64x128xf32>
      %253 = tpu.matmul %2, %246, %cst_79 {dimension_numbers = #tpu.dot_dimension_numbers<[1], [0], [0], [1], [0, 0, 1, 1], [], []>} : vector<64x16xf32>, vector<16x128xf32>, vector<64x128xf32> -> vector<64x128xf32>
      %254 = arith.addf %252, %253 : vector<64x128xf32>
      %255 = vector.broadcast %4 : vector<64x1xf32> to vector<64x128xf32>
      %256 = arith.addf %254, %255 : vector<64x128xf32>
      %257 = vector.extract_strided_slice %256 {offsets = [0, 0], sizes = [16, 128], strides = [1, 1]} : vector<64x128xf32> to vector<16x128xf32>
      %258 = arith.negf %257 : vector<16x128xf32>
      %259 = math.exp %258 : vector<16x128xf32>
      %cst_80 = arith.constant 1.000000e+00 : f32
      %260 = vector.broadcast %cst_80 : f32 to vector<16x128xf32>
      %261 = arith.addf %260, %259 : vector<16x128xf32>
      %262 = arith.divf %260, %261 : vector<16x128xf32>
      %263 = vector.extract_strided_slice %256 {offsets = [16, 0], sizes = [16, 128], strides = [1, 1]} : vector<64x128xf32> to vector<16x128xf32>
      %264 = arith.negf %263 : vector<16x128xf32>
      %265 = math.exp %264 : vector<16x128xf32>
      %cst_81 = arith.constant 1.000000e+00 : f32
      %266 = vector.broadcast %cst_81 : f32 to vector<16x128xf32>
      %267 = arith.addf %266, %265 : vector<16x128xf32>
      %268 = arith.divf %266, %267 : vector<16x128xf32>
      %269 = vector.extract_strided_slice %256 {offsets = [32, 0], sizes = [16, 128], strides = [1, 1]} : vector<64x128xf32> to vector<16x128xf32>
      %270 = math.tanh %269 : vector<16x128xf32>
      %271 = vector.extract_strided_slice %256 {offsets = [48, 0], sizes = [16, 128], strides = [1, 1]} : vector<64x128xf32> to vector<16x128xf32>
      %272 = arith.negf %271 : vector<16x128xf32>
      %273 = math.exp %272 : vector<16x128xf32>
      %cst_82 = arith.constant 1.000000e+00 : f32
      %274 = vector.broadcast %cst_82 : f32 to vector<16x128xf32>
      %275 = arith.addf %274, %273 : vector<16x128xf32>
      %276 = arith.divf %274, %275 : vector<16x128xf32>
      %277 = arith.mulf %268, %249 : vector<16x128xf32>
      %278 = arith.mulf %262, %270 : vector<16x128xf32>
      %279 = arith.addf %277, %278 : vector<16x128xf32>
      %280 = math.tanh %279 : vector<16x128xf32>
      %281 = arith.mulf %276, %280 : vector<16x128xf32>
      %c5_i32 = arith.constant 5 : i32
      %282 = vector.broadcast %c5_i32 : i32 to vector<1x128xi32>
      %283 = arith.cmpi sgt, %0, %282 : vector<1x128xi32>
      %cst_83 = arith.constant 0.000000e+00 : f32
      %284 = vector.shape_cast %283 : vector<1x128xi1> to vector<1x128xi1>
      %285 = vector.broadcast %284 : vector<1x128xi1> to vector<16x128xi1>
      %286 = vector.broadcast %cst_83 : f32 to vector<16x128xf32>
      %287 = arith.select %285, %281, %286 : vector<16x128xi1>, vector<16x128xf32>
      %c0_84 = arith.constant 0 : index
      %c5_85 = arith.constant 5 : index
      %c0_86 = arith.constant 0 : index
      %c0_87 = arith.constant 0 : index
      %288 = vector.load %arg7[%c0_84, %c5_85, %c0_86, %c0_87] : memref<1x8x16x128xf32, #tpu.memory_space<vmem>>, vector<1x1x16x128xf32>
      %289 = vector.shape_cast %288 : vector<1x1x16x128xf32> to vector<16x128xf32>
      %290 = vector.shape_cast %287 : vector<16x128xf32> to vector<1x1x16x128xf32>
      tpu.vector_store %arg7[%c0_84, %c5_85, %c0_86, %c0_87], %290 {strides = array<i32>} : memref<1x8x16x128xf32, #tpu.memory_space<vmem>>, vector<1x1x16x128xf32>,
      %291 = vector.shape_cast %283 : vector<1x128xi1> to vector<1x128xi1>
      %292 = vector.broadcast %291 : vector<1x128xi1> to vector<16x128xi1>
      %293 = arith.select %292, %281, %246 : vector<16x128xi1>, vector<16x128xf32>
      %294 = vector.shape_cast %283 : vector<1x128xi1> to vector<1x128xi1>
      %295 = vector.broadcast %294 : vector<1x128xi1> to vector<16x128xi1>
      %296 = arith.select %295, %279, %249 : vector<16x128xi1>, vector<16x128xf32>
      %c6 = arith.constant 6 : index
      %c0_88 = arith.constant 0 : index
      %c0_89 = arith.constant 0 : index
      %297 = vector.load %arg3[%c6, %c0_88, %c0_89] : memref<8x8x128xf32, #tpu.memory_space<vmem>>, vector<1x8x128xf32>
      %298 = vector.shape_cast %297 : vector<1x8x128xf32> to vector<8x128xf32>
      %cst_90 = arith.constant dense<0.000000e+00> : vector<64x128xf32>
      %299 = tpu.matmul %6, %298, %cst_90 {dimension_numbers = #tpu.dot_dimension_numbers<[1], [0], [0], [1], [0, 0, 1, 1], [], []>} : vector<64x8xf32>, vector<8x128xf32>, vector<64x128xf32> -> vector<64x128xf32>
      %cst_91 = arith.constant dense<0.000000e+00> : vector<64x128xf32>
      %300 = tpu.matmul %2, %293, %cst_91 {dimension_numbers = #tpu.dot_dimension_numbers<[1], [0], [0], [1], [0, 0, 1, 1], [], []>} : vector<64x16xf32>, vector<16x128xf32>, vector<64x128xf32> -> vector<64x128xf32>
      %301 = arith.addf %299, %300 : vector<64x128xf32>
      %302 = vector.broadcast %4 : vector<64x1xf32> to vector<64x128xf32>
      %303 = arith.addf %301, %302 : vector<64x128xf32>
      %304 = vector.extract_strided_slice %303 {offsets = [0, 0], sizes = [16, 128], strides = [1, 1]} : vector<64x128xf32> to vector<16x128xf32>
      %305 = arith.negf %304 : vector<16x128xf32>
      %306 = math.exp %305 : vector<16x128xf32>
      %cst_92 = arith.constant 1.000000e+00 : f32
      %307 = vector.broadcast %cst_92 : f32 to vector<16x128xf32>
      %308 = arith.addf %307, %306 : vector<16x128xf32>
      %309 = arith.divf %307, %308 : vector<16x128xf32>
      %310 = vector.extract_strided_slice %303 {offsets = [16, 0], sizes = [16, 128], strides = [1, 1]} : vector<64x128xf32> to vector<16x128xf32>
      %311 = arith.negf %310 : vector<16x128xf32>
      %312 = math.exp %311 : vector<16x128xf32>
      %cst_93 = arith.constant 1.000000e+00 : f32
      %313 = vector.broadcast %cst_93 : f32 to vector<16x128xf32>
      %314 = arith.addf %313, %312 : vector<16x128xf32>
      %315 = arith.divf %313, %314 : vector<16x128xf32>
      %316 = vector.extract_strided_slice %303 {offsets = [32, 0], sizes = [16, 128], strides = [1, 1]} : vector<64x128xf32> to vector<16x128xf32>
      %317 = math.tanh %316 : vector<16x128xf32>
      %318 = vector.extract_strided_slice %303 {offsets = [48, 0], sizes = [16, 128], strides = [1, 1]} : vector<64x128xf32> to vector<16x128xf32>
      %319 = arith.negf %318 : vector<16x128xf32>
      %320 = math.exp %319 : vector<16x128xf32>
      %cst_94 = arith.constant 1.000000e+00 : f32
      %321 = vector.broadcast %cst_94 : f32 to vector<16x128xf32>
      %322 = arith.addf %321, %320 : vector<16x128xf32>
      %323 = arith.divf %321, %322 : vector<16x128xf32>
      %324 = arith.mulf %315, %296 : vector<16x128xf32>
      %325 = arith.mulf %309, %317 : vector<16x128xf32>
      %326 = arith.addf %324, %325 : vector<16x128xf32>
      %327 = math.tanh %326 : vector<16x128xf32>
      %328 = arith.mulf %323, %327 : vector<16x128xf32>
      %c6_i32 = arith.constant 6 : i32
      %329 = vector.broadcast %c6_i32 : i32 to vector<1x128xi32>
      %330 = arith.cmpi sgt, %0, %329 : vector<1x128xi32>
      %cst_95 = arith.constant 0.000000e+00 : f32
      %331 = vector.shape_cast %330 : vector<1x128xi1> to vector<1x128xi1>
      %332 = vector.broadcast %331 : vector<1x128xi1> to vector<16x128xi1>
      %333 = vector.broadcast %cst_95 : f32 to vector<16x128xf32>
      %334 = arith.select %332, %328, %333 : vector<16x128xi1>, vector<16x128xf32>
      %c0_96 = arith.constant 0 : index
      %c6_97 = arith.constant 6 : index
      %c0_98 = arith.constant 0 : index
      %c0_99 = arith.constant 0 : index
      %335 = vector.load %arg7[%c0_96, %c6_97, %c0_98, %c0_99] : memref<1x8x16x128xf32, #tpu.memory_space<vmem>>, vector<1x1x16x128xf32>
      %336 = vector.shape_cast %335 : vector<1x1x16x128xf32> to vector<16x128xf32>
      %337 = vector.shape_cast %334 : vector<16x128xf32> to vector<1x1x16x128xf32>
      tpu.vector_store %arg7[%c0_96, %c6_97, %c0_98, %c0_99], %337 {strides = array<i32>} : memref<1x8x16x128xf32, #tpu.memory_space<vmem>>, vector<1x1x16x128xf32>,
      %338 = vector.shape_cast %330 : vector<1x128xi1> to vector<1x128xi1>
      %339 = vector.broadcast %338 : vector<1x128xi1> to vector<16x128xi1>
      %340 = arith.select %339, %328, %293 : vector<16x128xi1>, vector<16x128xf32>
      %341 = vector.shape_cast %330 : vector<1x128xi1> to vector<1x128xi1>
      %342 = vector.broadcast %341 : vector<1x128xi1> to vector<16x128xi1>
      %343 = arith.select %342, %326, %296 : vector<16x128xi1>, vector<16x128xf32>
      %c7 = arith.constant 7 : index
      %c0_100 = arith.constant 0 : index
      %c0_101 = arith.constant 0 : index
      %344 = vector.load %arg3[%c7, %c0_100, %c0_101] : memref<8x8x128xf32, #tpu.memory_space<vmem>>, vector<1x8x128xf32>
      %345 = vector.shape_cast %344 : vector<1x8x128xf32> to vector<8x128xf32>
      %cst_102 = arith.constant dense<0.000000e+00> : vector<64x128xf32>
      %346 = tpu.matmul %6, %345, %cst_102 {dimension_numbers = #tpu.dot_dimension_numbers<[1], [0], [0], [1], [0, 0, 1, 1], [], []>} : vector<64x8xf32>, vector<8x128xf32>, vector<64x128xf32> -> vector<64x128xf32>
      %cst_103 = arith.constant dense<0.000000e+00> : vector<64x128xf32>
      %347 = tpu.matmul %2, %340, %cst_103 {dimension_numbers = #tpu.dot_dimension_numbers<[1], [0], [0], [1], [0, 0, 1, 1], [], []>} : vector<64x16xf32>, vector<16x128xf32>, vector<64x128xf32> -> vector<64x128xf32>
      %348 = arith.addf %346, %347 : vector<64x128xf32>
      %349 = vector.broadcast %4 : vector<64x1xf32> to vector<64x128xf32>
      %350 = arith.addf %348, %349 : vector<64x128xf32>
      %351 = vector.extract_strided_slice %350 {offsets = [0, 0], sizes = [16, 128], strides = [1, 1]} : vector<64x128xf32> to vector<16x128xf32>
      %352 = arith.negf %351 : vector<16x128xf32>
      %353 = math.exp %352 : vector<16x128xf32>
      %cst_104 = arith.constant 1.000000e+00 : f32
      %354 = vector.broadcast %cst_104 : f32 to vector<16x128xf32>
      %355 = arith.addf %354, %353 : vector<16x128xf32>
      %356 = arith.divf %354, %355 : vector<16x128xf32>
      %357 = vector.extract_strided_slice %350 {offsets = [16, 0], sizes = [16, 128], strides = [1, 1]} : vector<64x128xf32> to vector<16x128xf32>
      %358 = arith.negf %357 : vector<16x128xf32>
      %359 = math.exp %358 : vector<16x128xf32>
      %cst_105 = arith.constant 1.000000e+00 : f32
      %360 = vector.broadcast %cst_105 : f32 to vector<16x128xf32>
      %361 = arith.addf %360, %359 : vector<16x128xf32>
      %362 = arith.divf %360, %361 : vector<16x128xf32>
      %363 = vector.extract_strided_slice %350 {offsets = [32, 0], sizes = [16, 128], strides = [1, 1]} : vector<64x128xf32> to vector<16x128xf32>
      %364 = math.tanh %363 : vector<16x128xf32>
      %365 = vector.extract_strided_slice %350 {offsets = [48, 0], sizes = [16, 128], strides = [1, 1]} : vector<64x128xf32> to vector<16x128xf32>
      %366 = arith.negf %365 : vector<16x128xf32>
      %367 = math.exp %366 : vector<16x128xf32>
      %cst_106 = arith.constant 1.000000e+00 : f32
      %368 = vector.broadcast %cst_106 : f32 to vector<16x128xf32>
      %369 = arith.addf %368, %367 : vector<16x128xf32>
      %370 = arith.divf %368, %369 : vector<16x128xf32>
      %371 = arith.mulf %362, %343 : vector<16x128xf32>
      %372 = arith.mulf %356, %364 : vector<16x128xf32>
      %373 = arith.addf %371, %372 : vector<16x128xf32>
      %374 = math.tanh %373 : vector<16x128xf32>
      %375 = arith.mulf %370, %374 : vector<16x128xf32>
      %c7_i32 = arith.constant 7 : i32
      %376 = vector.broadcast %c7_i32 : i32 to vector<1x128xi32>
      %377 = arith.cmpi sgt, %0, %376 : vector<1x128xi32>
      %cst_107 = arith.constant 0.000000e+00 : f32
      %378 = vector.shape_cast %377 : vector<1x128xi1> to vector<1x128xi1>
      %379 = vector.broadcast %378 : vector<1x128xi1> to vector<16x128xi1>
      %380 = vector.broadcast %cst_107 : f32 to vector<16x128xf32>
      %381 = arith.select %379, %375, %380 : vector<16x128xi1>, vector<16x128xf32>
      %c0_108 = arith.constant 0 : index
      %c7_109 = arith.constant 7 : index
      %c0_110 = arith.constant 0 : index
      %c0_111 = arith.constant 0 : index
      %382 = vector.load %arg7[%c0_108, %c7_109, %c0_110, %c0_111] : memref<1x8x16x128xf32, #tpu.memory_space<vmem>>, vector<1x1x16x128xf32>
      %383 = vector.shape_cast %382 : vector<1x1x16x128xf32> to vector<16x128xf32>
      %384 = vector.shape_cast %381 : vector<16x128xf32> to vector<1x1x16x128xf32>
      tpu.vector_store %arg7[%c0_108, %c7_109, %c0_110, %c0_111], %384 {strides = array<i32>} : memref<1x8x16x128xf32, #tpu.memory_space<vmem>>, vector<1x1x16x128xf32>,
    } else {
    }
    %c1_i32 = arith.constant 1 : i32
    %12 = arith.cmpi eq, %arg0, %c1_i32 : i32
    %13 = arith.extui %12 : i1 to i32
    %c0_i32_12 = arith.constant 0 : i32
    %14 = arith.cmpi ne, %13, %c0_i32_12 : i32
    scf.if %14 {
      %c7 = arith.constant 7 : index
      %c0_13 = arith.constant 0 : index
      %c0_14 = arith.constant 0 : index
      %15 = vector.load %arg3[%c7, %c0_13, %c0_14] : memref<8x8x128xf32, #tpu.memory_space<vmem>>, vector<1x8x128xf32>
      %16 = vector.shape_cast %15 : vector<1x8x128xf32> to vector<8x128xf32>
      %cst_15 = arith.constant dense<0.000000e+00> : vector<64x128xf32>
      %17 = tpu.matmul %6, %16, %cst_15 {dimension_numbers = #tpu.dot_dimension_numbers<[1], [0], [0], [1], [0, 0, 1, 1], [], []>} : vector<64x8xf32>, vector<8x128xf32>, vector<64x128xf32> -> vector<64x128xf32>
      %cst_16 = arith.constant dense<0.000000e+00> : vector<64x128xf32>
      %18 = tpu.matmul %2, %7, %cst_16 {dimension_numbers = #tpu.dot_dimension_numbers<[1], [0], [0], [1], [0, 0, 1, 1], [], []>} : vector<64x16xf32>, vector<16x128xf32>, vector<64x128xf32> -> vector<64x128xf32>
      %19 = arith.addf %17, %18 : vector<64x128xf32>
      %20 = vector.broadcast %4 : vector<64x1xf32> to vector<64x128xf32>
      %21 = arith.addf %19, %20 : vector<64x128xf32>
      %22 = vector.extract_strided_slice %21 {offsets = [0, 0], sizes = [16, 128], strides = [1, 1]} : vector<64x128xf32> to vector<16x128xf32>
      %23 = arith.negf %22 : vector<16x128xf32>
      %24 = math.exp %23 : vector<16x128xf32>
      %cst_17 = arith.constant 1.000000e+00 : f32
      %25 = vector.broadcast %cst_17 : f32 to vector<16x128xf32>
      %26 = arith.addf %25, %24 : vector<16x128xf32>
      %27 = arith.divf %25, %26 : vector<16x128xf32>
      %28 = vector.extract_strided_slice %21 {offsets = [16, 0], sizes = [16, 128], strides = [1, 1]} : vector<64x128xf32> to vector<16x128xf32>
      %29 = arith.negf %28 : vector<16x128xf32>
      %30 = math.exp %29 : vector<16x128xf32>
      %cst_18 = arith.constant 1.000000e+00 : f32
      %31 = vector.broadcast %cst_18 : f32 to vector<16x128xf32>
      %32 = arith.addf %31, %30 : vector<16x128xf32>
      %33 = arith.divf %31, %32 : vector<16x128xf32>
      %34 = vector.extract_strided_slice %21 {offsets = [32, 0], sizes = [16, 128], strides = [1, 1]} : vector<64x128xf32> to vector<16x128xf32>
      %35 = math.tanh %34 : vector<16x128xf32>
      %36 = vector.extract_strided_slice %21 {offsets = [48, 0], sizes = [16, 128], strides = [1, 1]} : vector<64x128xf32> to vector<16x128xf32>
      %37 = arith.negf %36 : vector<16x128xf32>
      %38 = math.exp %37 : vector<16x128xf32>
      %cst_19 = arith.constant 1.000000e+00 : f32
      %39 = vector.broadcast %cst_19 : f32 to vector<16x128xf32>
      %40 = arith.addf %39, %38 : vector<16x128xf32>
      %41 = arith.divf %39, %40 : vector<16x128xf32>
      %42 = arith.mulf %33, %8 : vector<16x128xf32>
      %43 = arith.mulf %27, %35 : vector<16x128xf32>
      %44 = arith.addf %42, %43 : vector<16x128xf32>
      %45 = math.tanh %44 : vector<16x128xf32>
      %46 = arith.mulf %41, %45 : vector<16x128xf32>
      %c7_i32 = arith.constant 7 : i32
      %47 = vector.broadcast %c7_i32 : i32 to vector<1x128xi32>
      %48 = arith.cmpi sgt, %0, %47 : vector<1x128xi32>
      %cst_20 = arith.constant 0.000000e+00 : f32
      %49 = vector.shape_cast %48 : vector<1x128xi1> to vector<1x128xi1>
      %50 = vector.broadcast %49 : vector<1x128xi1> to vector<16x128xi1>
      %51 = vector.broadcast %cst_20 : f32 to vector<16x128xf32>
      %52 = arith.select %50, %46, %51 : vector<16x128xi1>, vector<16x128xf32>
      %c0_21 = arith.constant 0 : index
      %c7_22 = arith.constant 7 : index
      %c0_23 = arith.constant 0 : index
      %c0_24 = arith.constant 0 : index
      %53 = vector.load %arg7[%c0_21, %c7_22, %c0_23, %c0_24] : memref<1x8x16x128xf32, #tpu.memory_space<vmem>>, vector<1x1x16x128xf32>
      %54 = vector.shape_cast %53 : vector<1x1x16x128xf32> to vector<16x128xf32>
      %55 = vector.shape_cast %52 : vector<16x128xf32> to vector<1x1x16x128xf32>
      tpu.vector_store %arg7[%c0_21, %c7_22, %c0_23, %c0_24], %55 {strides = array<i32>} : memref<1x8x16x128xf32, #tpu.memory_space<vmem>>, vector<1x1x16x128xf32>,
      %56 = vector.shape_cast %48 : vector<1x128xi1> to vector<1x128xi1>
      %57 = vector.broadcast %56 : vector<1x128xi1> to vector<16x128xi1>
      %58 = arith.select %57, %46, %7 : vector<16x128xi1>, vector<16x128xf32>
      %59 = vector.shape_cast %48 : vector<1x128xi1> to vector<1x128xi1>
      %60 = vector.broadcast %59 : vector<1x128xi1> to vector<16x128xi1>
      %61 = arith.select %60, %44, %8 : vector<16x128xi1>, vector<16x128xf32>
      %c6 = arith.constant 6 : index
      %c0_25 = arith.constant 0 : index
      %c0_26 = arith.constant 0 : index
      %62 = vector.load %arg3[%c6, %c0_25, %c0_26] : memref<8x8x128xf32, #tpu.memory_space<vmem>>, vector<1x8x128xf32>
      %63 = vector.shape_cast %62 : vector<1x8x128xf32> to vector<8x128xf32>
      %cst_27 = arith.constant dense<0.000000e+00> : vector<64x128xf32>
      %64 = tpu.matmul %6, %63, %cst_27 {dimension_numbers = #tpu.dot_dimension_numbers<[1], [0], [0], [1], [0, 0, 1, 1], [], []>} : vector<64x8xf32>, vector<8x128xf32>, vector<64x128xf32> -> vector<64x128xf32>
      %cst_28 = arith.constant dense<0.000000e+00> : vector<64x128xf32>
      %65 = tpu.matmul %2, %58, %cst_28 {dimension_numbers = #tpu.dot_dimension_numbers<[1], [0], [0], [1], [0, 0, 1, 1], [], []>} : vector<64x16xf32>, vector<16x128xf32>, vector<64x128xf32> -> vector<64x128xf32>
      %66 = arith.addf %64, %65 : vector<64x128xf32>
      %67 = vector.broadcast %4 : vector<64x1xf32> to vector<64x128xf32>
      %68 = arith.addf %66, %67 : vector<64x128xf32>
      %69 = vector.extract_strided_slice %68 {offsets = [0, 0], sizes = [16, 128], strides = [1, 1]} : vector<64x128xf32> to vector<16x128xf32>
      %70 = arith.negf %69 : vector<16x128xf32>
      %71 = math.exp %70 : vector<16x128xf32>
      %cst_29 = arith.constant 1.000000e+00 : f32
      %72 = vector.broadcast %cst_29 : f32 to vector<16x128xf32>
      %73 = arith.addf %72, %71 : vector<16x128xf32>
      %74 = arith.divf %72, %73 : vector<16x128xf32>
      %75 = vector.extract_strided_slice %68 {offsets = [16, 0], sizes = [16, 128], strides = [1, 1]} : vector<64x128xf32> to vector<16x128xf32>
      %76 = arith.negf %75 : vector<16x128xf32>
      %77 = math.exp %76 : vector<16x128xf32>
      %cst_30 = arith.constant 1.000000e+00 : f32
      %78 = vector.broadcast %cst_30 : f32 to vector<16x128xf32>
      %79 = arith.addf %78, %77 : vector<16x128xf32>
      %80 = arith.divf %78, %79 : vector<16x128xf32>
      %81 = vector.extract_strided_slice %68 {offsets = [32, 0], sizes = [16, 128], strides = [1, 1]} : vector<64x128xf32> to vector<16x128xf32>
      %82 = math.tanh %81 : vector<16x128xf32>
      %83 = vector.extract_strided_slice %68 {offsets = [48, 0], sizes = [16, 128], strides = [1, 1]} : vector<64x128xf32> to vector<16x128xf32>
      %84 = arith.negf %83 : vector<16x128xf32>
      %85 = math.exp %84 : vector<16x128xf32>
      %cst_31 = arith.constant 1.000000e+00 : f32
      %86 = vector.broadcast %cst_31 : f32 to vector<16x128xf32>
      %87 = arith.addf %86, %85 : vector<16x128xf32>
      %88 = arith.divf %86, %87 : vector<16x128xf32>
      %89 = arith.mulf %80, %61 : vector<16x128xf32>
      %90 = arith.mulf %74, %82 : vector<16x128xf32>
      %91 = arith.addf %89, %90 : vector<16x128xf32>
      %92 = math.tanh %91 : vector<16x128xf32>
      %93 = arith.mulf %88, %92 : vector<16x128xf32>
      %c6_i32 = arith.constant 6 : i32
      %94 = vector.broadcast %c6_i32 : i32 to vector<1x128xi32>
      %95 = arith.cmpi sgt, %0, %94 : vector<1x128xi32>
      %cst_32 = arith.constant 0.000000e+00 : f32
      %96 = vector.shape_cast %95 : vector<1x128xi1> to vector<1x128xi1>
      %97 = vector.broadcast %96 : vector<1x128xi1> to vector<16x128xi1>
      %98 = vector.broadcast %cst_32 : f32 to vector<16x128xf32>
      %99 = arith.select %97, %93, %98 : vector<16x128xi1>, vector<16x128xf32>
      %c0_33 = arith.constant 0 : index
      %c6_34 = arith.constant 6 : index
      %c0_35 = arith.constant 0 : index
      %c0_36 = arith.constant 0 : index
      %100 = vector.load %arg7[%c0_33, %c6_34, %c0_35, %c0_36] : memref<1x8x16x128xf32, #tpu.memory_space<vmem>>, vector<1x1x16x128xf32>
      %101 = vector.shape_cast %100 : vector<1x1x16x128xf32> to vector<16x128xf32>
      %102 = vector.shape_cast %99 : vector<16x128xf32> to vector<1x1x16x128xf32>
      tpu.vector_store %arg7[%c0_33, %c6_34, %c0_35, %c0_36], %102 {strides = array<i32>} : memref<1x8x16x128xf32, #tpu.memory_space<vmem>>, vector<1x1x16x128xf32>,
      %103 = vector.shape_cast %95 : vector<1x128xi1> to vector<1x128xi1>
      %104 = vector.broadcast %103 : vector<1x128xi1> to vector<16x128xi1>
      %105 = arith.select %104, %93, %58 : vector<16x128xi1>, vector<16x128xf32>
      %106 = vector.shape_cast %95 : vector<1x128xi1> to vector<1x128xi1>
      %107 = vector.broadcast %106 : vector<1x128xi1> to vector<16x128xi1>
      %108 = arith.select %107, %91, %61 : vector<16x128xi1>, vector<16x128xf32>
      %c5 = arith.constant 5 : index
      %c0_37 = arith.constant 0 : index
      %c0_38 = arith.constant 0 : index
      %109 = vector.load %arg3[%c5, %c0_37, %c0_38] : memref<8x8x128xf32, #tpu.memory_space<vmem>>, vector<1x8x128xf32>
      %110 = vector.shape_cast %109 : vector<1x8x128xf32> to vector<8x128xf32>
      %cst_39 = arith.constant dense<0.000000e+00> : vector<64x128xf32>
      %111 = tpu.matmul %6, %110, %cst_39 {dimension_numbers = #tpu.dot_dimension_numbers<[1], [0], [0], [1], [0, 0, 1, 1], [], []>} : vector<64x8xf32>, vector<8x128xf32>, vector<64x128xf32> -> vector<64x128xf32>
      %cst_40 = arith.constant dense<0.000000e+00> : vector<64x128xf32>
      %112 = tpu.matmul %2, %105, %cst_40 {dimension_numbers = #tpu.dot_dimension_numbers<[1], [0], [0], [1], [0, 0, 1, 1], [], []>} : vector<64x16xf32>, vector<16x128xf32>, vector<64x128xf32> -> vector<64x128xf32>
      %113 = arith.addf %111, %112 : vector<64x128xf32>
      %114 = vector.broadcast %4 : vector<64x1xf32> to vector<64x128xf32>
      %115 = arith.addf %113, %114 : vector<64x128xf32>
      %116 = vector.extract_strided_slice %115 {offsets = [0, 0], sizes = [16, 128], strides = [1, 1]} : vector<64x128xf32> to vector<16x128xf32>
      %117 = arith.negf %116 : vector<16x128xf32>
      %118 = math.exp %117 : vector<16x128xf32>
      %cst_41 = arith.constant 1.000000e+00 : f32
      %119 = vector.broadcast %cst_41 : f32 to vector<16x128xf32>
      %120 = arith.addf %119, %118 : vector<16x128xf32>
      %121 = arith.divf %119, %120 : vector<16x128xf32>
      %122 = vector.extract_strided_slice %115 {offsets = [16, 0], sizes = [16, 128], strides = [1, 1]} : vector<64x128xf32> to vector<16x128xf32>
      %123 = arith.negf %122 : vector<16x128xf32>
      %124 = math.exp %123 : vector<16x128xf32>
      %cst_42 = arith.constant 1.000000e+00 : f32
      %125 = vector.broadcast %cst_42 : f32 to vector<16x128xf32>
      %126 = arith.addf %125, %124 : vector<16x128xf32>
      %127 = arith.divf %125, %126 : vector<16x128xf32>
      %128 = vector.extract_strided_slice %115 {offsets = [32, 0], sizes = [16, 128], strides = [1, 1]} : vector<64x128xf32> to vector<16x128xf32>
      %129 = math.tanh %128 : vector<16x128xf32>
      %130 = vector.extract_strided_slice %115 {offsets = [48, 0], sizes = [16, 128], strides = [1, 1]} : vector<64x128xf32> to vector<16x128xf32>
      %131 = arith.negf %130 : vector<16x128xf32>
      %132 = math.exp %131 : vector<16x128xf32>
      %cst_43 = arith.constant 1.000000e+00 : f32
      %133 = vector.broadcast %cst_43 : f32 to vector<16x128xf32>
      %134 = arith.addf %133, %132 : vector<16x128xf32>
      %135 = arith.divf %133, %134 : vector<16x128xf32>
      %136 = arith.mulf %127, %108 : vector<16x128xf32>
      %137 = arith.mulf %121, %129 : vector<16x128xf32>
      %138 = arith.addf %136, %137 : vector<16x128xf32>
      %139 = math.tanh %138 : vector<16x128xf32>
      %140 = arith.mulf %135, %139 : vector<16x128xf32>
      %c5_i32 = arith.constant 5 : i32
      %141 = vector.broadcast %c5_i32 : i32 to vector<1x128xi32>
      %142 = arith.cmpi sgt, %0, %141 : vector<1x128xi32>
      %cst_44 = arith.constant 0.000000e+00 : f32
      %143 = vector.shape_cast %142 : vector<1x128xi1> to vector<1x128xi1>
      %144 = vector.broadcast %143 : vector<1x128xi1> to vector<16x128xi1>
      %145 = vector.broadcast %cst_44 : f32 to vector<16x128xf32>
      %146 = arith.select %144, %140, %145 : vector<16x128xi1>, vector<16x128xf32>
      %c0_45 = arith.constant 0 : index
      %c5_46 = arith.constant 5 : index
      %c0_47 = arith.constant 0 : index
      %c0_48 = arith.constant 0 : index
      %147 = vector.load %arg7[%c0_45, %c5_46, %c0_47, %c0_48] : memref<1x8x16x128xf32, #tpu.memory_space<vmem>>, vector<1x1x16x128xf32>
      %148 = vector.shape_cast %147 : vector<1x1x16x128xf32> to vector<16x128xf32>
      %149 = vector.shape_cast %146 : vector<16x128xf32> to vector<1x1x16x128xf32>
      tpu.vector_store %arg7[%c0_45, %c5_46, %c0_47, %c0_48], %149 {strides = array<i32>} : memref<1x8x16x128xf32, #tpu.memory_space<vmem>>, vector<1x1x16x128xf32>,
      %150 = vector.shape_cast %142 : vector<1x128xi1> to vector<1x128xi1>
      %151 = vector.broadcast %150 : vector<1x128xi1> to vector<16x128xi1>
      %152 = arith.select %151, %140, %105 : vector<16x128xi1>, vector<16x128xf32>
      %153 = vector.shape_cast %142 : vector<1x128xi1> to vector<1x128xi1>
      %154 = vector.broadcast %153 : vector<1x128xi1> to vector<16x128xi1>
      %155 = arith.select %154, %138, %108 : vector<16x128xi1>, vector<16x128xf32>
      %c4 = arith.constant 4 : index
      %c0_49 = arith.constant 0 : index
      %c0_50 = arith.constant 0 : index
      %156 = vector.load %arg3[%c4, %c0_49, %c0_50] : memref<8x8x128xf32, #tpu.memory_space<vmem>>, vector<1x8x128xf32>
      %157 = vector.shape_cast %156 : vector<1x8x128xf32> to vector<8x128xf32>
      %cst_51 = arith.constant dense<0.000000e+00> : vector<64x128xf32>
      %158 = tpu.matmul %6, %157, %cst_51 {dimension_numbers = #tpu.dot_dimension_numbers<[1], [0], [0], [1], [0, 0, 1, 1], [], []>} : vector<64x8xf32>, vector<8x128xf32>, vector<64x128xf32> -> vector<64x128xf32>
      %cst_52 = arith.constant dense<0.000000e+00> : vector<64x128xf32>
      %159 = tpu.matmul %2, %152, %cst_52 {dimension_numbers = #tpu.dot_dimension_numbers<[1], [0], [0], [1], [0, 0, 1, 1], [], []>} : vector<64x16xf32>, vector<16x128xf32>, vector<64x128xf32> -> vector<64x128xf32>
      %160 = arith.addf %158, %159 : vector<64x128xf32>
      %161 = vector.broadcast %4 : vector<64x1xf32> to vector<64x128xf32>
      %162 = arith.addf %160, %161 : vector<64x128xf32>
      %163 = vector.extract_strided_slice %162 {offsets = [0, 0], sizes = [16, 128], strides = [1, 1]} : vector<64x128xf32> to vector<16x128xf32>
      %164 = arith.negf %163 : vector<16x128xf32>
      %165 = math.exp %164 : vector<16x128xf32>
      %cst_53 = arith.constant 1.000000e+00 : f32
      %166 = vector.broadcast %cst_53 : f32 to vector<16x128xf32>
      %167 = arith.addf %166, %165 : vector<16x128xf32>
      %168 = arith.divf %166, %167 : vector<16x128xf32>
      %169 = vector.extract_strided_slice %162 {offsets = [16, 0], sizes = [16, 128], strides = [1, 1]} : vector<64x128xf32> to vector<16x128xf32>
      %170 = arith.negf %169 : vector<16x128xf32>
      %171 = math.exp %170 : vector<16x128xf32>
      %cst_54 = arith.constant 1.000000e+00 : f32
      %172 = vector.broadcast %cst_54 : f32 to vector<16x128xf32>
      %173 = arith.addf %172, %171 : vector<16x128xf32>
      %174 = arith.divf %172, %173 : vector<16x128xf32>
      %175 = vector.extract_strided_slice %162 {offsets = [32, 0], sizes = [16, 128], strides = [1, 1]} : vector<64x128xf32> to vector<16x128xf32>
      %176 = math.tanh %175 : vector<16x128xf32>
      %177 = vector.extract_strided_slice %162 {offsets = [48, 0], sizes = [16, 128], strides = [1, 1]} : vector<64x128xf32> to vector<16x128xf32>
      %178 = arith.negf %177 : vector<16x128xf32>
      %179 = math.exp %178 : vector<16x128xf32>
      %cst_55 = arith.constant 1.000000e+00 : f32
      %180 = vector.broadcast %cst_55 : f32 to vector<16x128xf32>
      %181 = arith.addf %180, %179 : vector<16x128xf32>
      %182 = arith.divf %180, %181 : vector<16x128xf32>
      %183 = arith.mulf %174, %155 : vector<16x128xf32>
      %184 = arith.mulf %168, %176 : vector<16x128xf32>
      %185 = arith.addf %183, %184 : vector<16x128xf32>
      %186 = math.tanh %185 : vector<16x128xf32>
      %187 = arith.mulf %182, %186 : vector<16x128xf32>
      %c4_i32 = arith.constant 4 : i32
      %188 = vector.broadcast %c4_i32 : i32 to vector<1x128xi32>
      %189 = arith.cmpi sgt, %0, %188 : vector<1x128xi32>
      %cst_56 = arith.constant 0.000000e+00 : f32
      %190 = vector.shape_cast %189 : vector<1x128xi1> to vector<1x128xi1>
      %191 = vector.broadcast %190 : vector<1x128xi1> to vector<16x128xi1>
      %192 = vector.broadcast %cst_56 : f32 to vector<16x128xf32>
      %193 = arith.select %191, %187, %192 : vector<16x128xi1>, vector<16x128xf32>
      %c0_57 = arith.constant 0 : index
      %c4_58 = arith.constant 4 : index
      %c0_59 = arith.constant 0 : index
      %c0_60 = arith.constant 0 : index
      %194 = vector.load %arg7[%c0_57, %c4_58, %c0_59, %c0_60] : memref<1x8x16x128xf32, #tpu.memory_space<vmem>>, vector<1x1x16x128xf32>
      %195 = vector.shape_cast %194 : vector<1x1x16x128xf32> to vector<16x128xf32>
      %196 = vector.shape_cast %193 : vector<16x128xf32> to vector<1x1x16x128xf32>
      tpu.vector_store %arg7[%c0_57, %c4_58, %c0_59, %c0_60], %196 {strides = array<i32>} : memref<1x8x16x128xf32, #tpu.memory_space<vmem>>, vector<1x1x16x128xf32>,
      %197 = vector.shape_cast %189 : vector<1x128xi1> to vector<1x128xi1>
      %198 = vector.broadcast %197 : vector<1x128xi1> to vector<16x128xi1>
      %199 = arith.select %198, %187, %152 : vector<16x128xi1>, vector<16x128xf32>
      %200 = vector.shape_cast %189 : vector<1x128xi1> to vector<1x128xi1>
      %201 = vector.broadcast %200 : vector<1x128xi1> to vector<16x128xi1>
      %202 = arith.select %201, %185, %155 : vector<16x128xi1>, vector<16x128xf32>
      %c3 = arith.constant 3 : index
      %c0_61 = arith.constant 0 : index
      %c0_62 = arith.constant 0 : index
      %203 = vector.load %arg3[%c3, %c0_61, %c0_62] : memref<8x8x128xf32, #tpu.memory_space<vmem>>, vector<1x8x128xf32>
      %204 = vector.shape_cast %203 : vector<1x8x128xf32> to vector<8x128xf32>
      %cst_63 = arith.constant dense<0.000000e+00> : vector<64x128xf32>
      %205 = tpu.matmul %6, %204, %cst_63 {dimension_numbers = #tpu.dot_dimension_numbers<[1], [0], [0], [1], [0, 0, 1, 1], [], []>} : vector<64x8xf32>, vector<8x128xf32>, vector<64x128xf32> -> vector<64x128xf32>
      %cst_64 = arith.constant dense<0.000000e+00> : vector<64x128xf32>
      %206 = tpu.matmul %2, %199, %cst_64 {dimension_numbers = #tpu.dot_dimension_numbers<[1], [0], [0], [1], [0, 0, 1, 1], [], []>} : vector<64x16xf32>, vector<16x128xf32>, vector<64x128xf32> -> vector<64x128xf32>
      %207 = arith.addf %205, %206 : vector<64x128xf32>
      %208 = vector.broadcast %4 : vector<64x1xf32> to vector<64x128xf32>
      %209 = arith.addf %207, %208 : vector<64x128xf32>
      %210 = vector.extract_strided_slice %209 {offsets = [0, 0], sizes = [16, 128], strides = [1, 1]} : vector<64x128xf32> to vector<16x128xf32>
      %211 = arith.negf %210 : vector<16x128xf32>
      %212 = math.exp %211 : vector<16x128xf32>
      %cst_65 = arith.constant 1.000000e+00 : f32
      %213 = vector.broadcast %cst_65 : f32 to vector<16x128xf32>
      %214 = arith.addf %213, %212 : vector<16x128xf32>
      %215 = arith.divf %213, %214 : vector<16x128xf32>
      %216 = vector.extract_strided_slice %209 {offsets = [16, 0], sizes = [16, 128], strides = [1, 1]} : vector<64x128xf32> to vector<16x128xf32>
      %217 = arith.negf %216 : vector<16x128xf32>
      %218 = math.exp %217 : vector<16x128xf32>
      %cst_66 = arith.constant 1.000000e+00 : f32
      %219 = vector.broadcast %cst_66 : f32 to vector<16x128xf32>
      %220 = arith.addf %219, %218 : vector<16x128xf32>
      %221 = arith.divf %219, %220 : vector<16x128xf32>
      %222 = vector.extract_strided_slice %209 {offsets = [32, 0], sizes = [16, 128], strides = [1, 1]} : vector<64x128xf32> to vector<16x128xf32>
      %223 = math.tanh %222 : vector<16x128xf32>
      %224 = vector.extract_strided_slice %209 {offsets = [48, 0], sizes = [16, 128], strides = [1, 1]} : vector<64x128xf32> to vector<16x128xf32>
      %225 = arith.negf %224 : vector<16x128xf32>
      %226 = math.exp %225 : vector<16x128xf32>
      %cst_67 = arith.constant 1.000000e+00 : f32
      %227 = vector.broadcast %cst_67 : f32 to vector<16x128xf32>
      %228 = arith.addf %227, %226 : vector<16x128xf32>
      %229 = arith.divf %227, %228 : vector<16x128xf32>
      %230 = arith.mulf %221, %202 : vector<16x128xf32>
      %231 = arith.mulf %215, %223 : vector<16x128xf32>
      %232 = arith.addf %230, %231 : vector<16x128xf32>
      %233 = math.tanh %232 : vector<16x128xf32>
      %234 = arith.mulf %229, %233 : vector<16x128xf32>
      %c3_i32 = arith.constant 3 : i32
      %235 = vector.broadcast %c3_i32 : i32 to vector<1x128xi32>
      %236 = arith.cmpi sgt, %0, %235 : vector<1x128xi32>
      %cst_68 = arith.constant 0.000000e+00 : f32
      %237 = vector.shape_cast %236 : vector<1x128xi1> to vector<1x128xi1>
      %238 = vector.broadcast %237 : vector<1x128xi1> to vector<16x128xi1>
      %239 = vector.broadcast %cst_68 : f32 to vector<16x128xf32>
      %240 = arith.select %238, %234, %239 : vector<16x128xi1>, vector<16x128xf32>
      %c0_69 = arith.constant 0 : index
      %c3_70 = arith.constant 3 : index
      %c0_71 = arith.constant 0 : index
      %c0_72 = arith.constant 0 : index
      %241 = vector.load %arg7[%c0_69, %c3_70, %c0_71, %c0_72] : memref<1x8x16x128xf32, #tpu.memory_space<vmem>>, vector<1x1x16x128xf32>
      %242 = vector.shape_cast %241 : vector<1x1x16x128xf32> to vector<16x128xf32>
      %243 = vector.shape_cast %240 : vector<16x128xf32> to vector<1x1x16x128xf32>
      tpu.vector_store %arg7[%c0_69, %c3_70, %c0_71, %c0_72], %243 {strides = array<i32>} : memref<1x8x16x128xf32, #tpu.memory_space<vmem>>, vector<1x1x16x128xf32>,
      %244 = vector.shape_cast %236 : vector<1x128xi1> to vector<1x128xi1>
      %245 = vector.broadcast %244 : vector<1x128xi1> to vector<16x128xi1>
      %246 = arith.select %245, %234, %199 : vector<16x128xi1>, vector<16x128xf32>
      %247 = vector.shape_cast %236 : vector<1x128xi1> to vector<1x128xi1>
      %248 = vector.broadcast %247 : vector<1x128xi1> to vector<16x128xi1>
      %249 = arith.select %248, %232, %202 : vector<16x128xi1>, vector<16x128xf32>
      %c2 = arith.constant 2 : index
      %c0_73 = arith.constant 0 : index
      %c0_74 = arith.constant 0 : index
      %250 = vector.load %arg3[%c2, %c0_73, %c0_74] : memref<8x8x128xf32, #tpu.memory_space<vmem>>, vector<1x8x128xf32>
      %251 = vector.shape_cast %250 : vector<1x8x128xf32> to vector<8x128xf32>
      %cst_75 = arith.constant dense<0.000000e+00> : vector<64x128xf32>
      %252 = tpu.matmul %6, %251, %cst_75 {dimension_numbers = #tpu.dot_dimension_numbers<[1], [0], [0], [1], [0, 0, 1, 1], [], []>} : vector<64x8xf32>, vector<8x128xf32>, vector<64x128xf32> -> vector<64x128xf32>
      %cst_76 = arith.constant dense<0.000000e+00> : vector<64x128xf32>
      %253 = tpu.matmul %2, %246, %cst_76 {dimension_numbers = #tpu.dot_dimension_numbers<[1], [0], [0], [1], [0, 0, 1, 1], [], []>} : vector<64x16xf32>, vector<16x128xf32>, vector<64x128xf32> -> vector<64x128xf32>
      %254 = arith.addf %252, %253 : vector<64x128xf32>
      %255 = vector.broadcast %4 : vector<64x1xf32> to vector<64x128xf32>
      %256 = arith.addf %254, %255 : vector<64x128xf32>
      %257 = vector.extract_strided_slice %256 {offsets = [0, 0], sizes = [16, 128], strides = [1, 1]} : vector<64x128xf32> to vector<16x128xf32>
      %258 = arith.negf %257 : vector<16x128xf32>
      %259 = math.exp %258 : vector<16x128xf32>
      %cst_77 = arith.constant 1.000000e+00 : f32
      %260 = vector.broadcast %cst_77 : f32 to vector<16x128xf32>
      %261 = arith.addf %260, %259 : vector<16x128xf32>
      %262 = arith.divf %260, %261 : vector<16x128xf32>
      %263 = vector.extract_strided_slice %256 {offsets = [16, 0], sizes = [16, 128], strides = [1, 1]} : vector<64x128xf32> to vector<16x128xf32>
      %264 = arith.negf %263 : vector<16x128xf32>
      %265 = math.exp %264 : vector<16x128xf32>
      %cst_78 = arith.constant 1.000000e+00 : f32
      %266 = vector.broadcast %cst_78 : f32 to vector<16x128xf32>
      %267 = arith.addf %266, %265 : vector<16x128xf32>
      %268 = arith.divf %266, %267 : vector<16x128xf32>
      %269 = vector.extract_strided_slice %256 {offsets = [32, 0], sizes = [16, 128], strides = [1, 1]} : vector<64x128xf32> to vector<16x128xf32>
      %270 = math.tanh %269 : vector<16x128xf32>
      %271 = vector.extract_strided_slice %256 {offsets = [48, 0], sizes = [16, 128], strides = [1, 1]} : vector<64x128xf32> to vector<16x128xf32>
      %272 = arith.negf %271 : vector<16x128xf32>
      %273 = math.exp %272 : vector<16x128xf32>
      %cst_79 = arith.constant 1.000000e+00 : f32
      %274 = vector.broadcast %cst_79 : f32 to vector<16x128xf32>
      %275 = arith.addf %274, %273 : vector<16x128xf32>
      %276 = arith.divf %274, %275 : vector<16x128xf32>
      %277 = arith.mulf %268, %249 : vector<16x128xf32>
      %278 = arith.mulf %262, %270 : vector<16x128xf32>
      %279 = arith.addf %277, %278 : vector<16x128xf32>
      %280 = math.tanh %279 : vector<16x128xf32>
      %281 = arith.mulf %276, %280 : vector<16x128xf32>
      %c2_i32 = arith.constant 2 : i32
      %282 = vector.broadcast %c2_i32 : i32 to vector<1x128xi32>
      %283 = arith.cmpi sgt, %0, %282 : vector<1x128xi32>
      %cst_80 = arith.constant 0.000000e+00 : f32
      %284 = vector.shape_cast %283 : vector<1x128xi1> to vector<1x128xi1>
      %285 = vector.broadcast %284 : vector<1x128xi1> to vector<16x128xi1>
      %286 = vector.broadcast %cst_80 : f32 to vector<16x128xf32>
      %287 = arith.select %285, %281, %286 : vector<16x128xi1>, vector<16x128xf32>
      %c0_81 = arith.constant 0 : index
      %c2_82 = arith.constant 2 : index
      %c0_83 = arith.constant 0 : index
      %c0_84 = arith.constant 0 : index
      %288 = vector.load %arg7[%c0_81, %c2_82, %c0_83, %c0_84] : memref<1x8x16x128xf32, #tpu.memory_space<vmem>>, vector<1x1x16x128xf32>
      %289 = vector.shape_cast %288 : vector<1x1x16x128xf32> to vector<16x128xf32>
      %290 = vector.shape_cast %287 : vector<16x128xf32> to vector<1x1x16x128xf32>
      tpu.vector_store %arg7[%c0_81, %c2_82, %c0_83, %c0_84], %290 {strides = array<i32>} : memref<1x8x16x128xf32, #tpu.memory_space<vmem>>, vector<1x1x16x128xf32>,
      %291 = vector.shape_cast %283 : vector<1x128xi1> to vector<1x128xi1>
      %292 = vector.broadcast %291 : vector<1x128xi1> to vector<16x128xi1>
      %293 = arith.select %292, %281, %246 : vector<16x128xi1>, vector<16x128xf32>
      %294 = vector.shape_cast %283 : vector<1x128xi1> to vector<1x128xi1>
      %295 = vector.broadcast %294 : vector<1x128xi1> to vector<16x128xi1>
      %296 = arith.select %295, %279, %249 : vector<16x128xi1>, vector<16x128xf32>
      %c1 = arith.constant 1 : index
      %c0_85 = arith.constant 0 : index
      %c0_86 = arith.constant 0 : index
      %297 = vector.load %arg3[%c1, %c0_85, %c0_86] : memref<8x8x128xf32, #tpu.memory_space<vmem>>, vector<1x8x128xf32>
      %298 = vector.shape_cast %297 : vector<1x8x128xf32> to vector<8x128xf32>
      %cst_87 = arith.constant dense<0.000000e+00> : vector<64x128xf32>
      %299 = tpu.matmul %6, %298, %cst_87 {dimension_numbers = #tpu.dot_dimension_numbers<[1], [0], [0], [1], [0, 0, 1, 1], [], []>} : vector<64x8xf32>, vector<8x128xf32>, vector<64x128xf32> -> vector<64x128xf32>
      %cst_88 = arith.constant dense<0.000000e+00> : vector<64x128xf32>
      %300 = tpu.matmul %2, %293, %cst_88 {dimension_numbers = #tpu.dot_dimension_numbers<[1], [0], [0], [1], [0, 0, 1, 1], [], []>} : vector<64x16xf32>, vector<16x128xf32>, vector<64x128xf32> -> vector<64x128xf32>
      %301 = arith.addf %299, %300 : vector<64x128xf32>
      %302 = vector.broadcast %4 : vector<64x1xf32> to vector<64x128xf32>
      %303 = arith.addf %301, %302 : vector<64x128xf32>
      %304 = vector.extract_strided_slice %303 {offsets = [0, 0], sizes = [16, 128], strides = [1, 1]} : vector<64x128xf32> to vector<16x128xf32>
      %305 = arith.negf %304 : vector<16x128xf32>
      %306 = math.exp %305 : vector<16x128xf32>
      %cst_89 = arith.constant 1.000000e+00 : f32
      %307 = vector.broadcast %cst_89 : f32 to vector<16x128xf32>
      %308 = arith.addf %307, %306 : vector<16x128xf32>
      %309 = arith.divf %307, %308 : vector<16x128xf32>
      %310 = vector.extract_strided_slice %303 {offsets = [16, 0], sizes = [16, 128], strides = [1, 1]} : vector<64x128xf32> to vector<16x128xf32>
      %311 = arith.negf %310 : vector<16x128xf32>
      %312 = math.exp %311 : vector<16x128xf32>
      %cst_90 = arith.constant 1.000000e+00 : f32
      %313 = vector.broadcast %cst_90 : f32 to vector<16x128xf32>
      %314 = arith.addf %313, %312 : vector<16x128xf32>
      %315 = arith.divf %313, %314 : vector<16x128xf32>
      %316 = vector.extract_strided_slice %303 {offsets = [32, 0], sizes = [16, 128], strides = [1, 1]} : vector<64x128xf32> to vector<16x128xf32>
      %317 = math.tanh %316 : vector<16x128xf32>
      %318 = vector.extract_strided_slice %303 {offsets = [48, 0], sizes = [16, 128], strides = [1, 1]} : vector<64x128xf32> to vector<16x128xf32>
      %319 = arith.negf %318 : vector<16x128xf32>
      %320 = math.exp %319 : vector<16x128xf32>
      %cst_91 = arith.constant 1.000000e+00 : f32
      %321 = vector.broadcast %cst_91 : f32 to vector<16x128xf32>
      %322 = arith.addf %321, %320 : vector<16x128xf32>
      %323 = arith.divf %321, %322 : vector<16x128xf32>
      %324 = arith.mulf %315, %296 : vector<16x128xf32>
      %325 = arith.mulf %309, %317 : vector<16x128xf32>
      %326 = arith.addf %324, %325 : vector<16x128xf32>
      %327 = math.tanh %326 : vector<16x128xf32>
      %328 = arith.mulf %323, %327 : vector<16x128xf32>
      %c1_i32_92 = arith.constant 1 : i32
      %329 = vector.broadcast %c1_i32_92 : i32 to vector<1x128xi32>
      %330 = arith.cmpi sgt, %0, %329 : vector<1x128xi32>
      %cst_93 = arith.constant 0.000000e+00 : f32
      %331 = vector.shape_cast %330 : vector<1x128xi1> to vector<1x128xi1>
      %332 = vector.broadcast %331 : vector<1x128xi1> to vector<16x128xi1>
      %333 = vector.broadcast %cst_93 : f32 to vector<16x128xf32>
      %334 = arith.select %332, %328, %333 : vector<16x128xi1>, vector<16x128xf32>
      %c0_94 = arith.constant 0 : index
      %c1_95 = arith.constant 1 : index
      %c0_96 = arith.constant 0 : index
      %c0_97 = arith.constant 0 : index
      %335 = vector.load %arg7[%c0_94, %c1_95, %c0_96, %c0_97] : memref<1x8x16x128xf32, #tpu.memory_space<vmem>>, vector<1x1x16x128xf32>
      %336 = vector.shape_cast %335 : vector<1x1x16x128xf32> to vector<16x128xf32>
      %337 = vector.shape_cast %334 : vector<16x128xf32> to vector<1x1x16x128xf32>
      tpu.vector_store %arg7[%c0_94, %c1_95, %c0_96, %c0_97], %337 {strides = array<i32>} : memref<1x8x16x128xf32, #tpu.memory_space<vmem>>, vector<1x1x16x128xf32>,
      %338 = vector.shape_cast %330 : vector<1x128xi1> to vector<1x128xi1>
      %339 = vector.broadcast %338 : vector<1x128xi1> to vector<16x128xi1>
      %340 = arith.select %339, %328, %293 : vector<16x128xi1>, vector<16x128xf32>
      %341 = vector.shape_cast %330 : vector<1x128xi1> to vector<1x128xi1>
      %342 = vector.broadcast %341 : vector<1x128xi1> to vector<16x128xi1>
      %343 = arith.select %342, %326, %296 : vector<16x128xi1>, vector<16x128xf32>
      %c0_98 = arith.constant 0 : index
      %c0_99 = arith.constant 0 : index
      %c0_100 = arith.constant 0 : index
      %344 = vector.load %arg3[%c0_98, %c0_99, %c0_100] : memref<8x8x128xf32, #tpu.memory_space<vmem>>, vector<1x8x128xf32>
      %345 = vector.shape_cast %344 : vector<1x8x128xf32> to vector<8x128xf32>
      %cst_101 = arith.constant dense<0.000000e+00> : vector<64x128xf32>
      %346 = tpu.matmul %6, %345, %cst_101 {dimension_numbers = #tpu.dot_dimension_numbers<[1], [0], [0], [1], [0, 0, 1, 1], [], []>} : vector<64x8xf32>, vector<8x128xf32>, vector<64x128xf32> -> vector<64x128xf32>
      %cst_102 = arith.constant dense<0.000000e+00> : vector<64x128xf32>
      %347 = tpu.matmul %2, %340, %cst_102 {dimension_numbers = #tpu.dot_dimension_numbers<[1], [0], [0], [1], [0, 0, 1, 1], [], []>} : vector<64x16xf32>, vector<16x128xf32>, vector<64x128xf32> -> vector<64x128xf32>
      %348 = arith.addf %346, %347 : vector<64x128xf32>
      %349 = vector.broadcast %4 : vector<64x1xf32> to vector<64x128xf32>
      %350 = arith.addf %348, %349 : vector<64x128xf32>
      %351 = vector.extract_strided_slice %350 {offsets = [0, 0], sizes = [16, 128], strides = [1, 1]} : vector<64x128xf32> to vector<16x128xf32>
      %352 = arith.negf %351 : vector<16x128xf32>
      %353 = math.exp %352 : vector<16x128xf32>
      %cst_103 = arith.constant 1.000000e+00 : f32
      %354 = vector.broadcast %cst_103 : f32 to vector<16x128xf32>
      %355 = arith.addf %354, %353 : vector<16x128xf32>
      %356 = arith.divf %354, %355 : vector<16x128xf32>
      %357 = vector.extract_strided_slice %350 {offsets = [16, 0], sizes = [16, 128], strides = [1, 1]} : vector<64x128xf32> to vector<16x128xf32>
      %358 = arith.negf %357 : vector<16x128xf32>
      %359 = math.exp %358 : vector<16x128xf32>
      %cst_104 = arith.constant 1.000000e+00 : f32
      %360 = vector.broadcast %cst_104 : f32 to vector<16x128xf32>
      %361 = arith.addf %360, %359 : vector<16x128xf32>
      %362 = arith.divf %360, %361 : vector<16x128xf32>
      %363 = vector.extract_strided_slice %350 {offsets = [32, 0], sizes = [16, 128], strides = [1, 1]} : vector<64x128xf32> to vector<16x128xf32>
      %364 = math.tanh %363 : vector<16x128xf32>
      %365 = vector.extract_strided_slice %350 {offsets = [48, 0], sizes = [16, 128], strides = [1, 1]} : vector<64x128xf32> to vector<16x128xf32>
      %366 = arith.negf %365 : vector<16x128xf32>
      %367 = math.exp %366 : vector<16x128xf32>
      %cst_105 = arith.constant 1.000000e+00 : f32
      %368 = vector.broadcast %cst_105 : f32 to vector<16x128xf32>
      %369 = arith.addf %368, %367 : vector<16x128xf32>
      %370 = arith.divf %368, %369 : vector<16x128xf32>
      %371 = arith.mulf %362, %343 : vector<16x128xf32>
      %372 = arith.mulf %356, %364 : vector<16x128xf32>
      %373 = arith.addf %371, %372 : vector<16x128xf32>
      %374 = math.tanh %373 : vector<16x128xf32>
      %375 = arith.mulf %370, %374 : vector<16x128xf32>
      %c0_i32_106 = arith.constant 0 : i32
      %376 = vector.broadcast %c0_i32_106 : i32 to vector<1x128xi32>
      %377 = arith.cmpi sgt, %0, %376 : vector<1x128xi32>
      %cst_107 = arith.constant 0.000000e+00 : f32
      %378 = vector.shape_cast %377 : vector<1x128xi1> to vector<1x128xi1>
      %379 = vector.broadcast %378 : vector<1x128xi1> to vector<16x128xi1>
      %380 = vector.broadcast %cst_107 : f32 to vector<16x128xf32>
      %381 = arith.select %379, %375, %380 : vector<16x128xi1>, vector<16x128xf32>
      %c0_108 = arith.constant 0 : index
      %c0_109 = arith.constant 0 : index
      %c0_110 = arith.constant 0 : index
      %c0_111 = arith.constant 0 : index
      %382 = vector.load %arg7[%c0_108, %c0_109, %c0_110, %c0_111] : memref<1x8x16x128xf32, #tpu.memory_space<vmem>>, vector<1x1x16x128xf32>
      %383 = vector.shape_cast %382 : vector<1x1x16x128xf32> to vector<16x128xf32>
      %384 = vector.shape_cast %381 : vector<16x128xf32> to vector<1x1x16x128xf32>
      tpu.vector_store %arg7[%c0_108, %c0_109, %c0_110, %c0_111], %384 {strides = array<i32>} : memref<1x8x16x128xf32, #tpu.memory_space<vmem>>, vector<1x1x16x128xf32>,
    } else {
    }
    return
  }
  func.func @transform_0(%arg0: i32, %arg1: i32) -> (i32, i32) {
    %c0_i32 = arith.constant 0 : i32
    %c0_i32_0 = arith.constant 0 : i32
    return %c0_i32, %arg1 : i32, i32
  }
  func.func @transform_1(%arg0: i32, %arg1: i32) -> (i32, i32, i32) {
    %c0_i32 = arith.constant 0 : i32
    %c0_i32_0 = arith.constant 0 : i32
    %c0_i32_1 = arith.constant 0 : i32
    return %c0_i32, %c0_i32_0, %arg1 : i32, i32, i32
  }
  func.func @transform_2(%arg0: i32, %arg1: i32) -> (i32, i32, i32) {
    %c0_i32 = arith.constant 0 : i32
    %c0_i32_0 = arith.constant 0 : i32
    %c0_i32_1 = arith.constant 0 : i32
    return %arg0, %c0_i32, %c0_i32_0 : i32, i32, i32
  }
  func.func @transform_3(%arg0: i32, %arg1: i32) -> (i32, i32, i32) {
    %c0_i32 = arith.constant 0 : i32
    %c0_i32_0 = arith.constant 0 : i32
    %c0_i32_1 = arith.constant 0 : i32
    return %arg0, %c0_i32, %c0_i32_0 : i32, i32, i32
  }
  func.func @transform_4(%arg0: i32, %arg1: i32) -> (i32, i32, i32) {
    %c0_i32 = arith.constant 0 : i32
    %c0_i32_0 = arith.constant 0 : i32
    %c0_i32_1 = arith.constant 0 : i32
    return %arg0, %c0_i32, %c0_i32_0 : i32, i32, i32
  }
  func.func @transform_5(%arg0: i32, %arg1: i32) -> (i32, i32, i32, i32) {
    %c0_i32 = arith.constant 0 : i32
    %c0_i32_0 = arith.constant 0 : i32
    %c0_i32_1 = arith.constant 0 : i32
    return %arg0, %c0_i32, %c0_i32_0, %arg1 : i32, i32, i32, i32
  }
}

</mosaic_0001>

<bundles_post_ra>
// kernel: tpu_custom_call.1
= control target key start
LH: loop header
LB: loop body
LE: loop exit
PB: predicated region body
PF: predicated region fallthrough
CT: control target
= control target key end

     0   :  { %10 = vsyncpa [#allocation3], 0  ;;  %s7667_s0 = inlined_call_operand.vmem [shape: s32[1,128], index: 0, kind: input, shape index: {}]   ;;  %s7668_s1 = inlined_call_operand.vmem [shape: f32[8,8,128], index: 1, kind: input, shape index: {}]   ;;  %s7669_s2 = inlined_call_operand.vmem [shape: f32[2,64,8], index: 2, kind: input, shape index: {}]   ;;  %s7670_s3 = inlined_call_operand.vmem [shape: f32[2,64,16], index: 3, kind: input, shape index: {}]   ;;  %s7671_s4 = inlined_call_operand.vmem [shape: f32[2,64,1], index: 4, kind: input, shape index: {}]   ;;  %s7672_s5 = inlined_call_operand.hbm [shape: f32[2,8,16,128], index: 5, kind: output, shape index: {}]  }
   0x1   :  { %12 = vsyncpa [#allocation3 + $0x1], 0  ;;  %s5459_s18 = smov 0   ;;  %s5461_s19 = smov 0  }
   0x2   :  { %s5463_s20 = smov 0   ;;  %s5465_s21 = smov 0  }
   0x3   :  { %s5467_s22 = smov 0   ;;  %s5469_s23 = smov 0  }
   0x4 LB: > { %s4341_s24 = sadd.s32 4294967295, %s5421_s23   ;;  %s4342_s25 = sadd.s32 4294967294, %s5421_s23   ;;  %s5421_s23 = sphi %s5469_s23, %s18_s23   ;;  %s5417_s22 = sphi %s5467_s22, %s7789_s22   ;;  %s5413_s21 = sphi %s5465_s21, %s7788_s21   ;;  %s5409_s20 = sphi %s5463_s20, %s7787_s20   ;;  %s5405_s19 = sphi %s5461_s19, %s7786_s19   ;;  %s5401_s18 = sphi %s5459_s18, %s7785_s18  }
   0x5   : > { %s30_s26 = sadd.s32 1, %s5417_s22  ;;  %s169_s27 = sadd.s32 1, %s5409_s20 }
   0x6   : > { %p32_p0 = scmp.ge.s32.totalorder %s30_s26, 2  ;;  %p179_p1 = scmp.ne.s32.totalorder %s5409_s20, %s5405_s19 }
   0x7   : > { %p180_p2 = scmp.eq.s32.totalorder %s4341_s24, 1  ;;  %p185_p3 = scmp.ne.s32.totalorder %s5405_s19, %s5401_s18 }
   0x8   : > { %s7791_s26 = smov (%p32_p0, %s30_s26), 0  ;;  %p186_p5 = scmp.eq.s32.totalorder %s4342_s25, 1 }
   0x9   : > { %p5499_p4 = por %p180_p2, %p179_p1  ;;  %s164_s29 = ssub.s32 %s5417_s22, %s7791_s26 }
   0xa   : > { %p4347_p6 = scmp.ge.s32.totalorder %s5421_s23, 1  ;;  %p167_p7 = scmp.eq.s32.totalorder %s164_s29, 0 }
   0xb   : > { %p5506_p8 = por %p186_p5, %p185_p3  ;;  %p241_p9 = scmp.lt.s32.totalorder %s5421_s23, 3 }
   0xc   : > { %s5512_s6 = scalar_select %p167_p7, %s5409_s20, %s169_s27  }
   0xd   : > { %p242_p10 = pnand %p4347_p6, %p241_p9 }
   0xf   : > { %245 = sbr.rel (%p242_p10) target bundleno = 3623 (0xe27), region = 40 }
  0x14   : > { %s283_s7 = sand.u32 1, %s5405_s19   ;;  %p293_p11 = scmp.lt.s32.totalorder %s5413_s21, 1  ;;  %v5519_v0 = vld [vmem:[%s7667_s0] sm:$0x1] }
  0x15   : > { %s5523_s10 = sshll.u32 %s283_s7, 7  ;;  %p4355_p12 = scmp.ne.s32.totalorder %s5413_s21, 0 }
  0x16   : > { %s294_s11 = scalar_select %p293_p11, %s5413_s21, 1 }
  0x17   : > { %s5584_s8 = scalar_lea.vmem [#allocation2], %s5523_s10 }
  0x18   : > { %s4760_s12 = sshll.u32 %s294_s11, 6 }
  0x19   : > { %s302_s15 = scalar_lea.vmem %s7670_s3, %s4760_s12  ;;  %s307_s24 = scalar_lea.vmem %s7671_s4, %s4760_s12 }
  0x1a   : > { %v5532_v1 = vld [vmem:[%s302_s15] sm:$0xff]  ;;  %v5534_v2 = vld [vmem:[%s302_s15 + $0x8] sm:$0xff]  ;;  %v5536_v3 = vld [vmem:[%s302_s15 + $0x10] sm:$0xff]  ;;  %s297_s29 = scalar_lea.vmem %s7669_s2, %s4760_s12 }
  0x1b   : > { %v5538_v4 = vld [vmem:[%s302_s15 + $0x18] sm:$0xff]  ;;  %v5540_v5 = vld [vmem:[%s302_s15 + $0x20] sm:$0xff]  ;;  %v5542_v6 = vld [vmem:[%s302_s15 + $0x28] sm:$0xff] }
  0x1c   : > { %v5547_v7 = vld [vmem:[%s302_s15 + $0x30] sm:$0xff]  ;;  %v5549_v8 = vld [vmem:[%s302_s15 + $0x38] sm:$0xff]  ;;  %v5551_v9 = vld [vmem:[%s307_s24] sm:$0xff] }
  0x1d   : > { %v5553_v10 = vld [vmem:[%s307_s24 + $0x8] sm:$0xff]  ;;  %v5555_v11 = vld [vmem:[%s307_s24 + $0x10] sm:$0xff]  ;;  %v5557_v12 = vld [vmem:[%s307_s24 + $0x18] sm:$0xff]  ;;  %336 = sbr.rel (%p4355_p12) target bundleno = 1817 (0x719), region = 44 }
  0x1e   : > { %v5559_v13 = vld [vmem:[%s307_s24 + $0x20] sm:$0xff]  ;;  %v5561_v14 = vld [vmem:[%s307_s24 + $0x28] sm:$0xff]  ;;  %v5563_v15 = vld [vmem:[%s307_s24 + $0x30] sm:$0xff] }
  0x1f   : > { %7678 = vst [vmem:[#allocation5_spill] sm:$0xff] %v5561_v14  ;;  %v5565_v16 = vld [vmem:[%s307_s24 + $0x38] sm:$0xff]  ;;  %v5567_v17 = vld [vmem:[%s297_s29] sm:$0xff]  ;;  %v5569_v18 = vld [vmem:[%s297_s29 + $0x8] sm:$0xff] }
  0x20   : > { %v5571_v19 = vld [vmem:[%s297_s29 + $0x10] sm:$0xff]  ;;  %v5573_v20 = vld [vmem:[%s297_s29 + $0x18] sm:$0xff]  ;;  %v5575_v21 = vld [vmem:[%s297_s29 + $0x20] sm:$0xff] }
  0x21   : > { %v5577_v22 = vld [vmem:[%s297_s29 + $0x28] sm:$0xff]  ;;  %v5579_v23 = vld [vmem:[%s297_s29 + $0x30] sm:$0xff]  ;;  %v5581_v24 = vld [vmem:[%s297_s29 + $0x38] sm:$0xff] }
  0x22   : > { %v337_v25 = vld [vmem:[%s7668_s1] sm:$0xff]  ;;  %vm338_vm0 = vcmask 130048   ;;  %vm404_vm1 = vcmask 64512   ;;  %v5423_v26 = vmov 0.0   ;;  %v7673_v27 = vmov 0  }
  0x23   : > { %378 = vmatpush.msra.mxu0 %v5423_v26  ;;  %444 = vmatpush.msra.mxu1 %v337_v25  ;;  %vm644_vm2 = vcmp.gt.s32.totalorder %v5519_v0, 0 }
  0x24   : > { %4356 = vmatmul.msk.f32.vlgmr.msra.gmra.mxu0 %vm338_vm0, %v5532_v1  ;;  %4364 = vmatmul.msk.f32.vlgmr.msra.gmra.mxu1 %vm404_vm1, %v5567_v17 }
  0x25   : > { %4826 = vset.pattern.permute.xlu1 %v7673_v27  ;;  %4825 = vset.pattern.permute.xlu0 %v7673_v27 }
  0x26   : > { %472 = vperm.xlu1 %4826, %v5551_v9   ;;  %477 = vperm.xlu0 %4825, %v5553_v10  }
  0x27   : > { %4827 = vset.pattern.permute.xlu2 %v7673_v27 }
  0x28   : > { %507 = vperm.xlu2 %4827, %v5565_v16  }
  0x2c   : > { %4357 = vmatmul.msk.f32.gmra.mxu0 %vm338_vm0, %v5534_v2  ;;  %4365 = vmatmul.msk.f32.gmra.mxu1 %vm404_vm1, %v5569_v18 }
  0x2e   : > { %482 = vperm.xlu1 %4826, %v5555_v11   ;;  %487 = vperm.xlu0 %4825, %v5557_v12  }
  0x30   : > { %502 = vperm.xlu2 %4827, %v5563_v15  }
  0x34   : > { %4358 = vmatmul.msk.f32.gmra.mxu0 %vm338_vm0, %v5536_v3  ;;  %4366 = vmatmul.msk.f32.gmra.mxu1 %vm404_vm1, %v5571_v19 }
  0x36   : > { %492 = vperm.xlu1 %4826, %v5559_v13   ;;  %497 = vperm.xlu0 %4825, %v5561_v14  }
  0x3c   : > { %4359 = vmatmul.msk.f32.gmra.mxu0 %vm338_vm0, %v5538_v4  ;;  %4367 = vmatmul.msk.f32.gmra.mxu1 %vm404_vm1, %v5573_v20 }
  0x44   : > { %4360 = vmatmul.msk.f32.gmra.mxu0 %vm338_vm0, %v5540_v5  ;;  %4368 = vmatmul.msk.f32.gmra.mxu1 %vm404_vm1, %v5575_v21 }
  0x4c   : > { %4361 = vmatmul.msk.f32.gmra.mxu0 %vm338_vm0, %v5542_v6  ;;  %4369 = vmatmul.msk.f32.gmra.mxu1 %vm404_vm1, %v5577_v22 }
  0x54   : > { %4362 = vmatmul.msk.f32.gmra.mxu0 %vm338_vm0, %v5547_v7  ;;  %4370 = vmatmul.msk.f32.gmra.mxu1 %vm404_vm1, %v5579_v23 }
  0x5c   : > { %4363 = vmatmul.msk.f32.gmra.mxu0 %vm338_vm0, %v5549_v8  ;;  %4371 = vmatmul.msk.f32.gmra.mxu1 %vm404_vm1, %v5581_v24 }
  0x98   : > { %v5633_v28 = vpop.permute.xlu1 %472  ;;  %v5636_v34 = vpop.permute.xlu0 %477 }
  0xa0   : > { %v5639_v41 = vpop.permute.xlu1 %482  ;;  %v5647_v50 = vpop.permute.xlu0 %487 }
  0xa1   : > { %v380_v29 = vpop.f32.mrf.mxu0  ;;  %v446_v30 = vpop.f32.mrf.mxu1 }
  0xa2   : > { %v447_v31 = vadd.f32 %v446_v30, %v380_v29 }
  0xa4   : > { %v510_v32 = vadd.f32 %v5633_v28, %v447_v31 }
  0xa6   : > { %v4372_v33 = vmul.f32 -1.442695, %v510_v32  ;;  %v5663_v32 = vpop.permute.xlu2 %507 }
  0xa8   : > { %4828 = vpow2.f32 %v4372_v33  ;;  %v5655_v60 = vpop.permute.xlu1 %492 }
  0xa9   : > { %v383_v35 = vpop.f32.mrf.mxu0  ;;  %v449_v36 = vpop.f32.mrf.mxu1 }
  0xaa   : > { %v450_v37 = vadd.f32 %v449_v36, %v383_v35 }
  0xac   : > { %v511_v38 = vadd.f32 %v5636_v34, %v450_v37  ;;  %v645_v37 = vsel %vm644_vm2, 1, %v7673_v27 }
  0xae   : > { %v4829_v39 = vpop.eup %4828  ;;  %v4373_v40 = vmul.f32 -1.442695, %v511_v38 }
  0xaf   : > { %v5641_v42 = vadd.f32 1.0, %v4829_v39 }
  0xb0   : > { %4830 = vpow2.f32 %v4373_v40 }
  0xb1   : > { %v386_v43 = vpop.f32.mrf.mxu0  ;;  %v452_v44 = vpop.f32.mrf.mxu1  ;;  %4832 = vrcp.f32 %v5641_v42  ;;  %vm531_vm4 = vweird.f32 %v5641_v42 }
  0xb2   : > { %v453_v45 = vadd.f32 %v452_v44, %v386_v43  ;;  %v535_v44 = vand.u32 2147483647, %v5641_v42 }
  0xb4   : > { %v512_v46 = vadd.f32 %v5639_v41, %v453_v45  ;;  %vm5686_vm7 = vcmp.eq.f32.partialorder %v535_v44, 8.507059e+37 }
  0xb6   : > { %v4831_v47 = vpop.eup %4830  ;;  %v4374_v48 = vmul.f32 -1.442695, %v512_v46 }
  0xb7   : > { %v5645_v49 = vadd.f32 1.0, %v4831_v47  ;;  %v5649_v54 = vpop.eup %4832 }
  0xb8   : > { %4834 = vpow2.f32 %v4374_v48  ;;  %v527_v58 = vmul.f32 %v5649_v54, %v5641_v42  ;;  %vm532_vm3 = vweird.f32 %v5649_v54  ;;  %v646_v48 = vperm.slane %v645_v37, 0  ;;  %v5696_v37 = vpop.permute.xlu2 %502 }
  0xb9   : > { %v389_v51 = vpop.f32.mrf.mxu0  ;;  %v455_v52 = vpop.f32.mrf.mxu1  ;;  %4836 = vrcp.f32 %v5645_v49  ;;  %vm5679_vm6 = vmor %vm531_vm4, %vm532_vm3  ;;  %vm546_vm9 = vweird.f32 %v5645_v49 }
  0xba   : > { %v456_v53 = vadd.f32 %v455_v52, %v389_v51  ;;  %v528_v26 = vsub.f32 1.0, %v527_v58  ;;  %v537_v51 = vand.u32 2147483648, %v5641_v42  ;;  %vm5691_vm10 = vcmp.eq.s32.totalorder %v646_v48, 1 }
  0xbc   : > { %v513_v55 = vadd.f32 %v5647_v50, %v456_v53  ;;  %v529_v33 = vmul.f32 %v5649_v54, %v528_v26  ;;  %v5674_v53 = vpop.permute.xlu0 %497 }
  0xbe   : > { %v4835_v56 = vpop.eup %4834  ;;  %v4375_v57 = vmul.f32 -1.442695, %v513_v55  ;;  %v530_v46 = vadd.f32 %v5649_v54, %v529_v33 }
  0xbf   : > { %v562_v59 = vadd.f32 1.0, %v4835_v56  ;;  %v5657_v63 = vpop.eup %4836 }
  0xc0   : > { %4838 = vpow2.f32 %v4375_v57  ;;  %v542_v30 = vmul.f32 %v5657_v63, %v5645_v49  ;;  %vm547_vm12 = vweird.f32 %v5657_v63 }
  0xc1   : > { %4840 = vrcp.f32 %v562_v59  ;;  %v392_v61 = vpop.f32.mrf.mxu0  ;;  %v458_v62 = vpop.f32.mrf.mxu1  ;;  %v575_v52 = vand.u32 2147483648, %v562_v59  ;;  %v573_v56 = vand.u32 2147483647, %v562_v59  ;;  %vm569_vm8 = vweird.f32 %v562_v59  ;;  %vm5710_vm14 = vmor %vm546_vm9, %vm547_vm12 }
  0xc2   : > { %v459_v25 = vadd.f32 %v458_v62, %v392_v61  ;;  %v543_v43 = vsub.f32 1.0, %v542_v30 }
  0xc3   : > { %v576_v33 = vor.u32 1.1754944e-38, %v575_v52  ;;  %vm574_vm13 = vcmp.eq.f32.partialorder %v573_v56, 8.507059e+37  ;;  %v552_v52 = vand.u32 2147483648, %v5645_v49 }
  0xc4   : > { %v514_v29 = vadd.f32 %v5655_v60, %v459_v25  ;;  %v544_v58 = vmul.f32 %v5657_v63, %v543_v43  ;;  %v534_v25 = vsel %vm5679_vm6, %v5649_v54, %v530_v46 }
  0xc6   : > { %v4839_v31 = vpop.eup %4838  ;;  %4842 = vtanh.f32 %v514_v29 }
  0xc7   : > { %v4841_v35 = vpop.eup %4840  ;;  %v5666_v36 = vadd.f32 1.0, %v4839_v31  ;;  %v538_v31 = vor.u32 1.1754944e-38, %v537_v51  ;;  %v550_v51 = vand.u32 2147483647, %v5645_v49 }
  0xc8   : > { %v565_v38 = vmul.f32 %v4841_v35, %v562_v59  ;;  %vm570_vm5 = vweird.f32 %v4841_v35  ;;  %v545_v59 = vadd.f32 %v5657_v63, %v544_v58 }
  0xc9   : > { %4844 = vrcp.f32 %v5666_v36  ;;  %v395_v39 = vpop.f32.mrf.mxu0  ;;  %v461_v40 = vpop.f32.mrf.mxu1  ;;  %vm571_vm11 = vmor %vm569_vm8, %vm570_vm5  ;;  %v539_v43 = vsel %vm5686_vm7, %v538_v31, %v534_v25  ;;  %vm584_vm2 = vweird.f32 %v5666_v36  ;;  %v553_v31 = vor.u32 1.1754944e-38, %v552_v52 }
  0xca   : > { %v462_v45 = vadd.f32 %v461_v40, %v395_v39  ;;  %v566_v47 = vsub.f32 1.0, %v565_v38  ;;  %vm551_vm4 = vcmp.eq.f32.partialorder %v550_v51, 8.507059e+37 }
  0xcc   : > { %v567_v55 = vmul.f32 %v4841_v35, %v566_v47  ;;  %v515_v57 = vadd.f32 %v5674_v53, %v462_v45  ;;  %v4843_v62 = vpop.eup %4842 }
  0xcd   : > { %v636_v48 = vmul.f32 %v4843_v62, %v539_v43  ;;  %v549_v62 = vsel %vm5710_vm14, %v5657_v63, %v545_v59 }
  0xce   : > { %v568_v42 = vadd.f32 %v4841_v35, %v567_v55  ;;  %4846 = vtanh.f32 %v515_v57  ;;  %v590_v55 = vand.u32 2147483648, %v5666_v36 }
  0xcf   : > { %v4845_v29 = vpop.eup %4844 }
  0xd0   : > { %v580_v54 = vmul.f32 %v4845_v29, %v5666_v36  ;;  %v572_v38 = vsel %vm571_vm11, %v4841_v35, %v568_v42  ;;  %v588_v35 = vand.u32 2147483647, %v5666_v36  ;;  %vm585_vm15 = vweird.f32 %v4845_v29 }
  0xd1   : > { %v398_v39 = vpop.f32.mrf.mxu0  ;;  %v464_v40 = vpop.f32.mrf.mxu1  ;;  %v577_v44 = vsel %vm574_vm13, %v576_v33, %v572_v38  ;;  %vm586_vm3 = vmor %vm584_vm2, %vm585_vm15  ;;  %v591_v33 = vor.u32 1.1754944e-38, %v590_v55  ;;  %v554_v38 = vsel %vm551_vm4, %v553_v31, %v549_v62 }
  0xd2   : > { %v465_v45 = vadd.f32 %v464_v40, %v398_v39  ;;  %v581_v46 = vsub.f32 1.0, %v580_v54  ;;  %v634_v47 = vmul.f32 0.0, %v577_v44  ;;  %vm589_vm5 = vcmp.eq.f32.partialorder %v588_v35, 8.507059e+37 }
  0xd4   : > { %v516_v57 = vadd.f32 %v5696_v37, %v465_v45  ;;  %v582_v58 = vmul.f32 %v4845_v29, %v581_v46  ;;  %v638_v61 = vadd.f32 %v636_v48, %v634_v47  ;;  %v4847_v42 = vpop.eup %4846 }
  0xd5   : > { %v637_v59 = vmul.f32 %v4847_v42, %v554_v38 }
  0xd6   : > { %v4376_v25 = vmul.f32 -1.442695, %v516_v57  ;;  %v583_v26 = vadd.f32 %v4845_v29, %v582_v58  ;;  %v5721_v49 = vsel %vm5691_vm10, %v638_v61, 0.0 }
  0xd8   : > { %4848 = vpow2.f32 %v4376_v25  ;;  %v587_v54 = vsel %vm586_vm3, %v4845_v29, %v583_v26  ;;  %v4378_v29 = vld [vmem:[%s7668_s1 + $0x8] sm:$0xff] }
  0xd9   : > { %v401_v39 = vpop.f32.mrf.mxu0  ;;  %v467_v40 = vpop.f32.mrf.mxu1  ;;  %v592_v63 = vsel %vm589_vm5, %v591_v33, %v587_v54  ;;  %712 = vmatpush.msra.mxu3 %v4378_v29 }
  0xda   : > { %v468_v43 = vadd.f32 %v467_v40, %v401_v39  ;;  %v635_v44 = vmul.f32 0.0, %v592_v63  ;;  %4389 = vmatmul.msk.f32.vlgmr.msra.gmra.mxu3 %vm404_vm1, %v5567_v17 }
  0xdc   : > { %v517_v36 = vadd.f32 %v5663_v32, %v468_v43  ;;  %v639_v45 = vadd.f32 %v637_v59, %v635_v44 }
  0xde   : > { %v4849_v46 = vpop.eup %4848  ;;  %v4377_v47 = vmul.f32 -1.442695, %v517_v36  ;;  %v5726_v48 = vsel %vm5691_vm10, %v639_v45, 0.0 }
  0xdf   : > { %v602_v51 = vadd.f32 1.0, %v4849_v46 }
  0xe0   : > { %4850 = vpow2.f32 %v4377_v47 }
  0xe1   : > { %4852 = vrcp.f32 %v602_v51  ;;  %v615_v58 = vand.u32 2147483648, %v602_v51  ;;  %v613_v25 = vand.u32 2147483647, %v602_v51  ;;  %vm609_vm7 = vweird.f32 %v602_v51 }
  0xe2   : > { %4390 = vmatmul.msk.f32.gmra.mxu3 %vm404_vm1, %v5569_v18 }
  0xe3   : > { %v616_v31 = vor.u32 1.1754944e-38, %v615_v58  ;;  %vm614_vm9 = vcmp.eq.f32.partialorder %v613_v25, 8.507059e+37 }
  0xe6   : > { %v4851_v52 = vpop.eup %4850 }
  0xe7   : > { %v4853_v35 = vpop.eup %4852  ;;  %v603_v55 = vadd.f32 1.0, %v4851_v52 }
  0xe8   : > { %v605_v56 = vmul.f32 %v4853_v35, %v602_v51  ;;  %vm610_vm6 = vweird.f32 %v4853_v35 }
  0xe9   : > { %4854 = vrcp.f32 %v603_v55  ;;  %vm611_vm8 = vmor %vm609_vm7, %vm610_vm6  ;;  %v628_v43 = vand.u32 2147483647, %v603_v55  ;;  %vm624_vm12 = vweird.f32 %v603_v55 }
  0xea   : > { %v606_v57 = vsub.f32 1.0, %v605_v56  ;;  %4856 = vtanh.f32 %v638_v61  ;;  %4391 = vmatmul.msk.f32.gmra.mxu3 %vm404_vm1, %v5571_v19  ;;  %v630_v61 = vand.u32 2147483648, %v603_v55 }
  0xeb   : > { %4858 = vtanh.f32 %v639_v45  ;;  %vm629_vm14 = vcmp.eq.f32.partialorder %v628_v43, 8.507059e+37 }
  0xec   : > { %v607_v62 = vmul.f32 %v4853_v35, %v606_v57  ;;  %v631_v46 = vor.u32 1.1754944e-38, %v630_v61 }
  0xee   : > { %v608_v26 = vadd.f32 %v4853_v35, %v607_v62 }
  0xef   : > { %v4855_v42 = vpop.eup %4854 }
  0xf0   : > { %v620_v33 = vmul.f32 %v4855_v42, %v603_v55  ;;  %v612_v54 = vsel %vm611_vm8, %v4853_v35, %v608_v26  ;;  %v4857_v38 = vpop.eup %4856  ;;  %vm625_vm11 = vweird.f32 %v4855_v42 }
  0xf1   : > { %v617_v39 = vsel %vm614_vm9, %v616_v31, %v612_v54  ;;  %vm626_vm13 = vmor %vm624_vm12, %vm625_vm11  ;;  %v4859_v45 = vpop.eup %4858 }
  0xf2   : > { %v621_v40 = vsub.f32 1.0, %v620_v33  ;;  %v642_v63 = vmul.f32 %v4857_v38, %v617_v39  ;;  %4392 = vmatmul.msk.f32.gmra.mxu3 %vm404_vm1, %v5573_v20 }
  0xf4   : > { %v622_v59 = vmul.f32 %v4855_v42, %v621_v40  ;;  %v5739_v44 = vsel %vm5691_vm10, %v642_v63, 0.0 }
  0xf5   : > { %650 = vst [vmem:[%s5584_s8] sm:$0xff] %v5739_v44 }
  0xf6   : > { %v623_v36 = vadd.f32 %v4855_v42, %v622_v59 }
  0xf8   : > { %v627_v47 = vsel %vm626_vm13, %v4855_v42, %v623_v36 }
  0xf9   : > { %v632_v29 = vsel %vm629_vm14, %v631_v46, %v627_v47 }
  0xfa   : > { %v643_v51 = vmul.f32 %v4859_v45, %v632_v29  ;;  %4393 = vmatmul.msk.f32.gmra.mxu3 %vm404_vm1, %v5575_v21 }
  0xfc   : > { %4379 = vmatpush.msk.msra.mxu2 %vm5691_vm10, %v643_v51  ;;  %v5749_v52 = vsel %vm5691_vm10, %v643_v51, 0.0 }
  0xfd   : > { %651 = vst [vmem:[%s5584_s8 + $0x8] sm:$0xff] %v5749_v52 }
  0xfe   : > { %4380 = vmatpush.msk.msra.mxu2 %vm5691_vm10, %v642_v63  ;;  %vm872_vm10 = vcmp.gt.s32.totalorder %v5519_v0, 1 }
  0xff   : > { %4381 = vmatmul.msk.f32.vlgmr.msra.gmra.mxu2 %vm338_vm0, %v5532_v1 }
 0x102   : > { %4394 = vmatmul.msk.f32.gmra.mxu3 %vm404_vm1, %v5577_v22 }
 0x107   : > { %4382 = vmatmul.msk.f32.gmra.mxu2 %vm338_vm0, %v5534_v2 }
 0x10a   : > { %4395 = vmatmul.msk.f32.gmra.mxu3 %vm404_vm1, %v5579_v23 }
 0x10f   : > { %4383 = vmatmul.msk.f32.gmra.mxu2 %vm338_vm0, %v5536_v3 }
 0x112   : > { %4396 = vmatmul.msk.f32.gmra.mxu3 %vm404_vm1, %v5581_v24 }
 0x117   : > { %4384 = vmatmul.msk.f32.gmra.mxu2 %vm338_vm0, %v5538_v4 }
 0x11f   : > { %4385 = vmatmul.msk.f32.gmra.mxu2 %vm338_vm0, %v5540_v5 }
 0x127   : > { %4386 = vmatmul.msk.f32.gmra.mxu2 %vm338_vm0, %v5542_v6 }
 0x12f   : > { %4387 = vmatmul.msk.f32.gmra.mxu2 %vm338_vm0, %v5547_v7 }
 0x137   : > { %4388 = vmatmul.msk.f32.gmra.mxu2 %vm338_vm0, %v5549_v8 }
 0x15d   : > { %v714_v30 = vpop.f32.mrf.mxu3 }
 0x165   : > { %v717_v35 = vpop.f32.mrf.mxu3 }
 0x16d   : > { %v720_v58 = vpop.f32.mrf.mxu3 }
 0x175   : > { %v723_v54 = vpop.f32.mrf.mxu3 }
 0x17d   : > { %v726_v46 = vpop.f32.mrf.mxu3 }
 0x182   : > { %v673_v55 = vpop.f32.mrf.mxu2 }
 0x183   : > { %v715_v56 = vadd.f32 %v714_v30, %v673_v55 }
 0x185   : > { %v738_v57 = vadd.f32 %v715_v56, %v5633_v28 }
 0x187   : > { %v4397_v62 = vmul.f32 -1.442695, %v738_v57 }
 0x189   : > { %4860 = vpow2.f32 %v4397_v62 }
 0x18a   : > { %v676_v25 = vpop.f32.mrf.mxu2 }
 0x18b   : > { %v718_v26 = vadd.f32 %v717_v35, %v676_v25  ;;  %v729_v25 = vpop.f32.mrf.mxu3 }
 0x18d   : > { %v739_v42 = vadd.f32 %v718_v26, %v5636_v34 }
 0x18f   : > { %v4861_v31 = vpop.eup %4860  ;;  %v4398_v33 = vmul.f32 -1.442695, %v739_v42 }
 0x190   : > { %v5781_v38 = vadd.f32 1.0, %v4861_v31 }
 0x191   : > { %4862 = vpow2.f32 %v4398_v33 }
 0x192   : > { %v679_v39 = vpop.f32.mrf.mxu2  ;;  %4864 = vrcp.f32 %v5781_v38  ;;  %vm759_vm3 = vweird.f32 %v5781_v38 }
 0x193   : > { %v721_v40 = vadd.f32 %v720_v58, %v679_v39 }
 0x195   : > { %v740_v63 = vadd.f32 %v721_v40, %v5639_v41 }
 0x197   : > { %v4863_v61 = vpop.eup %4862  ;;  %v4399_v59 = vmul.f32 -1.442695, %v740_v63  ;;  %v873_v63 = vsel %vm872_vm10, 1, %v7673_v27 }
 0x198   : > { %v5785_v43 = vadd.f32 1.0, %v4863_v61  ;;  %v4865_v45 = vpop.eup %4864 }
 0x199   : > { %4866 = vpow2.f32 %v4399_v59  ;;  %v755_v30 = vmul.f32 %v4865_v45, %v5781_v38  ;;  %v763_v59 = vand.u32 2147483647, %v5781_v38  ;;  %vm760_vm15 = vweird.f32 %v4865_v45 }
 0x19a   : > { %v682_v36 = vpop.f32.mrf.mxu2  ;;  %4868 = vrcp.f32 %v5785_v43  ;;  %vm5803_vm4 = vmor %vm759_vm3, %vm760_vm15  ;;  %vm774_vm8 = vweird.f32 %v5785_v43  ;;  %v778_v27 = vand.u32 2147483647, %v5785_v43 }
 0x19b   : > { %v724_v47 = vadd.f32 %v723_v54, %v682_v36  ;;  %v756_v58 = vsub.f32 1.0, %v755_v30  ;;  %v765_v30 = vand.u32 2147483648, %v5781_v38  ;;  %vm764_vm6 = vcmp.eq.f32.partialorder %v763_v59, 8.507059e+37 }
 0x19d   : > { %v741_v29 = vadd.f32 %v724_v47, %v5647_v50  ;;  %v757_v33 = vmul.f32 %v4865_v45, %v756_v58 }
 0x19f   : > { %v4867_v51 = vpop.eup %4866  ;;  %v4400_v35 = vmul.f32 -1.442695, %v741_v29  ;;  %v758_v47 = vadd.f32 %v4865_v45, %v757_v33 }
 0x1a0   : > { %v790_v55 = vadd.f32 1.0, %v4867_v51  ;;  %v5790_v57 = vpop.eup %4868 }
 0x1a1   : > { %4870 = vpow2.f32 %v4400_v35  ;;  %v770_v42 = vmul.f32 %v5790_v57, %v5785_v43  ;;  %v874_v35 = vperm.slane %v873_v63, 0  ;;  %vm775_vm12 = vweird.f32 %v5790_v57 }
 0x1a2   : > { %4872 = vrcp.f32 %v790_v55  ;;  %v685_v56 = vpop.f32.mrf.mxu2  ;;  %v803_v51 = vand.u32 2147483648, %v790_v55  ;;  %v801_v58 = vand.u32 2147483647, %v790_v55  ;;  %vm797_vm5 = vweird.f32 %v790_v55  ;;  %vm5828_vm14 = vmor %vm774_vm8, %vm775_vm12 }
 0x1a3   : > { %v727_v62 = vadd.f32 %v726_v46, %v685_v56  ;;  %v771_v61 = vsub.f32 1.0, %v770_v42  ;;  %vm5812_vm9 = vcmp.eq.s32.totalorder %v874_v35, 1 }
 0x1a4   : > { %v804_v38 = vor.u32 1.1754944e-38, %v803_v51  ;;  %vm802_vm11 = vcmp.eq.f32.partialorder %v801_v58, 8.507059e+37 }
 0x1a5   : > { %v742_v26 = vadd.f32 %v727_v62, %v5655_v60  ;;  %v772_v42 = vmul.f32 %v5790_v57, %v771_v61 }
 0x1a7   : > { %v4871_v31 = vpop.eup %4870  ;;  %4874 = vtanh.f32 %v742_v26  ;;  %v773_v59 = vadd.f32 %v5790_v57, %v772_v42 }
 0x1a8   : > { %v4873_v54 = vpop.eup %4872  ;;  %v5796_v39 = vadd.f32 1.0, %v4871_v31  ;;  %v732_v31 = vpop.f32.mrf.mxu3 }
 0x1a9   : > { %v793_v40 = vmul.f32 %v4873_v54, %v790_v55  ;;  %vm798_vm2 = vweird.f32 %v4873_v54 }
 0x1aa   : > { %4876 = vrcp.f32 %v5796_v39  ;;  %v688_v36 = vpop.f32.mrf.mxu2  ;;  %vm799_vm7 = vmor %vm797_vm5, %vm798_vm2  ;;  %v818_v62 = vand.u32 2147483648, %v5796_v39  ;;  %v816_v58 = vand.u32 2147483647, %v5796_v39  ;;  %vm812_vm10 = vweird.f32 %v5796_v39 }
 0x1ab   : > { %v794_v46 = vsub.f32 1.0, %v793_v40  ;;  %v730_v29 = vadd.f32 %v729_v25, %v688_v36  ;;  %v762_v25 = vsel %vm5803_vm4, %v4865_v45, %v758_v47  ;;  %v766_v36 = vor.u32 1.1754944e-38, %v765_v30 }
 0x1ac   : > { %vm779_vm2 = vcmp.eq.f32.partialorder %v778_v27, 8.507059e+37  ;;  %vm817_vm3 = vcmp.eq.f32.partialorder %v816_v58, 8.507059e+37 }
 0x1ad   : > { %v795_v56 = vmul.f32 %v4873_v54, %v794_v46  ;;  %v743_v26 = vadd.f32 %v730_v29, %v5674_v53  ;;  %v4875_v33 = vpop.eup %4874  ;;  %v767_v55 = vsel %vm764_vm6, %v766_v36, %v762_v25 }
 0x1af   : > { %v796_v40 = vadd.f32 %v4873_v54, %v795_v56  ;;  %4878 = vtanh.f32 %v743_v26  ;;  %v864_v56 = vmul.f32 %v4875_v33, %v767_v55 }
 0x1b0   : > { %v4877_v63 = vpop.eup %4876  ;;  %v735_v55 = vpop.f32.mrf.mxu3 }
 0x1b1   : > { %v808_v61 = vmul.f32 %v4877_v63, %v5796_v39  ;;  %v800_v29 = vsel %vm799_vm7, %v4873_v54, %v796_v40  ;;  %v780_v54 = vand.u32 2147483648, %v5785_v43  ;;  %vm813_vm13 = vweird.f32 %v4877_v63 }
 0x1b2   : > { %v805_v45 = vsel %vm802_vm11, %v804_v38, %v800_v29  ;;  %v691_v47 = vpop.f32.mrf.mxu2  ;;  %vm814_vm15 = vmor %vm812_vm10, %vm813_vm13 }
 0x1b3   : > { %v809_v51 = vsub.f32 1.0, %v808_v61  ;;  %v862_v30 = vmul.f32 %v805_v45, %v5721_v49  ;;  %v733_v35 = vadd.f32 %v732_v31, %v691_v47  ;;  %v777_v31 = vsel %vm5828_vm14, %v5790_v57, %v773_v59 }
 0x1b4   : > { %v819_v61 = vor.u32 1.1754944e-38, %v818_v62  ;;  %v781_v29 = vor.u32 1.1754944e-38, %v780_v54 }
 0x1b5   : > { %v810_v40 = vmul.f32 %v4877_v63, %v809_v51  ;;  %v866_v25 = vadd.f32 %v864_v56, %v862_v30  ;;  %v744_v42 = vadd.f32 %v733_v35, %v5696_v37  ;;  %v4879_v43 = vpop.eup %4878  ;;  %v4405_v35 = vld [vmem:[%s7668_s1 + $0x10] sm:$0xff] }
 0x1b6   : > { %v782_v47 = vsel %vm779_vm2, %v781_v29, %v777_v31  ;;  %943 = vmatpush.msrb.mxu1 %v4405_v35 }
 0x1b7   : > { %v811_v33 = vadd.f32 %v4877_v63, %v810_v40  ;;  %v4401_v38 = vmul.f32 -1.442695, %v744_v42  ;;  %v5840_v36 = vsel %vm5812_vm9, %v866_v25, %v5721_v49  ;;  %v865_v51 = vmul.f32 %v4879_v43, %v782_v47  ;;  %4414 = vmatmul.msk.f32.vlgmr.msrb.gmra.mxu1 %vm404_vm1, %v5567_v17 }
 0x1b9   : > { %v815_v45 = vsel %vm814_vm15, %v4877_v63, %v811_v33  ;;  %4880 = vpow2.f32 %v4401_v38 }
 0x1ba   : > { %v820_v57 = vsel %vm817_vm3, %v819_v61, %v815_v45  ;;  %v694_v59 = vpop.f32.mrf.mxu2 }
 0x1bb   : > { %v863_v39 = vmul.f32 %v820_v57, %v5726_v48  ;;  %v736_v30 = vadd.f32 %v735_v55, %v694_v59 }
 0x1bd   : > { %v867_v56 = vadd.f32 %v865_v51, %v863_v39  ;;  %v745_v49 = vadd.f32 %v736_v30, %v5663_v32 }
 0x1bf   : > { %v4881_v62 = vpop.eup %4880  ;;  %v4402_v54 = vmul.f32 -1.442695, %v745_v49  ;;  %v5850_v27 = vsel %vm5812_vm9, %v867_v56, %v5726_v48  ;;  %4415 = vmatmul.msk.f32.gmra.mxu1 %vm404_vm1, %v5569_v18 }
 0x1c0   : > { %v830_v63 = vadd.f32 1.0, %v4881_v62 }
 0x1c1   : > { %4882 = vpow2.f32 %v4402_v54 }
 0x1c2   : > { %4884 = vrcp.f32 %v830_v63  ;;  %v843_v33 = vand.u32 2147483648, %v830_v63  ;;  %v841_v48 = vand.u32 2147483647, %v830_v63  ;;  %vm837_vm5 = vweird.f32 %v830_v63 }
 0x1c4   : > { %v844_v29 = vor.u32 1.1754944e-38, %v843_v33  ;;  %vm842_vm7 = vcmp.eq.f32.partialorder %v841_v48, 8.507059e+37 }
 0x1c7   : > { %v4883_v58 = vpop.eup %4882  ;;  %4416 = vmatmul.msk.f32.gmra.mxu1 %vm404_vm1, %v5571_v19 }
 0x1c8   : > { %v4885_v40 = vpop.eup %4884  ;;  %v831_v26 = vadd.f32 1.0, %v4883_v58 }
 0x1c9   : > { %v833_v42 = vmul.f32 %v4885_v40, %v830_v63  ;;  %vm838_vm4 = vweird.f32 %v4885_v40 }
 0x1ca   : > { %4886 = vrcp.f32 %v831_v26  ;;  %vm839_vm6 = vmor %vm837_vm5, %vm838_vm4  ;;  %v856_v30 = vand.u32 2147483647, %v831_v26  ;;  %vm852_vm11 = vweird.f32 %v831_v26 }
 0x1cb   : > { %v834_v31 = vsub.f32 1.0, %v833_v42  ;;  %4888 = vtanh.f32 %v866_v25  ;;  %v858_v25 = vand.u32 2147483648, %v831_v26 }
 0x1cc   : > { %4890 = vtanh.f32 %v867_v56  ;;  %vm857_vm13 = vcmp.eq.f32.partialorder %v856_v30, 8.507059e+37 }
 0x1cd   : > { %v835_v38 = vmul.f32 %v4885_v40, %v834_v31  ;;  %v859_v62 = vor.u32 1.1754944e-38, %v858_v25 }
 0x1cf   : > { %v836_v43 = vadd.f32 %v4885_v40, %v835_v38  ;;  %4417 = vmatmul.msk.f32.gmra.mxu1 %vm404_vm1, %v5573_v20 }
 0x1d0   : > { %v4887_v61 = vpop.eup %4886 }
 0x1d1   : > { %v848_v55 = vmul.f32 %v4887_v61, %v831_v26  ;;  %v840_v45 = vsel %vm839_vm6, %v4885_v40, %v836_v43  ;;  %v4889_v47 = vpop.eup %4888  ;;  %vm853_vm8 = vweird.f32 %v4887_v61 }
 0x1d2   : > { %v845_v57 = vsel %vm842_vm7, %v844_v29, %v840_v45  ;;  %vm854_vm12 = vmor %vm852_vm11, %vm853_vm8  ;;  %v4891_v63 = vpop.eup %4890 }
 0x1d3   : > { %v849_v59 = vsub.f32 1.0, %v848_v55  ;;  %v870_v39 = vmul.f32 %v4889_v47, %v845_v57 }
 0x1d5   : > { %v850_v51 = vmul.f32 %v4887_v61, %v849_v59  ;;  %v876_v49 = vsel %vm5812_vm9, %v870_v39, 0.0  ;;  %v5875_v26 = vsel %vm5812_vm9, %v870_v39, %v5739_v44 }
 0x1d6   : > { %4403 = vst [vmem:[%s5584_s8 + $0x10] sm:$0xff] %v876_v49 }
 0x1d7   : > { %v851_v35 = vadd.f32 %v4887_v61, %v850_v51  ;;  %4418 = vmatmul.msk.f32.gmra.mxu1 %vm404_vm1, %v5575_v21 }
 0x1d9   : > { %v855_v54 = vsel %vm854_vm12, %v4887_v61, %v851_v35 }
 0x1da   : > { %v860_v58 = vsel %vm857_vm13, %v859_v62, %v855_v54 }
 0x1db   : > { %v871_v56 = vmul.f32 %v4891_v63, %v860_v58 }
 0x1dd   : > { %v877_v40 = vsel %vm5812_vm9, %v871_v56, 0.0  ;;  %v5868_v42 = vsel %vm5812_vm9, %v871_v56, %v5749_v52  ;;  %vm1103_vm9 = vcmp.gt.s32.totalorder %v5519_v0, 2 }
 0x1de   : > { %4404 = vst [vmem:[%s5584_s8 + $0x18] sm:$0xff] %v877_v40  ;;  %901 = vmatpush.msrb.mxu0 %v5868_v42 }
 0x1df   : > { %4419 = vmatmul.msk.f32.gmra.mxu1 %vm404_vm1, %v5577_v22 }
 0x1e0   : > { %902 = vmatpush.msrb.mxu0 %v5875_v26 }
 0x1e1   : > { %4406 = vmatmul.msk.f32.vlgmr.msrb.gmra.mxu0 %vm338_vm0, %v5532_v1 }
 0x1e7   : > { %4420 = vmatmul.msk.f32.gmra.mxu1 %vm404_vm1, %v5579_v23 }
 0x1e9   : > { %4407 = vmatmul.msk.f32.gmra.mxu0 %vm338_vm0, %v5534_v2 }
 0x1ef   : > { %4421 = vmatmul.msk.f32.gmra.mxu1 %vm404_vm1, %v5581_v24 }
 0x1f1   : > { %4408 = vmatmul.msk.f32.gmra.mxu0 %vm338_vm0, %v5536_v3 }
 0x1f9   : > { %4409 = vmatmul.msk.f32.gmra.mxu0 %vm338_vm0, %v5538_v4 }
 0x201   : > { %4410 = vmatmul.msk.f32.gmra.mxu0 %vm338_vm0, %v5540_v5 }
 0x209   : > { %4411 = vmatmul.msk.f32.gmra.mxu0 %vm338_vm0, %v5542_v6 }
 0x211   : > { %4412 = vmatmul.msk.f32.gmra.mxu0 %vm338_vm0, %v5547_v7 }
 0x219   : > { %4413 = vmatmul.msk.f32.gmra.mxu0 %vm338_vm0, %v5549_v8 }
 0x234   : > { %v945_v44 = vpop.f32.mrf.mxu1 }
 0x23c   : > { %v948_v52 = vpop.f32.mrf.mxu1 }
 0x244   : > { %v951_v38 = vpop.f32.mrf.mxu1 }
 0x24c   : > { %v954_v47 = vpop.f32.mrf.mxu1 }
 0x254   : > { %v957_v62 = vpop.f32.mrf.mxu1 }
 0x25e   : > { %v904_v46 = vpop.f32.mrf.mxu0 }
 0x25f   : > { %v946_v31 = vadd.f32 %v945_v44, %v904_v46 }
 0x261   : > { %v969_v33 = vadd.f32 %v946_v31, %v5633_v28 }
 0x263   : > { %v4422_v48 = vmul.f32 -1.442695, %v969_v33 }
 0x265   : > { %4892 = vpow2.f32 %v4422_v48  ;;  %v960_v48 = vpop.f32.mrf.mxu1 }
 0x266   : > { %v907_v43 = vpop.f32.mrf.mxu0 }
 0x267   : > { %v949_v61 = vadd.f32 %v948_v52, %v907_v43 }
 0x269   : > { %v970_v29 = vadd.f32 %v949_v61, %v5636_v34 }
 0x26b   : > { %v4893_v55 = vpop.eup %4892  ;;  %v4423_v45 = vmul.f32 -1.442695, %v970_v29 }
 0x26c   : > { %v5904_v57 = vadd.f32 1.0, %v4893_v55 }
 0x26d   : > { %4894 = vpow2.f32 %v4423_v45 }
 0x26e   : > { %v910_v59 = vpop.f32.mrf.mxu0  ;;  %4896 = vrcp.f32 %v5904_v57  ;;  %vm990_vm15 = vweird.f32 %v5904_v57 }
 0x26f   : > { %v952_v39 = vadd.f32 %v951_v38, %v910_v59 }
 0x271   : > { %v971_v25 = vadd.f32 %v952_v39, %v5639_v41  ;;  %v7693_v39 = vmov 0  }
 0x273   : > { %v4895_v51 = vpop.eup %4894  ;;  %v4424_v30 = vmul.f32 -1.442695, %v971_v25  ;;  %v1104_v25 = vsel %vm1103_vm9, 1, %v7693_v39 }
 0x274   : > { %v5908_v49 = vadd.f32 1.0, %v4895_v51  ;;  %v4897_v63 = vpop.eup %4896 }
 0x275   : > { %4898 = vpow2.f32 %v4424_v30  ;;  %v986_v40 = vmul.f32 %v4897_v63, %v5904_v57  ;;  %v994_v30 = vand.u32 2147483647, %v5904_v57  ;;  %vm991_vm14 = vweird.f32 %v4897_v63 }
 0x276   : > { %v913_v35 = vpop.f32.mrf.mxu0  ;;  %4900 = vrcp.f32 %v5908_v49  ;;  %vm5926_vm2 = vmor %vm990_vm15, %vm991_vm14  ;;  %vm1005_vm6 = vweird.f32 %v5908_v49  ;;  %v1009_v14 = vand.u32 2147483647, %v5908_v49 }
 0x277   : > { %v955_v54 = vadd.f32 %v954_v47, %v913_v35  ;;  %v987_v33 = vsub.f32 1.0, %v986_v40  ;;  %v996_v40 = vand.u32 2147483648, %v5904_v57  ;;  %vm995_vm4 = vcmp.eq.f32.partialorder %v994_v30, 8.507059e+37 }
 0x279   : > { %v972_v58 = vadd.f32 %v955_v54, %v5647_v50  ;;  %v988_v55 = vmul.f32 %v4897_v63, %v987_v33 }
 0x27b   : > { %v4899_v56 = vpop.eup %4898  ;;  %v4425_v44 = vmul.f32 -1.442695, %v972_v58  ;;  %v989_v54 = vadd.f32 %v4897_v63, %v988_v55 }
 0x27c   : > { %v1021_v52 = vadd.f32 1.0, %v4899_v56  ;;  %v5913_v31 = vpop.eup %4900 }
 0x27d   : > { %4902 = vpow2.f32 %v4425_v44  ;;  %v1001_v61 = vmul.f32 %v5913_v31, %v5908_v49  ;;  %v1105_v44 = vperm.slane %v1104_v25, 0  ;;  %vm1006_vm11 = vweird.f32 %v5913_v31 }
 0x27e   : > { %4904 = vrcp.f32 %v1021_v52  ;;  %v916_v46 = vpop.f32.mrf.mxu0  ;;  %v1034_v56 = vand.u32 2147483648, %v1021_v52  ;;  %v1032_v33 = vand.u32 2147483647, %v1021_v52  ;;  %vm1028_vm3 = vweird.f32 %v1021_v52  ;;  %vm5951_vm13 = vmor %vm1005_vm6, %vm1006_vm11 }
 0x27f   : > { %v958_v38 = vadd.f32 %v957_v62, %v916_v46  ;;  %v1002_v51 = vsub.f32 1.0, %v1001_v61  ;;  %vm5935_vm7 = vcmp.eq.s32.totalorder %v1105_v44, 1 }
 0x280   : > { %v1035_v57 = vor.u32 1.1754944e-38, %v1034_v56  ;;  %vm1033_vm8 = vcmp.eq.f32.partialorder %v1032_v33, 8.507059e+37 }
 0x281   : > { %v973_v43 = vadd.f32 %v958_v38, %v5655_v60  ;;  %v1003_v61 = vmul.f32 %v5913_v31, %v1002_v51 }
 0x283   : > { %v4903_v29 = vpop.eup %4902  ;;  %4906 = vtanh.f32 %v973_v43  ;;  %v1004_v30 = vadd.f32 %v5913_v31, %v1003_v61 }
 0x284   : > { %v4905_v45 = vpop.eup %4904  ;;  %v5919_v47 = vadd.f32 1.0, %v4903_v29  ;;  %v963_v29 = vpop.f32.mrf.mxu1 }
 0x285   : > { %v1024_v59 = vmul.f32 %v4905_v45, %v1021_v52  ;;  %vm1029_vm10 = vweird.f32 %v4905_v45 }
 0x286   : > { %4908 = vrcp.f32 %v5919_v47  ;;  %v919_v35 = vpop.f32.mrf.mxu0  ;;  %vm1030_vm5 = vmor %vm1028_vm3, %vm1029_vm10  ;;  %v1049_v38 = vand.u32 2147483648, %v5919_v47  ;;  %v1047_v33 = vand.u32 2147483647, %v5919_v47  ;;  %vm1043_vm9 = vweird.f32 %v5919_v47 }
 0x287   : > { %v1025_v62 = vsub.f32 1.0, %v1024_v59  ;;  %v961_v58 = vadd.f32 %v960_v48, %v919_v35  ;;  %v993_v48 = vsel %vm5926_vm2, %v4897_v63, %v989_v54  ;;  %v997_v35 = vor.u32 1.1754944e-38, %v996_v40 }
 0x288   : > { %vm1010_vm10 = vcmp.eq.f32.partialorder %v1009_v14, 8.507059e+37  ;;  %vm1048_vm15 = vcmp.eq.f32.partialorder %v1047_v33, 8.507059e+37 }
 0x289   : > { %v1026_v46 = vmul.f32 %v4905_v45, %v1025_v62  ;;  %v974_v43 = vadd.f32 %v961_v58, %v5674_v53  ;;  %v4907_v55 = vpop.eup %4906  ;;  %v998_v52 = vsel %vm995_vm4, %v997_v35, %v993_v48 }
 0x28b   : > { %v1027_v59 = vadd.f32 %v4905_v45, %v1026_v46  ;;  %4910 = vtanh.f32 %v974_v43  ;;  %v1095_v46 = vmul.f32 %v4907_v55, %v998_v52 }
 0x28c   : > { %v4909_v25 = vpop.eup %4908  ;;  %v966_v52 = vpop.f32.mrf.mxu1 }
 0x28d   : > { %v1039_v51 = vmul.f32 %v4909_v25, %v5919_v47  ;;  %v1031_v58 = vsel %vm1030_vm5, %v4905_v45, %v1027_v59  ;;  %v1011_v45 = vand.u32 2147483648, %v5908_v49  ;;  %vm1044_vm12 = vweird.f32 %v4909_v25 }
 0x28e   : > { %v1036_v63 = vsel %vm1033_vm8, %v1035_v57, %v1031_v58  ;;  %v922_v54 = vpop.f32.mrf.mxu0  ;;  %vm1045_vm14 = vmor %vm1043_vm9, %vm1044_vm12 }
 0x28f   : > { %v1040_v56 = vsub.f32 1.0, %v1039_v51  ;;  %v1093_v40 = vmul.f32 %v1036_v63, %v5840_v36  ;;  %v964_v44 = vadd.f32 %v963_v29, %v922_v54  ;;  %v1008_v29 = vsel %vm5951_vm13, %v5913_v31, %v1004_v30 }
 0x290   : > { %v1050_v51 = vor.u32 1.1754944e-38, %v1049_v38  ;;  %v1012_v58 = vor.u32 1.1754944e-38, %v1011_v45 }
 0x291   : > { %v1041_v59 = vmul.f32 %v4909_v25, %v1040_v56  ;;  %v1097_v48 = vadd.f32 %v1095_v46, %v1093_v40  ;;  %v975_v61 = vadd.f32 %v964_v44, %v5696_v37  ;;  %v4911_v49 = vpop.eup %4910  ;;  %v4430_v44 = vld [vmem:[%s7668_s1 + $0x18] sm:$0xff] }
 0x292   : > { %v1013_v54 = vsel %vm1010_vm10, %v1012_v58, %v1008_v29  ;;  %1174 = vmatpush.msrb.mxu2 %v4430_v44 }
 0x293   : > { %v1042_v55 = vadd.f32 %v4909_v25, %v1041_v59  ;;  %v4426_v57 = vmul.f32 -1.442695, %v975_v61  ;;  %v5963_v35 = vsel %vm5935_vm7, %v1097_v48, %v5840_v36  ;;  %v1096_v56 = vmul.f32 %v4911_v49, %v1013_v54  ;;  %4439 = vmatmul.msk.f32.vlgmr.msrb.gmra.mxu2 %vm404_vm1, %v5567_v17 }
 0x295   : > { %v1046_v63 = vsel %vm1045_vm14, %v4909_v25, %v1042_v55  ;;  %4912 = vpow2.f32 %v4426_v57 }
 0x296   : > { %v1051_v31 = vsel %vm1048_vm15, %v1050_v51, %v1046_v63  ;;  %v925_v30 = vpop.f32.mrf.mxu0 }
 0x297   : > { %v1094_v47 = vmul.f32 %v1051_v31, %v5850_v27  ;;  %v967_v40 = vadd.f32 %v966_v52, %v925_v30 }
 0x299   : > { %v1098_v46 = vadd.f32 %v1096_v56, %v1094_v47  ;;  %v976_v36 = vadd.f32 %v967_v40, %v5663_v32 }
 0x29b   : > { %v4913_v38 = vpop.eup %4912  ;;  %v4427_v45 = vmul.f32 -1.442695, %v976_v36  ;;  %v5973_v14 = vsel %vm5935_vm7, %v1098_v46, %v5850_v27  ;;  %4440 = vmatmul.msk.f32.gmra.mxu2 %vm404_vm1, %v5569_v18 }
 0x29c   : > { %v1061_v25 = vadd.f32 1.0, %v4913_v38 }
 0x29d   : > { %4914 = vpow2.f32 %v4427_v45 }
 0x29e   : > { %4916 = vrcp.f32 %v1061_v25  ;;  %v1074_v55 = vand.u32 2147483648, %v1061_v25  ;;  %v1072_v27 = vand.u32 2147483647, %v1061_v25  ;;  %vm1068_vm3 = vweird.f32 %v1061_v25 }
 0x2a0   : > { %v1075_v58 = vor.u32 1.1754944e-38, %v1074_v55  ;;  %vm1073_vm5 = vcmp.eq.f32.partialorder %v1072_v27, 8.507059e+37 }
 0x2a3   : > { %v4915_v33 = vpop.eup %4914  ;;  %4441 = vmatmul.msk.f32.gmra.mxu2 %vm404_vm1, %v5571_v19 }
 0x2a4   : > { %v4917_v59 = vpop.eup %4916  ;;  %v1062_v43 = vadd.f32 1.0, %v4915_v33 }
 0x2a5   : > { %v1064_v61 = vmul.f32 %v4917_v59, %v1061_v25  ;;  %vm1069_vm2 = vweird.f32 %v4917_v59 }
 0x2a6   : > { %4918 = vrcp.f32 %v1062_v43  ;;  %vm1070_vm4 = vmor %vm1068_vm3, %vm1069_vm2  ;;  %v1087_v40 = vand.u32 2147483647, %v1062_v43  ;;  %vm1083_vm8 = vweird.f32 %v1062_v43 }
 0x2a7   : > { %v1065_v29 = vsub.f32 1.0, %v1064_v61  ;;  %4920 = vtanh.f32 %v1097_v48  ;;  %v1089_v48 = vand.u32 2147483648, %v1062_v43 }
 0x2a8   : > { %4922 = vtanh.f32 %v1098_v46  ;;  %vm1088_vm12 = vcmp.eq.f32.partialorder %v1087_v40, 8.507059e+37 }
 0x2a9   : > { %v1066_v57 = vmul.f32 %v4917_v59, %v1065_v29  ;;  %v1090_v38 = vor.u32 1.1754944e-38, %v1089_v48 }
 0x2ab   : > { %v1067_v49 = vadd.f32 %v4917_v59, %v1066_v57  ;;  %4442 = vmatmul.msk.f32.gmra.mxu2 %vm404_vm1, %v5573_v20 }
 0x2ac   : > { %v4919_v51 = vpop.eup %4918 }
 0x2ad   : > { %v1079_v52 = vmul.f32 %v4919_v51, %v1062_v43  ;;  %v1071_v63 = vsel %vm1070_vm4, %v4917_v59, %v1067_v49  ;;  %v4921_v54 = vpop.eup %4920  ;;  %vm1084_vm6 = vweird.f32 %v4919_v51 }
 0x2ae   : > { %v1076_v31 = vsel %vm1073_vm5, %v1075_v58, %v1071_v63  ;;  %vm1085_vm11 = vmor %vm1083_vm8, %vm1084_vm6  ;;  %v4923_v25 = vpop.eup %4922 }
 0x2af   : > { %v1080_v30 = vsub.f32 1.0, %v1079_v52  ;;  %v1101_v47 = vmul.f32 %v4921_v54, %v1076_v31 }
 0x2b1   : > { %v1081_v56 = vmul.f32 %v4919_v51, %v1080_v30  ;;  %v1107_v36 = vsel %vm5935_vm7, %v1101_v47, 0.0  ;;  %v5998_v43 = vsel %vm5935_vm7, %v1101_v47, %v5875_v26 }
 0x2b2   : > { %4428 = vst [vmem:[%s5584_s8 + $0x20] sm:$0xff] %v1107_v36 }
 0x2b3   : > { %v1082_v44 = vadd.f32 %v4919_v51, %v1081_v56  ;;  %4443 = vmatmul.msk.f32.gmra.mxu2 %vm404_vm1, %v5575_v21 }
 0x2b5   : > { %v1086_v45 = vsel %vm1085_vm11, %v4919_v51, %v1082_v44 }
 0x2b6   : > { %v1091_v33 = vsel %vm1088_vm12, %v1090_v38, %v1086_v45 }
 0x2b7   : > { %v1102_v46 = vmul.f32 %v4923_v25, %v1091_v33 }
 0x2b9   : > { %v1108_v59 = vsel %vm5935_vm7, %v1102_v46, 0.0  ;;  %v5991_v61 = vsel %vm5935_vm7, %v1102_v46, %v5868_v42  ;;  %vm1334_vm7 = vcmp.gt.s32.totalorder %v5519_v0, 3 }
 0x2ba   : > { %4429 = vst [vmem:[%s5584_s8 + $0x28] sm:$0xff] %v1108_v59  ;;  %1132 = vmatpush.msrb.mxu3 %v5991_v61 }
 0x2bb   : > { %4444 = vmatmul.msk.f32.gmra.mxu2 %vm404_vm1, %v5577_v22 }
 0x2bc   : > { %1133 = vmatpush.msrb.mxu3 %v5998_v43 }
 0x2bd   : > { %4431 = vmatmul.msk.f32.vlgmr.msrb.gmra.mxu3 %vm338_vm0, %v5532_v1 }
 0x2c3   : > { %4445 = vmatmul.msk.f32.gmra.mxu2 %vm404_vm1, %v5579_v23 }
 0x2c5   : > { %4432 = vmatmul.msk.f32.gmra.mxu3 %vm338_vm0, %v5534_v2 }
 0x2cb   : > { %4446 = vmatmul.msk.f32.gmra.mxu2 %vm404_vm1, %v5581_v24 }
 0x2cd   : > { %4433 = vmatmul.msk.f32.gmra.mxu3 %vm338_vm0, %v5536_v3 }
 0x2d5   : > { %4434 = vmatmul.msk.f32.gmra.mxu3 %vm338_vm0, %v5538_v4 }
 0x2dd   : > { %4435 = vmatmul.msk.f32.gmra.mxu3 %vm338_vm0, %v5540_v5 }
 0x2e5   : > { %4436 = vmatmul.msk.f32.gmra.mxu3 %vm338_vm0, %v5542_v6 }
 0x2ed   : > { %4437 = vmatmul.msk.f32.gmra.mxu3 %vm338_vm0, %v5547_v7 }
 0x2f5   : > { %4438 = vmatmul.msk.f32.gmra.mxu3 %vm338_vm0, %v5549_v8 }
 0x316   : > { %v1176_v42 = vpop.f32.mrf.mxu2 }
 0x31e   : > { %v1179_v26 = vpop.f32.mrf.mxu2 }
 0x326   : > { %v1182_v57 = vpop.f32.mrf.mxu2 }
 0x32e   : > { %v1185_v54 = vpop.f32.mrf.mxu2 }
 0x336   : > { %v1188_v38 = vpop.f32.mrf.mxu2 }
 0x340   : > { %v1135_v62 = vpop.f32.mrf.mxu3 }
 0x341   : > { %v1177_v29 = vadd.f32 %v1176_v42, %v1135_v62 }
 0x343   : > { %v1200_v55 = vadd.f32 %v1177_v29, %v5633_v28 }
 0x345   : > { %v4447_v27 = vmul.f32 -1.442695, %v1200_v55 }
 0x347   : > { %4924 = vpow2.f32 %v4447_v27  ;;  %v1191_v27 = vpop.f32.mrf.mxu2 }
 0x348   : > { %v1138_v49 = vpop.f32.mrf.mxu3 }
 0x349   : > { %v1180_v51 = vadd.f32 %v1179_v26, %v1138_v49 }
 0x34b   : > { %v1201_v58 = vadd.f32 %v1180_v51, %v5636_v34 }
 0x34d   : > { %v4925_v52 = vpop.eup %4924  ;;  %v4448_v63 = vmul.f32 -1.442695, %v1201_v58 }
 0x34e   : > { %v6027_v31 = vadd.f32 1.0, %v4925_v52 }
 0x34f   : > { %4926 = vpow2.f32 %v4448_v63 }
 0x350   : > { %v1141_v30 = vpop.f32.mrf.mxu3  ;;  %4928 = vrcp.f32 %v6027_v31  ;;  %vm1221_vm14 = vweird.f32 %v6027_v31 }
 0x351   : > { %v1183_v47 = vadd.f32 %v1182_v57, %v1141_v30 }
 0x353   : > { %v1202_v48 = vadd.f32 %v1183_v47, %v5639_v41  ;;  %v1335_v47 = vsel %vm1334_vm7, 1, %v7693_v39 }
 0x355   : > { %v4927_v56 = vpop.eup %4926  ;;  %v4449_v40 = vmul.f32 -1.442695, %v1202_v48 }
 0x356   : > { %v6031_v36 = vadd.f32 1.0, %v4927_v56  ;;  %v4929_v25 = vpop.eup %4928  ;;  %v1225_v56 = vand.u32 2147483647, %v6027_v31 }
 0x357   : > { %4930 = vpow2.f32 %v4449_v40  ;;  %v1217_v59 = vmul.f32 %v4929_v25, %v6027_v31  ;;  %vm1222_vm13 = vweird.f32 %v4929_v25 }
 0x358   : > { %v1144_v44 = vpop.f32.mrf.mxu3  ;;  %4932 = vrcp.f32 %v6031_v36  ;;  %vm6049_vm10 = vmor %vm1221_vm14, %vm1222_vm13  ;;  %vm1226_vm2 = vcmp.eq.f32.partialorder %v1225_v56, 8.507059e+37  ;;  %vm1236_vm4 = vweird.f32 %v6031_v36 }
 0x359   : > { %v1186_v45 = vadd.f32 %v1185_v54, %v1144_v44  ;;  %v1218_v55 = vsub.f32 1.0, %v1217_v59  ;;  %v1336_v59 = vperm.slane %v1335_v47, 0 }
 0x35b   : > { %v1203_v33 = vadd.f32 %v1186_v45, %v5647_v50  ;;  %v1219_v52 = vmul.f32 %v4929_v25, %v1218_v55  ;;  %vm6058_vm5 = vcmp.eq.s32.totalorder %v1336_v59, 1  ;;  %v1240_v55 = vand.u32 2147483647, %v6031_v36 }
 0x35d   : > { %v4931_v46 = vpop.eup %4930  ;;  %v4450_v42 = vmul.f32 -1.442695, %v1203_v33 }
 0x35e   : > { %v1252_v26 = vadd.f32 1.0, %v4931_v46  ;;  %v6036_v29 = vpop.eup %4932  ;;  %v1227_v46 = vand.u32 2147483648, %v6027_v31 }
 0x35f   : > { %4934 = vpow2.f32 %v4450_v42  ;;  %v1232_v51 = vmul.f32 %v6036_v29, %v6031_v36  ;;  %vm1237_vm8 = vweird.f32 %v6036_v29 }
 0x360   : > { %4936 = vrcp.f32 %v1252_v26  ;;  %v1147_v62 = vpop.f32.mrf.mxu3  ;;  %v1265_v33 = vand.u32 2147483648, %v1252_v26  ;;  %vm1259_vm15 = vweird.f32 %v1252_v26  ;;  %v1228_v47 = vor.u32 1.1754944e-38, %v1227_v46  ;;  %vm6074_vm12 = vmor %vm1236_vm4, %vm1237_vm8 }
 0x361   : > { %v1189_v57 = vadd.f32 %v1188_v38, %v1147_v62  ;;  %v1233_v48 = vsub.f32 1.0, %v1232_v51  ;;  %v1220_v38 = vadd.f32 %v4929_v25, %v1219_v52  ;;  %v1263_v62 = vand.u32 2147483647, %v1252_v26  ;;  %v1194_v51 = vpop.f32.mrf.mxu2 }
 0x362   : > { %v1266_v31 = vor.u32 1.1754944e-38, %v1265_v33 }
 0x363   : > { %v1204_v49 = vadd.f32 %v1189_v57, %v5655_v60  ;;  %vm1264_vm6 = vcmp.eq.f32.partialorder %v1263_v62, 8.507059e+37 }
 0x365   : > { %v4935_v58 = vpop.eup %4934  ;;  %4938 = vtanh.f32 %v1204_v49  ;;  %v1234_v49 = vmul.f32 %v6036_v29, %v1233_v48 }
 0x366   : > { %v4937_v63 = vpop.eup %4936  ;;  %v6042_v54 = vadd.f32 1.0, %v4935_v58 }
 0x367   : > { %v1255_v30 = vmul.f32 %v4937_v63, %v1252_v26  ;;  %vm1260_vm9 = vweird.f32 %v4937_v63  ;;  %v1235_v56 = vadd.f32 %v6036_v29, %v1234_v49 }
 0x368   : > { %4940 = vrcp.f32 %v6042_v54  ;;  %v1150_v40 = vpop.f32.mrf.mxu3  ;;  %vm1261_vm3 = vmor %vm1259_vm15, %vm1260_vm9  ;;  %v1278_v62 = vand.u32 2147483647, %v6042_v54  ;;  %vm1274_vm7 = vweird.f32 %v6042_v54  ;;  %vm1241_vm9 = vcmp.eq.f32.partialorder %v1240_v55, 8.507059e+37 }
 0x369   : > { %v1256_v44 = vsub.f32 1.0, %v1255_v30  ;;  %v1192_v45 = vadd.f32 %v1191_v27, %v1150_v40  ;;  %v1224_v27 = vsel %vm6049_vm10, %v4929_v25, %v1220_v38 }
 0x36a   : > { %v1229_v26 = vsel %vm1226_vm2, %v1228_v47, %v1224_v27  ;;  %vm1279_vm14 = vcmp.eq.f32.partialorder %v1278_v62, 8.507059e+37 }
 0x36b   : > { %v1257_v42 = vmul.f32 %v4937_v63, %v1256_v44  ;;  %v1205_v57 = vadd.f32 %v1192_v45, %v5674_v53  ;;  %v4939_v58 = vpop.eup %4938 }
 0x36c   : > { %v1326_v46 = vmul.f32 %v4939_v58, %v1229_v26  ;;  %v1197_v26 = vpop.f32.mrf.mxu2 }
 0x36d   : > { %v1258_v52 = vadd.f32 %v4937_v63, %v1257_v42  ;;  %4942 = vtanh.f32 %v1205_v57  ;;  %v1280_v42 = vand.u32 2147483648, %v6042_v54 }
 0x36e   : > { %v4941_v30 = vpop.eup %4940 }
 0x36f   : > { %v1270_v48 = vmul.f32 %v4941_v30, %v6042_v54  ;;  %v1262_v44 = vsel %vm1261_vm3, %v4937_v63, %v1258_v52  ;;  %v1242_v63 = vand.u32 2147483648, %v6031_v36  ;;  %vm1275_vm11 = vweird.f32 %v4941_v30 }
 0x370   : > { %v1267_v25 = vsel %vm1264_vm6, %v1266_v31, %v1262_v44  ;;  %v1153_v38 = vpop.f32.mrf.mxu3  ;;  %vm1276_vm13 = vmor %vm1274_vm7, %vm1275_vm11 }
 0x371   : > { %v1271_v45 = vsub.f32 1.0, %v1270_v48  ;;  %v1324_v33 = vmul.f32 %v1267_v25, %v5963_v35  ;;  %v1195_v59 = vadd.f32 %v1194_v51, %v1153_v38  ;;  %v1239_v51 = vsel %vm6074_vm12, %v6036_v29, %v1235_v56 }
 0x372   : > { %v1281_v48 = vor.u32 1.1754944e-38, %v1280_v42  ;;  %v1243_v44 = vor.u32 1.1754944e-38, %v1242_v63 }
 0x373   : > { %v1272_v52 = vmul.f32 %v4941_v30, %v1271_v45  ;;  %v1328_v27 = vadd.f32 %v1326_v46, %v1324_v33  ;;  %v1206_v49 = vadd.f32 %v1195_v59, %v5696_v37  ;;  %v4943_v36 = vpop.eup %4942  ;;  %v4455_v59 = vld [vmem:[%s7668_s1 + $0x20] sm:$0xff] }
 0x374   : > { %v1244_v38 = vsel %vm1241_vm9, %v1243_v44, %v1239_v51  ;;  %1405 = vmatpush.msra.mxu1 %v4455_v59 }
 0x375   : > { %v1273_v58 = vadd.f32 %v4941_v30, %v1272_v52  ;;  %v4451_v31 = vmul.f32 -1.442695, %v1206_v49  ;;  %v6086_v47 = vsel %vm6058_vm5, %v1328_v27, %v5963_v35  ;;  %v1327_v45 = vmul.f32 %v4943_v36, %v1244_v38  ;;  %4464 = vmatmul.msk.f32.vlgmr.msra.gmra.mxu1 %vm404_vm1, %v5567_v17 }
 0x377   : > { %v1277_v25 = vsel %vm1276_vm13, %v4941_v30, %v1273_v58  ;;  %4944 = vpow2.f32 %v4451_v31 }
 0x378   : > { %v1282_v29 = vsel %vm1279_vm14, %v1281_v48, %v1277_v25  ;;  %v1156_v56 = vpop.f32.mrf.mxu3 }
 0x379   : > { %v1325_v54 = vmul.f32 %v1282_v29, %v5973_v14  ;;  %v1198_v33 = vadd.f32 %v1197_v26, %v1156_v56 }
 0x37b   : > { %v1329_v46 = vadd.f32 %v1327_v45, %v1325_v54  ;;  %v1207_v35 = vadd.f32 %v1198_v33, %v5663_v32 }
 0x37d   : > { %v4945_v42 = vpop.eup %4944  ;;  %v4452_v63 = vmul.f32 -1.442695, %v1207_v35  ;;  %v6096_v30 = vsel %vm6058_vm5, %v1329_v46, %v5973_v14  ;;  %4465 = vmatmul.msk.f32.gmra.mxu1 %vm404_vm1, %v5569_v18 }
 0x37e   : > { %v1292_v55 = vadd.f32 1.0, %v4945_v42 }
 0x37f   : > { %4946 = vpow2.f32 %v4452_v63 }
 0x380   : > { %4948 = vrcp.f32 %v1292_v55  ;;  %v1305_v58 = vand.u32 2147483648, %v1292_v55  ;;  %v1303_v14 = vand.u32 2147483647, %v1292_v55  ;;  %vm1299_vm15 = vweird.f32 %v1292_v55 }
 0x382   : > { %v1306_v44 = vor.u32 1.1754944e-38, %v1305_v58  ;;  %vm1304_vm3 = vcmp.eq.f32.partialorder %v1303_v14, 8.507059e+37 }
 0x385   : > { %v4947_v62 = vpop.eup %4946  ;;  %4466 = vmatmul.msk.f32.gmra.mxu1 %vm404_vm1, %v5571_v19 }
 0x386   : > { %v4949_v52 = vpop.eup %4948  ;;  %v1293_v57 = vadd.f32 1.0, %v4947_v62 }
 0x387   : > { %v1295_v49 = vmul.f32 %v4949_v52, %v1292_v55  ;;  %vm1300_vm10 = vweird.f32 %v4949_v52 }
 0x388   : > { %4950 = vrcp.f32 %v1293_v57  ;;  %vm1301_vm2 = vmor %vm1299_vm15, %vm1300_vm10  ;;  %v1318_v33 = vand.u32 2147483647, %v1293_v57  ;;  %vm1314_vm6 = vweird.f32 %v1293_v57 }
 0x389   : > { %v1296_v51 = vsub.f32 1.0, %v1295_v49  ;;  %4952 = vtanh.f32 %v1328_v27  ;;  %v1320_v27 = vand.u32 2147483648, %v1293_v57 }
 0x38a   : > { %4954 = vtanh.f32 %v1329_v46  ;;  %vm1319_vm11 = vcmp.eq.f32.partialorder %v1318_v33, 8.507059e+37 }
 0x38b   : > { %v1297_v31 = vmul.f32 %v4949_v52, %v1296_v51  ;;  %v1321_v42 = vor.u32 1.1754944e-38, %v1320_v27 }
 0x38d   : > { %v1298_v36 = vadd.f32 %v4949_v52, %v1297_v31  ;;  %4467 = vmatmul.msk.f32.gmra.mxu1 %vm404_vm1, %v5573_v20 }
 0x38e   : > { %v4951_v48 = vpop.eup %4950 }
 0x38f   : > { %v1310_v26 = vmul.f32 %v4951_v48, %v1293_v57  ;;  %v1302_v25 = vsel %vm1301_vm2, %v4949_v52, %v1298_v36  ;;  %v4953_v38 = vpop.eup %4952  ;;  %vm1315_vm4 = vweird.f32 %v4951_v48 }
 0x390   : > { %v1307_v29 = vsel %vm1304_vm3, %v1306_v44, %v1302_v25  ;;  %vm1316_vm8 = vmor %vm1314_vm6, %vm1315_vm4  ;;  %v4955_v55 = vpop.eup %4954 }
 0x391   : > { %v1311_v56 = vsub.f32 1.0, %v1310_v26  ;;  %v1332_v54 = vmul.f32 %v4953_v38, %v1307_v29 }
 0x393   : > { %v1312_v45 = vmul.f32 %v4951_v48, %v1311_v56  ;;  %v1338_v35 = vsel %vm6058_vm5, %v1332_v54, 0.0  ;;  %v6121_v57 = vsel %vm6058_vm5, %v1332_v54, %v5998_v43 }
 0x394   : > { %4453 = vst [vmem:[%s5584_s8 + $0x30] sm:$0xff] %v1338_v35 }
 0x395   : > { %v1313_v59 = vadd.f32 %v4951_v48, %v1312_v45  ;;  %4468 = vmatmul.msk.f32.gmra.mxu1 %vm404_vm1, %v5575_v21 }
 0x397   : > { %v1317_v63 = vsel %vm1316_vm8, %v4951_v48, %v1313_v59 }
 0x398   : > { %v1322_v46 = vsel %vm1319_vm11, %v1321_v42, %v1317_v63 }
 0x399   : > { %v1333_v62 = vmul.f32 %v4955_v55, %v1322_v46 }
 0x39b   : > { %v1339_v52 = vsel %vm6058_vm5, %v1333_v62, 0.0  ;;  %v6114_v49 = vsel %vm6058_vm5, %v1333_v62, %v5991_v61  ;;  %vm1565_vm5 = vcmp.gt.s32.totalorder %v5519_v0, 4 }
 0x39c   : > { %4454 = vst [vmem:[%s5584_s8 + $0x38] sm:$0xff] %v1339_v52  ;;  %1363 = vmatpush.msra.mxu0 %v6114_v49 }
 0x39d   : > { %4469 = vmatmul.msk.f32.gmra.mxu1 %vm404_vm1, %v5577_v22 }
 0x39e   : > { %1364 = vmatpush.msra.mxu0 %v6121_v57 }
 0x39f   : > { %4456 = vmatmul.msk.f32.vlgmr.msra.gmra.mxu0 %vm338_vm0, %v5532_v1 }
 0x3a5   : > { %4470 = vmatmul.msk.f32.gmra.mxu1 %vm404_vm1, %v5579_v23 }
 0x3a7   : > { %4457 = vmatmul.msk.f32.gmra.mxu0 %vm338_vm0, %v5534_v2 }
 0x3ad   : > { %4471 = vmatmul.msk.f32.gmra.mxu1 %vm404_vm1, %v5581_v24 }
 0x3af   : > { %4458 = vmatmul.msk.f32.gmra.mxu0 %vm338_vm0, %v5536_v3 }
 0x3b7   : > { %4459 = vmatmul.msk.f32.gmra.mxu0 %vm338_vm0, %v5538_v4 }
 0x3bf   : > { %4460 = vmatmul.msk.f32.gmra.mxu0 %vm338_vm0, %v5540_v5 }
 0x3c7   : > { %4461 = vmatmul.msk.f32.gmra.mxu0 %vm338_vm0, %v5542_v6 }
 0x3cf   : > { %4462 = vmatmul.msk.f32.gmra.mxu0 %vm338_vm0, %v5547_v7 }
 0x3d7   : > { %4463 = vmatmul.msk.f32.gmra.mxu0 %vm338_vm0, %v5549_v8 }
 0x3f2   : > { %v1407_v61 = vpop.f32.mrf.mxu1 }
 0x3fa   : > { %v1410_v43 = vpop.f32.mrf.mxu1 }
 0x402   : > { %v1413_v31 = vpop.f32.mrf.mxu1 }
 0x40a   : > { %v1416_v38 = vpop.f32.mrf.mxu1 }
 0x412   : > { %v1419_v42 = vpop.f32.mrf.mxu1 }
 0x41c   : > { %v1366_v40 = vpop.f32.mrf.mxu0 }
 0x41d   : > { %v1408_v51 = vadd.f32 %v1407_v61, %v1366_v40 }
 0x41f   : > { %v1431_v58 = vadd.f32 %v1408_v51, %v5633_v28 }
 0x421   : > { %v4472_v14 = vmul.f32 -1.442695, %v1431_v58 }
 0x423   : > { %4956 = vpow2.f32 %v4472_v14  ;;  %v1422_v14 = vpop.f32.mrf.mxu1 }
 0x424   : > { %v1369_v36 = vpop.f32.mrf.mxu0 }
 0x425   : > { %v1411_v48 = vadd.f32 %v1410_v43, %v1369_v36 }
 0x427   : > { %v1432_v44 = vadd.f32 %v1411_v48, %v5636_v34 }
 0x429   : > { %v4957_v26 = vpop.eup %4956  ;;  %v4473_v25 = vmul.f32 -1.442695, %v1432_v44 }
 0x42a   : > { %v6150_v29 = vadd.f32 1.0, %v4957_v26 }
 0x42b   : > { %4958 = vpow2.f32 %v4473_v25 }
 0x42c   : > { %v1372_v56 = vpop.f32.mrf.mxu0  ;;  %4960 = vrcp.f32 %v6150_v29  ;;  %vm1452_vm13 = vweird.f32 %v6150_v29 }
 0x42d   : > { %v1414_v54 = vadd.f32 %v1413_v31, %v1372_v56 }
 0x42f   : > { %v1433_v27 = vadd.f32 %v1414_v54, %v5639_v41  ;;  %v1566_v54 = vsel %vm1565_vm5, 1, %v7693_v39 }
 0x431   : > { %v4959_v45 = vpop.eup %4958  ;;  %v4474_v33 = vmul.f32 -1.442695, %v1433_v27 }
 0x432   : > { %v6154_v35 = vadd.f32 1.0, %v4959_v45  ;;  %v4961_v55 = vpop.eup %4960  ;;  %v1456_v45 = vand.u32 2147483647, %v6150_v29 }
 0x433   : > { %4962 = vpow2.f32 %v4474_v33  ;;  %v1448_v52 = vmul.f32 %v4961_v55, %v6150_v29  ;;  %vm1453_vm12 = vweird.f32 %v4961_v55 }
 0x434   : > { %v1375_v59 = vpop.f32.mrf.mxu0  ;;  %4964 = vrcp.f32 %v6154_v35  ;;  %vm6172_vm9 = vmor %vm1452_vm13, %vm1453_vm12  ;;  %vm1457_vm10 = vcmp.eq.f32.partialorder %v1456_v45, 8.507059e+37  ;;  %vm1467_vm2 = vweird.f32 %v6154_v35 }
 0x435   : > { %v1417_v63 = vadd.f32 %v1416_v38, %v1375_v59  ;;  %v1449_v58 = vsub.f32 1.0, %v1448_v52  ;;  %v1567_v52 = vperm.slane %v1566_v54, 0 }
 0x437   : > { %v1434_v46 = vadd.f32 %v1417_v63, %v5647_v50  ;;  %v1450_v26 = vmul.f32 %v4961_v55, %v1449_v58  ;;  %vm6181_vm3 = vcmp.eq.s32.totalorder %v1567_v52, 1  ;;  %v1471_v58 = vand.u32 2147483647, %v6154_v35 }
 0x439   : > { %v4963_v62 = vpop.eup %4962  ;;  %v4475_v61 = vmul.f32 -1.442695, %v1434_v46 }
 0x43a   : > { %v1483_v43 = vadd.f32 1.0, %v4963_v62  ;;  %v6159_v51 = vpop.eup %4964  ;;  %v1458_v62 = vand.u32 2147483648, %v6150_v29 }
 0x43b   : > { %4966 = vpow2.f32 %v4475_v61  ;;  %v1463_v48 = vmul.f32 %v6159_v51, %v6154_v35  ;;  %vm1468_vm6 = vweird.f32 %v6159_v51 }
 0x43c   : > { %4968 = vrcp.f32 %v1483_v43  ;;  %v1378_v40 = vpop.f32.mrf.mxu0  ;;  %v1496_v46 = vand.u32 2147483648, %v1483_v43  ;;  %vm1490_vm14 = vweird.f32 %v1483_v43  ;;  %v1459_v54 = vor.u32 1.1754944e-38, %v1458_v62  ;;  %vm6197_vm11 = vmor %vm1467_vm2, %vm1468_vm6 }
 0x43d   : > { %v1420_v31 = vadd.f32 %v1419_v42, %v1378_v40  ;;  %v1464_v27 = vsub.f32 1.0, %v1463_v48  ;;  %v1451_v42 = vadd.f32 %v4961_v55, %v1450_v26  ;;  %v1494_v40 = vand.u32 2147483647, %v1483_v43  ;;  %v1425_v48 = vpop.f32.mrf.mxu1 }
 0x43e   : > { %v1497_v29 = vor.u32 1.1754944e-38, %v1496_v46 }
 0x43f   : > { %v1435_v36 = vadd.f32 %v1420_v31, %v5655_v60  ;;  %vm1495_vm4 = vcmp.eq.f32.partialorder %v1494_v40, 8.507059e+37 }
 0x441   : > { %v4967_v44 = vpop.eup %4966  ;;  %4970 = vtanh.f32 %v1435_v36  ;;  %v1465_v36 = vmul.f32 %v6159_v51, %v1464_v27 }
 0x442   : > { %v4969_v25 = vpop.eup %4968  ;;  %v6165_v38 = vadd.f32 1.0, %v4967_v44 }
 0x443   : > { %v1486_v56 = vmul.f32 %v4969_v25, %v1483_v43  ;;  %vm1491_vm7 = vweird.f32 %v4969_v25  ;;  %v1466_v45 = vadd.f32 %v6159_v51, %v1465_v36 }
 0x444   : > { %4972 = vrcp.f32 %v6165_v38  ;;  %v1381_v33 = vpop.f32.mrf.mxu0  ;;  %vm1492_vm15 = vmor %vm1490_vm14, %vm1491_vm7  ;;  %v1509_v40 = vand.u32 2147483647, %v6165_v38  ;;  %vm1505_vm5 = vweird.f32 %v6165_v38  ;;  %vm1472_vm7 = vcmp.eq.f32.partialorder %v1471_v58, 8.507059e+37 }
 0x445   : > { %v1487_v59 = vsub.f32 1.0, %v1486_v56  ;;  %v1423_v63 = vadd.f32 %v1422_v14, %v1381_v33  ;;  %v1455_v14 = vsel %vm6172_vm9, %v4961_v55, %v1451_v42 }
 0x446   : > { %v1460_v43 = vsel %vm1457_vm10, %v1459_v54, %v1455_v14  ;;  %vm1510_vm13 = vcmp.eq.f32.partialorder %v1509_v40, 8.507059e+37 }
 0x447   : > { %v1488_v61 = vmul.f32 %v4969_v25, %v1487_v59  ;;  %v1436_v31 = vadd.f32 %v1423_v63, %v5674_v53  ;;  %v4971_v44 = vpop.eup %4970 }
 0x448   : > { %v1557_v62 = vmul.f32 %v4971_v44, %v1460_v43  ;;  %v1428_v43 = vpop.f32.mrf.mxu1 }
 0x449   : > { %v1489_v26 = vadd.f32 %v4969_v25, %v1488_v61  ;;  %4974 = vtanh.f32 %v1436_v31  ;;  %v1511_v61 = vand.u32 2147483648, %v6165_v38 }
 0x44a   : > { %v4973_v56 = vpop.eup %4972 }
 0x44b   : > { %v1501_v27 = vmul.f32 %v4973_v56, %v6165_v38  ;;  %v1493_v59 = vsel %vm1492_vm15, %v4969_v25, %v1489_v26  ;;  %v1473_v25 = vand.u32 2147483648, %v6154_v35  ;;  %vm1506_vm8 = vweird.f32 %v4973_v56 }
 0x44c   : > { %v1498_v55 = vsel %vm1495_vm4, %v1497_v29, %v1493_v59  ;;  %v1384_v42 = vpop.f32.mrf.mxu0  ;;  %vm1507_vm12 = vmor %vm1505_vm5, %vm1506_vm8 }
 0x44d   : > { %v1502_v63 = vsub.f32 1.0, %v1501_v27  ;;  %v1555_v46 = vmul.f32 %v1498_v55, %v6086_v47  ;;  %v1426_v52 = vadd.f32 %v1425_v48, %v1384_v42  ;;  %v1470_v48 = vsel %vm6197_vm11, %v6159_v51, %v1466_v45 }
 0x44e   : > { %v1512_v27 = vor.u32 1.1754944e-38, %v1511_v61  ;;  %v1474_v59 = vor.u32 1.1754944e-38, %v1473_v25 }
 0x44f   : > { %v1503_v26 = vmul.f32 %v4973_v56, %v1502_v63  ;;  %v1559_v14 = vadd.f32 %v1557_v62, %v1555_v46  ;;  %v1437_v36 = vadd.f32 %v1426_v52, %v5696_v37  ;;  %v4975_v35 = vpop.eup %4974  ;;  %v4480_v52 = vld [vmem:[%s7668_s1 + $0x28] sm:$0xff] }
 0x450   : > { %v1475_v42 = vsel %vm1472_vm7, %v1474_v59, %v1470_v48  ;;  %1636 = vmatpush.msra.mxu2 %v4480_v52 }
 0x451   : > { %v1504_v44 = vadd.f32 %v4973_v56, %v1503_v26  ;;  %v4476_v29 = vmul.f32 -1.442695, %v1437_v36  ;;  %v6209_v54 = vsel %vm6181_vm3, %v1559_v14, %v6086_v47  ;;  %v1558_v63 = vmul.f32 %v4975_v35, %v1475_v42  ;;  %4489 = vmatmul.msk.f32.vlgmr.msra.gmra.mxu2 %vm404_vm1, %v5567_v17 }
 0x453   : > { %v1508_v55 = vsel %vm1507_vm12, %v4973_v56, %v1504_v44  ;;  %4976 = vpow2.f32 %v4476_v29 }
 0x454   : > { %v1513_v51 = vsel %vm1510_vm13, %v1512_v27, %v1508_v55  ;;  %v1387_v45 = vpop.f32.mrf.mxu0 }
 0x455   : > { %v1556_v38 = vmul.f32 %v1513_v51, %v6096_v30  ;;  %v1429_v46 = vadd.f32 %v1428_v43, %v1387_v45 }
 0x457   : > { %v1560_v62 = vadd.f32 %v1558_v63, %v1556_v38  ;;  %v1438_v47 = vadd.f32 %v1429_v46, %v5663_v32 }
 0x459   : > { %v4977_v61 = vpop.eup %4976  ;;  %v4477_v25 = vmul.f32 -1.442695, %v1438_v47  ;;  %v6219_v56 = vsel %vm6181_vm3, %v1560_v62, %v6096_v30  ;;  %4490 = vmatmul.msk.f32.gmra.mxu2 %vm404_vm1, %v5569_v18 }
 0x45a   : > { %v1523_v58 = vadd.f32 1.0, %v4977_v61 }
 0x45b   : > { %4978 = vpow2.f32 %v4477_v25 }
 0x45c   : > { %4980 = vrcp.f32 %v1523_v58  ;;  %v1536_v44 = vand.u32 2147483648, %v1523_v58  ;;  %v1534_v30 = vand.u32 2147483647, %v1523_v58  ;;  %vm1530_vm14 = vweird.f32 %v1523_v58 }
 0x45e   : > { %v1537_v59 = vor.u32 1.1754944e-38, %v1536_v44  ;;  %vm1535_vm15 = vcmp.eq.f32.partialorder %v1534_v30, 8.507059e+37 }
 0x461   : > { %v4979_v40 = vpop.eup %4978  ;;  %4491 = vmatmul.msk.f32.gmra.mxu2 %vm404_vm1, %v5571_v19 }
 0x462   : > { %v4981_v26 = vpop.eup %4980  ;;  %v1524_v31 = vadd.f32 1.0, %v4979_v40 }
 0x463   : > { %v1526_v36 = vmul.f32 %v4981_v26, %v1523_v58  ;;  %vm1531_vm9 = vweird.f32 %v4981_v26 }
 0x464   : > { %4982 = vrcp.f32 %v1524_v31  ;;  %vm1532_vm10 = vmor %vm1530_vm14, %vm1531_vm9  ;;  %v1549_v46 = vand.u32 2147483647, %v1524_v31  ;;  %vm1545_vm4 = vweird.f32 %v1524_v31 }
 0x465   : > { %v1527_v48 = vsub.f32 1.0, %v1526_v36  ;;  %4984 = vtanh.f32 %v1559_v14  ;;  %v1551_v14 = vand.u32 2147483648, %v1524_v31 }
 0x466   : > { %4986 = vtanh.f32 %v1560_v62  ;;  %vm1550_vm8 = vcmp.eq.f32.partialorder %v1549_v46, 8.507059e+37 }
 0x467   : > { %v1528_v29 = vmul.f32 %v4981_v26, %v1527_v48  ;;  %v1552_v61 = vor.u32 1.1754944e-38, %v1551_v14 }
 0x469   : > { %v1529_v35 = vadd.f32 %v4981_v26, %v1528_v29  ;;  %4492 = vmatmul.msk.f32.gmra.mxu2 %vm404_vm1, %v5573_v20 }
 0x46a   : > { %v4983_v27 = vpop.eup %4982 }
 0x46b   : > { %v1541_v43 = vmul.f32 %v4983_v27, %v1524_v31  ;;  %v1533_v55 = vsel %vm1532_vm10, %v4981_v26, %v1529_v35  ;;  %v4985_v42 = vpop.eup %4984  ;;  %vm1546_vm2 = vweird.f32 %v4983_v27 }
 0x46c   : > { %v1538_v51 = vsel %vm1535_vm15, %v1537_v59, %v1533_v55  ;;  %vm1547_vm6 = vmor %vm1545_vm4, %vm1546_vm2  ;;  %v4987_v58 = vpop.eup %4986 }
 0x46d   : > { %v1542_v45 = vsub.f32 1.0, %v1541_v43  ;;  %v1563_v38 = vmul.f32 %v4985_v42, %v1538_v51 }
 0x46f   : > { %v1543_v63 = vmul.f32 %v4983_v27, %v1542_v45  ;;  %v1569_v47 = vsel %vm6181_vm3, %v1563_v38, 0.0  ;;  %v6244_v31 = vsel %vm6181_vm3, %v1563_v38, %v6121_v57 }
 0x470   : > { %4478 = vst [vmem:[%s5584_s8 + $0x40] sm:$0xff] %v1569_v47 }
 0x471   : > { %v1544_v52 = vadd.f32 %v4983_v27, %v1543_v63  ;;  %4493 = vmatmul.msk.f32.gmra.mxu2 %vm404_vm1, %v5575_v21 }
 0x473   : > { %v1548_v25 = vsel %vm1547_vm6, %v4983_v27, %v1544_v52 }
 0x474   : > { %v1553_v62 = vsel %vm1550_vm8, %v1552_v61, %v1548_v25 }
 0x475   : > { %v1564_v40 = vmul.f32 %v4987_v58, %v1553_v62 }
 0x477   : > { %v1570_v26 = vsel %vm6181_vm3, %v1564_v40, 0.0  ;;  %v6237_v36 = vsel %vm6181_vm3, %v1564_v40, %v6114_v49  ;;  %vm1796_vm3 = vcmp.gt.s32.totalorder %v5519_v0, 5 }
 0x478   : > { %4479 = vst [vmem:[%s5584_s8 + $0x48] sm:$0xff] %v1570_v26  ;;  %1594 = vmatpush.msra.mxu3 %v6237_v36 }
 0x479   : > { %4494 = vmatmul.msk.f32.gmra.mxu2 %vm404_vm1, %v5577_v22 }
 0x47a   : > { %1595 = vmatpush.msra.mxu3 %v6244_v31 }
 0x47b   : > { %4481 = vmatmul.msk.f32.vlgmr.msra.gmra.mxu3 %vm338_vm0, %v5532_v1 }
 0x481   : > { %4495 = vmatmul.msk.f32.gmra.mxu2 %vm404_vm1, %v5579_v23 }
 0x483   : > { %4482 = vmatmul.msk.f32.gmra.mxu3 %vm338_vm0, %v5534_v2 }
 0x489   : > { %4496 = vmatmul.msk.f32.gmra.mxu2 %vm404_vm1, %v5581_v24 }
 0x48b   : > { %4483 = vmatmul.msk.f32.gmra.mxu3 %vm338_vm0, %v5536_v3 }
 0x493   : > { %4484 = vmatmul.msk.f32.gmra.mxu3 %vm338_vm0, %v5538_v4 }
 0x49b   : > { %4485 = vmatmul.msk.f32.gmra.mxu3 %vm338_vm0, %v5540_v5 }
 0x4a3   : > { %4486 = vmatmul.msk.f32.gmra.mxu3 %vm338_vm0, %v5542_v6 }
 0x4ab   : > { %4487 = vmatmul.msk.f32.gmra.mxu3 %vm338_vm0, %v5547_v7 }
 0x4b3   : > { %4488 = vmatmul.msk.f32.gmra.mxu3 %vm338_vm0, %v5549_v8 }
 0x4d4   : > { %v1638_v49 = vpop.f32.mrf.mxu2 }
 0x4dc   : > { %v1641_v57 = vpop.f32.mrf.mxu2 }
 0x4e4   : > { %v1644_v29 = vpop.f32.mrf.mxu2 }
 0x4ec   : > { %v1647_v42 = vpop.f32.mrf.mxu2 }
 0x4f4   : > { %v1650_v61 = vpop.f32.mrf.mxu2 }
 0x4fe   : > { %v1597_v33 = vpop.f32.mrf.mxu3 }
 0x4ff   : > { %v1639_v48 = vadd.f32 %v1638_v49, %v1597_v33 }
 0x501   : > { %v1662_v44 = vadd.f32 %v1639_v48, %v5633_v28 }
 0x503   : > { %v4497_v30 = vmul.f32 -1.442695, %v1662_v44 }
 0x505   : > { %4988 = vpow2.f32 %v4497_v30  ;;  %v1653_v30 = vpop.f32.mrf.mxu2 }
 0x506   : > { %v1600_v35 = vpop.f32.mrf.mxu3 }
 0x507   : > { %v1642_v27 = vadd.f32 %v1641_v57, %v1600_v35 }
 0x509   : > { %v1663_v59 = vadd.f32 %v1642_v27, %v5636_v34 }
 0x50b   : > { %v4989_v43 = vpop.eup %4988  ;;  %v4498_v55 = vmul.f32 -1.442695, %v1663_v59 }
 0x50c   : > { %v6273_v51 = vadd.f32 1.0, %v4989_v43 }
 0x50d   : > { %4990 = vpow2.f32 %v4498_v55 }
 0x50e   : > { %v1603_v45 = vpop.f32.mrf.mxu3  ;;  %4992 = vrcp.f32 %v6273_v51  ;;  %vm1683_vm12 = vweird.f32 %v6273_v51 }
 0x50f   : > { %v1645_v38 = vadd.f32 %v1644_v29, %v1603_v45 }
 0x511   : > { %v1664_v14 = vadd.f32 %v1645_v38, %v5639_v41  ;;  %v1797_v38 = vsel %vm1796_vm3, 1, %v7693_v39 }
 0x513   : > { %v4991_v63 = vpop.eup %4990  ;;  %v4499_v46 = vmul.f32 -1.442695, %v1664_v14 }
 0x514   : > { %v6277_v47 = vadd.f32 1.0, %v4991_v63  ;;  %v4993_v58 = vpop.eup %4992  ;;  %v1687_v63 = vand.u32 2147483647, %v6273_v51 }
 0x515   : > { %4994 = vpow2.f32 %v4499_v46  ;;  %v1679_v26 = vmul.f32 %v4993_v58, %v6273_v51  ;;  %vm1684_vm11 = vweird.f32 %v4993_v58 }
 0x516   : > { %v1606_v52 = vpop.f32.mrf.mxu3  ;;  %4996 = vrcp.f32 %v6277_v47  ;;  %vm6295_vm7 = vmor %vm1683_vm12, %vm1684_vm11  ;;  %vm1688_vm9 = vcmp.eq.f32.partialorder %v1687_v63, 8.507059e+37  ;;  %vm1698_vm10 = vweird.f32 %v6277_v47 }
 0x517   : > { %v1648_v25 = vadd.f32 %v1647_v42, %v1606_v52  ;;  %v1680_v44 = vsub.f32 1.0, %v1679_v26  ;;  %v1798_v26 = vperm.slane %v1797_v38, 0 }
 0x519   : > { %v1665_v62 = vadd.f32 %v1648_v25, %v5647_v50  ;;  %v1681_v43 = vmul.f32 %v4993_v58, %v1680_v44  ;;  %vm6304_vm15 = vcmp.eq.s32.totalorder %v1798_v26, 1  ;;  %v1702_v44 = vand.u32 2147483647, %v6277_v47 }
 0x51b   : > { %v4995_v40 = vpop.eup %4994  ;;  %v4500_v49 = vmul.f32 -1.442695, %v1665_v62 }
 0x51c   : > { %v1714_v57 = vadd.f32 1.0, %v4995_v40  ;;  %v6282_v48 = vpop.eup %4996  ;;  %v1689_v40 = vand.u32 2147483648, %v6273_v51 }
 0x51d   : > { %4998 = vpow2.f32 %v4500_v49  ;;  %v1694_v27 = vmul.f32 %v6282_v48, %v6277_v47  ;;  %vm1699_vm4 = vweird.f32 %v6282_v48 }
 0x51e   : > { %5000 = vrcp.f32 %v1714_v57  ;;  %v1609_v33 = vpop.f32.mrf.mxu3  ;;  %v1727_v62 = vand.u32 2147483648, %v1714_v57  ;;  %vm1721_vm13 = vweird.f32 %v1714_v57  ;;  %v1690_v38 = vor.u32 1.1754944e-38, %v1689_v40  ;;  %vm6320_vm8 = vmor %vm1698_vm10, %vm1699_vm4 }
 0x51f   : > { %v1651_v29 = vadd.f32 %v1650_v61, %v1609_v33  ;;  %v1695_v14 = vsub.f32 1.0, %v1694_v27  ;;  %v1682_v61 = vadd.f32 %v4993_v58, %v1681_v43  ;;  %v1725_v33 = vand.u32 2147483647, %v1714_v57  ;;  %v1656_v27 = vpop.f32.mrf.mxu2 }
 0x520   : > { %v1728_v51 = vor.u32 1.1754944e-38, %v1727_v62 }
 0x521   : > { %v1666_v35 = vadd.f32 %v1651_v29, %v5655_v60  ;;  %vm1726_vm2 = vcmp.eq.f32.partialorder %v1725_v33, 8.507059e+37 }
 0x523   : > { %v4999_v59 = vpop.eup %4998  ;;  %5002 = vtanh.f32 %v1666_v35  ;;  %v1696_v35 = vmul.f32 %v6282_v48, %v1695_v14 }
 0x524   : > { %v5001_v55 = vpop.eup %5000  ;;  %v6288_v42 = vadd.f32 1.0, %v4999_v59 }
 0x525   : > { %v1717_v45 = vmul.f32 %v5001_v55, %v1714_v57  ;;  %vm1722_vm5 = vweird.f32 %v5001_v55  ;;  %v1697_v63 = vadd.f32 %v6282_v48, %v1696_v35 }
 0x526   : > { %5004 = vrcp.f32 %v6288_v42  ;;  %v1612_v46 = vpop.f32.mrf.mxu3  ;;  %vm1723_vm14 = vmor %vm1721_vm13, %vm1722_vm5  ;;  %v1740_v33 = vand.u32 2147483647, %v6288_v42  ;;  %vm1736_vm3 = vweird.f32 %v6288_v42  ;;  %vm1703_vm5 = vcmp.eq.f32.partialorder %v1702_v44, 8.507059e+37 }
 0x527   : > { %v1718_v52 = vsub.f32 1.0, %v1717_v45  ;;  %v1654_v25 = vadd.f32 %v1653_v30, %v1612_v46  ;;  %v1686_v30 = vsel %vm6295_vm7, %v4993_v58, %v1682_v61 }
 0x528   : > { %v1691_v57 = vsel %vm1688_vm9, %v1690_v38, %v1686_v30  ;;  %vm1741_vm12 = vcmp.eq.f32.partialorder %v1740_v33, 8.507059e+37 }
 0x529   : > { %v1719_v49 = vmul.f32 %v5001_v55, %v1718_v52  ;;  %v1667_v29 = vadd.f32 %v1654_v25, %v5674_v53  ;;  %v5003_v59 = vpop.eup %5002 }
 0x52a   : > { %v1788_v40 = vmul.f32 %v5003_v59, %v1691_v57  ;;  %v1659_v57 = vpop.f32.mrf.mxu2 }
 0x52b   : > { %v1720_v43 = vadd.f32 %v5001_v55, %v1719_v49  ;;  %5006 = vtanh.f32 %v1667_v29  ;;  %v1742_v49 = vand.u32 2147483648, %v6288_v42 }
 0x52c   : > { %v5005_v45 = vpop.eup %5004 }
 0x52d   : > { %v1732_v14 = vmul.f32 %v5005_v45, %v6288_v42  ;;  %v1724_v52 = vsel %vm1723_vm14, %v5001_v55, %v1720_v43  ;;  %v1704_v55 = vand.u32 2147483648, %v6277_v47  ;;  %vm1737_vm6 = vweird.f32 %v5005_v45 }
 0x52e   : > { %v1729_v58 = vsel %vm1726_vm2, %v1728_v51, %v1724_v52  ;;  %v1615_v61 = vpop.f32.mrf.mxu3  ;;  %vm1738_vm11 = vmor %vm1736_vm3, %vm1737_vm6 }
 0x52f   : > { %v1733_v25 = vsub.f32 1.0, %v1732_v14  ;;  %v1786_v62 = vmul.f32 %v1729_v58, %v6209_v54  ;;  %v1657_v26 = vadd.f32 %v1656_v27, %v1615_v61  ;;  %v1701_v27 = vsel %vm6320_vm8, %v6282_v48, %v1697_v63 }
 0x530   : > { %v1743_v14 = vor.u32 1.1754944e-38, %v1742_v49  ;;  %v1705_v52 = vor.u32 1.1754944e-38, %v1704_v55 }
 0x531   : > { %v1734_v43 = vmul.f32 %v5005_v45, %v1733_v25  ;;  %v1790_v30 = vadd.f32 %v1788_v40, %v1786_v62  ;;  %v1668_v35 = vadd.f32 %v1657_v26, %v5696_v37  ;;  %v5007_v47 = vpop.eup %5006  ;;  %v4505_v26 = vld [vmem:[%s7668_s1 + $0x30] sm:$0xff] }
 0x532   : > { %v1706_v61 = vsel %vm1703_vm5, %v1705_v52, %v1701_v27  ;;  %1867 = vmatpush.msrb.mxu1 %v4505_v26 }
 0x533   : > { %v1735_v59 = vadd.f32 %v5005_v45, %v1734_v43  ;;  %v4501_v51 = vmul.f32 -1.442695, %v1668_v35  ;;  %v6332_v38 = vsel %vm6304_vm15, %v1790_v30, %v6209_v54  ;;  %v1789_v25 = vmul.f32 %v5007_v47, %v1706_v61  ;;  %4514 = vmatmul.msk.f32.vlgmr.msrb.gmra.mxu1 %vm404_vm1, %v5567_v17 }
 0x535   : > { %v1739_v58 = vsel %vm1738_vm11, %v5005_v45, %v1735_v59  ;;  %5008 = vpow2.f32 %v4501_v51 }
 0x536   : > { %v1744_v48 = vsel %vm1741_vm12, %v1743_v14, %v1739_v58  ;;  %v1618_v63 = vpop.f32.mrf.mxu3 }
 0x537   : > { %v1787_v42 = vmul.f32 %v1744_v48, %v6219_v56  ;;  %v1660_v62 = vadd.f32 %v1659_v57, %v1618_v63 }
 0x539   : > { %v1791_v40 = vadd.f32 %v1789_v25, %v1787_v42  ;;  %v1669_v54 = vadd.f32 %v1660_v62, %v5663_v32 }
 0x53b   : > { %v5009_v49 = vpop.eup %5008  ;;  %v4502_v55 = vmul.f32 -1.442695, %v1669_v54  ;;  %v6342_v45 = vsel %vm6304_vm15, %v1791_v40, %v6219_v56  ;;  %4515 = vmatmul.msk.f32.gmra.mxu1 %vm404_vm1, %v5569_v18 }
 0x53c   : > { %v1754_v44 = vadd.f32 1.0, %v5009_v49 }
 0x53d   : > { %5010 = vpow2.f32 %v4502_v55 }
 0x53e   : > { %5012 = vrcp.f32 %v1754_v44  ;;  %v1767_v59 = vand.u32 2147483648, %v1754_v44  ;;  %v1765_v56 = vand.u32 2147483647, %v1754_v44  ;;  %vm1761_vm13 = vweird.f32 %v1754_v44 }
 0x540   : > { %v1768_v52 = vor.u32 1.1754944e-38, %v1767_v59  ;;  %vm1766_vm14 = vcmp.eq.f32.partialorder %v1765_v56, 8.507059e+37 }
 0x543   : > { %v5011_v33 = vpop.eup %5010  ;;  %4516 = vmatmul.msk.f32.gmra.mxu1 %vm404_vm1, %v5571_v19 }
 0x544   : > { %v5013_v43 = vpop.eup %5012  ;;  %v1755_v29 = vadd.f32 1.0, %v5011_v33 }
 0x545   : > { %v1757_v35 = vmul.f32 %v5013_v43, %v1754_v44  ;;  %vm1762_vm7 = vweird.f32 %v5013_v43 }
 0x546   : > { %5014 = vrcp.f32 %v1755_v29  ;;  %vm1763_vm9 = vmor %vm1761_vm13, %vm1762_vm7  ;;  %v1780_v62 = vand.u32 2147483647, %v1755_v29  ;;  %vm1776_vm2 = vweird.f32 %v1755_v29 }
 0x547   : > { %v1758_v27 = vsub.f32 1.0, %v1757_v35  ;;  %5016 = vtanh.f32 %v1790_v30  ;;  %v1782_v30 = vand.u32 2147483648, %v1755_v29 }
 0x548   : > { %5018 = vtanh.f32 %v1791_v40  ;;  %vm1781_vm6 = vcmp.eq.f32.partialorder %v1780_v62, 8.507059e+37 }
 0x549   : > { %v1759_v51 = vmul.f32 %v5013_v43, %v1758_v27  ;;  %v1783_v49 = vor.u32 1.1754944e-38, %v1782_v30 }
 0x54b   : > { %v1760_v47 = vadd.f32 %v5013_v43, %v1759_v51  ;;  %4517 = vmatmul.msk.f32.gmra.mxu1 %vm404_vm1, %v5573_v20 }
 0x54c   : > { %v5015_v14 = vpop.eup %5014 }
 0x54d   : > { %v1772_v57 = vmul.f32 %v5015_v14, %v1755_v29  ;;  %v1764_v58 = vsel %vm1763_vm9, %v5013_v43, %v1760_v47  ;;  %v5017_v61 = vpop.eup %5016  ;;  %vm1777_vm10 = vweird.f32 %v5015_v14 }
 0x54e   : > { %v1769_v48 = vsel %vm1766_vm14, %v1768_v52, %v1764_v58  ;;  %vm1778_vm4 = vmor %vm1776_vm2, %vm1777_vm10  ;;  %v5019_v44 = vpop.eup %5018 }
 0x54f   : > { %v1773_v63 = vsub.f32 1.0, %v1772_v57  ;;  %v1794_v42 = vmul.f32 %v5017_v61, %v1769_v48 }
 0x551   : > { %v1774_v25 = vmul.f32 %v5015_v14, %v1773_v63  ;;  %v1800_v54 = vsel %vm6304_vm15, %v1794_v42, 0.0  ;;  %v6367_v29 = vsel %vm6304_vm15, %v1794_v42, %v6244_v31 }
 0x552   : > { %4503 = vst [vmem:[%s5584_s8 + $0x50] sm:$0xff] %v1800_v54 }
 0x553   : > { %v1775_v26 = vadd.f32 %v5015_v14, %v1774_v25  ;;  %4518 = vmatmul.msk.f32.gmra.mxu1 %vm404_vm1, %v5575_v21 }
 0x555   : > { %v1779_v55 = vsel %vm1778_vm4, %v5015_v14, %v1775_v26 }
 0x556   : > { %v1784_v40 = vsel %vm1781_vm6, %v1783_v49, %v1779_v55 }
 0x557   : > { %v1795_v33 = vmul.f32 %v5019_v44, %v1784_v40 }
 0x559   : > { %v1801_v43 = vsel %vm6304_vm15, %v1795_v33, 0.0  ;;  %v6360_v35 = vsel %vm6304_vm15, %v1795_v33, %v6237_v36  ;;  %vm2027_vm15 = vcmp.gt.s32.totalorder %v5519_v0, 6 }
 0x55a   : > { %4504 = vst [vmem:[%s5584_s8 + $0x58] sm:$0xff] %v1801_v43  ;;  %1825 = vmatpush.msrb.mxu0 %v6360_v35 }
 0x55b   : > { %4519 = vmatmul.msk.f32.gmra.mxu1 %vm404_vm1, %v5577_v22 }
 0x55c   : > { %1826 = vmatpush.msrb.mxu0 %v6367_v29 }
 0x55d   : > { %4506 = vmatmul.msk.f32.vlgmr.msrb.gmra.mxu0 %vm338_vm0, %v5532_v1 }
 0x563   : > { %4520 = vmatmul.msk.f32.gmra.mxu1 %vm404_vm1, %v5579_v23 }
 0x565   : > { %4507 = vmatmul.msk.f32.gmra.mxu0 %vm338_vm0, %v5534_v2 }
 0x56b   : > { %4521 = vmatmul.msk.f32.gmra.mxu1 %vm404_vm1, %v5581_v24 }
 0x56d   : > { %4508 = vmatmul.msk.f32.gmra.mxu0 %vm338_vm0, %v5536_v3 }
 0x575   : > { %4509 = vmatmul.msk.f32.gmra.mxu0 %vm338_vm0, %v5538_v4 }
 0x57d   : > { %4510 = vmatmul.msk.f32.gmra.mxu0 %vm338_vm0, %v5540_v5 }
 0x585   : > { %4511 = vmatmul.msk.f32.gmra.mxu0 %vm338_vm0, %v5542_v6 }
 0x58d   : > { %4512 = vmatmul.msk.f32.gmra.mxu0 %vm338_vm0, %v5547_v7 }
 0x595   : > { %4513 = vmatmul.msk.f32.gmra.mxu0 %vm338_vm0, %v5549_v8 }
 0x5b0   : > { %v1869_v36 = vpop.f32.mrf.mxu1 }
 0x5b8   : > { %v1872_v31 = vpop.f32.mrf.mxu1 }
 0x5c0   : > { %v1875_v51 = vpop.f32.mrf.mxu1 }
 0x5c8   : > { %v1878_v61 = vpop.f32.mrf.mxu1 }
 0x5d0   : > { %v1881_v49 = vpop.f32.mrf.mxu1 }
 0x5da   : > { %v1828_v46 = vpop.f32.mrf.mxu0 }
 0x5db   : > { %v1870_v27 = vadd.f32 %v1869_v36, %v1828_v46 }
 0x5dd   : > { %v1893_v59 = vadd.f32 %v1870_v27, %v5633_v28 }
 0x5df   : > { %v4522_v56 = vmul.f32 -1.442695, %v1893_v59 }
 0x5e1   : > { %5020 = vpow2.f32 %v4522_v56  ;;  %v1884_v56 = vpop.f32.mrf.mxu1 }
 0x5e2   : > { %v1831_v47 = vpop.f32.mrf.mxu0 }
 0x5e3   : > { %v1873_v14 = vadd.f32 %v1872_v31, %v1831_v47 }
 0x5e5   : > { %v1894_v52 = vadd.f32 %v1873_v14, %v5636_v34 }
 0x5e7   : > { %v5021_v57 = vpop.eup %5020  ;;  %v4523_v58 = vmul.f32 -1.442695, %v1894_v52 }
 0x5e8   : > { %v6396_v48 = vadd.f32 1.0, %v5021_v57 }
 0x5e9   : > { %5022 = vpow2.f32 %v4523_v58 }
 0x5ea   : > { %v1834_v63 = vpop.f32.mrf.mxu0  ;;  %5024 = vrcp.f32 %v6396_v48  ;;  %vm1914_vm11 = vweird.f32 %v6396_v48 }
 0x5eb   : > { %v1876_v42 = vadd.f32 %v1875_v51, %v1834_v63 }
 0x5ed   : > { %v1895_v30 = vadd.f32 %v1876_v42, %v5639_v41  ;;  %v2028_v42 = vsel %vm2027_vm15, 1, %v7693_v39 }
 0x5ef   : > { %v5023_v25 = vpop.eup %5022  ;;  %v4524_v62 = vmul.f32 -1.442695, %v1895_v30 }
 0x5f0   : > { %v6400_v54 = vadd.f32 1.0, %v5023_v25  ;;  %v5025_v44 = vpop.eup %5024  ;;  %v1918_v25 = vand.u32 2147483647, %v6396_v48 }
 0x5f1   : > { %5026 = vpow2.f32 %v4524_v62  ;;  %v1910_v43 = vmul.f32 %v5025_v44, %v6396_v48  ;;  %vm1915_vm8 = vweird.f32 %v5025_v44 }
 0x5f2   : > { %v1837_v26 = vpop.f32.mrf.mxu0  ;;  %5028 = vrcp.f32 %v6400_v54  ;;  %vm6418_vm5 = vmor %vm1914_vm11, %vm1915_vm8  ;;  %vm1919_vm7 = vcmp.eq.f32.partialorder %v1918_v25, 8.507059e+37  ;;  %vm1929_vm9 = vweird.f32 %v6400_v54 }
 0x5f3   : > { %v1879_v55 = vadd.f32 %v1878_v61, %v1837_v26  ;;  %v1911_v59 = vsub.f32 1.0, %v1910_v43  ;;  %v2029_v43 = vperm.slane %v2028_v42, 0 }
 0x5f5   : > { %v1896_v40 = vadd.f32 %v1879_v55, %v5647_v50  ;;  %v1912_v57 = vmul.f32 %v5025_v44, %v1911_v59  ;;  %vm6427_vm14 = vcmp.eq.s32.totalorder %v2029_v43, 1  ;;  %v1933_v59 = vand.u32 2147483647, %v6400_v54 }
 0x5f7   : > { %v5027_v33 = vpop.eup %5026  ;;  %v4525_v36 = vmul.f32 -1.442695, %v1896_v40 }
 0x5f8   : > { %v1945_v31 = vadd.f32 1.0, %v5027_v33  ;;  %v6405_v27 = vpop.eup %5028  ;;  %v1920_v33 = vand.u32 2147483648, %v6396_v48 }
 0x5f9   : > { %5030 = vpow2.f32 %v4525_v36  ;;  %v1925_v14 = vmul.f32 %v6405_v27, %v6400_v54  ;;  %vm1930_vm2 = vweird.f32 %v6405_v27 }
 0x5fa   : > { %5032 = vrcp.f32 %v1945_v31  ;;  %v1840_v46 = vpop.f32.mrf.mxu0  ;;  %v1958_v40 = vand.u32 2147483648, %v1945_v31  ;;  %vm1952_vm12 = vweird.f32 %v1945_v31  ;;  %v1921_v42 = vor.u32 1.1754944e-38, %v1920_v33  ;;  %vm6445_vm6 = vmor %vm1929_vm9, %vm1930_vm2 }
 0x5fb   : > { %v1882_v51 = vadd.f32 %v1881_v49, %v1840_v46  ;;  %v1926_v30 = vsub.f32 1.0, %v1925_v14  ;;  %v1913_v49 = vadd.f32 %v5025_v44, %v1912_v57  ;;  %v1956_v46 = vand.u32 2147483647, %v1945_v31  ;;  %v1887_v14 = vpop.f32.mrf.mxu1 }
 0x5fc   : > { %v1959_v48 = vor.u32 1.1754944e-38, %v1958_v40 }
 0x5fd   : > { %v1897_v47 = vadd.f32 %v1882_v51, %v5655_v60  ;;  %vm1957_vm10 = vcmp.eq.f32.partialorder %v1956_v46, 8.507059e+37 }
 0x5ff   : > { %v5031_v52 = vpop.eup %5030  ;;  %5034 = vtanh.f32 %v1897_v47  ;;  %v1927_v47 = vmul.f32 %v6405_v27, %v1926_v30 }
 0x600   : > { %v5033_v58 = vpop.eup %5032  ;;  %v6411_v61 = vadd.f32 1.0, %v5031_v52 }
 0x601   : > { %v1948_v63 = vmul.f32 %v5033_v58, %v1945_v31  ;;  %vm1953_vm3 = vweird.f32 %v5033_v58  ;;  %v1928_v25 = vadd.f32 %v6405_v27, %v1927_v47 }
 0x602   : > { %5036 = vrcp.f32 %v6411_v61  ;;  %v1843_v62 = vpop.f32.mrf.mxu0  ;;  %vm1954_vm13 = vmor %vm1952_vm12, %vm1953_vm3  ;;  %v1971_v46 = vand.u32 2147483647, %v6411_v61  ;;  %vm1967_vm15 = vweird.f32 %v6411_v61  ;;  %vm1934_vm3 = vcmp.eq.f32.partialorder %v1933_v59, 8.507059e+37 }
 0x603   : > { %v1949_v26 = vsub.f32 1.0, %v1948_v63  ;;  %v1885_v55 = vadd.f32 %v1884_v56, %v1843_v62  ;;  %v1917_v56 = vsel %vm6418_vm5, %v5025_v44, %v1913_v49 }
 0x604   : > { %v1922_v31 = vsel %vm1919_vm7, %v1921_v42, %v1917_v56  ;;  %vm1972_vm11 = vcmp.eq.f32.partialorder %v1971_v46, 8.507059e+37 }
 0x605   : > { %v1950_v36 = vmul.f32 %v5033_v58, %v1949_v26  ;;  %v1898_v51 = vadd.f32 %v1885_v55, %v5674_v53  ;;  %v5035_v52 = vpop.eup %5034 }
 0x606   : > { %v2019_v33 = vmul.f32 %v5035_v52, %v1922_v31  ;;  %v1890_v31 = vpop.f32.mrf.mxu1 }
 0x607   : > { %v1951_v57 = vadd.f32 %v5033_v58, %v1950_v36  ;;  %5038 = vtanh.f32 %v1898_v51  ;;  %v1973_v36 = vand.u32 2147483648, %v6411_v61 }
 0x608   : > { %v5037_v63 = vpop.eup %5036 }
 0x609   : > { %v1963_v30 = vmul.f32 %v5037_v63, %v6411_v61  ;;  %v1955_v26 = vsel %vm1954_vm13, %v5033_v58, %v1951_v57  ;;  %v1935_v58 = vand.u32 2147483648, %v6400_v54  ;;  %vm1968_vm4 = vweird.f32 %v5037_v63 }
 0x60a   : > { %v1960_v44 = vsel %vm1957_vm10, %v1959_v48, %v1955_v26  ;;  %v1846_v49 = vpop.f32.mrf.mxu0  ;;  %vm1969_vm8 = vmor %vm1967_vm15, %vm1968_vm4 }
 0x60b   : > { %v1964_v55 = vsub.f32 1.0, %v1963_v30  ;;  %v2017_v40 = vmul.f32 %v1960_v44, %v6332_v38  ;;  %v1888_v43 = vadd.f32 %v1887_v14, %v1846_v49  ;;  %v1932_v14 = vsel %vm6445_vm6, %v6405_v27, %v1928_v25 }
 0x60c   : > { %v1974_v30 = vor.u32 1.1754944e-38, %v1973_v36  ;;  %v1936_v26 = vor.u32 1.1754944e-38, %v1935_v58  ;;  %v4530_v36 = vld [vmem:[%s7668_s1 + $0x38] sm:$0xff] }
 0x60d   : > { %v1965_v57 = vmul.f32 %v5037_v63, %v1964_v55  ;;  %v6439_v56 = vadd.f32 %v2019_v33, %v2017_v40  ;;  %v1899_v47 = vadd.f32 %v1888_v43, %v5696_v37  ;;  %v5039_v54 = vpop.eup %5038  ;;  %2098 = vmatpush.msrb.mxu2 %v4530_v36 }
 0x60e   : > { %v1937_v49 = vsel %vm1934_vm3, %v1936_v26, %v1932_v14  ;;  %4539 = vmatmul.msk.f32.vlgmr.msrb.gmra.mxu2 %vm404_vm1, %v5567_v17 }
 0x60f   : > { %v1966_v52 = vadd.f32 %v5037_v63, %v1965_v57  ;;  %v4526_v48 = vmul.f32 -1.442695, %v1899_v47  ;;  %v2038_v42 = vsel %vm6427_vm14, %v6439_v56, %v6332_v38  ;;  %v2020_v55 = vmul.f32 %v5039_v54, %v1937_v49 }
 0x611   : > { %v1970_v44 = vsel %vm1969_vm8, %v5037_v63, %v1966_v52  ;;  %5040 = vpow2.f32 %v4526_v48 }
 0x612   : > { %v1975_v27 = vsel %vm1972_vm11, %v1974_v30, %v1970_v44  ;;  %v1849_v25 = vpop.f32.mrf.mxu0 }
 0x613   : > { %v2018_v61 = vmul.f32 %v1975_v27, %v6342_v45  ;;  %v1891_v40 = vadd.f32 %v1890_v31, %v1849_v25 }
 0x615   : > { %v6459_v33 = vadd.f32 %v2020_v55, %v2018_v61  ;;  %v1900_v43 = vadd.f32 %v1891_v40, %v5663_v32 }
 0x616   : > { %4540 = vmatmul.msk.f32.gmra.mxu2 %vm404_vm1, %v5569_v18 }
 0x617   : > { %v5041_v58 = vpop.eup %5040  ;;  %v4527_v59 = vmul.f32 -1.442695, %v1900_v43  ;;  %v2039_v63 = vsel %vm6427_vm14, %v6459_v33, %v6342_v45 }
 0x618   : > { %v1985_v46 = vadd.f32 1.0, %v5041_v58 }
 0x619   : > { %5042 = vpow2.f32 %v4527_v59 }
 0x61a   : > { %5044 = vrcp.f32 %v1985_v46  ;;  %v1998_v48 = vand.u32 2147483648, %v1985_v46  ;;  %v1996_v30 = vand.u32 2147483647, %v1985_v46  ;;  %vm1992_vm12 = vweird.f32 %v1985_v46 }
 0x61c   : > { %v1999_v44 = vor.u32 1.1754944e-38, %v1998_v48  ;;  %vm1997_vm13 = vcmp.eq.f32.partialorder %v1996_v30, 8.507059e+37 }
 0x61e   : > { %4541 = vmatmul.msk.f32.gmra.mxu2 %vm404_vm1, %v5571_v19 }
 0x61f   : > { %v5043_v57 = vpop.eup %5042 }
 0x620   : > { %v5045_v51 = vpop.eup %5044  ;;  %v1986_v47 = vadd.f32 1.0, %v5043_v57 }
 0x621   : > { %v1988_v14 = vmul.f32 %v5045_v51, %v1985_v46  ;;  %vm1993_vm5 = vweird.f32 %v5045_v51 }
 0x622   : > { %5046 = vrcp.f32 %v1986_v47  ;;  %vm1994_vm7 = vmor %vm1992_vm12, %vm1993_vm5  ;;  %v2013_v43 = vand.u32 2147483648, %v1986_v47  ;;  %v2011_v58 = vand.u32 2147483647, %v1986_v47  ;;  %vm2007_vm10 = vweird.f32 %v1986_v47 }
 0x623   : > { %v1989_v52 = vsub.f32 1.0, %v1988_v14  ;;  %5048 = vtanh.f32 %v6439_v56 }
 0x624   : > { %5050 = vtanh.f32 %v6459_v33  ;;  %v2014_v57 = vor.u32 1.1754944e-38, %v2013_v43  ;;  %vm2012_vm4 = vcmp.eq.f32.partialorder %v2011_v58, 8.507059e+37 }
 0x625   : > { %v1990_v54 = vmul.f32 %v5045_v51, %v1989_v52 }
 0x626   : > { %4542 = vmatmul.msk.f32.gmra.mxu2 %vm404_vm1, %v5573_v20 }
 0x627   : > { %v1991_v26 = vadd.f32 %v5045_v51, %v1990_v54 }
 0x628   : > { %v5047_v31 = vpop.eup %5046 }
 0x629   : > { %v2003_v49 = vmul.f32 %v5047_v31, %v1986_v47  ;;  %v1995_v27 = vsel %vm1994_vm7, %v5045_v51, %v1991_v26  ;;  %v5049_v25 = vpop.eup %5048  ;;  %vm2008_vm9 = vweird.f32 %v5047_v31 }
 0x62a   : > { %v2000_v61 = vsel %vm1997_vm13, %v1999_v44, %v1995_v27  ;;  %vm2009_vm2 = vmor %vm2007_vm10, %vm2008_vm9  ;;  %v5051_v14 = vpop.eup %5050 }
 0x62b   : > { %v2004_v55 = vsub.f32 1.0, %v2003_v49  ;;  %v2025_v40 = vmul.f32 %v5049_v25, %v2000_v61 }
 0x62d   : > { %v2005_v36 = vmul.f32 %v5047_v31, %v2004_v55  ;;  %v2031_v59 = vsel %vm6427_vm14, %v2025_v40, 0.0  ;;  %v2036_v47 = vsel %vm6427_vm14, %v2025_v40, %v6367_v29 }
 0x62e   : > { %4528 = vst [vmem:[%s5584_s8 + $0x60] sm:$0xff] %v2031_v59  ;;  %4543 = vmatmul.msk.f32.gmra.mxu2 %vm404_vm1, %v5575_v21 }
 0x62f   : > { %v2006_v46 = vadd.f32 %v5047_v31, %v2005_v36 }
 0x631   : > { %v2010_v51 = vsel %vm2009_vm2, %v5047_v31, %v2006_v46 }
 0x632   : > { %v2015_v52 = vsel %vm2012_vm4, %v2014_v57, %v2010_v51  ;;  %vm2258_vm4 = vcmp.gt.s32.totalorder %v5519_v0, 7 }
 0x633   : > { %v2026_v48 = vmul.f32 %v5051_v14, %v2015_v52 }
 0x635   : > { %v2032_v54 = vsel %vm6427_vm14, %v2026_v48, 0.0  ;;  %v2037_v30 = vsel %vm6427_vm14, %v2026_v48, %v6360_v35 }
 0x636   : > { %4529 = vst [vmem:[%s5584_s8 + $0x68] sm:$0xff] %v2032_v54  ;;  %2056 = vmatpush.msrb.mxu3 %v2037_v30  ;;  %4544 = vmatmul.msk.f32.gmra.mxu2 %vm404_vm1, %v5577_v22 }
 0x638   : > { %2057 = vmatpush.msrb.mxu3 %v2036_v47 }
 0x639   : > { %4531 = vmatmul.msk.f32.vlgmr.msrb.gmra.mxu3 %vm338_vm0, %v5532_v1 }
 0x63e   : > { %4545 = vmatmul.msk.f32.gmra.mxu2 %vm404_vm1, %v5579_v23 }
 0x641   : > { %4532 = vmatmul.msk.f32.gmra.mxu3 %vm338_vm0, %v5534_v2 }
 0x646   : > { %4546 = vmatmul.msk.f32.gmra.mxu2 %vm404_vm1, %v5581_v24 }
 0x649   : > { %4533 = vmatmul.msk.f32.gmra.mxu3 %vm338_vm0, %v5536_v3 }
 0x651   : > { %4534 = vmatmul.msk.f32.gmra.mxu3 %vm338_vm0, %v5538_v4 }
 0x659   : > { %4535 = vmatmul.msk.f32.gmra.mxu3 %vm338_vm0, %v5540_v5 }
 0x661   : > { %4536 = vmatmul.msk.f32.gmra.mxu3 %vm338_vm0, %v5542_v6 }
 0x669   : > { %4537 = vmatmul.msk.f32.gmra.mxu3 %vm338_vm0, %v5547_v7 }
 0x671   : > { %4538 = vmatmul.msk.f32.gmra.mxu3 %vm338_vm0, %v5549_v8 }
 0x691   : > { %v2100_v35 = vpop.f32.mrf.mxu2 }
 0x699   : > { %v2103_v29 = vpop.f32.mrf.mxu2 }
 0x6a1   : > { %v2106_v31 = vpop.f32.mrf.mxu2 }
 0x6a9   : > { %v2109_v27 = vpop.f32.mrf.mxu2 }
 0x6b1   : > { %v2112_v46 = vpop.f32.mrf.mxu2 }
 0x6bc   : > { %v2059_v26 = vpop.f32.mrf.mxu3 }
 0x6bd   : > { %v2101_v49 = vadd.f32 %v2100_v35, %v2059_v26  ;;  %v2115_v35 = vpop.f32.mrf.mxu2 }
 0x6bf   : > { %v2124_v61 = vadd.f32 %v2101_v49, %v5633_v28 }
 0x6c1   : > { %v4547_v43 = vmul.f32 -1.442695, %v2124_v61 }
 0x6c4   : > { %v2062_v44 = vpop.f32.mrf.mxu3 }
 0x6c5   : > { %v2104_v58 = vadd.f32 %v2103_v29, %v2062_v44 }
 0x6c7   : > { %v2125_v51 = vadd.f32 %v2104_v58, %v5636_v34 }
 0x6c9   : > { %v4548_v54 = vmul.f32 -1.442695, %v2125_v51 }
 0x6cc   : > { %v2065_v25 = vpop.f32.mrf.mxu3 }
 0x6cd   : > { %v2107_v55 = vadd.f32 %v2106_v31, %v2065_v25  ;;  %v2118_v25 = vpop.f32.mrf.mxu2 }
 0x6cf   : > { %v2126_v40 = vadd.f32 %v2107_v55, %v5639_v41 }
 0x6d1   : > { %v4549_v36 = vmul.f32 -1.442695, %v2126_v40 }
 0x6d3   : > { %5052 = vpow2.f32 %v4549_v36 }
 0x6d4   : > { %v2068_v59 = vpop.f32.mrf.mxu3  ;;  %5054 = vpow2.f32 %v4547_v43 }
 0x6d5   : > { %v2110_v57 = vadd.f32 %v2109_v27, %v2068_v59 }
 0x6d7   : > { %v2127_v14 = vadd.f32 %v2110_v57, %v5647_v50 }
 0x6d9   : > { %v5053_v52 = vpop.eup %5052  ;;  %v4550_v48 = vmul.f32 -1.442695, %v2127_v14 }
 0x6da   : > { %v5055_v30 = vpop.eup %5054  ;;  %v2176_v28 = vadd.f32 1.0, %v5053_v52 }
 0x6db   : > { %5056 = vpow2.f32 %v4550_v48  ;;  %v6519_v41 = vadd.f32 1.0, %v5055_v30 }
 0x6dc   : > { %v2071_v47 = vpop.f32.mrf.mxu3  ;;  %5058 = vpow2.f32 %v4548_v54  ;;  %v2121_v54 = vpop.f32.mrf.mxu2  ;;  %vm2183_vm1 = vweird.f32 %v2176_v28 }
 0x6dd   : > { %5060 = vrcp.f32 %v2176_v28  ;;  %v2113_v59 = vadd.f32 %v2112_v46, %v2071_v47  ;;  %vm2145_vm8 = vweird.f32 %v6519_v41 }
 0x6de   : > { %5062 = vrcp.f32 %v6519_v41 }
 0x6df   : > { %v2128_v30 = vadd.f32 %v2113_v59, %v5655_v60 }
 0x6e1   : > { %v5057_v29 = vpop.eup %5056 }
 0x6e2   : > { %v6522_v26 = vadd.f32 1.0, %v5057_v29  ;;  %v5059_v34 = vpop.eup %5058 }
 0x6e3   : > { %v5061_v50 = vpop.eup %5060  ;;  %v6524_v44 = vadd.f32 1.0, %v5059_v34 }
 0x6e4   : > { %v2074_v31 = vpop.f32.mrf.mxu3  ;;  %5064 = vrcp.f32 %v6522_v26  ;;  %v6527_v49 = vpop.eup %5062  ;;  %v2179_v27 = vmul.f32 %v5061_v50, %v2176_v28  ;;  %vm2184_vm0 = vweird.f32 %v5061_v50  ;;  %vm2198_vm12 = vweird.f32 %v6522_v26 }
 0x6e5   : > { %v2141_v61 = vmul.f32 %v6527_v49, %v6519_v41  ;;  %5066 = vrcp.f32 %v6524_v44  ;;  %vm2146_vm6 = vweird.f32 %v6527_v49  ;;  %vm6544_vm15 = vmor %vm2183_vm1, %vm2184_vm0  ;;  %vm2160_vm10 = vweird.f32 %v6524_v44 }
 0x6e6   : > { %v2180_v55 = vsub.f32 1.0, %v2179_v27  ;;  %v2189_v27 = vand.u32 2147483648, %v2176_v28  ;;  %vm6557_vm3 = vmor %vm2145_vm8, %vm2146_vm6  ;;  %v2164_v56 = vand.u32 2147483647, %v6524_v44 }
 0x6e7   : > { %v2142_v58 = vsub.f32 1.0, %v2141_v61  ;;  %v2187_v61 = vand.u32 2147483647, %v2176_v28  ;;  %v2151_v28 = vand.u32 2147483648, %v6519_v41 }
 0x6e8   : > { %v2181_v51 = vmul.f32 %v5061_v50, %v2180_v55  ;;  %vm2165_vm1 = vcmp.eq.f32.partialorder %v2164_v56, 8.507059e+37 }
 0x6e9   : > { %v2143_v29 = vmul.f32 %v6527_v49, %v2142_v58  ;;  %vm2188_vm11 = vcmp.eq.f32.partialorder %v2187_v61, 8.507059e+37 }
 0x6ea   : > { %v6532_v43 = vpop.eup %5064  ;;  %v2182_v47 = vadd.f32 %v5061_v50, %v2181_v51 }
 0x6eb   : > { %v2194_v14 = vmul.f32 %v6532_v43, %v6522_v26  ;;  %v6537_v52 = vpop.eup %5066  ;;  %v2144_v60 = vadd.f32 %v6527_v49, %v2143_v29  ;;  %vm2199_vm5 = vweird.f32 %v6532_v43 }
 0x6ec   : > { %v2077_v40 = vpop.f32.mrf.mxu3  ;;  %v2156_v34 = vmul.f32 %v6537_v52, %v6524_v44  ;;  %vm6577_vm13 = vmor %vm2198_vm12, %vm2199_vm5  ;;  %vm2161_vm9 = vweird.f32 %v6537_v52 }
 0x6ed   : > { %v2119_v36 = vadd.f32 %v2118_v25, %v2077_v40  ;;  %v2195_v46 = vsub.f32 1.0, %v2194_v14  ;;  %v2116_v40 = vadd.f32 %v2115_v35, %v2074_v31  ;;  %v2190_v14 = vor.u32 1.1754944e-38, %v2189_v27  ;;  %vm2162_vm0 = vmor %vm2160_vm10, %vm2161_vm9 }
 0x6ee   : > { %v2157_v58 = vsub.f32 1.0, %v2156_v34  ;;  %v2148_v31 = vsel %vm6557_vm3, %v6527_v49, %v2144_v60  ;;  %v2202_v49 = vand.u32 2147483647, %v6522_v26 }
 0x6ef   : > { %v2130_v57 = vadd.f32 %v2119_v36, %v5696_v37  ;;  %v2196_v59 = vmul.f32 %v6532_v43, %v2195_v46 }
 0x6f0   : > { %v2158_v29 = vmul.f32 %v6537_v52, %v2157_v58  ;;  %vm2203_vm2 = vcmp.eq.f32.partialorder %v2202_v49, 8.507059e+37 }
 0x6f1   : > { %v4551_v48 = vmul.f32 -1.442695, %v2130_v57  ;;  %v2186_v57 = vsel %vm6544_vm15, %v5061_v50, %v2182_v47  ;;  %v2197_v34 = vadd.f32 %v6532_v43, %v2196_v59  ;;  %v2152_v47 = vor.u32 1.1754944e-38, %v2151_v28 }
 0x6f2   : > { %v2191_v50 = vsel %vm2188_vm11, %v2190_v14, %v2186_v57  ;;  %v2159_v61 = vadd.f32 %v6537_v52, %v2158_v29  ;;  %v2259_v28 = vsel %vm2258_vm4, 1, %v7693_v39 }
 0x6f3   : > { %5068 = vpow2.f32 %v4551_v48  ;;  %v2201_v55 = vsel %vm6577_vm13, %v6532_v43, %v2197_v34 }
 0x6f4   : > { %v2080_v37 = vpop.f32.mrf.mxu3  ;;  %5070 = vtanh.f32 %v2128_v30  ;;  %v2129_v30 = vadd.f32 %v2116_v40, %v5674_v53  ;;  %v2248_v53 = vmul.f32 %v2191_v50, %v2038_v42  ;;  %v2166_v42 = vand.u32 2147483648, %v6524_v44 }
 0x6f5   : > { %v2122_v25 = vadd.f32 %v2121_v54, %v2080_v37  ;;  %v2163_v57 = vsel %vm2162_vm0, %v6537_v52, %v2159_v61  ;;  %v2260_v50 = vperm.slane %v2259_v28, 0 }
 0x6f7   : > { %v2131_v36 = vadd.f32 %v2122_v25, %v5663_v32  ;;  %v2149_v32 = vand.u32 2147483647, %v6519_v41  ;;  %v2204_v41 = vand.u32 2147483648, %v6522_v26  ;;  %vm6597_vm14 = vcmp.eq.s32.totalorder %v2260_v50, 1 }
 0x6f9   : > { %v5069_v51 = vpop.eup %5068  ;;  %v4552_v48 = vmul.f32 -1.442695, %v2131_v36  ;;  %vm2150_vm7 = vcmp.eq.f32.partialorder %v2149_v32, 8.507059e+37  ;;  %v2205_v38 = vor.u32 1.1754944e-38, %v2204_v41 }
 0x6fa   : > { %v2216_v35 = vadd.f32 1.0, %v5069_v51  ;;  %v5071_v46 = vpop.eup %5070  ;;  %v2153_v27 = vsel %vm2150_vm7, %v2152_v47, %v2148_v31  ;;  %v2167_v51 = vor.u32 1.1754944e-38, %v2166_v42 }
 0x6fb   : > { %5072 = vpow2.f32 %v4552_v48  ;;  %v2250_v25 = vmul.f32 %v5071_v46, %v2153_v27  ;;  %v2206_v58 = vsel %vm2203_vm2, %v2205_v38, %v2201_v55 }
 0x6fc   : > { %5074 = vrcp.f32 %v2216_v35  ;;  %v2249_v44 = vmul.f32 %v2206_v58, %v2039_v63  ;;  %v2229_v48 = vand.u32 2147483648, %v2216_v35  ;;  %v2168_v54 = vsel %vm2165_vm1, %v2167_v51, %v2163_v57 }
 0x6fd   : > { %5076 = vtanh.f32 %v2129_v30  ;;  %v2252_v40 = vadd.f32 %v2250_v25, %v2248_v53  ;;  %v2227_v31 = vand.u32 2147483647, %v2216_v35  ;;  %vm2223_vm15 = vweird.f32 %v2216_v35 }
 0x6fe   : > { %v2230_v39 = vor.u32 1.1754944e-38, %v2229_v48 }
 0x6ff   : > { %vm2228_vm3 = vcmp.eq.f32.partialorder %v2227_v31, 8.507059e+37 }
 0x701   : > { %v5073_v60 = vpop.eup %5072 }
 0x702   : > { %v5075_v26 = vpop.eup %5074  ;;  %v2217_v36 = vadd.f32 1.0, %v5073_v60 }
 0x703   : > { %v2219_v59 = vmul.f32 %v5075_v26, %v2216_v35  ;;  %v5077_v43 = vpop.eup %5076  ;;  %vm2224_vm6 = vweird.f32 %v5075_v26 }
 0x704   : > { %5078 = vrcp.f32 %v2217_v36  ;;  %v2251_v52 = vmul.f32 %v5077_v43, %v2168_v54  ;;  %vm2225_vm8 = vmor %vm2223_vm15, %vm2224_vm6  ;;  %v2244_v53 = vand.u32 2147483648, %v2217_v36  ;;  %v2242_v37 = vand.u32 2147483647, %v2217_v36 }
 0x705   : > { %v2220_v14 = vsub.f32 1.0, %v2219_v59  ;;  %5080 = vtanh.f32 %v2252_v40  ;;  %vm2238_vm5 = vweird.f32 %v2217_v36 }
 0x706   : > { %v2253_v34 = vadd.f32 %v2251_v52, %v2249_v44  ;;  %v2245_v25 = vor.u32 1.1754944e-38, %v2244_v53  ;;  %vm2243_vm7 = vcmp.eq.f32.partialorder %v2242_v37, 8.507059e+37 }
 0x707   : > { %v2221_v32 = vmul.f32 %v5075_v26, %v2220_v14 }
 0x708   : > { %5082 = vtanh.f32 %v2253_v34 }
 0x709   : > { %v2222_v30 = vadd.f32 %v5075_v26, %v2221_v32 }
 0x70a   : > { %v5079_v29 = vpop.eup %5078 }
 0x70b   : > { %v2226_v46 = vsel %vm2225_vm8, %v5075_v26, %v2222_v30  ;;  %v2234_v62 = vmul.f32 %v5079_v29, %v2217_v36  ;;  %v5081_v41 = vpop.eup %5080  ;;  %vm2239_vm11 = vweird.f32 %v5079_v29 }
 0x70c   : > { %v2231_v45 = vsel %vm2228_vm3, %v2230_v39, %v2226_v46  ;;  %vm2240_vm12 = vmor %vm2238_vm5, %vm2239_vm11 }
 0x70d   : > { %v2256_v63 = vmul.f32 %v5081_v41, %v2231_v45  ;;  %v2235_v47 = vsub.f32 1.0, %v2234_v62 }
 0x70e   : > { %v5083_v55 = vpop.eup %5082 }
 0x70f   : > { %v2262_v35 = vsel %vm6597_vm14, %v2256_v63, 0.0  ;;  %v2236_v49 = vmul.f32 %v5079_v29, %v2235_v47 }
 0x710   : > { %4553 = vst [vmem:[%s5584_s8 + $0x70] sm:$0xff] %v2262_v35 }
 0x711   : > { %v2237_v27 = vadd.f32 %v5079_v29, %v2236_v49 }
 0x713   : > { %v2241_v61 = vsel %vm2240_vm12, %v5079_v29, %v2237_v27 }
 0x714   : > { %v2246_v60 = vsel %vm2243_vm7, %v2245_v25, %v2241_v61 }
 0x715   : > { %v2257_v38 = vmul.f32 %v5083_v55, %v2246_v60 }
 0x717   : > { %v2263_v56 = vsel %vm6597_vm14, %v2257_v38, 0.0 }
 0x718   : > { %4554 = vst [vmem:[%s5584_s8 + $0x78] sm:$0xff] %v2263_v56 }
 0x719 PF: > { %p4555_p13 = scmp.ne.s32.totalorder %s5413_s21, 1 }
 0x71b   : > { %2270 = sbr.rel (%p4555_p13) target bundleno = 3607 (0xe17), region = 48 }
 0x720   : > { %v4556_v42 = vld [vmem:[%s7668_s1 + $0x38] sm:$0xff]  ;;  %vm2273_vm13 = vcmask 130048   ;;  %vm2339_vm9 = vcmask 64512   ;;  %v5425_v26 = vmov 0.0   ;;  %v5426_v40 = vmov 0  }
 0x721   : > { %2313 = vmatpush.msra.mxu0 %v5425_v26  ;;  %2379 = vmatpush.msra.mxu1 %v4556_v42  ;;  %vm2579_vm10 = vcmp.gt.s32.totalorder %v5519_v0, 7 }
 0x722   : > { %4557 = vmatmul.msk.f32.vlgmr.msra.gmra.mxu0 %vm2273_vm13, %v5532_v1  ;;  %4565 = vmatmul.msk.f32.vlgmr.msra.gmra.mxu1 %vm2339_vm9, %v5567_v17 }
 0x723   : > { %5085 = vset.pattern.permute.xlu1 %v5426_v40  ;;  %5084 = vset.pattern.permute.xlu0 %v5426_v40 }
 0x724   : > { %2407 = vperm.xlu1 %5085, %v5551_v9   ;;  %2412 = vperm.xlu0 %5084, %v5553_v10   ;;  %v7732_v9 = vld [vmem:[#allocation5_spill] sm:$0xff] }
 0x725   : > { %5086 = vset.pattern.permute.xlu2 %v5426_v40 }
 0x726   : > { %2442 = vperm.xlu2 %5086, %v5565_v16  }
 0x72a   : > { %4558 = vmatmul.msk.f32.gmra.mxu0 %vm2273_vm13, %v5534_v2  ;;  %4566 = vmatmul.msk.f32.gmra.mxu1 %vm2339_vm9, %v5569_v18 }
 0x72c   : > { %2417 = vperm.xlu1 %5085, %v5555_v11   ;;  %2422 = vperm.xlu0 %5084, %v5557_v12  }
 0x72e   : > { %2437 = vperm.xlu2 %5086, %v5563_v15  }
 0x732   : > { %4559 = vmatmul.msk.f32.gmra.mxu0 %vm2273_vm13, %v5536_v3  ;;  %4567 = vmatmul.msk.f32.gmra.mxu1 %vm2339_vm9, %v5571_v19 }
 0x734   : > { %2427 = vperm.xlu1 %5085, %v5559_v13   ;;  %2432 = vperm.xlu0 %5084, %v7732_v9   ;;  %v2580_v9 = vsel %vm2579_vm10, 1, %v5426_v40 }
 0x73a   : > { %4560 = vmatmul.msk.f32.gmra.mxu0 %vm2273_vm13, %v5538_v4  ;;  %4568 = vmatmul.msk.f32.gmra.mxu1 %vm2339_vm9, %v5573_v20 }
 0x742   : > { %4561 = vmatmul.msk.f32.gmra.mxu0 %vm2273_vm13, %v5540_v5  ;;  %4569 = vmatmul.msk.f32.gmra.mxu1 %vm2339_vm9, %v5575_v21 }
 0x74a   : > { %4562 = vmatmul.msk.f32.gmra.mxu0 %vm2273_vm13, %v5542_v6  ;;  %4570 = vmatmul.msk.f32.gmra.mxu1 %vm2339_vm9, %v5577_v22 }
 0x752   : > { %4563 = vmatmul.msk.f32.gmra.mxu0 %vm2273_vm13, %v5547_v7  ;;  %4571 = vmatmul.msk.f32.gmra.mxu1 %vm2339_vm9, %v5579_v23 }
 0x75a   : > { %4564 = vmatmul.msk.f32.gmra.mxu0 %vm2273_vm13, %v5549_v8  ;;  %4572 = vmatmul.msk.f32.gmra.mxu1 %vm2339_vm9, %v5581_v24 }
 0x780   : > { %v6684_v38 = vpop.permute.xlu2 %2442 }
 0x796   : > { %v6654_v10 = vpop.permute.xlu1 %2407  ;;  %v6657_v36 = vpop.permute.xlu0 %2412 }
 0x79e   : > { %v6660_v28 = vpop.permute.xlu1 %2417  ;;  %v6668_v29 = vpop.permute.xlu0 %2422 }
 0x79f   : > { %v2315_v11 = vpop.f32.mrf.mxu0  ;;  %v2381_v12 = vpop.f32.mrf.mxu1 }
 0x7a0   : > { %v2382_v13 = vadd.f32 %v2381_v12, %v2315_v11 }
 0x7a2   : > { %v2445_v15 = vadd.f32 %v6654_v10, %v2382_v13 }
 0x7a4   : > { %v4573_v16 = vmul.f32 -1.442695, %v2445_v15 }
 0x7a6   : > { %5087 = vpow2.f32 %v4573_v16  ;;  %v6676_v53 = vpop.permute.xlu1 %2427 }
 0x7a7   : > { %v2318_v58 = vpop.f32.mrf.mxu0  ;;  %v2384_v59 = vpop.f32.mrf.mxu1 }
 0x7a8   : > { %v2385_v57 = vadd.f32 %v2384_v59, %v2318_v58 }
 0x7aa   : > { %v2446_v43 = vadd.f32 %v6657_v36, %v2385_v57 }
 0x7ac   : > { %v5088_v51 = vpop.eup %5087  ;;  %v4574_v14 = vmul.f32 -1.442695, %v2446_v43  ;;  %v2581_v43 = vperm.slane %v2580_v9, 0 }
 0x7ad   : > { %v6662_v44 = vadd.f32 1.0, %v5088_v51 }
 0x7ae   : > { %5089 = vpow2.f32 %v4574_v14  ;;  %vm6712_vm3 = vcmp.eq.s32.totalorder %v2581_v43, 1 }
 0x7af   : > { %v2321_v48 = vpop.f32.mrf.mxu0  ;;  %v2387_v54 = vpop.f32.mrf.mxu1  ;;  %5091 = vrcp.f32 %v6662_v44  ;;  %v2470_v16 = vand.u32 2147483647, %v6662_v44  ;;  %v2472_v51 = vand.u32 2147483648, %v6662_v44  ;;  %vm2466_vm4 = vweird.f32 %v6662_v44 }
 0x7b0   : > { %v2388_v32 = vadd.f32 %v2387_v54, %v2321_v48  ;;  %v6695_v48 = vpop.permute.xlu0 %2432 }
 0x7b1   : > { %vm6707_vm6 = vcmp.eq.f32.partialorder %v2470_v16, 8.507059e+37 }
 0x7b2   : > { %v2447_v31 = vadd.f32 %v6660_v28, %v2388_v32 }
 0x7b4   : > { %v5090_v52 = vpop.eup %5089  ;;  %v4575_v50 = vmul.f32 -1.442695, %v2447_v31 }
 0x7b5   : > { %v6666_v30 = vadd.f32 1.0, %v5090_v52  ;;  %v6670_v62 = vpop.eup %5091 }
 0x7b6   : > { %5093 = vpow2.f32 %v4575_v50  ;;  %v2462_v63 = vmul.f32 %v6670_v62, %v6662_v44  ;;  %vm2467_vm2 = vweird.f32 %v6670_v62 }
 0x7b7   : > { %v2324_v34 = vpop.f32.mrf.mxu0  ;;  %v2390_v39 = vpop.f32.mrf.mxu1  ;;  %5095 = vrcp.f32 %v6666_v30  ;;  %vm6700_vm1 = vmor %vm2466_vm4, %vm2467_vm2  ;;  %vm2481_vm8 = vweird.f32 %v6666_v30 }
 0x7b8   : > { %v2391_v46 = vadd.f32 %v2390_v39, %v2324_v34  ;;  %v2463_v25 = vsub.f32 1.0, %v2462_v63 }
 0x7ba   : > { %v2448_v41 = vadd.f32 %v6668_v29, %v2391_v46  ;;  %v2464_v56 = vmul.f32 %v6670_v62, %v2463_v25 }
 0x7bc   : > { %v5094_v45 = vpop.eup %5093  ;;  %v4576_v33 = vmul.f32 -1.442695, %v2448_v41  ;;  %v2465_v59 = vadd.f32 %v6670_v62, %v2464_v56 }
 0x7bd   : > { %v2497_v47 = vadd.f32 1.0, %v5094_v45  ;;  %v6678_v37 = vpop.eup %5095 }
 0x7be   : > { %5097 = vpow2.f32 %v4576_v33  ;;  %v2477_v55 = vmul.f32 %v6678_v37, %v6666_v30  ;;  %v2469_v39 = vsel %vm6700_vm1, %v6670_v62, %v2465_v59  ;;  %v2473_v33 = vor.u32 1.1754944e-38, %v2472_v51 }
 0x7bf   : > { %5099 = vrcp.f32 %v2497_v47  ;;  %v2327_v35 = vpop.f32.mrf.mxu0  ;;  %v2393_v49 = vpop.f32.mrf.mxu1  ;;  %v2510_v14 = vand.u32 2147483648, %v2497_v47  ;;  %v2508_v32 = vand.u32 2147483647, %v2497_v47  ;;  %vm2504_vm15 = vweird.f32 %v2497_v47 }
 0x7c0   : > { %v2394_v27 = vadd.f32 %v2393_v49, %v2327_v35  ;;  %v2478_v15 = vsub.f32 1.0, %v2477_v55  ;;  %vm2482_vm11 = vweird.f32 %v6678_v37  ;;  %v6717_v35 = vpop.permute.xlu2 %2437 }
 0x7c1   : > { %v2511_v63 = vor.u32 1.1754944e-38, %v2510_v14  ;;  %vm2509_vm5 = vcmp.eq.f32.partialorder %v2508_v32, 8.507059e+37  ;;  %vm6731_vm12 = vmor %vm2481_vm8, %vm2482_vm11 }
 0x7c2   : > { %v2449_v61 = vadd.f32 %v6676_v53, %v2394_v27  ;;  %v2479_v52 = vmul.f32 %v6678_v37, %v2478_v15 }
 0x7c4   : > { %v5098_v60 = vpop.eup %5097  ;;  %5101 = vtanh.f32 %v2449_v61  ;;  %v2474_v61 = vsel %vm6707_vm6, %v2473_v33, %v2469_v39 }
 0x7c5   : > { %v5100_v42 = vpop.eup %5099  ;;  %v6687_v26 = vadd.f32 1.0, %v5098_v60 }
 0x7c6   : > { %v2500_v11 = vmul.f32 %v5100_v42, %v2497_v47  ;;  %vm2505_vm0 = vweird.f32 %v5100_v42  ;;  %v2480_v47 = vadd.f32 %v6678_v37, %v2479_v52 }
 0x7c7   : > { %5103 = vrcp.f32 %v6687_v26  ;;  %v2330_v12 = vpop.f32.mrf.mxu0  ;;  %v2396_v13 = vpop.f32.mrf.mxu1  ;;  %vm2506_vm14 = vmor %vm2504_vm15, %vm2505_vm0  ;;  %v2525_v15 = vand.u32 2147483648, %v6687_v26  ;;  %vm2519_vm10 = vweird.f32 %v6687_v26 }
 0x7c8   : > { %v2397_v58 = vadd.f32 %v2396_v13, %v2330_v12  ;;  %v2501_v57 = vsub.f32 1.0, %v2500_v11  ;;  %v2485_v12 = vand.u32 2147483647, %v6666_v30  ;;  %v2487_v13 = vand.u32 2147483648, %v6666_v30 }
 0x7c9   : > { %v2484_v43 = vsel %vm6731_vm12, %v6678_v37, %v2480_v47 }
 0x7ca   : > { %v2502_v54 = vmul.f32 %v5100_v42, %v2501_v57  ;;  %v2450_v31 = vadd.f32 %v6695_v48, %v2397_v58  ;;  %v5102_v34 = vpop.eup %5101  ;;  %v2488_v32 = vor.u32 1.1754944e-38, %v2487_v13  ;;  %vm2486_vm4 = vcmp.eq.f32.partialorder %v2485_v12, 8.507059e+37 }
 0x7cb   : > { %v2571_v11 = vmul.f32 %v5102_v34, %v2474_v61 }
 0x7cc   : > { %v2503_v44 = vadd.f32 %v5100_v42, %v2502_v54  ;;  %5105 = vtanh.f32 %v2450_v31  ;;  %v2526_v31 = vor.u32 1.1754944e-38, %v2525_v15  ;;  %v2489_v50 = vsel %vm2486_vm4, %v2488_v32, %v2484_v43 }
 0x7cd   : > { %v5104_v41 = vpop.eup %5103 }
 0x7ce   : > { %v2515_v62 = vmul.f32 %v5104_v41, %v6687_v26  ;;  %v2507_v49 = vsel %vm2506_vm14, %v5100_v42, %v2503_v44  ;;  %v2523_v42 = vand.u32 2147483647, %v6687_v26  ;;  %vm2520_vm7 = vweird.f32 %v5104_v41 }
 0x7cf   : > { %v2333_v27 = vpop.f32.mrf.mxu0  ;;  %v2399_v25 = vpop.f32.mrf.mxu1  ;;  %v2512_v55 = vsel %vm2509_vm5, %v2511_v63, %v2507_v49  ;;  %vm2521_vm2 = vmor %vm2519_vm10, %vm2520_vm7 }
 0x7d0   : > { %v2400_v60 = vadd.f32 %v2399_v25, %v2333_v27  ;;  %v2516_v56 = vsub.f32 1.0, %v2515_v62  ;;  %v2569_v9 = vmul.f32 0.0, %v2512_v55  ;;  %vm2524_vm0 = vcmp.eq.f32.partialorder %v2523_v42, 8.507059e+37 }
 0x7d2   : > { %v2451_v58 = vadd.f32 %v6717_v35, %v2400_v60  ;;  %v2517_v59 = vmul.f32 %v5104_v41, %v2516_v56  ;;  %v2573_v57 = vadd.f32 %v2571_v11, %v2569_v9  ;;  %v5106_v54 = vpop.eup %5105 }
 0x7d3   : > { %v2572_v46 = vmul.f32 %v5106_v54, %v2489_v50 }
 0x7d4   : > { %v4577_v51 = vmul.f32 -1.442695, %v2451_v58  ;;  %v2518_v14 = vadd.f32 %v5104_v41, %v2517_v59  ;;  %v6742_v30 = vsel %vm6712_vm3, %v2573_v57, 0.0 }
 0x7d6   : > { %5107 = vpow2.f32 %v4577_v51  ;;  %v2522_v52 = vsel %vm2521_vm2, %v5104_v41, %v2518_v14  ;;  %v4581_v41 = vld [vmem:[%s7668_s1 + $0x30] sm:$0xff] }
 0x7d7   : > { %v2336_v34 = vpop.f32.mrf.mxu0  ;;  %v2402_v39 = vpop.f32.mrf.mxu1  ;;  %v2527_v37 = vsel %vm2524_vm0, %v2526_v31, %v2522_v52  ;;  %2648 = vmatpush.msra.mxu3 %v4581_v41 }
 0x7d8   : > { %v2403_v44 = vadd.f32 %v2402_v39, %v2336_v34  ;;  %v2570_v33 = vmul.f32 0.0, %v2527_v37  ;;  %4592 = vmatmul.msk.f32.vlgmr.msra.gmra.mxu3 %vm2339_vm9, %v5567_v17 }
 0x7da   : > { %v2452_v26 = vadd.f32 %v6684_v38, %v2403_v44  ;;  %v2574_v63 = vadd.f32 %v2572_v46, %v2570_v33 }
 0x7dc   : > { %v5108_v62 = vpop.eup %5107  ;;  %v4578_v49 = vmul.f32 -1.442695, %v2452_v26  ;;  %v6747_v47 = vsel %vm6712_vm3, %v2574_v63, 0.0 }
 0x7dd   : > { %v2537_v27 = vadd.f32 1.0, %v5108_v62 }
 0x7de   : > { %5109 = vpow2.f32 %v4578_v49 }
 0x7df   : > { %5111 = vrcp.f32 %v2537_v27  ;;  %v2550_v9 = vand.u32 2147483648, %v2537_v27  ;;  %v2548_v12 = vand.u32 2147483647, %v2537_v27  ;;  %vm2544_vm6 = vweird.f32 %v2537_v27 }
 0x7e0   : > { %4593 = vmatmul.msk.f32.gmra.mxu3 %vm2339_vm9, %v5569_v18 }
 0x7e1   : > { %v2551_v15 = vor.u32 1.1754944e-38, %v2550_v9  ;;  %vm2549_vm8 = vcmp.eq.f32.partialorder %v2548_v12, 8.507059e+37 }
 0x7e4   : > { %v5110_v25 = vpop.eup %5109 }
 0x7e5   : > { %v5112_v61 = vpop.eup %5111  ;;  %v2538_v55 = vadd.f32 1.0, %v5110_v25 }
 0x7e6   : > { %v2540_v60 = vmul.f32 %v5112_v61, %v2537_v27  ;;  %vm2545_vm1 = vweird.f32 %v5112_v61 }
 0x7e7   : > { %5113 = vrcp.f32 %v2538_v55  ;;  %vm2546_vm15 = vmor %vm2544_vm6, %vm2545_vm1  ;;  %v2563_v32 = vand.u32 2147483647, %v2538_v55  ;;  %vm2559_vm11 = vweird.f32 %v2538_v55 }
 0x7e8   : > { %v2541_v56 = vsub.f32 1.0, %v2540_v60  ;;  %5115 = vtanh.f32 %v2573_v57  ;;  %4594 = vmatmul.msk.f32.gmra.mxu3 %vm2339_vm9, %v5571_v19  ;;  %v2565_v57 = vand.u32 2147483648, %v2538_v55 }
 0x7e9   : > { %5117 = vtanh.f32 %v2574_v63  ;;  %vm2564_vm12 = vcmp.eq.f32.partialorder %v2563_v32, 8.507059e+37 }
 0x7ea   : > { %v2542_v11 = vmul.f32 %v5112_v61, %v2541_v56  ;;  %v2566_v50 = vor.u32 1.1754944e-38, %v2565_v57 }
 0x7ec   : > { %v2543_v13 = vadd.f32 %v5112_v61, %v2542_v11 }
 0x7ed   : > { %v5114_v42 = vpop.eup %5113 }
 0x7ee   : > { %v2555_v16 = vmul.f32 %v5114_v42, %v2538_v55  ;;  %v2547_v58 = vsel %vm2546_vm15, %v5112_v61, %v2543_v13  ;;  %v5116_v59 = vpop.eup %5115  ;;  %vm2560_vm14 = vweird.f32 %v5114_v42 }
 0x7ef   : > { %v2552_v43 = vsel %vm2549_vm8, %v2551_v15, %v2547_v58  ;;  %vm2561_vm5 = vmor %vm2559_vm11, %vm2560_vm14  ;;  %v5118_v39 = vpop.eup %5117 }
 0x7f0   : > { %v2556_v51 = vsub.f32 1.0, %v2555_v16  ;;  %v2577_v14 = vmul.f32 %v5116_v59, %v2552_v43  ;;  %4595 = vmatmul.msk.f32.gmra.mxu3 %vm2339_vm9, %v5573_v20 }
 0x7f2   : > { %v2557_v54 = vmul.f32 %v5114_v42, %v2556_v51  ;;  %v6760_v31 = vsel %vm6712_vm3, %v2577_v14, 0.0 }
 0x7f3   : > { %4579 = vst [vmem:[%s5584_s8 + $0x70] sm:$0xff] %v6760_v31 }
 0x7f4   : > { %v2558_v52 = vadd.f32 %v5114_v42, %v2557_v54 }
 0x7f6   : > { %v2562_v34 = vsel %vm2561_vm5, %v5114_v42, %v2558_v52 }
 0x7f7   : > { %v2567_v37 = vsel %vm2564_vm12, %v2566_v50, %v2562_v34 }
 0x7f8   : > { %v2578_v46 = vmul.f32 %v5118_v39, %v2567_v37  ;;  %4596 = vmatmul.msk.f32.gmra.mxu3 %vm2339_vm9, %v5575_v21 }
 0x7fa   : > { %4582 = vmatpush.msk.msra.mxu2 %vm6712_vm3, %v2578_v46  ;;  %v6770_v44 = vsel %vm6712_vm3, %v2578_v46, 0.0 }
 0x7fb   : > { %4580 = vst [vmem:[%s5584_s8 + $0x78] sm:$0xff] %v6770_v44 }
 0x7fc   : > { %4583 = vmatpush.msk.msra.mxu2 %vm6712_vm3, %v2577_v14  ;;  %vm2808_vm3 = vcmp.gt.s32.totalorder %v5519_v0, 6 }
 0x7fd   : > { %4584 = vmatmul.msk.f32.vlgmr.msra.gmra.mxu2 %vm2273_vm13, %v5532_v1 }
 0x800   : > { %4597 = vmatmul.msk.f32.gmra.mxu3 %vm2339_vm9, %v5577_v22 }
 0x805   : > { %4585 = vmatmul.msk.f32.gmra.mxu2 %vm2273_vm13, %v5534_v2 }
 0x808   : > { %4598 = vmatmul.msk.f32.gmra.mxu3 %vm2339_vm9, %v5579_v23 }
 0x80d   : > { %4586 = vmatmul.msk.f32.gmra.mxu2 %vm2273_vm13, %v5536_v3 }
 0x810   : > { %4599 = vmatmul.msk.f32.gmra.mxu3 %vm2339_vm9, %v5581_v24 }
 0x815   : > { %4587 = vmatmul.msk.f32.gmra.mxu2 %vm2273_vm13, %v5538_v4 }
 0x81d   : > { %4588 = vmatmul.msk.f32.gmra.mxu2 %vm2273_vm13, %v5540_v5 }
 0x825   : > { %4589 = vmatmul.msk.f32.gmra.mxu2 %vm2273_vm13, %v5542_v6 }
 0x82d   : > { %4590 = vmatmul.msk.f32.gmra.mxu2 %vm2273_vm13, %v5547_v7 }
 0x835   : > { %4591 = vmatmul.msk.f32.gmra.mxu2 %vm2273_vm13, %v5549_v8 }
 0x85b   : > { %v2650_v45 = vpop.f32.mrf.mxu3 }
 0x863   : > { %v2653_v33 = vpop.f32.mrf.mxu3 }
 0x86b   : > { %v2656_v49 = vpop.f32.mrf.mxu3 }
 0x873   : > { %v2659_v56 = vpop.f32.mrf.mxu3 }
 0x87b   : > { %v2662_v59 = vpop.f32.mrf.mxu3 }
 0x880   : > { %v2609_v26 = vpop.f32.mrf.mxu2 }
 0x881   : > { %v2651_v63 = vadd.f32 %v2650_v45, %v2609_v26 }
 0x883   : > { %v2674_v62 = vadd.f32 %v2651_v63, %v6654_v10  ;;  %v2665_v46 = vpop.f32.mrf.mxu3 }
 0x885   : > { %v4600_v41 = vmul.f32 -1.442695, %v2674_v62 }
 0x887   : > { %5119 = vpow2.f32 %v4600_v41 }
 0x888   : > { %v2612_v27 = vpop.f32.mrf.mxu2 }
 0x889   : > { %v2654_v25 = vadd.f32 %v2653_v33, %v2612_v27  ;;  %v2809_v27 = vsel %vm2808_vm3, 1, %v5426_v40 }
 0x88b   : > { %v2675_v61 = vadd.f32 %v2654_v25, %v6657_v36 }
 0x88d   : > { %v5120_v55 = vpop.eup %5119  ;;  %v4601_v60 = vmul.f32 -1.442695, %v2675_v61 }
 0x88e   : > { %v6802_v9 = vadd.f32 1.0, %v5120_v55 }
 0x88f   : > { %5121 = vpow2.f32 %v4601_v60 }
 0x890   : > { %v2615_v11 = vpop.f32.mrf.mxu2  ;;  %5123 = vrcp.f32 %v6802_v9  ;;  %v2699_v61 = vand.u32 2147483647, %v6802_v9  ;;  %vm2695_vm2 = vweird.f32 %v6802_v9 }
 0x891   : > { %v2657_v12 = vadd.f32 %v2656_v49, %v2615_v11 }
 0x892   : > { %vm2700_vm1 = vcmp.eq.f32.partialorder %v2699_v61, 8.507059e+37 }
 0x893   : > { %v2676_v13 = vadd.f32 %v2657_v12, %v6660_v28 }
 0x895   : > { %v5122_v42 = vpop.eup %5121  ;;  %v4602_v15 = vmul.f32 -1.442695, %v2676_v13  ;;  %v2701_v13 = vand.u32 2147483648, %v6802_v9 }
 0x896   : > { %v6806_v16 = vadd.f32 1.0, %v5122_v42  ;;  %v5124_v51 = vpop.eup %5123  ;;  %v2810_v42 = vperm.slane %v2809_v27, 0 }
 0x897   : > { %5125 = vpow2.f32 %v4602_v15  ;;  %v2691_v54 = vmul.f32 %v5124_v51, %v6802_v9  ;;  %vm2696_vm7 = vweird.f32 %v5124_v51 }
 0x898   : > { %v2618_v58 = vpop.f32.mrf.mxu2  ;;  %5127 = vrcp.f32 %v6806_v16  ;;  %vm6824_vm4 = vmor %vm2695_vm2, %vm2696_vm7  ;;  %vm2710_vm15 = vweird.f32 %v6806_v16  ;;  %vm6833_vm8 = vcmp.eq.s32.totalorder %v2810_v42, 1 }
 0x899   : > { %v2660_v43 = vadd.f32 %v2659_v56, %v2618_v58  ;;  %v2692_v39 = vsub.f32 1.0, %v2691_v54 }
 0x89b   : > { %v2677_v14 = vadd.f32 %v2660_v43, %v6668_v29  ;;  %v2693_v63 = vmul.f32 %v5124_v51, %v2692_v39 }
 0x89d   : > { %v5126_v57 = vpop.eup %5125  ;;  %v4603_v32 = vmul.f32 -1.442695, %v2677_v14  ;;  %v2694_v56 = vadd.f32 %v5124_v51, %v2693_v63 }
 0x89e   : > { %v2726_v52 = vadd.f32 1.0, %v5126_v57  ;;  %v6811_v34 = vpop.eup %5127  ;;  %v2668_v57 = vpop.f32.mrf.mxu3 }
 0x89f   : > { %5129 = vpow2.f32 %v4603_v32  ;;  %v2706_v33 = vmul.f32 %v6811_v34, %v6806_v16  ;;  %v2698_v32 = vsel %vm6824_vm4, %v5124_v51, %v2694_v56  ;;  %vm2711_vm11 = vweird.f32 %v6811_v34 }
 0x8a0   : > { %5131 = vrcp.f32 %v2726_v52  ;;  %v2621_v50 = vpop.f32.mrf.mxu2  ;;  %v2739_v12 = vand.u32 2147483648, %v2726_v52  ;;  %v2737_v58 = vand.u32 2147483647, %v2726_v52  ;;  %vm2733_vm0 = vweird.f32 %v2726_v52  ;;  %vm6849_vm12 = vmor %vm2710_vm15, %vm2711_vm11 }
 0x8a1   : > { %v2663_v37 = vadd.f32 %v2662_v59, %v2621_v50  ;;  %v2707_v25 = vsub.f32 1.0, %v2706_v33 }
 0x8a2   : > { %v2740_v9 = vor.u32 1.1754944e-38, %v2739_v12  ;;  %vm2738_vm14 = vcmp.eq.f32.partialorder %v2737_v58, 8.507059e+37 }
 0x8a3   : > { %v2678_v45 = vadd.f32 %v2663_v37, %v6676_v53  ;;  %v2708_v14 = vmul.f32 %v6811_v34, %v2707_v25  ;;  %v2702_v37 = vor.u32 1.1754944e-38, %v2701_v13 }
 0x8a5   : > { %v5130_v26 = vpop.eup %5129  ;;  %5133 = vtanh.f32 %v2678_v45 }
 0x8a6   : > { %v5132_v62 = vpop.eup %5131  ;;  %v6817_v49 = vadd.f32 1.0, %v5130_v26  ;;  %v2709_v26 = vadd.f32 %v6811_v34, %v2708_v14 }
 0x8a7   : > { %v2729_v41 = vmul.f32 %v5132_v62, %v2726_v52  ;;  %vm2734_vm10 = vweird.f32 %v5132_v62  ;;  %v2703_v52 = vsel %vm2700_vm1, %v2702_v37, %v2698_v32 }
 0x8a8   : > { %5135 = vrcp.f32 %v6817_v49  ;;  %v2624_v55 = vpop.f32.mrf.mxu2  ;;  %vm2735_vm6 = vmor %vm2733_vm0, %vm2734_vm10  ;;  %v2752_v56 = vand.u32 2147483647, %v6817_v49  ;;  %vm2748_vm3 = vweird.f32 %v6817_v49 }
 0x8a9   : > { %v2730_v60 = vsub.f32 1.0, %v2729_v41  ;;  %v2666_v11 = vadd.f32 %v2665_v46, %v2624_v55  ;;  %v2754_v55 = vand.u32 2147483648, %v6817_v49 }
 0x8aa   : > { %vm2753_vm2 = vcmp.eq.f32.partialorder %v2752_v56, 8.507059e+37 }
 0x8ab   : > { %v2731_v15 = vmul.f32 %v5132_v62, %v2730_v60  ;;  %v2679_v43 = vadd.f32 %v2666_v11, %v6695_v48  ;;  %v5134_v54 = vpop.eup %5133  ;;  %v2714_v60 = vand.u32 2147483647, %v6806_v16  ;;  %v2755_v14 = vor.u32 1.1754944e-38, %v2754_v55 }
 0x8ac   : > { %v2800_v25 = vmul.f32 %v5134_v54, %v2703_v52  ;;  %v2671_v54 = vpop.f32.mrf.mxu3  ;;  %v4608_v52 = vld [vmem:[%s7668_s1 + $0x28] sm:$0xff] }
 0x8ad   : > { %v2732_v50 = vadd.f32 %v5132_v62, %v2731_v15  ;;  %5137 = vtanh.f32 %v2679_v43  ;;  %v2713_v15 = vsel %vm6849_vm12, %v6811_v34, %v2709_v26  ;;  %vm2715_vm10 = vcmp.eq.f32.partialorder %v2714_v60, 8.507059e+37  ;;  %2879 = vmatpush.msrb.mxu1 %v4608_v52 }
 0x8ae   : > { %v5136_v39 = vpop.eup %5135  ;;  %4617 = vmatmul.msk.f32.vlgmr.msrb.gmra.mxu1 %vm2339_vm9, %v5567_v17 }
 0x8af   : > { %v2744_v45 = vmul.f32 %v5136_v39, %v6817_v49  ;;  %v2736_v33 = vsel %vm2735_vm6, %v5132_v62, %v2732_v50  ;;  %v2716_v62 = vand.u32 2147483648, %v6806_v16  ;;  %vm2749_vm5 = vweird.f32 %v5136_v39 }
 0x8b0   : > { %v2741_v51 = vsel %vm2738_vm14, %v2740_v9, %v2736_v33  ;;  %v2627_v63 = vpop.f32.mrf.mxu2  ;;  %vm2750_vm7 = vmor %vm2748_vm3, %vm2749_vm5 }
 0x8b1   : > { %v2745_v41 = vsub.f32 1.0, %v2744_v45  ;;  %v2798_v27 = vmul.f32 %v2741_v51, %v6742_v30  ;;  %v2669_v61 = vadd.f32 %v2668_v57, %v2627_v63  ;;  %v2717_v57 = vor.u32 1.1754944e-38, %v2716_v62 }
 0x8b3   : > { %v2746_v11 = vmul.f32 %v5136_v39, %v2745_v41  ;;  %v2802_v12 = vadd.f32 %v2800_v25, %v2798_v27  ;;  %v2680_v42 = vadd.f32 %v2669_v61, %v6717_v35  ;;  %v5138_v16 = vpop.eup %5137  ;;  %v2718_v50 = vsel %vm2715_vm10, %v2717_v57, %v2713_v15 }
 0x8b4   : > { %v2801_v37 = vmul.f32 %v5138_v16, %v2718_v50 }
 0x8b5   : > { %v2747_v58 = vadd.f32 %v5136_v39, %v2746_v11  ;;  %v4604_v59 = vmul.f32 -1.442695, %v2680_v42  ;;  %v6861_v43 = vsel %vm6833_vm8, %v2802_v12, %v6742_v30 }
 0x8b6   : > { %4618 = vmatmul.msk.f32.gmra.mxu1 %vm2339_vm9, %v5569_v18 }
 0x8b7   : > { %v2751_v32 = vsel %vm2750_vm7, %v5136_v39, %v2747_v58  ;;  %5139 = vpow2.f32 %v4604_v59 }
 0x8b8   : > { %v2756_v34 = vsel %vm2753_vm2, %v2755_v14, %v2751_v32  ;;  %v2630_v9 = vpop.f32.mrf.mxu2 }
 0x8b9   : > { %v2799_v49 = vmul.f32 %v2756_v34, %v6747_v47  ;;  %v2672_v45 = vadd.f32 %v2671_v54, %v2630_v9 }
 0x8bb   : > { %v2803_v33 = vadd.f32 %v2801_v37, %v2799_v49  ;;  %v2681_v30 = vadd.f32 %v2672_v45, %v6684_v38 }
 0x8bd   : > { %v5140_v51 = vpop.eup %5139  ;;  %v4605_v26 = vmul.f32 -1.442695, %v2681_v30  ;;  %v6871_v39 = vsel %vm6833_vm8, %v2803_v33, %v6747_v47 }
 0x8be   : > { %v2766_v63 = vadd.f32 1.0, %v5140_v51  ;;  %4619 = vmatmul.msk.f32.gmra.mxu1 %vm2339_vm9, %v5571_v19 }
 0x8bf   : > { %5141 = vpow2.f32 %v4605_v26 }
 0x8c0   : > { %5143 = vrcp.f32 %v2766_v63  ;;  %v2779_v60 = vand.u32 2147483648, %v2766_v63  ;;  %v2777_v47 = vand.u32 2147483647, %v2766_v63  ;;  %vm2773_vm0 = vweird.f32 %v2766_v63 }
 0x8c2   : > { %v2780_v13 = vor.u32 1.1754944e-38, %v2779_v60  ;;  %vm2778_vm6 = vcmp.eq.f32.partialorder %v2777_v47, 8.507059e+37 }
 0x8c5   : > { %v5142_v41 = vpop.eup %5141 }
 0x8c6   : > { %v5144_v27 = vpop.eup %5143  ;;  %v2767_v25 = vadd.f32 1.0, %v5142_v41  ;;  %4620 = vmatmul.msk.f32.gmra.mxu1 %vm2339_vm9, %v5573_v20 }
 0x8c7   : > { %v2769_v61 = vmul.f32 %v5144_v27, %v2766_v63  ;;  %vm2774_vm4 = vweird.f32 %v5144_v27 }
 0x8c8   : > { %5145 = vrcp.f32 %v2767_v25  ;;  %vm2775_vm1 = vmor %vm2773_vm0, %vm2774_vm4  ;;  %v2792_v54 = vand.u32 2147483647, %v2767_v25  ;;  %vm2788_vm14 = vweird.f32 %v2767_v25 }
 0x8c9   : > { %v2770_v55 = vsub.f32 1.0, %v2769_v61  ;;  %5147 = vtanh.f32 %v2802_v12  ;;  %v2794_v12 = vand.u32 2147483648, %v2767_v25 }
 0x8ca   : > { %5149 = vtanh.f32 %v2803_v33  ;;  %vm2793_vm5 = vcmp.eq.f32.partialorder %v2792_v54, 8.507059e+37 }
 0x8cb   : > { %v2771_v62 = vmul.f32 %v5144_v27, %v2770_v55  ;;  %v2795_v34 = vor.u32 1.1754944e-38, %v2794_v12 }
 0x8cd   : > { %v2772_v56 = vadd.f32 %v5144_v27, %v2771_v62 }
 0x8ce   : > { %v5146_v11 = vpop.eup %5145  ;;  %4621 = vmatmul.msk.f32.gmra.mxu1 %vm2339_vm9, %v5575_v21 }
 0x8cf   : > { %v2784_v42 = vmul.f32 %v5146_v11, %v2767_v25  ;;  %v2776_v15 = vsel %vm2775_vm1, %v5144_v27, %v2772_v56  ;;  %v5148_v58 = vpop.eup %5147  ;;  %vm2789_vm15 = vweird.f32 %v5146_v11 }
 0x8d0   : > { %v2781_v59 = vsel %vm2778_vm6, %v2780_v13, %v2776_v15  ;;  %vm2790_vm11 = vmor %vm2788_vm14, %vm2789_vm15  ;;  %v5150_v49 = vpop.eup %5149 }
 0x8d1   : > { %v2785_v16 = vsub.f32 1.0, %v2784_v42  ;;  %v2806_v14 = vmul.f32 %v5148_v58, %v2781_v59 }
 0x8d3   : > { %v2786_v57 = vmul.f32 %v5146_v11, %v2785_v16  ;;  %v2812_v32 = vsel %vm6833_vm8, %v2806_v14, 0.0  ;;  %v6896_v52 = vsel %vm6833_vm8, %v2806_v14, %v6760_v31 }
 0x8d4   : > { %4606 = vst [vmem:[%s5584_s8 + $0x60] sm:$0xff] %v2812_v32 }
 0x8d5   : > { %v2787_v50 = vadd.f32 %v5146_v11, %v2786_v57 }
 0x8d6   : > { %4622 = vmatmul.msk.f32.gmra.mxu1 %vm2339_vm9, %v5577_v22 }
 0x8d7   : > { %v2791_v9 = vsel %vm2790_vm11, %v5146_v11, %v2787_v50 }
 0x8d8   : > { %v2796_v37 = vsel %vm2793_vm5, %v2795_v34, %v2791_v9 }
 0x8d9   : > { %v2807_v45 = vmul.f32 %v5150_v49, %v2796_v37 }
 0x8db   : > { %v2813_v33 = vsel %vm6833_vm8, %v2807_v45, 0.0  ;;  %v6889_v30 = vsel %vm6833_vm8, %v2807_v45, %v6770_v44  ;;  %vm3039_vm8 = vcmp.gt.s32.totalorder %v5519_v0, 5 }
 0x8dc   : > { %4607 = vst [vmem:[%s5584_s8 + $0x68] sm:$0xff] %v2813_v33  ;;  %2837 = vmatpush.msrb.mxu0 %v6889_v30 }
 0x8de   : > { %2838 = vmatpush.msrb.mxu0 %v6896_v52  ;;  %4623 = vmatmul.msk.f32.gmra.mxu1 %vm2339_vm9, %v5579_v23 }
 0x8df   : > { %4609 = vmatmul.msk.f32.vlgmr.msrb.gmra.mxu0 %vm2273_vm13, %v5532_v1 }
 0x8e6   : > { %4624 = vmatmul.msk.f32.gmra.mxu1 %vm2339_vm9, %v5581_v24 }
 0x8e7   : > { %4610 = vmatmul.msk.f32.gmra.mxu0 %vm2273_vm13, %v5534_v2 }
 0x8ef   : > { %4611 = vmatmul.msk.f32.gmra.mxu0 %vm2273_vm13, %v5536_v3 }
 0x8f7   : > { %4612 = vmatmul.msk.f32.gmra.mxu0 %vm2273_vm13, %v5538_v4 }
 0x8ff   : > { %4613 = vmatmul.msk.f32.gmra.mxu0 %vm2273_vm13, %v5540_v5 }
 0x907   : > { %4614 = vmatmul.msk.f32.gmra.mxu0 %vm2273_vm13, %v5542_v6 }
 0x90f   : > { %4615 = vmatmul.msk.f32.gmra.mxu0 %vm2273_vm13, %v5547_v7 }
 0x917   : > { %4616 = vmatmul.msk.f32.gmra.mxu0 %vm2273_vm13, %v5549_v8 }
 0x92b   : > { %v2881_v31 = vpop.f32.mrf.mxu1 }
 0x933   : > { %v2884_v44 = vpop.f32.mrf.mxu1 }
 0x93b   : > { %v2887_v63 = vpop.f32.mrf.mxu1 }
 0x943   : > { %v2890_v62 = vpop.f32.mrf.mxu1 }
 0x94b   : > { %v2893_v16 = vpop.f32.mrf.mxu1 }
 0x953   : > { %v2896_v33 = vpop.f32.mrf.mxu1 }
 0x95c   : > { %v2840_v46 = vpop.f32.mrf.mxu0 }
 0x95d   : > { %v2882_v51 = vadd.f32 %v2881_v31, %v2840_v46 }
 0x95f   : > { %v2905_v26 = vadd.f32 %v2882_v51, %v6654_v10 }
 0x961   : > { %v4625_v41 = vmul.f32 -1.442695, %v2905_v26 }
 0x963   : > { %5151 = vpow2.f32 %v4625_v41 }
 0x964   : > { %v2843_v27 = vpop.f32.mrf.mxu0 }
 0x965   : > { %v2885_v25 = vadd.f32 %v2884_v44, %v2843_v27  ;;  %v3040_v27 = vsel %vm3039_vm8, 1, %v5426_v40 }
 0x967   : > { %v2906_v61 = vadd.f32 %v2885_v25, %v6657_v36 }
 0x969   : > { %v5152_v55 = vpop.eup %5151  ;;  %v4626_v60 = vmul.f32 -1.442695, %v2906_v61 }
 0x96a   : > { %v6925_v47 = vadd.f32 1.0, %v5152_v55 }
 0x96b   : > { %5153 = vpow2.f32 %v4626_v60 }
 0x96c   : > { %v2846_v56 = vpop.f32.mrf.mxu0  ;;  %5155 = vrcp.f32 %v6925_v47  ;;  %v2930_v61 = vand.u32 2147483647, %v6925_v47  ;;  %vm2926_vm7 = vweird.f32 %v6925_v47 }
 0x96d   : > { %v2888_v11 = vadd.f32 %v2887_v63, %v2846_v56 }
 0x96e   : > { %vm2931_vm4 = vcmp.eq.f32.partialorder %v2930_v61, 8.507059e+37 }
 0x96f   : > { %v2907_v13 = vadd.f32 %v2888_v11, %v6660_v28 }
 0x971   : > { %v5154_v42 = vpop.eup %5153  ;;  %v4627_v15 = vmul.f32 -1.442695, %v2907_v13  ;;  %v2932_v13 = vand.u32 2147483648, %v6925_v47 }
 0x972   : > { %v6929_v58 = vadd.f32 1.0, %v5154_v42  ;;  %v5156_v12 = vpop.eup %5155  ;;  %v3041_v42 = vperm.slane %v3040_v27, 0 }
 0x973   : > { %5157 = vpow2.f32 %v4627_v15  ;;  %v2922_v32 = vmul.f32 %v5156_v12, %v6925_v47  ;;  %vm2927_vm12 = vweird.f32 %v5156_v12 }
 0x974   : > { %v2849_v59 = vpop.f32.mrf.mxu0  ;;  %5159 = vrcp.f32 %v6929_v58  ;;  %vm6947_vm10 = vmor %vm2926_vm7, %vm2927_vm12  ;;  %vm2941_vm1 = vweird.f32 %v6929_v58  ;;  %vm6956_vm6 = vcmp.eq.s32.totalorder %v3041_v42, 1 }
 0x975   : > { %v2891_v14 = vadd.f32 %v2890_v62, %v2849_v59  ;;  %v2923_v37 = vsub.f32 1.0, %v2922_v32 }
 0x977   : > { %v2908_v57 = vadd.f32 %v2891_v14, %v6668_v29  ;;  %v2924_v51 = vmul.f32 %v5156_v12, %v2923_v37 }
 0x979   : > { %v5158_v54 = vpop.eup %5157  ;;  %v4628_v50 = vmul.f32 -1.442695, %v2908_v57  ;;  %v2925_v62 = vadd.f32 %v5156_v12, %v2924_v51 }
 0x97a   : > { %v2957_v34 = vadd.f32 1.0, %v5158_v54  ;;  %v6934_v49 = vpop.eup %5159  ;;  %v2899_v54 = vpop.f32.mrf.mxu1 }
 0x97b   : > { %5161 = vpow2.f32 %v4628_v50  ;;  %v2937_v44 = vmul.f32 %v6934_v49, %v6929_v58  ;;  %v2929_v50 = vsel %vm6947_vm10, %v5156_v12, %v2925_v62  ;;  %vm2942_vm14 = vweird.f32 %v6934_v49 }
 0x97c   : > { %5163 = vrcp.f32 %v2957_v34  ;;  %v2852_v9 = vpop.f32.mrf.mxu0  ;;  %v2970_v11 = vand.u32 2147483648, %v2957_v34  ;;  %v2968_v59 = vand.u32 2147483647, %v2957_v34  ;;  %vm2964_vm2 = vweird.f32 %v2957_v34  ;;  %vm6972_vm5 = vmor %vm2941_vm1, %vm2942_vm14 }
 0x97d   : > { %v2894_v45 = vadd.f32 %v2893_v16, %v2852_v9  ;;  %v2938_v25 = vsub.f32 1.0, %v2937_v44 }
 0x97e   : > { %v2971_v47 = vor.u32 1.1754944e-38, %v2970_v11  ;;  %vm2969_vm15 = vcmp.eq.f32.partialorder %v2968_v59, 8.507059e+37 }
 0x97f   : > { %v2909_v31 = vadd.f32 %v2894_v45, %v6676_v53  ;;  %v2939_v57 = vmul.f32 %v6934_v49, %v2938_v25  ;;  %v2933_v45 = vor.u32 1.1754944e-38, %v2932_v13 }
 0x981   : > { %v5162_v46 = vpop.eup %5161  ;;  %5165 = vtanh.f32 %v2909_v31 }
 0x982   : > { %v5164_v26 = vpop.eup %5163  ;;  %v6940_v63 = vadd.f32 1.0, %v5162_v46  ;;  %v2940_v46 = vadd.f32 %v6934_v49, %v2939_v57 }
 0x983   : > { %v2960_v41 = vmul.f32 %v5164_v26, %v2957_v34  ;;  %vm2965_vm3 = vweird.f32 %v5164_v26  ;;  %v2934_v34 = vsel %vm2931_vm4, %v2933_v45, %v2929_v50 }
 0x984   : > { %5167 = vrcp.f32 %v6940_v63  ;;  %v2855_v55 = vpop.f32.mrf.mxu0  ;;  %vm2966_vm0 = vmor %vm2964_vm2, %vm2965_vm3  ;;  %v2983_v62 = vand.u32 2147483647, %v6940_v63  ;;  %vm2979_vm8 = vweird.f32 %v6940_v63 }
 0x985   : > { %v2961_v60 = vsub.f32 1.0, %v2960_v41  ;;  %v2897_v56 = vadd.f32 %v2896_v33, %v2855_v55  ;;  %v2985_v55 = vand.u32 2147483648, %v6940_v63 }
 0x986   : > { %vm2984_vm7 = vcmp.eq.f32.partialorder %v2983_v62, 8.507059e+37 }
 0x987   : > { %v2962_v15 = vmul.f32 %v5164_v26, %v2961_v60  ;;  %v2910_v14 = vadd.f32 %v2897_v56, %v6695_v48  ;;  %v5166_v32 = vpop.eup %5165  ;;  %v2945_v60 = vand.u32 2147483647, %v6929_v58  ;;  %v2986_v57 = vor.u32 1.1754944e-38, %v2985_v55 }
 0x988   : > { %v3031_v25 = vmul.f32 %v5166_v32, %v2934_v34  ;;  %v2902_v32 = vpop.f32.mrf.mxu1  ;;  %v4633_v34 = vld [vmem:[%s7668_s1 + $0x20] sm:$0xff] }
 0x989   : > { %v2963_v9 = vadd.f32 %v5164_v26, %v2962_v15  ;;  %5169 = vtanh.f32 %v2910_v14  ;;  %v2944_v15 = vsel %vm6972_vm5, %v6934_v49, %v2940_v46  ;;  %vm2946_vm3 = vcmp.eq.f32.partialorder %v2945_v60, 8.507059e+37  ;;  %3110 = vmatpush.msrb.mxu2 %v4633_v34 }
 0x98a   : > { %v5168_v37 = vpop.eup %5167  ;;  %4642 = vmatmul.msk.f32.vlgmr.msrb.gmra.mxu2 %vm2339_vm9, %v5567_v17 }
 0x98b   : > { %v2975_v31 = vmul.f32 %v5168_v37, %v6940_v63  ;;  %v2967_v44 = vsel %vm2966_vm0, %v5164_v26, %v2963_v9  ;;  %v2947_v26 = vand.u32 2147483648, %v6929_v58  ;;  %vm2980_vm11 = vweird.f32 %v5168_v37 }
 0x98c   : > { %v2972_v12 = vsel %vm2969_vm15, %v2971_v47, %v2967_v44  ;;  %v2858_v51 = vpop.f32.mrf.mxu0  ;;  %vm2981_vm12 = vmor %vm2979_vm8, %vm2980_vm11 }
 0x98d   : > { %v2976_v41 = vsub.f32 1.0, %v2975_v31  ;;  %v3029_v27 = vmul.f32 %v2972_v12, %v6861_v43  ;;  %v2900_v61 = vadd.f32 %v2899_v54, %v2858_v51  ;;  %v2948_v54 = vor.u32 1.1754944e-38, %v2947_v26 }
 0x98f   : > { %v2977_v56 = vmul.f32 %v5168_v37, %v2976_v41  ;;  %v3033_v11 = vadd.f32 %v3031_v25, %v3029_v27  ;;  %v2911_v42 = vadd.f32 %v2900_v61, %v6717_v35  ;;  %v5170_v58 = vpop.eup %5169  ;;  %v2949_v9 = vsel %vm2946_vm3, %v2948_v54, %v2944_v15 }
 0x990   : > { %v3032_v45 = vmul.f32 %v5170_v58, %v2949_v9 }
 0x991   : > { %v2978_v59 = vadd.f32 %v5168_v37, %v2977_v56  ;;  %v4629_v16 = vmul.f32 -1.442695, %v2911_v42  ;;  %v6984_v14 = vsel %vm6956_vm6, %v3033_v11, %v6861_v43 }
 0x992   : > { %4643 = vmatmul.msk.f32.gmra.mxu2 %vm2339_vm9, %v5569_v18 }
 0x993   : > { %v2982_v50 = vsel %vm2981_vm12, %v5168_v37, %v2978_v59  ;;  %5171 = vpow2.f32 %v4629_v16 }
 0x994   : > { %v2987_v49 = vsel %vm2984_vm7, %v2986_v57, %v2982_v50  ;;  %v2861_v47 = vpop.f32.mrf.mxu0 }
 0x995   : > { %v3030_v63 = vmul.f32 %v2987_v49, %v6871_v39  ;;  %v2903_v31 = vadd.f32 %v2902_v32, %v2861_v47 }
 0x997   : > { %v3034_v44 = vadd.f32 %v3032_v45, %v3030_v63  ;;  %v2912_v43 = vadd.f32 %v2903_v31, %v6684_v38 }
 0x999   : > { %v5172_v12 = vpop.eup %5171  ;;  %v4630_v46 = vmul.f32 -1.442695, %v2912_v43  ;;  %v6994_v37 = vsel %vm6956_vm6, %v3034_v44, %v6871_v39 }
 0x99a   : > { %v2997_v51 = vadd.f32 1.0, %v5172_v12  ;;  %4644 = vmatmul.msk.f32.gmra.mxu2 %vm2339_vm9, %v5571_v19 }
 0x99b   : > { %5173 = vpow2.f32 %v4630_v46 }
 0x99c   : > { %5175 = vrcp.f32 %v2997_v51  ;;  %v3010_v60 = vand.u32 2147483648, %v2997_v51  ;;  %v3008_v39 = vand.u32 2147483647, %v2997_v51  ;;  %vm3004_vm2 = vweird.f32 %v2997_v51 }
 0x99e   : > { %v3011_v13 = vor.u32 1.1754944e-38, %v3010_v60  ;;  %vm3009_vm0 = vcmp.eq.f32.partialorder %v3008_v39, 8.507059e+37 }
 0x9a1   : > { %v5174_v41 = vpop.eup %5173 }
 0x9a2   : > { %v5176_v27 = vpop.eup %5175  ;;  %v2998_v25 = vadd.f32 1.0, %v5174_v41  ;;  %4645 = vmatmul.msk.f32.gmra.mxu2 %vm2339_vm9, %v5573_v20 }
 0x9a3   : > { %v3000_v61 = vmul.f32 %v5176_v27, %v2997_v51  ;;  %vm3005_vm10 = vweird.f32 %v5176_v27 }
 0x9a4   : > { %5177 = vrcp.f32 %v2998_v25  ;;  %vm3006_vm4 = vmor %vm3004_vm2, %vm3005_vm10  ;;  %v3023_v32 = vand.u32 2147483647, %v2998_v25  ;;  %vm3019_vm15 = vweird.f32 %v2998_v25 }
 0x9a5   : > { %v3001_v55 = vsub.f32 1.0, %v3000_v61  ;;  %5179 = vtanh.f32 %v3033_v11  ;;  %v3025_v11 = vand.u32 2147483648, %v2998_v25 }
 0x9a6   : > { %5181 = vtanh.f32 %v3034_v44  ;;  %vm3024_vm11 = vcmp.eq.f32.partialorder %v3023_v32, 8.507059e+37 }
 0x9a7   : > { %v3002_v26 = vmul.f32 %v5176_v27, %v3001_v55  ;;  %v3026_v49 = vor.u32 1.1754944e-38, %v3025_v11 }
 0x9a9   : > { %v3003_v62 = vadd.f32 %v5176_v27, %v3002_v26 }
 0x9aa   : > { %v5178_v56 = vpop.eup %5177  ;;  %4646 = vmatmul.msk.f32.gmra.mxu2 %vm2339_vm9, %v5575_v21 }
 0x9ab   : > { %v3015_v42 = vmul.f32 %v5178_v56, %v2998_v25  ;;  %v3007_v15 = vsel %vm3006_vm4, %v5176_v27, %v3003_v62  ;;  %v5180_v59 = vpop.eup %5179  ;;  %vm3020_vm1 = vweird.f32 %v5178_v56 }
 0x9ac   : > { %v3012_v16 = vsel %vm3009_vm0, %v3011_v13, %v3007_v15  ;;  %vm3021_vm14 = vmor %vm3019_vm15, %vm3020_vm1  ;;  %v5182_v63 = vpop.eup %5181 }
 0x9ad   : > { %v3016_v58 = vsub.f32 1.0, %v3015_v42  ;;  %v3037_v57 = vmul.f32 %v5180_v59, %v3012_v16 }
 0x9af   : > { %v3017_v54 = vmul.f32 %v5178_v56, %v3016_v58  ;;  %v3043_v50 = vsel %vm6956_vm6, %v3037_v57, 0.0  ;;  %v7019_v34 = vsel %vm6956_vm6, %v3037_v57, %v6896_v52 }
 0x9b0   : > { %4631 = vst [vmem:[%s5584_s8 + $0x50] sm:$0xff] %v3043_v50 }
 0x9b1   : > { %v3018_v9 = vadd.f32 %v5178_v56, %v3017_v54 }
 0x9b2   : > { %4647 = vmatmul.msk.f32.gmra.mxu2 %vm2339_vm9, %v5577_v22 }
 0x9b3   : > { %v3022_v47 = vsel %vm3021_vm14, %v5178_v56, %v3018_v9 }
 0x9b4   : > { %v3027_v45 = vsel %vm3024_vm11, %v3026_v49, %v3022_v47 }
 0x9b5   : > { %v3038_v31 = vmul.f32 %v5182_v63, %v3027_v45 }
 0x9b7   : > { %v3044_v44 = vsel %vm6956_vm6, %v3038_v31, 0.0  ;;  %v7012_v43 = vsel %vm6956_vm6, %v3038_v31, %v6889_v30  ;;  %vm3270_vm6 = vcmp.gt.s32.totalorder %v5519_v0, 4 }
 0x9b8   : > { %4632 = vst [vmem:[%s5584_s8 + $0x58] sm:$0xff] %v3044_v44  ;;  %3068 = vmatpush.msrb.mxu3 %v7012_v43 }
 0x9ba   : > { %3069 = vmatpush.msrb.mxu3 %v7019_v34  ;;  %4648 = vmatmul.msk.f32.gmra.mxu2 %vm2339_vm9, %v5579_v23 }
 0x9bb   : > { %4634 = vmatmul.msk.f32.vlgmr.msrb.gmra.mxu3 %vm2273_vm13, %v5532_v1 }
 0x9c2   : > { %4649 = vmatmul.msk.f32.gmra.mxu2 %vm2339_vm9, %v5581_v24 }
 0x9c3   : > { %4635 = vmatmul.msk.f32.gmra.mxu3 %vm2273_vm13, %v5534_v2 }
 0x9cb   : > { %4636 = vmatmul.msk.f32.gmra.mxu3 %vm2273_vm13, %v5536_v3 }
 0x9d3   : > { %4637 = vmatmul.msk.f32.gmra.mxu3 %vm2273_vm13, %v5538_v4 }
 0x9db   : > { %4638 = vmatmul.msk.f32.gmra.mxu3 %vm2273_vm13, %v5540_v5 }
 0x9e3   : > { %4639 = vmatmul.msk.f32.gmra.mxu3 %vm2273_vm13, %v5542_v6 }
 0x9eb   : > { %4640 = vmatmul.msk.f32.gmra.mxu3 %vm2273_vm13, %v5547_v7 }
 0x9f3   : > { %4641 = vmatmul.msk.f32.gmra.mxu3 %vm2273_vm13, %v5549_v8 }
 0xa0d   : > { %v3112_v30 = vpop.f32.mrf.mxu2 }
 0xa15   : > { %v3115_v52 = vpop.f32.mrf.mxu2 }
 0xa1d   : > { %v3118_v51 = vpop.f32.mrf.mxu2 }
 0xa25   : > { %v3121_v26 = vpop.f32.mrf.mxu2 }
 0xa2d   : > { %v3124_v58 = vpop.f32.mrf.mxu2 }
 0xa35   : > { %v3127_v44 = vpop.f32.mrf.mxu2 }
 0xa3e   : > { %v3071_v33 = vpop.f32.mrf.mxu3 }
 0xa3f   : > { %v3113_v12 = vadd.f32 %v3112_v30, %v3071_v33 }
 0xa41   : > { %v3136_v46 = vadd.f32 %v3113_v12, %v6654_v10 }
 0xa43   : > { %v4650_v41 = vmul.f32 -1.442695, %v3136_v46 }
 0xa45   : > { %5183 = vpow2.f32 %v4650_v41 }
 0xa46   : > { %v3074_v27 = vpop.f32.mrf.mxu3 }
 0xa47   : > { %v3116_v25 = vadd.f32 %v3115_v52, %v3074_v27  ;;  %v3271_v27 = vsel %vm3270_vm6, 1, %v5426_v40 }
 0xa49   : > { %v3137_v61 = vadd.f32 %v3116_v25, %v6657_v36 }
 0xa4b   : > { %v5184_v55 = vpop.eup %5183  ;;  %v4651_v60 = vmul.f32 -1.442695, %v3137_v61 }
 0xa4c   : > { %v7048_v39 = vadd.f32 1.0, %v5184_v55 }
 0xa4d   : > { %5185 = vpow2.f32 %v4651_v60 }
 0xa4e   : > { %v3077_v62 = vpop.f32.mrf.mxu3  ;;  %5187 = vrcp.f32 %v7048_v39  ;;  %v3161_v61 = vand.u32 2147483647, %v7048_v39  ;;  %vm3157_vm12 = vweird.f32 %v7048_v39 }
 0xa4f   : > { %v3119_v56 = vadd.f32 %v3118_v51, %v3077_v62 }
 0xa50   : > { %vm3162_vm10 = vcmp.eq.f32.partialorder %v3161_v61, 8.507059e+37 }
 0xa51   : > { %v3138_v13 = vadd.f32 %v3119_v56, %v6660_v28 }
 0xa53   : > { %v5186_v42 = vpop.eup %5185  ;;  %v4652_v15 = vmul.f32 -1.442695, %v3138_v13  ;;  %v3163_v13 = vand.u32 2147483648, %v7048_v39 }
 0xa54   : > { %v7052_v59 = vadd.f32 1.0, %v5186_v42  ;;  %v5188_v11 = vpop.eup %5187  ;;  %v3272_v42 = vperm.slane %v3271_v27, 0 }
 0xa55   : > { %5189 = vpow2.f32 %v4652_v15  ;;  %v3153_v50 = vmul.f32 %v5188_v11, %v7048_v39  ;;  %vm3158_vm5 = vweird.f32 %v5188_v11 }
 0xa56   : > { %v3080_v16 = vpop.f32.mrf.mxu3  ;;  %5191 = vrcp.f32 %v7052_v59  ;;  %vm7070_vm3 = vmor %vm3157_vm12, %vm3158_vm5  ;;  %vm3172_vm4 = vweird.f32 %v7052_v59  ;;  %vm7079_vm0 = vcmp.eq.s32.totalorder %v3272_v42, 1 }
 0xa57   : > { %v3122_v57 = vadd.f32 %v3121_v26, %v3080_v16  ;;  %v3154_v45 = vsub.f32 1.0, %v3153_v50 }
 0xa59   : > { %v3139_v54 = vadd.f32 %v3122_v57, %v6668_v29  ;;  %v3155_v12 = vmul.f32 %v5188_v11, %v3154_v45 }
 0xa5b   : > { %v5190_v32 = vpop.eup %5189  ;;  %v4653_v9 = vmul.f32 -1.442695, %v3139_v54  ;;  %v3156_v26 = vadd.f32 %v5188_v11, %v3155_v12 }
 0xa5c   : > { %v3188_v49 = vadd.f32 1.0, %v5190_v32  ;;  %v7057_v63 = vpop.eup %5191  ;;  %v3130_v32 = vpop.f32.mrf.mxu2 }
 0xa5d   : > { %5193 = vpow2.f32 %v4653_v9  ;;  %v3168_v52 = vmul.f32 %v7057_v63, %v7052_v59  ;;  %v3160_v9 = vsel %vm7070_vm3, %v5188_v11, %v3156_v26  ;;  %vm3173_vm15 = vweird.f32 %v7057_v63 }
 0xa5e   : > { %5195 = vrcp.f32 %v3188_v49  ;;  %v3083_v47 = vpop.f32.mrf.mxu3  ;;  %v3201_v56 = vand.u32 2147483648, %v3188_v49  ;;  %v3199_v16 = vand.u32 2147483647, %v3188_v49  ;;  %vm3195_vm7 = vweird.f32 %v3188_v49  ;;  %vm7095_vm11 = vmor %vm3172_vm4, %vm3173_vm15 }
 0xa5f   : > { %v3125_v31 = vadd.f32 %v3124_v58, %v3083_v47  ;;  %v3169_v25 = vsub.f32 1.0, %v3168_v52 }
 0xa60   : > { %v3202_v39 = vor.u32 1.1754944e-38, %v3201_v56  ;;  %vm3200_vm1 = vcmp.eq.f32.partialorder %v3199_v16, 8.507059e+37 }
 0xa61   : > { %v3140_v30 = vadd.f32 %v3125_v31, %v6676_v53  ;;  %v3170_v54 = vmul.f32 %v7057_v63, %v3169_v25  ;;  %v3164_v31 = vor.u32 1.1754944e-38, %v3163_v13 }
 0xa63   : > { %v5194_v33 = vpop.eup %5193  ;;  %5197 = vtanh.f32 %v3140_v30 }
 0xa64   : > { %v5196_v46 = vpop.eup %5195  ;;  %v7063_v51 = vadd.f32 1.0, %v5194_v33  ;;  %v3171_v33 = vadd.f32 %v7057_v63, %v3170_v54 }
 0xa65   : > { %v3191_v41 = vmul.f32 %v5196_v46, %v3188_v49  ;;  %vm3196_vm8 = vweird.f32 %v5196_v46  ;;  %v3165_v49 = vsel %vm3162_vm10, %v3164_v31, %v3160_v9 }
 0xa66   : > { %5199 = vrcp.f32 %v7063_v51  ;;  %v3086_v55 = vpop.f32.mrf.mxu3  ;;  %vm3197_vm2 = vmor %vm3195_vm7, %vm3196_vm8  ;;  %v3214_v26 = vand.u32 2147483647, %v7063_v51  ;;  %vm3210_vm6 = vweird.f32 %v7063_v51 }
 0xa67   : > { %v3192_v60 = vsub.f32 1.0, %v3191_v41  ;;  %v3128_v62 = vadd.f32 %v3127_v44, %v3086_v55  ;;  %v3216_v55 = vand.u32 2147483648, %v7063_v51 }
 0xa68   : > { %vm3215_vm12 = vcmp.eq.f32.partialorder %v3214_v26, 8.507059e+37 }
 0xa69   : > { %v3193_v15 = vmul.f32 %v5196_v46, %v3192_v60  ;;  %v3141_v57 = vadd.f32 %v3128_v62, %v6695_v48  ;;  %v5198_v50 = vpop.eup %5197  ;;  %v3176_v60 = vand.u32 2147483647, %v7052_v59  ;;  %v3217_v54 = vor.u32 1.1754944e-38, %v3216_v55 }
 0xa6a   : > { %v3262_v25 = vmul.f32 %v5198_v50, %v3165_v49  ;;  %v3133_v50 = vpop.f32.mrf.mxu2  ;;  %v4658_v49 = vld [vmem:[%s7668_s1 + $0x18] sm:$0xff] }
 0xa6b   : > { %v3194_v47 = vadd.f32 %v5196_v46, %v3193_v15  ;;  %5201 = vtanh.f32 %v3141_v57  ;;  %v3175_v15 = vsel %vm7095_vm11, %v7057_v63, %v3171_v33  ;;  %vm3177_vm8 = vcmp.eq.f32.partialorder %v3176_v60, 8.507059e+37  ;;  %3341 = vmatpush.msra.mxu1 %v4658_v49 }
 0xa6c   : > { %v5200_v45 = vpop.eup %5199  ;;  %4667 = vmatmul.msk.f32.vlgmr.msra.gmra.mxu1 %vm2339_vm9, %v5567_v17 }
 0xa6d   : > { %v3206_v30 = vmul.f32 %v5200_v45, %v7063_v51  ;;  %v3198_v52 = vsel %vm3197_vm2, %v5196_v46, %v3194_v47  ;;  %v3178_v46 = vand.u32 2147483648, %v7052_v59  ;;  %vm3211_vm14 = vweird.f32 %v5200_v45 }
 0xa6e   : > { %v3203_v11 = vsel %vm3200_vm1, %v3202_v39, %v3198_v52  ;;  %v3089_v12 = vpop.f32.mrf.mxu3  ;;  %vm3212_vm5 = vmor %vm3210_vm6, %vm3211_vm14 }
 0xa6f   : > { %v3207_v41 = vsub.f32 1.0, %v3206_v30  ;;  %v3260_v27 = vmul.f32 %v3203_v11, %v6984_v14  ;;  %v3131_v61 = vadd.f32 %v3130_v32, %v3089_v12  ;;  %v3179_v32 = vor.u32 1.1754944e-38, %v3178_v46 }
 0xa71   : > { %v3208_v62 = vmul.f32 %v5200_v45, %v3207_v41  ;;  %v3264_v56 = vadd.f32 %v3262_v25, %v3260_v27  ;;  %v3142_v42 = vadd.f32 %v3131_v61, %v6717_v35  ;;  %v5202_v59 = vpop.eup %5201  ;;  %v3180_v47 = vsel %vm3177_vm8, %v3179_v32, %v3175_v15 }
 0xa72   : > { %v3263_v31 = vmul.f32 %v5202_v59, %v3180_v47 }
 0xa73   : > { %v3209_v16 = vadd.f32 %v5200_v45, %v3208_v62  ;;  %v4654_v58 = vmul.f32 -1.442695, %v3142_v42  ;;  %v7107_v57 = vsel %vm7079_vm0, %v3264_v56, %v6984_v14 }
 0xa74   : > { %4668 = vmatmul.msk.f32.gmra.mxu1 %vm2339_vm9, %v5569_v18 }
 0xa75   : > { %v3213_v9 = vsel %vm3212_vm5, %v5200_v45, %v3209_v16  ;;  %5203 = vpow2.f32 %v4654_v58 }
 0xa76   : > { %v3218_v63 = vsel %vm3215_vm12, %v3217_v54, %v3213_v9  ;;  %v3092_v39 = vpop.f32.mrf.mxu3 }
 0xa77   : > { %v3261_v51 = vmul.f32 %v3218_v63, %v6994_v37  ;;  %v3134_v30 = vadd.f32 %v3133_v50, %v3092_v39 }
 0xa79   : > { %v3265_v52 = vadd.f32 %v3263_v31, %v3261_v51  ;;  %v3143_v14 = vadd.f32 %v3134_v30, %v6684_v38 }
 0xa7b   : > { %v5204_v11 = vpop.eup %5203  ;;  %v4655_v33 = vmul.f32 -1.442695, %v3143_v14  ;;  %v7117_v45 = vsel %vm7079_vm0, %v3265_v52, %v6994_v37 }
 0xa7c   : > { %v3228_v12 = vadd.f32 1.0, %v5204_v11  ;;  %4669 = vmatmul.msk.f32.gmra.mxu1 %vm2339_vm9, %v5571_v19 }
 0xa7d   : > { %5205 = vpow2.f32 %v4655_v33 }
 0xa7e   : > { %5207 = vrcp.f32 %v3228_v12  ;;  %v3241_v60 = vand.u32 2147483648, %v3228_v12  ;;  %v3239_v37 = vand.u32 2147483647, %v3228_v12  ;;  %vm3235_vm7 = vweird.f32 %v3228_v12 }
 0xa80   : > { %v3242_v13 = vor.u32 1.1754944e-38, %v3241_v60  ;;  %vm3240_vm2 = vcmp.eq.f32.partialorder %v3239_v37, 8.507059e+37 }
 0xa83   : > { %v5206_v41 = vpop.eup %5205 }
 0xa84   : > { %v5208_v27 = vpop.eup %5207  ;;  %v3229_v25 = vadd.f32 1.0, %v5206_v41  ;;  %4670 = vmatmul.msk.f32.gmra.mxu1 %vm2339_vm9, %v5573_v20 }
 0xa85   : > { %v3231_v61 = vmul.f32 %v5208_v27, %v3228_v12  ;;  %vm3236_vm3 = vweird.f32 %v5208_v27 }
 0xa86   : > { %5209 = vrcp.f32 %v3229_v25  ;;  %vm3237_vm10 = vmor %vm3235_vm7, %vm3236_vm3  ;;  %v3254_v50 = vand.u32 2147483647, %v3229_v25  ;;  %vm3250_vm1 = vweird.f32 %v3229_v25 }
 0xa87   : > { %v3232_v55 = vsub.f32 1.0, %v3231_v61  ;;  %5211 = vtanh.f32 %v3264_v56  ;;  %v3256_v56 = vand.u32 2147483648, %v3229_v25 }
 0xa88   : > { %5213 = vtanh.f32 %v3265_v52  ;;  %vm3255_vm14 = vcmp.eq.f32.partialorder %v3254_v50, 8.507059e+37 }
 0xa89   : > { %v3233_v46 = vmul.f32 %v5208_v27, %v3232_v55  ;;  %v3257_v63 = vor.u32 1.1754944e-38, %v3256_v56 }
 0xa8b   : > { %v3234_v26 = vadd.f32 %v5208_v27, %v3233_v46 }
 0xa8c   : > { %v5210_v62 = vpop.eup %5209  ;;  %4671 = vmatmul.msk.f32.gmra.mxu1 %vm2339_vm9, %v5575_v21 }
 0xa8d   : > { %v3246_v42 = vmul.f32 %v5210_v62, %v3229_v25  ;;  %v3238_v15 = vsel %vm3237_vm10, %v5208_v27, %v3234_v26  ;;  %v5212_v16 = vpop.eup %5211  ;;  %vm3251_vm4 = vweird.f32 %v5210_v62 }
 0xa8e   : > { %v3243_v58 = vsel %vm3240_vm2, %v3242_v13, %v3238_v15  ;;  %vm3252_vm15 = vmor %vm3250_vm1, %vm3251_vm4  ;;  %v5214_v51 = vpop.eup %5213 }
 0xa8f   : > { %v3247_v59 = vsub.f32 1.0, %v3246_v42  ;;  %v3268_v54 = vmul.f32 %v5212_v16, %v3243_v58 }
 0xa91   : > { %v3248_v32 = vmul.f32 %v5210_v62, %v3247_v59  ;;  %v3274_v9 = vsel %vm7079_vm0, %v3268_v54, 0.0  ;;  %v7142_v49 = vsel %vm7079_vm0, %v3268_v54, %v7019_v34 }
 0xa92   : > { %4656 = vst [vmem:[%s5584_s8 + $0x40] sm:$0xff] %v3274_v9 }
 0xa93   : > { %v3249_v47 = vadd.f32 %v5210_v62, %v3248_v32 }
 0xa94   : > { %4672 = vmatmul.msk.f32.gmra.mxu1 %vm2339_vm9, %v5577_v22 }
 0xa95   : > { %v3253_v39 = vsel %vm3252_vm15, %v5210_v62, %v3249_v47 }
 0xa96   : > { %v3258_v31 = vsel %vm3255_vm14, %v3257_v63, %v3253_v39 }
 0xa97   : > { %v3269_v30 = vmul.f32 %v5214_v51, %v3258_v31 }
 0xa99   : > { %v3275_v52 = vsel %vm7079_vm0, %v3269_v30, 0.0  ;;  %v7135_v14 = vsel %vm7079_vm0, %v3269_v30, %v7012_v43  ;;  %vm3501_vm0 = vcmp.gt.s32.totalorder %v5519_v0, 3 }
 0xa9a   : > { %4657 = vst [vmem:[%s5584_s8 + $0x48] sm:$0xff] %v3275_v52  ;;  %3299 = vmatpush.msra.mxu0 %v7135_v14 }
 0xa9c   : > { %3300 = vmatpush.msra.mxu0 %v7142_v49  ;;  %4673 = vmatmul.msk.f32.gmra.mxu1 %vm2339_vm9, %v5579_v23 }
 0xa9d   : > { %4659 = vmatmul.msk.f32.vlgmr.msra.gmra.mxu0 %vm2273_vm13, %v5532_v1 }
 0xaa4   : > { %4674 = vmatmul.msk.f32.gmra.mxu1 %vm2339_vm9, %v5581_v24 }
 0xaa5   : > { %4660 = vmatmul.msk.f32.gmra.mxu0 %vm2273_vm13, %v5534_v2 }
 0xaad   : > { %4661 = vmatmul.msk.f32.gmra.mxu0 %vm2273_vm13, %v5536_v3 }
 0xab5   : > { %4662 = vmatmul.msk.f32.gmra.mxu0 %vm2273_vm13, %v5538_v4 }
 0xabd   : > { %4663 = vmatmul.msk.f32.gmra.mxu0 %vm2273_vm13, %v5540_v5 }
 0xac5   : > { %4664 = vmatmul.msk.f32.gmra.mxu0 %vm2273_vm13, %v5542_v6 }
 0xacd   : > { %4665 = vmatmul.msk.f32.gmra.mxu0 %vm2273_vm13, %v5547_v7 }
 0xad5   : > { %4666 = vmatmul.msk.f32.gmra.mxu0 %vm2273_vm13, %v5549_v8 }
 0xae9   : > { %v3343_v43 = vpop.f32.mrf.mxu1 }
 0xaf1   : > { %v3346_v34 = vpop.f32.mrf.mxu1 }
 0xaf9   : > { %v3349_v12 = vpop.f32.mrf.mxu1 }
 0xb01   : > { %v3352_v46 = vpop.f32.mrf.mxu1 }
 0xb09   : > { %v3355_v59 = vpop.f32.mrf.mxu1 }
 0xb11   : > { %v3358_v52 = vpop.f32.mrf.mxu1 }
 0xb1a   : > { %v3302_v44 = vpop.f32.mrf.mxu0 }
 0xb1b   : > { %v3344_v11 = vadd.f32 %v3343_v43, %v3302_v44 }
 0xb1d   : > { %v3367_v33 = vadd.f32 %v3344_v11, %v6654_v10 }
 0xb1f   : > { %v4675_v41 = vmul.f32 -1.442695, %v3367_v33 }
 0xb21   : > { %5215 = vpow2.f32 %v4675_v41 }
 0xb22   : > { %v3305_v27 = vpop.f32.mrf.mxu0 }
 0xb23   : > { %v3347_v25 = vadd.f32 %v3346_v34, %v3305_v27  ;;  %v3502_v27 = vsel %vm3501_vm0, 1, %v5426_v40 }
 0xb25   : > { %v3368_v61 = vadd.f32 %v3347_v25, %v6657_v36 }
 0xb27   : > { %v5216_v55 = vpop.eup %5215  ;;  %v4676_v60 = vmul.f32 -1.442695, %v3368_v61 }
 0xb28   : > { %v7171_v37 = vadd.f32 1.0, %v5216_v55 }
 0xb29   : > { %5217 = vpow2.f32 %v4676_v60 }
 0xb2a   : > { %v3308_v26 = vpop.f32.mrf.mxu0  ;;  %5219 = vrcp.f32 %v7171_v37  ;;  %v3392_v61 = vand.u32 2147483647, %v7171_v37  ;;  %vm3388_vm5 = vweird.f32 %v7171_v37 }
 0xb2b   : > { %v3350_v62 = vadd.f32 %v3349_v12, %v3308_v26 }
 0xb2c   : > { %vm3393_vm3 = vcmp.eq.f32.partialorder %v3392_v61, 8.507059e+37 }
 0xb2d   : > { %v3369_v13 = vadd.f32 %v3350_v62, %v6660_v28 }
 0xb2f   : > { %v5218_v42 = vpop.eup %5217  ;;  %v4677_v15 = vmul.f32 -1.442695, %v3369_v13  ;;  %v3394_v13 = vand.u32 2147483648, %v7171_v37 }
 0xb30   : > { %v7175_v16 = vadd.f32 1.0, %v5218_v42  ;;  %v5220_v56 = vpop.eup %5219  ;;  %v3503_v42 = vperm.slane %v3502_v27, 0 }
 0xb31   : > { %5221 = vpow2.f32 %v4677_v15  ;;  %v3384_v9 = vmul.f32 %v5220_v56, %v7171_v37  ;;  %vm3389_vm11 = vweird.f32 %v5220_v56 }
 0xb32   : > { %v3311_v58 = vpop.f32.mrf.mxu0  ;;  %5223 = vrcp.f32 %v7175_v16  ;;  %vm7193_vm8 = vmor %vm3388_vm5, %vm3389_vm11  ;;  %vm3403_vm10 = vweird.f32 %v7175_v16  ;;  %vm7202_vm2 = vcmp.eq.s32.totalorder %v3503_v42, 1 }
 0xb33   : > { %v3353_v54 = vadd.f32 %v3352_v46, %v3311_v58  ;;  %v3385_v31 = vsub.f32 1.0, %v3384_v9 }
 0xb35   : > { %v3370_v32 = vadd.f32 %v3353_v54, %v6668_v29  ;;  %v3386_v11 = vmul.f32 %v5220_v56, %v3385_v31 }
 0xb37   : > { %v5222_v50 = vpop.eup %5221  ;;  %v4678_v47 = vmul.f32 -1.442695, %v3370_v32  ;;  %v3387_v46 = vadd.f32 %v5220_v56, %v3386_v11 }
 0xb38   : > { %v3419_v63 = vadd.f32 1.0, %v5222_v50  ;;  %v7180_v51 = vpop.eup %5223  ;;  %v3361_v50 = vpop.f32.mrf.mxu1 }
 0xb39   : > { %5225 = vpow2.f32 %v4678_v47  ;;  %v3399_v34 = vmul.f32 %v7180_v51, %v7175_v16  ;;  %v3391_v47 = vsel %vm7193_vm8, %v5220_v56, %v3387_v46  ;;  %vm3404_vm1 = vweird.f32 %v7180_v51 }
 0xb3a   : > { %5227 = vrcp.f32 %v3419_v63  ;;  %v3314_v39 = vpop.f32.mrf.mxu0  ;;  %v3432_v62 = vand.u32 2147483648, %v3419_v63  ;;  %v3430_v58 = vand.u32 2147483647, %v3419_v63  ;;  %vm3426_vm12 = vweird.f32 %v3419_v63  ;;  %vm7218_vm14 = vmor %vm3403_vm10, %vm3404_vm1 }
 0xb3b   : > { %v3356_v30 = vadd.f32 %v3355_v59, %v3314_v39  ;;  %v3400_v25 = vsub.f32 1.0, %v3399_v34 }
 0xb3c   : > { %v3433_v37 = vor.u32 1.1754944e-38, %v3432_v62  ;;  %vm3431_vm4 = vcmp.eq.f32.partialorder %v3430_v58, 8.507059e+37 }
 0xb3d   : > { %v3371_v43 = vadd.f32 %v3356_v30, %v6676_v53  ;;  %v3401_v32 = vmul.f32 %v7180_v51, %v3400_v25  ;;  %v3395_v30 = vor.u32 1.1754944e-38, %v3394_v13 }
 0xb3f   : > { %v5226_v44 = vpop.eup %5225  ;;  %5229 = vtanh.f32 %v3371_v43 }
 0xb40   : > { %v5228_v33 = vpop.eup %5227  ;;  %v7186_v12 = vadd.f32 1.0, %v5226_v44  ;;  %v3402_v44 = vadd.f32 %v7180_v51, %v3401_v32 }
 0xb41   : > { %v3422_v41 = vmul.f32 %v5228_v33, %v3419_v63  ;;  %vm3427_vm6 = vweird.f32 %v5228_v33  ;;  %v3396_v63 = vsel %vm3393_vm3, %v3395_v30, %v3391_v47 }
 0xb42   : > { %5231 = vrcp.f32 %v7186_v12  ;;  %v3317_v55 = vpop.f32.mrf.mxu0  ;;  %vm3428_vm7 = vmor %vm3426_vm12, %vm3427_vm6  ;;  %v3445_v46 = vand.u32 2147483647, %v7186_v12  ;;  %vm3441_vm0 = vweird.f32 %v7186_v12 }
 0xb43   : > { %v3423_v60 = vsub.f32 1.0, %v3422_v41  ;;  %v3359_v26 = vadd.f32 %v3358_v52, %v3317_v55  ;;  %v3447_v55 = vand.u32 2147483648, %v7186_v12 }
 0xb44   : > { %vm3446_vm5 = vcmp.eq.f32.partialorder %v3445_v46, 8.507059e+37 }
 0xb45   : > { %v3424_v15 = vmul.f32 %v5228_v33, %v3423_v60  ;;  %v3372_v54 = vadd.f32 %v3359_v26, %v6695_v48  ;;  %v5230_v9 = vpop.eup %5229  ;;  %v3407_v60 = vand.u32 2147483647, %v7175_v16  ;;  %v3448_v32 = vor.u32 1.1754944e-38, %v3447_v55 }
 0xb46   : > { %v3493_v25 = vmul.f32 %v5230_v9, %v3396_v63  ;;  %v3364_v9 = vpop.f32.mrf.mxu1  ;;  %v4683_v63 = vld [vmem:[%s7668_s1 + $0x10] sm:$0xff] }
 0xb47   : > { %v3425_v39 = vadd.f32 %v5228_v33, %v3424_v15  ;;  %5233 = vtanh.f32 %v3372_v54  ;;  %v3406_v15 = vsel %vm7218_vm14, %v7180_v51, %v3402_v44  ;;  %vm3408_vm6 = vcmp.eq.f32.partialorder %v3407_v60, 8.507059e+37  ;;  %3572 = vmatpush.msra.mxu2 %v4683_v63 }
 0xb48   : > { %v5232_v31 = vpop.eup %5231  ;;  %4692 = vmatmul.msk.f32.vlgmr.msra.gmra.mxu2 %vm2339_vm9, %v5567_v17 }
 0xb49   : > { %v3437_v43 = vmul.f32 %v5232_v31, %v7186_v12  ;;  %v3429_v34 = vsel %vm3428_vm7, %v5228_v33, %v3425_v39  ;;  %v3409_v33 = vand.u32 2147483648, %v7175_v16  ;;  %vm3442_vm15 = vweird.f32 %v5232_v31 }
 0xb4a   : > { %v3434_v56 = vsel %vm3431_vm4, %v3433_v37, %v3429_v34  ;;  %v3320_v11 = vpop.f32.mrf.mxu0  ;;  %vm3443_vm11 = vmor %vm3441_vm0, %vm3442_vm15 }
 0xb4b   : > { %v3438_v41 = vsub.f32 1.0, %v3437_v43  ;;  %v3491_v27 = vmul.f32 %v3434_v56, %v7107_v57  ;;  %v3362_v61 = vadd.f32 %v3361_v50, %v3320_v11  ;;  %v3410_v50 = vor.u32 1.1754944e-38, %v3409_v33 }
 0xb4d   : > { %v3439_v26 = vmul.f32 %v5232_v31, %v3438_v41  ;;  %v3495_v62 = vadd.f32 %v3493_v25, %v3491_v27  ;;  %v3373_v42 = vadd.f32 %v3362_v61, %v6717_v35  ;;  %v5234_v16 = vpop.eup %5233  ;;  %v3411_v39 = vsel %vm3408_vm6, %v3410_v50, %v3406_v15 }
 0xb4e   : > { %v3494_v30 = vmul.f32 %v5234_v16, %v3411_v39 }
 0xb4f   : > { %v3440_v58 = vadd.f32 %v5232_v31, %v3439_v26  ;;  %v4679_v59 = vmul.f32 -1.442695, %v3373_v42  ;;  %v7230_v54 = vsel %vm7202_vm2, %v3495_v62, %v7107_v57 }
 0xb50   : > { %4693 = vmatmul.msk.f32.gmra.mxu2 %vm2339_vm9, %v5569_v18 }
 0xb51   : > { %v3444_v47 = vsel %vm3443_vm11, %v5232_v31, %v3440_v58  ;;  %5235 = vpow2.f32 %v4679_v59 }
 0xb52   : > { %v3449_v51 = vsel %vm3446_vm5, %v3448_v32, %v3444_v47  ;;  %v3323_v37 = vpop.f32.mrf.mxu0 }
 0xb53   : > { %v3492_v12 = vmul.f32 %v3449_v51, %v7117_v45  ;;  %v3365_v43 = vadd.f32 %v3364_v9, %v3323_v37 }
 0xb55   : > { %v3496_v34 = vadd.f32 %v3494_v30, %v3492_v12  ;;  %v3374_v57 = vadd.f32 %v3365_v43, %v6684_v38 }
 0xb57   : > { %v5236_v56 = vpop.eup %5235  ;;  %v4680_v44 = vmul.f32 -1.442695, %v3374_v57  ;;  %v7240_v31 = vsel %vm7202_vm2, %v3496_v34, %v7117_v45 }
 0xb58   : > { %v3459_v11 = vadd.f32 1.0, %v5236_v56  ;;  %4694 = vmatmul.msk.f32.gmra.mxu2 %vm2339_vm9, %v5571_v19 }
 0xb59   : > { %5237 = vpow2.f32 %v4680_v44 }
 0xb5a   : > { %5239 = vrcp.f32 %v3459_v11  ;;  %v3472_v60 = vand.u32 2147483648, %v3459_v11  ;;  %v3470_v45 = vand.u32 2147483647, %v3459_v11  ;;  %vm3466_vm12 = vweird.f32 %v3459_v11 }
 0xb5c   : > { %v3473_v13 = vor.u32 1.1754944e-38, %v3472_v60  ;;  %vm3471_vm7 = vcmp.eq.f32.partialorder %v3470_v45, 8.507059e+37 }
 0xb5f   : > { %v5238_v41 = vpop.eup %5237 }
 0xb60   : > { %v5240_v27 = vpop.eup %5239  ;;  %v3460_v25 = vadd.f32 1.0, %v5238_v41  ;;  %4695 = vmatmul.msk.f32.gmra.mxu2 %vm2339_vm9, %v5573_v20 }
 0xb61   : > { %v3462_v61 = vmul.f32 %v5240_v27, %v3459_v11  ;;  %vm3467_vm8 = vweird.f32 %v5240_v27 }
 0xb62   : > { %5241 = vrcp.f32 %v3460_v25  ;;  %vm3468_vm3 = vmor %vm3466_vm12, %vm3467_vm8  ;;  %v3485_v9 = vand.u32 2147483647, %v3460_v25  ;;  %vm3481_vm4 = vweird.f32 %v3460_v25 }
 0xb63   : > { %v3463_v55 = vsub.f32 1.0, %v3462_v61  ;;  %5243 = vtanh.f32 %v3495_v62  ;;  %v3487_v62 = vand.u32 2147483648, %v3460_v25 }
 0xb64   : > { %5245 = vtanh.f32 %v3496_v34  ;;  %vm3486_vm15 = vcmp.eq.f32.partialorder %v3485_v9, 8.507059e+37 }
 0xb65   : > { %v3464_v33 = vmul.f32 %v5240_v27, %v3463_v55  ;;  %v3488_v51 = vor.u32 1.1754944e-38, %v3487_v62 }
 0xb67   : > { %v3465_v46 = vadd.f32 %v5240_v27, %v3464_v33 }
 0xb68   : > { %v5242_v26 = vpop.eup %5241  ;;  %4696 = vmatmul.msk.f32.gmra.mxu2 %vm2339_vm9, %v5575_v21 }
 0xb69   : > { %v3477_v42 = vmul.f32 %v5242_v26, %v3460_v25  ;;  %v3469_v15 = vsel %vm3468_vm3, %v5240_v27, %v3465_v46  ;;  %v5244_v58 = vpop.eup %5243  ;;  %vm3482_vm10 = vweird.f32 %v5242_v26 }
 0xb6a   : > { %v3474_v59 = vsel %vm3471_vm7, %v3473_v13, %v3469_v15  ;;  %vm3483_vm1 = vmor %vm3481_vm4, %vm3482_vm10  ;;  %v5246_v12 = vpop.eup %5245 }
 0xb6b   : > { %v3478_v16 = vsub.f32 1.0, %v3477_v42  ;;  %v3499_v32 = vmul.f32 %v5244_v58, %v3474_v59 }
 0xb6d   : > { %v3479_v50 = vmul.f32 %v5242_v26, %v3478_v16  ;;  %v3505_v47 = vsel %vm7202_vm2, %v3499_v32, 0.0  ;;  %v7265_v63 = vsel %vm7202_vm2, %v3499_v32, %v7142_v49 }
 0xb6e   : > { %4681 = vst [vmem:[%s5584_s8 + $0x30] sm:$0xff] %v3505_v47 }
 0xb6f   : > { %v3480_v39 = vadd.f32 %v5242_v26, %v3479_v50 }
 0xb70   : > { %4697 = vmatmul.msk.f32.gmra.mxu2 %vm2339_vm9, %v5577_v22 }
 0xb71   : > { %v3484_v37 = vsel %vm3483_vm1, %v5242_v26, %v3480_v39 }
 0xb72   : > { %v3489_v30 = vsel %vm3486_vm15, %v3488_v51, %v3484_v37 }
 0xb73   : > { %v3500_v43 = vmul.f32 %v5246_v12, %v3489_v30 }
 0xb75   : > { %v3506_v34 = vsel %vm7202_vm2, %v3500_v43, 0.0  ;;  %v7258_v57 = vsel %vm7202_vm2, %v3500_v43, %v7135_v14  ;;  %vm3732_vm2 = vcmp.gt.s32.totalorder %v5519_v0, 2 }
 0xb76   : > { %4682 = vst [vmem:[%s5584_s8 + $0x38] sm:$0xff] %v3506_v34  ;;  %3530 = vmatpush.msra.mxu3 %v7258_v57 }
 0xb78   : > { %3531 = vmatpush.msra.mxu3 %v7265_v63  ;;  %4698 = vmatmul.msk.f32.gmra.mxu2 %vm2339_vm9, %v5579_v23 }
 0xb79   : > { %4684 = vmatmul.msk.f32.vlgmr.msra.gmra.mxu3 %vm2273_vm13, %v5532_v1 }
 0xb80   : > { %4699 = vmatmul.msk.f32.gmra.mxu2 %vm2339_vm9, %v5581_v24 }
 0xb81   : > { %4685 = vmatmul.msk.f32.gmra.mxu3 %vm2273_vm13, %v5534_v2 }
 0xb89   : > { %4686 = vmatmul.msk.f32.gmra.mxu3 %vm2273_vm13, %v5536_v3 }
 0xb91   : > { %4687 = vmatmul.msk.f32.gmra.mxu3 %vm2273_vm13, %v5538_v4 }
 0xb99   : > { %4688 = vmatmul.msk.f32.gmra.mxu3 %vm2273_vm13, %v5540_v5 }
 0xba1   : > { %4689 = vmatmul.msk.f32.gmra.mxu3 %vm2273_vm13, %v5542_v6 }
 0xba9   : > { %4690 = vmatmul.msk.f32.gmra.mxu3 %vm2273_vm13, %v5547_v7 }
 0xbb1   : > { %4691 = vmatmul.msk.f32.gmra.mxu3 %vm2273_vm13, %v5549_v8 }
 0xbcb   : > { %v3574_v14 = vpop.f32.mrf.mxu2 }
 0xbd3   : > { %v3577_v49 = vpop.f32.mrf.mxu2 }
 0xbdb   : > { %v3580_v11 = vpop.f32.mrf.mxu2 }
 0xbe3   : > { %v3583_v33 = vpop.f32.mrf.mxu2 }
 0xbeb   : > { %v3586_v16 = vpop.f32.mrf.mxu2 }
 0xbf3   : > { %v3589_v34 = vpop.f32.mrf.mxu2 }
 0xbfc   : > { %v3533_v52 = vpop.f32.mrf.mxu3 }
 0xbfd   : > { %v3575_v56 = vadd.f32 %v3574_v14, %v3533_v52 }
 0xbff   : > { %v3598_v44 = vadd.f32 %v3575_v56, %v6654_v10 }
 0xc01   : > { %v4700_v41 = vmul.f32 -1.442695, %v3598_v44 }
 0xc03   : > { %5247 = vpow2.f32 %v4700_v41 }
 0xc04   : > { %v3536_v27 = vpop.f32.mrf.mxu3 }
 0xc05   : > { %v3578_v25 = vadd.f32 %v3577_v49, %v3536_v27  ;;  %v3733_v27 = vsel %vm3732_vm2, 1, %v5426_v40 }
 0xc07   : > { %v3599_v61 = vadd.f32 %v3578_v25, %v6657_v36 }
 0xc09   : > { %v5248_v55 = vpop.eup %5247  ;;  %v4701_v60 = vmul.f32 -1.442695, %v3599_v61 }
 0xc0a   : > { %v7294_v45 = vadd.f32 1.0, %v5248_v55 }
 0xc0b   : > { %5249 = vpow2.f32 %v4701_v60 }
 0xc0c   : > { %v3539_v46 = vpop.f32.mrf.mxu3  ;;  %5251 = vrcp.f32 %v7294_v45  ;;  %v3623_v61 = vand.u32 2147483647, %v7294_v45  ;;  %vm3619_vm11 = vweird.f32 %v7294_v45 }
 0xc0d   : > { %v3581_v26 = vadd.f32 %v3580_v11, %v3539_v46 }
 0xc0e   : > { %vm3624_vm8 = vcmp.eq.f32.partialorder %v3623_v61, 8.507059e+37 }
 0xc0f   : > { %v3600_v13 = vadd.f32 %v3581_v26, %v6660_v28 }
 0xc11   : > { %v5250_v42 = vpop.eup %5249  ;;  %v4702_v15 = vmul.f32 -1.442695, %v3600_v13  ;;  %v3625_v13 = vand.u32 2147483648, %v7294_v45 }
 0xc12   : > { %v7298_v58 = vadd.f32 1.0, %v5250_v42  ;;  %v5252_v62 = vpop.eup %5251  ;;  %v3734_v42 = vperm.slane %v3733_v27, 0 }
 0xc13   : > { %5253 = vpow2.f32 %v4702_v15  ;;  %v3615_v47 = vmul.f32 %v5252_v62, %v7294_v45  ;;  %vm3620_vm14 = vweird.f32 %v5252_v62 }
 0xc14   : > { %v3542_v59 = vpop.f32.mrf.mxu3  ;;  %5255 = vrcp.f32 %v7298_v58  ;;  %vm7316_vm6 = vmor %vm3619_vm11, %vm3620_vm14  ;;  %vm3634_vm3 = vweird.f32 %v7298_v58  ;;  %vm7325_vm7 = vcmp.eq.s32.totalorder %v3734_v42, 1 }
 0xc15   : > { %v3584_v32 = vadd.f32 %v3583_v33, %v3542_v59  ;;  %v3616_v30 = vsub.f32 1.0, %v3615_v47 }
 0xc17   : > { %v3601_v50 = vadd.f32 %v3584_v32, %v6668_v29  ;;  %v3617_v56 = vmul.f32 %v5252_v62, %v3616_v30 }
 0xc19   : > { %v5254_v9 = vpop.eup %5253  ;;  %v4703_v39 = vmul.f32 -1.442695, %v3601_v50  ;;  %v3618_v33 = vadd.f32 %v5252_v62, %v3617_v56 }
 0xc1a   : > { %v3650_v51 = vadd.f32 1.0, %v5254_v9  ;;  %v7303_v12 = vpop.eup %5255  ;;  %v3592_v9 = vpop.f32.mrf.mxu2 }
 0xc1b   : > { %5257 = vpow2.f32 %v4703_v39  ;;  %v3630_v49 = vmul.f32 %v7303_v12, %v7298_v58  ;;  %v3622_v39 = vsel %vm7316_vm6, %v5252_v62, %v3618_v33  ;;  %vm3635_vm4 = vweird.f32 %v7303_v12 }
 0xc1c   : > { %5259 = vrcp.f32 %v3650_v51  ;;  %v3545_v37 = vpop.f32.mrf.mxu3  ;;  %v3663_v26 = vand.u32 2147483648, %v3650_v51  ;;  %v3661_v59 = vand.u32 2147483647, %v3650_v51  ;;  %vm3657_vm5 = vweird.f32 %v3650_v51  ;;  %vm7341_vm15 = vmor %vm3634_vm3, %vm3635_vm4 }
 0xc1d   : > { %v3587_v43 = vadd.f32 %v3586_v16, %v3545_v37  ;;  %v3631_v25 = vsub.f32 1.0, %v3630_v49 }
 0xc1e   : > { %v3664_v45 = vor.u32 1.1754944e-38, %v3663_v26  ;;  %vm3662_vm10 = vcmp.eq.f32.partialorder %v3661_v59, 8.507059e+37 }
 0xc1f   : > { %v3602_v14 = vadd.f32 %v3587_v43, %v6676_v53  ;;  %v3632_v50 = vmul.f32 %v7303_v12, %v3631_v25  ;;  %v3626_v43 = vor.u32 1.1754944e-38, %v3625_v13 }
 0xc21   : > { %v5258_v52 = vpop.eup %5257  ;;  %5261 = vtanh.f32 %v3602_v14 }
 0xc22   : > { %v5260_v44 = vpop.eup %5259  ;;  %v7309_v11 = vadd.f32 1.0, %v5258_v52  ;;  %v3633_v52 = vadd.f32 %v7303_v12, %v3632_v50 }
 0xc23   : > { %v3653_v41 = vmul.f32 %v5260_v44, %v3650_v51  ;;  %vm3658_vm0 = vweird.f32 %v5260_v44  ;;  %v3627_v51 = vsel %vm3624_vm8, %v3626_v43, %v3622_v39 }
 0xc24   : > { %5263 = vrcp.f32 %v7309_v11  ;;  %v3548_v55 = vpop.f32.mrf.mxu3  ;;  %vm3659_vm12 = vmor %vm3657_vm5, %vm3658_vm0  ;;  %v3676_v33 = vand.u32 2147483647, %v7309_v11  ;;  %vm3672_vm2 = vweird.f32 %v7309_v11 }
 0xc25   : > { %v3654_v60 = vsub.f32 1.0, %v3653_v41  ;;  %v3590_v46 = vadd.f32 %v3589_v34, %v3548_v55  ;;  %v3678_v55 = vand.u32 2147483648, %v7309_v11 }
 0xc26   : > { %vm3677_vm11 = vcmp.eq.f32.partialorder %v3676_v33, 8.507059e+37 }
 0xc27   : > { %v3655_v15 = vmul.f32 %v5260_v44, %v3654_v60  ;;  %v3603_v32 = vadd.f32 %v3590_v46, %v6695_v48  ;;  %v5262_v47 = vpop.eup %5261  ;;  %v3638_v60 = vand.u32 2147483647, %v7298_v58  ;;  %v3679_v50 = vor.u32 1.1754944e-38, %v3678_v55 }
 0xc28   : > { %v3724_v25 = vmul.f32 %v5262_v47, %v3627_v51  ;;  %v3595_v47 = vpop.f32.mrf.mxu2  ;;  %v4708_v51 = vld [vmem:[%s7668_s1 + $0x8] sm:$0xff] }
 0xc29   : > { %v3656_v37 = vadd.f32 %v5260_v44, %v3655_v15  ;;  %5265 = vtanh.f32 %v3603_v32  ;;  %v3637_v15 = vsel %vm7341_vm15, %v7303_v12, %v3633_v52  ;;  %vm3639_vm0 = vcmp.eq.f32.partialorder %v3638_v60, 8.507059e+37  ;;  %3803 = vmatpush.msrb.mxu1 %v4708_v51 }
 0xc2a   : > { %v5264_v30 = vpop.eup %5263  ;;  %4717 = vmatmul.msk.f32.vlgmr.msrb.gmra.mxu1 %vm2339_vm9, %v5567_v17 }
 0xc2b   : > { %v3668_v14 = vmul.f32 %v5264_v30, %v7309_v11  ;;  %v3660_v49 = vsel %vm3659_vm12, %v5260_v44, %v3656_v37  ;;  %v3640_v44 = vand.u32 2147483648, %v7298_v58  ;;  %vm3673_vm1 = vweird.f32 %v5264_v30 }
 0xc2c   : > { %v3665_v62 = vsel %vm3662_vm10, %v3664_v45, %v3660_v49  ;;  %v3551_v56 = vpop.f32.mrf.mxu3  ;;  %vm3674_vm14 = vmor %vm3672_vm2, %vm3673_vm1 }
 0xc2d   : > { %v3669_v41 = vsub.f32 1.0, %v3668_v14  ;;  %v3722_v27 = vmul.f32 %v3665_v62, %v7230_v54  ;;  %v3593_v61 = vadd.f32 %v3592_v9, %v3551_v56  ;;  %v3641_v9 = vor.u32 1.1754944e-38, %v3640_v44 }
 0xc2f   : > { %v3670_v46 = vmul.f32 %v5264_v30, %v3669_v41  ;;  %v3726_v26 = vadd.f32 %v3724_v25, %v3722_v27  ;;  %v3604_v42 = vadd.f32 %v3593_v61, %v6717_v35  ;;  %v5266_v58 = vpop.eup %5265  ;;  %v3642_v37 = vsel %vm3639_vm0, %v3641_v9, %v3637_v15 }
 0xc30   : > { %v3725_v43 = vmul.f32 %v5266_v58, %v3642_v37 }
 0xc31   : > { %v3671_v59 = vadd.f32 %v5264_v30, %v3670_v46  ;;  %v4704_v16 = vmul.f32 -1.442695, %v3604_v42  ;;  %v7353_v32 = vsel %vm7325_vm7, %v3726_v26, %v7230_v54 }
 0xc32   : > { %4718 = vmatmul.msk.f32.gmra.mxu1 %vm2339_vm9, %v5569_v18 }
 0xc33   : > { %v3675_v39 = vsel %vm3674_vm14, %v5264_v30, %v3671_v59  ;;  %5267 = vpow2.f32 %v4704_v16 }
 0xc34   : > { %v3680_v12 = vsel %vm3677_vm11, %v3679_v50, %v3675_v39  ;;  %v3554_v45 = vpop.f32.mrf.mxu3 }
 0xc35   : > { %v3723_v11 = vmul.f32 %v3680_v12, %v7240_v31  ;;  %v3596_v14 = vadd.f32 %v3595_v47, %v3554_v45 }
 0xc37   : > { %v3727_v49 = vadd.f32 %v3725_v43, %v3723_v11  ;;  %v3605_v54 = vadd.f32 %v3596_v14, %v6684_v38 }
 0xc39   : > { %v5268_v62 = vpop.eup %5267  ;;  %v4705_v52 = vmul.f32 -1.442695, %v3605_v54  ;;  %v7363_v30 = vsel %vm7325_vm7, %v3727_v49, %v7240_v31 }
 0xc3a   : > { %v3690_v56 = vadd.f32 1.0, %v5268_v62  ;;  %4719 = vmatmul.msk.f32.gmra.mxu1 %vm2339_vm9, %v5571_v19 }
 0xc3b   : > { %5269 = vpow2.f32 %v4705_v52 }
 0xc3c   : > { %5271 = vrcp.f32 %v3690_v56  ;;  %v3703_v60 = vand.u32 2147483648, %v3690_v56  ;;  %v3701_v31 = vand.u32 2147483647, %v3690_v56  ;;  %vm3697_vm5 = vweird.f32 %v3690_v56 }
 0xc3e   : > { %v3704_v13 = vor.u32 1.1754944e-38, %v3703_v60  ;;  %vm3702_vm12 = vcmp.eq.f32.partialorder %v3701_v31, 8.507059e+37 }
 0xc41   : > { %v5270_v41 = vpop.eup %5269 }
 0xc42   : > { %v5272_v27 = vpop.eup %5271  ;;  %v3691_v25 = vadd.f32 1.0, %v5270_v41  ;;  %4720 = vmatmul.msk.f32.gmra.mxu1 %vm2339_vm9, %v5573_v20 }
 0xc43   : > { %v3693_v61 = vmul.f32 %v5272_v27, %v3690_v56  ;;  %vm3698_vm6 = vweird.f32 %v5272_v27 }
 0xc44   : > { %5273 = vrcp.f32 %v3691_v25  ;;  %vm3699_vm8 = vmor %vm3697_vm5, %vm3698_vm6  ;;  %v3716_v47 = vand.u32 2147483647, %v3691_v25  ;;  %vm3712_vm10 = vweird.f32 %v3691_v25 }
 0xc45   : > { %v3694_v55 = vsub.f32 1.0, %v3693_v61  ;;  %5275 = vtanh.f32 %v3726_v26  ;;  %v3718_v26 = vand.u32 2147483648, %v3691_v25 }
 0xc46   : > { %5277 = vtanh.f32 %v3727_v49  ;;  %vm3717_vm1 = vcmp.eq.f32.partialorder %v3716_v47, 8.507059e+37 }
 0xc47   : > { %v3695_v44 = vmul.f32 %v5272_v27, %v3694_v55  ;;  %v3719_v12 = vor.u32 1.1754944e-38, %v3718_v26 }
 0xc49   : > { %v3696_v33 = vadd.f32 %v5272_v27, %v3695_v44 }
 0xc4a   : > { %v5274_v46 = vpop.eup %5273  ;;  %4721 = vmatmul.msk.f32.gmra.mxu1 %vm2339_vm9, %v5575_v21 }
 0xc4b   : > { %v3708_v42 = vmul.f32 %v5274_v46, %v3691_v25  ;;  %v3700_v15 = vsel %vm3699_vm8, %v5272_v27, %v3696_v33  ;;  %v5276_v59 = vpop.eup %5275  ;;  %vm3713_vm3 = vweird.f32 %v5274_v46 }
 0xc4c   : > { %v3705_v16 = vsel %vm3702_vm12, %v3704_v13, %v3700_v15  ;;  %vm3714_vm4 = vmor %vm3712_vm10, %vm3713_vm3  ;;  %v5278_v11 = vpop.eup %5277 }
 0xc4d   : > { %v3709_v58 = vsub.f32 1.0, %v3708_v42  ;;  %v3730_v50 = vmul.f32 %v5276_v59, %v3705_v16 }
 0xc4f   : > { %v3710_v9 = vmul.f32 %v5274_v46, %v3709_v58  ;;  %v3736_v39 = vsel %vm7325_vm7, %v3730_v50, 0.0  ;;  %v7388_v51 = vsel %vm7325_vm7, %v3730_v50, %v7265_v63 }
 0xc50   : > { %4706 = vst [vmem:[%s5584_s8 + $0x20] sm:$0xff] %v3736_v39 }
 0xc51   : > { %v3711_v37 = vadd.f32 %v5274_v46, %v3710_v9 }
 0xc52   : > { %4722 = vmatmul.msk.f32.gmra.mxu1 %vm2339_vm9, %v5577_v22 }
 0xc53   : > { %v3715_v45 = vsel %vm3714_vm4, %v5274_v46, %v3711_v37 }
 0xc54   : > { %v3720_v43 = vsel %vm3717_vm1, %v3719_v12, %v3715_v45 }
 0xc55   : > { %v3731_v14 = vmul.f32 %v5278_v11, %v3720_v43 }
 0xc57   : > { %v3737_v49 = vsel %vm7325_vm7, %v3731_v14, 0.0  ;;  %v7381_v54 = vsel %vm7325_vm7, %v3731_v14, %v7258_v57  ;;  %vm3963_vm7 = vcmp.gt.s32.totalorder %v5519_v0, 1 }
 0xc58   : > { %4707 = vst [vmem:[%s5584_s8 + $0x28] sm:$0xff] %v3737_v49  ;;  %3761 = vmatpush.msrb.mxu0 %v7381_v54 }
 0xc5a   : > { %3762 = vmatpush.msrb.mxu0 %v7388_v51  ;;  %4723 = vmatmul.msk.f32.gmra.mxu1 %vm2339_vm9, %v5579_v23 }
 0xc5b   : > { %4709 = vmatmul.msk.f32.vlgmr.msrb.gmra.mxu0 %vm2273_vm13, %v5532_v1 }
 0xc62   : > { %4724 = vmatmul.msk.f32.gmra.mxu1 %vm2339_vm9, %v5581_v24 }
 0xc63   : > { %4710 = vmatmul.msk.f32.gmra.mxu0 %vm2273_vm13, %v5534_v2 }
 0xc6b   : > { %4711 = vmatmul.msk.f32.gmra.mxu0 %vm2273_vm13, %v5536_v3 }
 0xc73   : > { %4712 = vmatmul.msk.f32.gmra.mxu0 %vm2273_vm13, %v5538_v4 }
 0xc7b   : > { %4713 = vmatmul.msk.f32.gmra.mxu0 %vm2273_vm13, %v5540_v5 }
 0xc83   : > { %4714 = vmatmul.msk.f32.gmra.mxu0 %vm2273_vm13, %v5542_v6 }
 0xc8b   : > { %4715 = vmatmul.msk.f32.gmra.mxu0 %vm2273_vm13, %v5547_v7 }
 0xc93   : > { %4716 = vmatmul.msk.f32.gmra.mxu0 %vm2273_vm13, %v5549_v8 }
 0xca7   : > { %v3805_v57 = vpop.f32.mrf.mxu1 }
 0xcaf   : > { %v3808_v63 = vpop.f32.mrf.mxu1 }
 0xcb7   : > { %v3811_v56 = vpop.f32.mrf.mxu1 }
 0xcbf   : > { %v3814_v44 = vpop.f32.mrf.mxu1 }
 0xcc7   : > { %v3817_v58 = vpop.f32.mrf.mxu1 }
 0xccf   : > { %v3820_v49 = vpop.f32.mrf.mxu1 }
 0xcd8   : > { %v3764_v34 = vpop.f32.mrf.mxu0 }
 0xcd9   : > { %v3806_v62 = vadd.f32 %v3805_v57, %v3764_v34 }
 0xcdb   : > { %v3829_v52 = vadd.f32 %v3806_v62, %v6654_v10 }
 0xcdd   : > { %v4725_v41 = vmul.f32 -1.442695, %v3829_v52 }
 0xcdf   : > { %5279 = vpow2.f32 %v4725_v41 }
 0xce0   : > { %v3767_v27 = vpop.f32.mrf.mxu0 }
 0xce1   : > { %v3809_v25 = vadd.f32 %v3808_v63, %v3767_v27  ;;  %v3964_v27 = vsel %vm3963_vm7, 1, %v5426_v40 }
 0xce3   : > { %v3830_v61 = vadd.f32 %v3809_v25, %v6657_v36 }
 0xce5   : > { %v5280_v55 = vpop.eup %5279  ;;  %v4726_v60 = vmul.f32 -1.442695, %v3830_v61 }
 0xce6   : > { %v7417_v31 = vadd.f32 1.0, %v5280_v55 }
 0xce7   : > { %5281 = vpow2.f32 %v4726_v60 }
 0xce8   : > { %v3770_v33 = vpop.f32.mrf.mxu0  ;;  %5283 = vrcp.f32 %v7417_v31  ;;  %v3854_v61 = vand.u32 2147483647, %v7417_v31  ;;  %vm3850_vm14 = vweird.f32 %v7417_v31 }
 0xce9   : > { %v3812_v46 = vadd.f32 %v3811_v56, %v3770_v33 }
 0xcea   : > { %vm3855_vm6 = vcmp.eq.f32.partialorder %v3854_v61, 8.507059e+37 }
 0xceb   : > { %v3831_v13 = vadd.f32 %v3812_v46, %v6660_v28 }
 0xced   : > { %v5282_v42 = vpop.eup %5281  ;;  %v4727_v15 = vmul.f32 -1.442695, %v3831_v13  ;;  %v3856_v13 = vand.u32 2147483648, %v7417_v31 }
 0xcee   : > { %v7421_v59 = vadd.f32 1.0, %v5282_v42  ;;  %v5284_v26 = vpop.eup %5283  ;;  %v3965_v42 = vperm.slane %v3964_v27, 0 }
 0xcef   : > { %5285 = vpow2.f32 %v4727_v15  ;;  %v3846_v39 = vmul.f32 %v5284_v26, %v7417_v31  ;;  %vm3851_vm15 = vweird.f32 %v5284_v26 }
 0xcf0   : > { %v3773_v16 = vpop.f32.mrf.mxu0  ;;  %5287 = vrcp.f32 %v7421_v59  ;;  %vm7439_vm0 = vmor %vm3850_vm14, %vm3851_vm15  ;;  %vm3865_vm8 = vweird.f32 %v7421_v59  ;;  %vm7448_vm12 = vcmp.eq.s32.totalorder %v3965_v42, 1 }
 0xcf1   : > { %v3815_v50 = vadd.f32 %v3814_v44, %v3773_v16  ;;  %v3847_v43 = vsub.f32 1.0, %v3846_v39 }
 0xcf3   : > { %v3832_v9 = vadd.f32 %v3815_v50, %v6668_v29  ;;  %v3848_v62 = vmul.f32 %v5284_v26, %v3847_v43 }
 0xcf5   : > { %v5286_v47 = vpop.eup %5285  ;;  %v4728_v37 = vmul.f32 -1.442695, %v3832_v9  ;;  %v3849_v44 = vadd.f32 %v5284_v26, %v3848_v62 }
 0xcf6   : > { %v3881_v12 = vadd.f32 1.0, %v5286_v47  ;;  %v7426_v11 = vpop.eup %5287  ;;  %v3823_v47 = vpop.f32.mrf.mxu1 }
 0xcf7   : > { %5289 = vpow2.f32 %v4728_v37  ;;  %v3861_v63 = vmul.f32 %v7426_v11, %v7421_v59  ;;  %v3853_v37 = vsel %vm7439_vm0, %v5284_v26, %v3849_v44  ;;  %vm3866_vm10 = vweird.f32 %v7426_v11 }
 0xcf8   : > { %5291 = vrcp.f32 %v3881_v12  ;;  %v3776_v45 = vpop.f32.mrf.mxu0  ;;  %v3894_v46 = vand.u32 2147483648, %v3881_v12  ;;  %v3892_v16 = vand.u32 2147483647, %v3881_v12  ;;  %vm3888_vm11 = vweird.f32 %v3881_v12  ;;  %vm7466_vm1 = vmor %vm3865_vm8, %vm3866_vm10 }
 0xcf9   : > { %v3818_v14 = vadd.f32 %v3817_v58, %v3776_v45  ;;  %v3862_v25 = vsub.f32 1.0, %v3861_v63 }
 0xcfa   : > { %v3895_v31 = vor.u32 1.1754944e-38, %v3894_v46  ;;  %vm3893_vm3 = vcmp.eq.f32.partialorder %v3892_v16, 8.507059e+37 }
 0xcfb   : > { %v3833_v57 = vadd.f32 %v3818_v14, %v6676_v53  ;;  %v3863_v9 = vmul.f32 %v7426_v11, %v3862_v25  ;;  %v3857_v14 = vor.u32 1.1754944e-38, %v3856_v13 }
 0xcfd   : > { %v5290_v34 = vpop.eup %5289  ;;  %5293 = vtanh.f32 %v3833_v57 }
 0xcfe   : > { %v5292_v52 = vpop.eup %5291  ;;  %v7432_v56 = vadd.f32 1.0, %v5290_v34  ;;  %v3864_v34 = vadd.f32 %v7426_v11, %v3863_v9 }
 0xcff   : > { %v3884_v41 = vmul.f32 %v5292_v52, %v3881_v12  ;;  %vm3889_vm2 = vweird.f32 %v5292_v52  ;;  %v3858_v12 = vsel %vm3855_vm6, %v3857_v14, %v3853_v37 }
 0xd00   : > { %5295 = vrcp.f32 %v7432_v56  ;;  %v3779_v55 = vpop.f32.mrf.mxu0  ;;  %vm3890_vm5 = vmor %vm3888_vm11, %vm3889_vm2  ;;  %v3907_v44 = vand.u32 2147483647, %v7432_v56  ;;  %vm3903_vm7 = vweird.f32 %v7432_v56 }
 0xd01   : > { %v3885_v60 = vsub.f32 1.0, %v3884_v41  ;;  %v3821_v33 = vadd.f32 %v3820_v49, %v3779_v55  ;;  %v3909_v55 = vand.u32 2147483648, %v7432_v56 }
 0xd02   : > { %vm3908_vm14 = vcmp.eq.f32.partialorder %v3907_v44, 8.507059e+37 }
 0xd03   : > { %v3886_v15 = vmul.f32 %v5292_v52, %v3885_v60  ;;  %v3834_v50 = vadd.f32 %v3821_v33, %v6695_v48  ;;  %v5294_v39 = vpop.eup %5293  ;;  %v3869_v60 = vand.u32 2147483647, %v7421_v59  ;;  %v3910_v9 = vor.u32 1.1754944e-38, %v3909_v55 }
 0xd04   : > { %v3955_v25 = vmul.f32 %v5294_v39, %v3858_v12  ;;  %v3826_v39 = vpop.f32.mrf.mxu1 }
 0xd05   : > { %v3887_v45 = vadd.f32 %v5292_v52, %v3886_v15  ;;  %5297 = vtanh.f32 %v3834_v50  ;;  %v3868_v15 = vsel %vm7466_vm1, %v7426_v11, %v3864_v34  ;;  %vm3870_vm2 = vcmp.eq.f32.partialorder %v3869_v60, 8.507059e+37 }
 0xd06   : > { %v5296_v43 = vpop.eup %5295 }
 0xd07   : > { %v3899_v57 = vmul.f32 %v5296_v43, %v7432_v56  ;;  %v3891_v63 = vsel %vm3890_vm5, %v5292_v52, %v3887_v45  ;;  %v3871_v52 = vand.u32 2147483648, %v7421_v59  ;;  %vm3904_vm4 = vweird.f32 %v5296_v43 }
 0xd08   : > { %v3896_v26 = vsel %vm3893_vm3, %v3895_v31, %v3891_v63  ;;  %v3782_v62 = vpop.f32.mrf.mxu0  ;;  %vm3905_vm15 = vmor %vm3903_vm7, %vm3904_vm4 }
 0xd09   : > { %v3900_v41 = vsub.f32 1.0, %v3899_v57  ;;  %v3953_v27 = vmul.f32 %v3896_v26, %v7353_v32  ;;  %v3824_v61 = vadd.f32 %v3823_v47, %v3782_v62  ;;  %v3872_v47 = vor.u32 1.1754944e-38, %v3871_v52  ;;  %v3976_v26 = vld [vmem:[%s7668_s1] sm:$0xff] }
 0xd0a   : > { %4033 = vmatpush.msrb.mxu2 %v3976_v26 }
 0xd0b   : > { %v3901_v33 = vmul.f32 %v5296_v43, %v3900_v41  ;;  %v7460_v46 = vadd.f32 %v3955_v25, %v3953_v27  ;;  %v3835_v42 = vadd.f32 %v3824_v61, %v6717_v35  ;;  %v5298_v59 = vpop.eup %5297  ;;  %v3873_v45 = vsel %vm3870_vm2, %v3872_v47, %v3868_v15  ;;  %4741 = vmatmul.msk.f32.vlgmr.msrb.gmra.mxu2 %vm2339_vm9, %v5567_v17 }
 0xd0c   : > { %v3956_v14 = vmul.f32 %v5298_v59, %v3873_v45 }
 0xd0d   : > { %v3902_v16 = vadd.f32 %v5296_v43, %v3901_v33  ;;  %v4729_v58 = vmul.f32 -1.442695, %v3835_v42  ;;  %v3974_v50 = vsel %vm7448_vm12, %v7460_v46, %v7353_v32 }
 0xd0f   : > { %v3906_v37 = vsel %vm3905_vm15, %v5296_v43, %v3902_v16  ;;  %5299 = vpow2.f32 %v4729_v58 }
 0xd10   : > { %v3911_v11 = vsel %vm3908_vm14, %v3910_v9, %v3906_v37  ;;  %v3785_v31 = vpop.f32.mrf.mxu0 }
 0xd11   : > { %v3954_v56 = vmul.f32 %v3911_v11, %v7363_v30  ;;  %v3827_v57 = vadd.f32 %v3826_v39, %v3785_v31 }
 0xd13   : > { %v7480_v63 = vadd.f32 %v3956_v14, %v3954_v56  ;;  %v3836_v12 = vadd.f32 %v3827_v57, %v6684_v38  ;;  %4742 = vmatmul.msk.f32.gmra.mxu2 %vm2339_vm9, %v5569_v18 }
 0xd15   : > { %v5300_v34 = vpop.eup %5299  ;;  %v4730_v62 = vmul.f32 -1.442695, %v3836_v12  ;;  %v3975_v43 = vsel %vm7448_vm12, %v7480_v63, %v7363_v30 }
 0xd16   : > { %v3921_v41 = vadd.f32 1.0, %v5300_v34 }
 0xd17   : > { %5301 = vpow2.f32 %v4730_v62 }
 0xd18   : > { %5303 = vrcp.f32 %v3921_v41  ;;  %v3934_v52 = vand.u32 2147483648, %v3921_v41  ;;  %v3932_v33 = vand.u32 2147483647, %v3921_v41  ;;  %vm3928_vm11 = vweird.f32 %v3921_v41 }
 0xd1a   : > { %v3935_v42 = vor.u32 1.1754944e-38, %v3934_v52  ;;  %vm3933_vm5 = vcmp.eq.f32.partialorder %v3932_v33, 8.507059e+37 }
 0xd1b   : > { %4743 = vmatmul.msk.f32.gmra.mxu2 %vm2339_vm9, %v5571_v19 }
 0xd1d   : > { %v5302_v27 = vpop.eup %5301 }
 0xd1e   : > { %v5304_v25 = vpop.eup %5303  ;;  %v3922_v61 = vadd.f32 1.0, %v5302_v27 }
 0xd1f   : > { %v3924_v55 = vmul.f32 %v5304_v25, %v3921_v41  ;;  %vm3929_vm0 = vweird.f32 %v5304_v25 }
 0xd20   : > { %5305 = vrcp.f32 %v3922_v61  ;;  %vm3930_vm6 = vmor %vm3928_vm11, %vm3929_vm0  ;;  %v3949_v47 = vand.u32 2147483648, %v3922_v61  ;;  %v3947_v37 = vand.u32 2147483647, %v3922_v61  ;;  %vm3943_vm3 = vweird.f32 %v3922_v61 }
 0xd21   : > { %v3925_v60 = vsub.f32 1.0, %v3924_v55  ;;  %5307 = vtanh.f32 %v7460_v46 }
 0xd22   : > { %5309 = vtanh.f32 %v7480_v63  ;;  %v3950_v19 = vor.u32 1.1754944e-38, %v3949_v47  ;;  %vm3948_vm4 = vcmp.eq.f32.partialorder %v3947_v37, 8.507059e+37 }
 0xd23   : > { %v3926_v44 = vmul.f32 %v5304_v25, %v3925_v60  ;;  %4744 = vmatmul.msk.f32.gmra.mxu2 %vm2339_vm9, %v5573_v20 }
 0xd25   : > { %v3927_v13 = vadd.f32 %v5304_v25, %v3926_v44 }
 0xd26   : > { %v5306_v17 = vpop.eup %5305 }
 0xd27   : > { %v3939_v15 = vmul.f32 %v5306_v17, %v3922_v61  ;;  %v3931_v18 = vsel %vm3930_vm6, %v5304_v25, %v3927_v13  ;;  %v5308_v16 = vpop.eup %5307  ;;  %vm3944_vm8 = vweird.f32 %v5306_v17 }
 0xd28   : > { %v3936_v58 = vsel %vm3933_vm5, %v3935_v42, %v3931_v18  ;;  %vm3945_vm10 = vmor %vm3943_vm3, %vm3944_vm8  ;;  %v5310_v56 = vpop.eup %5309 }
 0xd29   : > { %v3940_v59 = vsub.f32 1.0, %v3939_v15  ;;  %v3961_v9 = vmul.f32 %v5308_v16, %v3936_v58 }
 0xd2b   : > { %v3941_v39 = vmul.f32 %v5306_v17, %v3940_v59  ;;  %v3967_v45 = vsel %vm7448_vm12, %v3961_v9, 0.0  ;;  %v3972_v34 = vsel %vm7448_vm12, %v3961_v9, %v7388_v51  ;;  %4745 = vmatmul.msk.f32.gmra.mxu2 %vm2339_vm9, %v5575_v21 }
 0xd2c   : > { %4731 = vst [vmem:[%s5584_s8 + $0x10] sm:$0xff] %v3967_v45 }
 0xd2d   : > { %v3942_v11 = vadd.f32 %v5306_v17, %v3941_v39 }
 0xd2f   : > { %v3946_v31 = vsel %vm3945_vm10, %v5306_v17, %v3942_v11 }
 0xd30   : > { %v3951_v14 = vsel %vm3948_vm4, %v3950_v19, %v3946_v31  ;;  %vm4193_vm4 = vcmp.gt.s32.totalorder %v5519_v0, 0 }
 0xd31   : > { %v3962_v57 = vmul.f32 %v5310_v56, %v3951_v14 }
 0xd33   : > { %v3968_v12 = vsel %vm7448_vm12, %v3962_v57, 0.0  ;;  %v3973_v26 = vsel %vm7448_vm12, %v3962_v57, %v7381_v54  ;;  %4746 = vmatmul.msk.f32.gmra.mxu2 %vm2339_vm9, %v5577_v22 }
 0xd34   : > { %4732 = vst [vmem:[%s5584_s8 + $0x18] sm:$0xff] %v3968_v12  ;;  %3991 = vmatpush.msrb.mxu3 %v3973_v26 }
 0xd36   : > { %3992 = vmatpush.msrb.mxu3 %v3972_v34 }
 0xd37   : > { %4733 = vmatmul.msk.f32.vlgmr.msrb.gmra.mxu3 %vm2273_vm13, %v5532_v1 }
 0xd3b   : > { %4747 = vmatmul.msk.f32.gmra.mxu2 %vm2339_vm9, %v5579_v23 }
 0xd3f   : > { %4734 = vmatmul.msk.f32.gmra.mxu3 %vm2273_vm13, %v5534_v2 }
 0xd43   : > { %4748 = vmatmul.msk.f32.gmra.mxu2 %vm2339_vm9, %v5581_v24 }
 0xd47   : > { %4735 = vmatmul.msk.f32.gmra.mxu3 %vm2273_vm13, %v5536_v3 }
 0xd4f   : > { %4736 = vmatmul.msk.f32.gmra.mxu3 %vm2273_vm13, %v5538_v4 }
 0xd57   : > { %4737 = vmatmul.msk.f32.gmra.mxu3 %vm2273_vm13, %v5540_v5 }
 0xd5f   : > { %4738 = vmatmul.msk.f32.gmra.mxu3 %vm2273_vm13, %v5542_v6 }
 0xd67   : > { %4739 = vmatmul.msk.f32.gmra.mxu3 %vm2273_vm13, %v5547_v7 }
 0xd6f   : > { %4740 = vmatmul.msk.f32.gmra.mxu3 %vm2273_vm13, %v5549_v8 }
 0xd8e   : > { %v4035_v1 = vpop.f32.mrf.mxu2 }
 0xd96   : > { %v4038_v2 = vpop.f32.mrf.mxu2 }
 0xd9e   : > { %v4041_v20 = vpop.f32.mrf.mxu2 }
 0xda6   : > { %v4044_v23 = vpop.f32.mrf.mxu2 }
 0xdae   : > { %v4047_v41 = vpop.f32.mrf.mxu2 }
 0xdb6   : > { %v4050_v33 = vpop.f32.mrf.mxu2 }
 0xdba   : > { %v3994_v3 = vpop.f32.mrf.mxu3 }
 0xdbb   : > { %v4036_v22 = vadd.f32 %v4035_v1, %v3994_v3 }
 0xdbd   : > { %v4059_v24 = vadd.f32 %v4036_v22, %v6654_v10 }
 0xdbe   : > { %v4053_v58 = vpop.f32.mrf.mxu2 }
 0xdbf   : > { %v4749_v6 = vmul.f32 -1.442695, %v4059_v24 }
 0xdc2   : > { %v3997_v21 = vpop.f32.mrf.mxu3 }
 0xdc3   : > { %v4039_v62 = vadd.f32 %v4038_v2, %v3997_v21 }
 0xdc5   : > { %v4060_v27 = vadd.f32 %v4039_v62, %v6657_v36 }
 0xdc6   : > { %v4056_v12 = vpop.f32.mrf.mxu2 }
 0xdc7   : > { %v4750_v60 = vmul.f32 -1.442695, %v4060_v27 }
 0xdca   : > { %v4000_v4 = vpop.f32.mrf.mxu3 }
 0xdcb   : > { %v4042_v5 = vadd.f32 %v4041_v20, %v4000_v4 }
 0xdcd   : > { %v4061_v54 = vadd.f32 %v4042_v5, %v6660_v28 }
 0xdcf   : > { %v4751_v51 = vmul.f32 -1.442695, %v4061_v54 }
 0xdd1   : > { %5311 = vpow2.f32 %v4751_v51 }
 0xdd2   : > { %v4003_v7 = vpop.f32.mrf.mxu3  ;;  %5313 = vpow2.f32 %v4749_v6 }
 0xdd3   : > { %v4045_v8 = vadd.f32 %v4044_v23, %v4003_v7 }
 0xdd5   : > { %v4062_v25 = vadd.f32 %v4045_v8, %v6668_v29 }
 0xdd7   : > { %v5312_v61 = vpop.eup %5311  ;;  %v4752_v55 = vmul.f32 -1.442695, %v4062_v25 }
 0xdd8   : > { %v5314_v52 = vpop.eup %5313  ;;  %v4111_v10 = vadd.f32 1.0, %v5312_v61 }
 0xdd9   : > { %5315 = vpow2.f32 %v4752_v55  ;;  %v7540_v28 = vadd.f32 1.0, %v5314_v52 }
 0xdda   : > { %v4006_v44 = vpop.f32.mrf.mxu3  ;;  %5317 = vpow2.f32 %v4750_v60  ;;  %v4124_v20 = vand.u32 2147483648, %v4111_v10  ;;  %vm4118_vm9 = vweird.f32 %v4111_v10  ;;  %v4122_v22 = vand.u32 2147483647, %v4111_v10 }
 0xddb   : > { %5319 = vrcp.f32 %v4111_v10  ;;  %v4048_v11 = vadd.f32 %v4047_v41, %v4006_v44  ;;  %vm4080_vm15 = vweird.f32 %v7540_v28  ;;  %v4086_v7 = vand.u32 2147483648, %v7540_v28 }
 0xddc   : > { %5321 = vrcp.f32 %v7540_v28  ;;  %v4125_v62 = vor.u32 1.1754944e-38, %v4124_v20  ;;  %vm4123_vm14 = vcmp.eq.f32.partialorder %v4122_v22, 8.507059e+37 }
 0xddd   : > { %v4063_v26 = vadd.f32 %v4048_v11, %v6676_v53 }
 0xddf   : > { %v5316_v13 = vpop.eup %5315 }
 0xde0   : > { %v7543_v17 = vadd.f32 1.0, %v5316_v13  ;;  %v5318_v36 = vpop.eup %5317 }
 0xde1   : > { %v5320_v29 = vpop.eup %5319  ;;  %v7545_v15 = vadd.f32 1.0, %v5318_v36 }
 0xde2   : > { %v4009_v42 = vpop.f32.mrf.mxu3  ;;  %5323 = vrcp.f32 %v7543_v17  ;;  %v7548_v18 = vpop.eup %5321  ;;  %v4114_v16 = vmul.f32 %v5320_v29, %v4111_v10  ;;  %vm4119_vm13 = vweird.f32 %v5320_v29  ;;  %v4139_v44 = vand.u32 2147483648, %v7543_v17 }
 0xde3   : > { %v4076_v59 = vmul.f32 %v7548_v18, %v7540_v28  ;;  %5325 = vrcp.f32 %v7545_v15  ;;  %vm4081_vm1 = vweird.f32 %v7548_v18  ;;  %vm7565_vm7 = vmor %vm4118_vm9, %vm4119_vm13  ;;  %v4051_v4 = vadd.f32 %v4050_v33, %v4009_v42 }
 0xde4   : > { %v4115_v9 = vsub.f32 1.0, %v4114_v16  ;;  %vm7578_vm2 = vmor %vm4080_vm15, %vm4081_vm1  ;;  %vm4133_vm11 = vweird.f32 %v7543_v17  ;;  %v4137_v33 = vand.u32 2147483647, %v7543_v17  ;;  %v4140_v32 = vor.u32 1.1754944e-38, %v4139_v44 }
 0xde5   : > { %v4077_v45 = vsub.f32 1.0, %v4076_v59  ;;  %v4064_v55 = vadd.f32 %v4051_v4, %v6695_v48  ;;  %vm4095_vm3 = vweird.f32 %v7545_v15  ;;  %v4099_v46 = vand.u32 2147483647, %v7545_v15 }
 0xde6   : > { %v4116_v31 = vmul.f32 %v5320_v29, %v4115_v9  ;;  %vm4138_vm10 = vcmp.eq.f32.partialorder %v4137_v33, 8.507059e+37 }
 0xde7   : > { %v4078_v34 = vmul.f32 %v7548_v18, %v4077_v45  ;;  %vm4100_vm9 = vcmp.eq.f32.partialorder %v4099_v46, 8.507059e+37 }
 0xde8   : > { %v7553_v39 = vpop.eup %5323  ;;  %v4117_v3 = vadd.f32 %v5320_v29, %v4116_v31 }
 0xde9   : > { %v4129_v56 = vmul.f32 %v7553_v39, %v7543_v17  ;;  %v7558_v14 = vpop.eup %5325  ;;  %v4079_v53 = vadd.f32 %v7548_v18, %v4078_v34  ;;  %vm4134_vm0 = vweird.f32 %v7553_v39 }
 0xdea   : > { %v4012_v47 = vpop.f32.mrf.mxu3  ;;  %v4091_v1 = vmul.f32 %v7558_v14, %v7545_v15  ;;  %v4121_v6 = vsel %vm7565_vm7, %v5320_v29, %v4117_v3  ;;  %vm7598_vm5 = vmor %vm4133_vm11, %vm4134_vm0  ;;  %vm4096_vm8 = vweird.f32 %v7558_v14 }
 0xdeb   : > { %v4054_v37 = vadd.f32 %v4053_v58, %v4012_v47  ;;  %v4130_v2 = vsub.f32 1.0, %v4129_v56  ;;  %v4083_v25 = vsel %vm7578_vm2, %v7548_v18, %v4079_v53  ;;  %v4126_v61 = vsel %vm4123_vm14, %v4125_v62, %v4121_v6  ;;  %vm4097_vm13 = vmor %vm4095_vm3, %vm4096_vm8 }
 0xdec   : > { %v4092_v5 = vsub.f32 1.0, %v4091_v1  ;;  %v4183_v48 = vmul.f32 %v4126_v61, %v3974_v50  ;;  %v4101_v50 = vand.u32 2147483648, %v7545_v15 }
 0xded   : > { %v4065_v19 = vadd.f32 %v4054_v37, %v6717_v35  ;;  %v4131_v54 = vmul.f32 %v7553_v39, %v4130_v2 }
 0xdee   : > { %v4093_v60 = vmul.f32 %v7558_v14, %v4092_v5  ;;  %v4102_v45 = vor.u32 1.1754944e-38, %v4101_v50 }
 0xdef   : > { %v4753_v57 = vmul.f32 -1.442695, %v4065_v19  ;;  %v4132_v52 = vadd.f32 %v7553_v39, %v4131_v54  ;;  %v4194_v19 = vsel %vm4193_vm4, 1, %v5426_v40 }
 0xdf0   : > { %v4094_v29 = vadd.f32 %v7558_v14, %v4093_v60 }
 0xdf1   : > { %5327 = vpow2.f32 %v4753_v57  ;;  %v4136_v18 = vsel %vm7598_vm5, %v7553_v39, %v4132_v52 }
 0xdf2   : > { %v4015_v35 = vpop.f32.mrf.mxu3  ;;  %5329 = vtanh.f32 %v4063_v26  ;;  %v4141_v9 = vsel %vm4138_vm10, %v4140_v32, %v4136_v18  ;;  %v4098_v37 = vsel %vm4097_vm13, %v7558_v14, %v4094_v29 }
 0xdf3   : > { %v4057_v21 = vadd.f32 %v4056_v12, %v4015_v35  ;;  %v4184_v0 = vmul.f32 %v4141_v9, %v3975_v43  ;;  %v4103_v31 = vsel %vm4100_vm9, %v4102_v45, %v4098_v37  ;;  %v4195_v12 = vperm.slane %v4194_v19, 0 }
 0xdf5   : > { %v4066_v24 = vadd.f32 %v4057_v21, %v6684_v38  ;;  %v4084_v38 = vand.u32 2147483647, %v7540_v28  ;;  %v4087_v28 = vor.u32 1.1754944e-38, %v4086_v7  ;;  %vm7618_vm12 = vcmp.eq.s32.totalorder %v4195_v12, 1 }
 0xdf7   : > { %v5328_v51 = vpop.eup %5327  ;;  %v4754_v41 = vmul.f32 -1.442695, %v4066_v24  ;;  %vm4085_vm6 = vcmp.eq.f32.partialorder %v4084_v38, 8.507059e+37 }
 0xdf8   : > { %v4151_v27 = vadd.f32 1.0, %v5328_v51  ;;  %v5330_v10 = vpop.eup %5329  ;;  %v4088_v36 = vsel %vm4085_vm6, %v4087_v28, %v4083_v25 }
 0xdf9   : > { %5331 = vpow2.f32 %v4754_v41  ;;  %v4185_v42 = vmul.f32 %v5330_v10, %v4088_v36 }
 0xdfa   : > { %5333 = vrcp.f32 %v4151_v27  ;;  %v4164_v15 = vand.u32 2147483648, %v4151_v27  ;;  %v4162_v57 = vand.u32 2147483647, %v4151_v27  ;;  %vm4158_vm7 = vweird.f32 %v4151_v27 }
 0xdfb   : > { %5335 = vtanh.f32 %v4064_v55  ;;  %v4187_v58 = vadd.f32 %v4185_v42, %v4183_v48 }
 0xdfc   : > { %v4165_v40 = vor.u32 1.1754944e-38, %v4164_v15  ;;  %vm4163_vm2 = vcmp.eq.f32.partialorder %v4162_v57, 8.507059e+37 }
 0xdff   : > { %v5332_v16 = vpop.eup %5331 }
 0xe00   : > { %v5334_v17 = vpop.eup %5333  ;;  %v4152_v59 = vadd.f32 1.0, %v5332_v16 }
 0xe01   : > { %v4154_v47 = vmul.f32 %v5334_v17, %v4151_v27  ;;  %v5336_v39 = vpop.eup %5335  ;;  %vm4159_vm1 = vweird.f32 %v5334_v17 }
 0xe02   : > { %5337 = vrcp.f32 %v4152_v59  ;;  %v4186_v14 = vmul.f32 %v5336_v39, %v4103_v31  ;;  %vm4160_vm15 = vmor %vm4158_vm7, %vm4159_vm1  ;;  %v4179_v20 = vand.u32 2147483648, %v4152_v59  ;;  %v4177_v23 = vand.u32 2147483647, %v4152_v59 }
 0xe03   : > { %v4155_v11 = vsub.f32 1.0, %v4154_v47  ;;  %5339 = vtanh.f32 %v4187_v58  ;;  %vm4173_vm0 = vweird.f32 %v4152_v59 }
 0xe04   : > { %v4188_v1 = vadd.f32 %v4186_v14, %v4184_v0  ;;  %v4180_v4 = vor.u32 1.1754944e-38, %v4179_v20  ;;  %vm4178_vm6 = vcmp.eq.f32.partialorder %v4177_v23, 8.507059e+37 }
 0xe05   : > { %v4156_v56 = vmul.f32 %v5334_v17, %v4155_v11 }
 0xe06   : > { %5341 = vtanh.f32 %v4188_v1 }
 0xe07   : > { %v4157_v26 = vadd.f32 %v5334_v17, %v4156_v56 }
 0xe08   : > { %v5338_v34 = vpop.eup %5337 }
 0xe09   : > { %v4161_v2 = vsel %vm4160_vm15, %v5334_v17, %v4157_v26  ;;  %v4169_v49 = vmul.f32 %v5338_v34, %v4152_v59  ;;  %v5340_v3 = vpop.eup %5339  ;;  %vm4174_vm14 = vweird.f32 %v5338_v34 }
 0xe0a   : > { %v4166_v30 = vsel %vm4163_vm2, %v4165_v40, %v4161_v2  ;;  %vm4175_vm11 = vmor %vm4173_vm0, %vm4174_vm14 }
 0xe0b   : > { %v4191_v43 = vmul.f32 %v5340_v3, %v4166_v30  ;;  %v4170_v35 = vsub.f32 1.0, %v4169_v49 }
 0xe0c   : > { %v5342_v5 = vpop.eup %5341 }
 0xe0d   : > { %v4197_v21 = vsel %vm7618_vm12, %v4191_v43, 0.0  ;;  %v4171_v22 = vmul.f32 %v5338_v34, %v4170_v35 }
 0xe0e   : > { %4199 = vst [vmem:[%s5584_s8] sm:$0xff] %v4197_v21 }
 0xe0f   : > { %v4172_v53 = vadd.f32 %v5338_v34, %v4171_v22 }
 0xe11   : > { %v4176_v24 = vsel %vm4175_vm11, %v5338_v34, %v4172_v53 }
 0xe12   : > { %v4181_v54 = vsel %vm4178_vm6, %v4180_v4, %v4176_v24 }
 0xe13   : > { %v4192_v6 = vmul.f32 %v5342_v5, %v4181_v54 }
 0xe15   : > { %v4198_v51 = vsel %vm7618_vm12, %v4192_v6, 0.0 }
 0xe16   : > { %4200 = vst [vmem:[%s5584_s8 + $0x8] sm:$0xff] %v4198_v51 }
 0xe17 PF: > { %s4763_s15 = sshll.u32 %s5413_s21, 7  ;;  %s4215_s25 = sshll.u32 %s5584_s8, 4  ;;  %s4216_s25 = int_to_ptr.vmem [resolvable:$true] %s4215_s25 }
 0xe18   : > { %s4214_s24 = scalar_lea.hbm %s7672_s5, %s4763_s15  ;;  %s4202_s29 = scalar_lea.sflag [#allocation3], %s283_s7 }
 0xe19   : > { %s4217_s27 = sshll.u32 %s4214_s24, 4  ;;  %s5363_s21 = scalar_lea.hbm %s7672_s5, 256  ;;  %s4218_s27 = int_to_ptr.hbm [resolvable:$true] %s4217_s27 }
 0xe1a   : > { %s5357_s9 = sshra.s32 %s4218_s27, 4  ;;  %s5358_s9 = int_to_ptr.hbm [resolvable:$true] %s5357_s9 }
 0xe1b   : > { %s5359_s11 = scalar_lea.hbm %s5358_s9, 128  ;;  %p5364_p3 = scmp.lt.s32.totalorder %s5358_s9, %s7672_s5 }
 0xe1c   : > { %p5360_p0 = scmp.ne.s32.totalorder %s5358_s9, %s5359_s11  ;;  %p5365_p5 = scmp.lt.s32.totalorder %s5363_s21, %s5359_s11 }
 0xe1e   : > { %p5361_p1 = pnand %p5360_p0, %p5499_p4  ;;  %p5366_p6 = por %p5365_p5, %p5364_p3 }
 0xe20   : > { %p5362_p2 = pneg %p5361_p1 }
 0xe22   : > { %p5367_p7 = pnand %p5366_p6, %p5362_p2 }
 0xe24   : > { %5370 = shalt.err (!%p5367_p7)
}
 0xe25   : > { %s5427_s7 = smov 128   ;;  %s5428_s8 = smov 8  }
 0xe26   : > { %4764 = dma.vmem_to_hbm [thread:$0]  (%p5499_p4), %s4216_s25, 2048, %s4218_s27, %s4202_s29, %s5427_s7, %s5427_s7, %s5428_s8  }
 0xe27 PF: > { %p4770_p9 = scmp.ge.s32.totalorder %s5421_s23, 2  ;;  %s4232_s15 = sand.u32 1, %s5401_s18  }
 0xe28   : > { %s4233_s16 = scalar_lea.sflag [#allocation3], %s4232_s15 }
 0xe29   : > { %p4767_p10 = pnand %p4770_p9, %p5506_p8 }
 0xe2b   : > { %p4768_p11 = pneg %p4767_p10 }
 0xe2d   : > { %5396 = dma.done.wait (%p4768_p11), %s4233_s16, 2048  }
 0xe2e   : > { %5398 = vsyncadd (%p4768_p11), %s4233_s16, 4294965248  ;;  %s18_s23 = sadd.s32 1, %s5421_s23   ;;  %s7785_s18 = smov %s5405_s19 }
 0xe2f   : > { %p15_p12 = scmp.ge.s32.totalorder %s18_s23, 4   ;;  %s7786_s19 = smov %s5409_s20 }
 0xe30   : > { %s7787_s20 = smov %s5512_s6  ;;  %s7788_s21 = smov %s5417_s22 }
 0xe31   : > { %s7789_s22 = smov %s7791_s26  ;;  %17 = sbr.rel (!%p15_p12) target bundleno = 4 (0x4), region = 123 }
 0xe36   :  { %4239 = vsyncpa [#allocation3], 1 }
 0xe37   :  { %4241 = vsyncpa [#allocation3 + $0x1], 1 }

</bundles_post_ra>
